<compile_context>
chip_gen: v6e
topology: v6e:2x2x1
jax: 0.10.0
libtpu: 0.0.40
codegen_flags: <defaults>
</compile_context>

<pallas_src>
import jax
import jax.numpy as jnp
import numpy as np
from jax.experimental import pallas as pl
from jax.experimental.pallas import tpu as pltpu

_BN_EPS = 1e-5
_LANE = 128          # output / contraction channels padded to this (lane dim)
_PITCH_ALIGN = 16    # flattened row-pitch alignment (sublane packing, bf16-safe)

_TAPS = tuple((kh, kw) for kh in range(3) for kw in range(3))


def _round_up(x, m):
    return (x + m - 1) // m * m


def _fold_bn(bn, conv_bias):
    scale = bn["gamma"] * jax.lax.rsqrt(bn["var"] + _BN_EPS)
    shift = (conv_bias - bn["mean"]) * scale + bn["beta"]
    return scale, shift


# ------------------------------ Pallas kernel ------------------------------- #

def _make_block_kernel(*, s0, hneed, pitch, mrows, top, bot, cp, sc_off):
    """Fused conv1+bn1+relu -> conv2+bn2 + 1x1-shortcut+bn + residual + relu.

    One grid step = one image.  All activation slices are unit-stride row
    windows of flattened (row pitch = `pitch`) buffers; offsets are static.
    """

    def kernel(ph_ref, w1_ref, w2_ref, wsc_ref, sh1_ref, sh2_ref, mask_ref,
               o_ref, h1pad_ref):
        # Zero the scratch margins (top/bottom rings of the zero-padded h1).
        # Done every step: cheap, and safe under megacore grid sharding.
        h1pad_ref[pl.ds(0, top), :] = jnp.zeros((top, cp), jnp.float32)
        h1pad_ref[pl.ds(top + mrows, bot), :] = jnp.zeros((bot, cp), jnp.float32)

        # ---- conv1 (+ folded bn1) as 9 shifted dots over stride phases. ----
        acc1 = jnp.zeros((mrows, cp), jnp.float32)
        for t, (kh, kw) in enumerate(_TAPS):
            phase = (kh % s0) * s0 + (kw % s0)
            off = phase * hneed * pitch + (kh // s0) * pitch + (kw // s0)
            lhs = ph_ref[0, pl.ds(off, mrows), :].astype(jnp.bfloat16)
            acc1 = acc1 + jnp.dot(lhs, w1_ref[t],
                                  preferred_element_type=jnp.float32)
        # bn1 shift + relu; zero the ragged right-pad columns so they act as
        # the zero padding of conv2; keep the result resident in VMEM.
        h1 = jnp.maximum(acc1 + sh1_ref[...], 0.0) * mask_ref[...]
        h1pad_ref[pl.ds(top, mrows), :] = h1

        # ---- conv2 (+ folded bn2) + 1x1 shortcut (+ folded bn) + residual. --
        acc2 = jnp.zeros((mrows, cp), jnp.float32)
        for t, (kh, kw) in enumerate(_TAPS):
            off = top - pitch - 1 + kh * pitch + kw
            lhs = h1pad_ref[pl.ds(off, mrows), :].astype(jnp.bfloat16)
            acc2 = acc2 + jnp.dot(lhs, w2_ref[t],
                                  preferred_element_type=jnp.float32)
        xs = ph_ref[0, pl.ds(sc_off, mrows), :].astype(jnp.bfloat16)
        acc2 = acc2 + jnp.dot(xs, wsc_ref[...],
                              preferred_element_type=jnp.float32)
        o_ref[0] = jnp.maximum(acc2 + sh2_ref[...], 0.0).astype(o_ref.dtype)

    return kernel


def _fused_block_call(kernel, inputs, *, batch, nph_rows, cin_p, mrows, cp,
                      scr_rows, flops, bytes_accessed, vmem_limit,
                      single_buffer):
    def const_spec(shape):
        # Grid-invariant operands (weights / shifts / mask).
        if single_buffer:
            return pl.BlockSpec(shape, lambda b: (0,) * len(shape),
                                pipeline_mode=pl.Buffered(1))
        return pl.BlockSpec(shape, lambda b: (0,) * len(shape))

    return pl.pallas_call(
        kernel,
        out_shape=jax.ShapeDtypeStruct((batch, mrows, cp), jnp.bfloat16),
        grid=(batch,),
        in_specs=[
            pl.BlockSpec((1, nph_rows, cin_p), lambda b: (b, 0, 0)),
            const_spec((9, cin_p, cp)),
            const_spec((9, cp, cp)),
            const_spec((cin_p, cp)),
            const_spec((1, cp)),
            const_spec((1, cp)),
            const_spec((mrows, 1)),
        ],
        out_specs=pl.BlockSpec((1, mrows, cp), lambda b: (b, 0, 0)),
        scratch_shapes=[pltpu.VMEM((scr_rows, cp), jnp.float32)],
        compiler_params=pltpu.CompilerParams(
            dimension_semantics=("parallel",),
            vmem_limit_bytes=vmem_limit),
        cost_estimate=pl.CostEstimate(
            flops=flops, transcendentals=0, bytes_accessed=bytes_accessed),
    )(*inputs)


# -------------------------------- JAX wrapper -------------------------------- #

def init_params(key, in_channels, out_channels):
    ks = jax.random.split(key, 6)
    params = {
        "w1": 0.1 * jax.random.normal(ks[0], (out_channels, in_channels, 3, 3), jnp.float32),
        "b1": 0.05 * jax.random.normal(ks[1], (out_channels,), jnp.float32),
        "w2": 0.1 * jax.random.normal(ks[2], (out_channels, out_channels, 3, 3), jnp.float32),
        "b2": 0.05 * jax.random.normal(ks[3], (out_channels,), jnp.float32),
        "wsc": 0.1 * jax.random.normal(ks[4], (out_channels, in_channels, 1, 1), jnp.float32),
        "bsc": 0.05 * jax.random.normal(ks[5], (out_channels,), jnp.float32),
    }
    for name in ("bn1", "bn2", "bnsc"):  # PyTorch BatchNorm2d init defaults
        params[name] = {
            "gamma": jnp.ones((out_channels,), jnp.float32),
            "beta": jnp.zeros((out_channels,), jnp.float32),
            "mean": jnp.zeros((out_channels,), jnp.float32),
            "var": jnp.ones((out_channels,), jnp.float32),
        }
    return params


def restnet_down_block(x_nchw, params, stride):
    """Forward pass of RestNetDownBlock (NCHW in/out, like the PyTorch module)."""
    s0, s1 = stride
    assert s1 == 1, "RestNetDownBlock: residual add requires stride[1] == 1"

    x = jnp.transpose(x_nchw, (0, 2, 3, 1)).astype(jnp.float32)     # -> NHWC
    B, H, W, cin = x.shape
    cout = params["w1"].shape[0]
    cp = _round_up(cout, _LANE)
    cin_p = _round_up(cin, _LANE)

    # Output geometry (floor((H + 2*pad - k)/stride) + 1, pad=1, k=3).
    ho = (H + 2 - 3) // s0 + 1
    wo = (W + 2 - 3) // s0 + 1

    # Common flattened row pitch for phases / h1 scratch / output rows.
    pitch = _round_up(wo + 3, _PITCH_ALIGN)
    dh_max = 2 // s0                       # max kernel-tap offset inside a phase
    hneed = ho + dh_max + 1                # rows kept per stride phase
    mrows = ho * pitch                     # GEMM "M" rows per image
    top = _round_up(pitch + 1, _PITCH_ALIGN)   # zeroed top margin of the scratch
    bot = pitch + _PITCH_ALIGN                 # zeroed bottom margin
    scr_rows = top + mrows + bot
    nph = s0 * s0
    nph_rows = nph * hneed * pitch
    sc_phase = (1 % s0) * s0 + (1 % s0)        # phase holding x[::s0, ::s0]
    sc_off = sc_phase * hneed * pitch + (1 // s0) * pitch + (1 // s0)

    # ---- fold BN into per-channel scale (-> weights) + shift (epilogue). ----
    sc1, sh1 = _fold_bn(params["bn1"], params["b1"])
    sc2, sh2 = _fold_bn(params["bn2"], params["b2"])
    scs, shs = _fold_bn(params["bnsc"], params["bsc"])

    def pad_w(w_khkw_kin_kout, k_in, k_pad):
        return jnp.pad(w_khkw_kin_kout,
                       ((0, 0), (0, 0), (0, k_pad - k_in), (0, cp - cout)))

    w1t = jnp.transpose(params["w1"], (2, 3, 1, 0)) * sc1       # (3,3,cin,cout)
    w1k = pad_w(w1t, cin, cin_p).reshape(9, cin_p, cp).astype(jnp.bfloat16)
    w2t = jnp.transpose(params["w2"], (2, 3, 1, 0)) * sc2       # (3,3,cout,cout)
    w2k = pad_w(w2t, cout, cp).reshape(9, cp, cp).astype(jnp.bfloat16)
    wsck = jnp.pad(params["wsc"][:, :, 0, 0].T * scs,
                   ((0, cin_p - cin), (0, cp - cout))).astype(jnp.bfloat16)
    sh1p = jnp.pad(sh1, (0, cp - cout)).reshape(1, cp).astype(jnp.float32)
    sh2p = jnp.pad(sh2 + shs, (0, cp - cout)).reshape(1, cp).astype(jnp.float32)

    # ---- stride-phase decomposition of the zero-padded input (in XLA), so ----
    # ---- every in-kernel access is a unit-stride row slice.               ----
    xpad = jnp.pad(x, ((0, 0), (1, 1), (1, 1), (0, cin_p - cin)))
    phase_list = []
    for pr in range(s0):
        for pc in range(s0):
            sl = xpad[:, pr::s0, pc::s0, :][:, :hneed, :pitch, :]
            sl = jnp.pad(sl, ((0, 0), (0, hneed - sl.shape[1]),
                              (0, pitch - sl.shape[2]), (0, 0)))
            phase_list.append(sl.reshape(B, hneed * pitch, cin_p))
    phases = jnp.concatenate(phase_list, axis=1)          # (B, nph_rows, cin_p)

    # Mask zeroing the ragged right-pad columns of each output row.
    col_mask = (jnp.arange(pitch) < wo).astype(jnp.float32)
    col_mask = jnp.tile(col_mask, (ho,)).reshape(mrows, 1)

    kernel = _make_block_kernel(s0=s0, hneed=hneed, pitch=pitch, mrows=mrows,
                                top=top, bot=bot, cp=cp, sc_off=sc_off)

    flops = 2 * B * mrows * cp * (9 * cin_p + 9 * cp + cin_p)
    bytes_accessed = int(phases.size * 4
                         + (w1k.size + w2k.size + wsck.size) * 2
                         + (sh1p.size + sh2p.size + col_mask.size) * 4
                         + B * mrows * cp * 2)
    need = (2 * nph_rows * cin_p * 4
            + 2 * (w1k.size + w2k.size + wsck.size) * 2
            + 2 * mrows * cp * 2
            + scr_rows * cp * 4)
    vmem_limit = int(min(60 * 1024 * 1024, 2 * need + (16 << 20)))

    inputs = (phases, w1k, w2k, wsck, sh1p, sh2p, col_mask)
    kwargs = dict(batch=B, nph_rows=nph_rows, cin_p=cin_p, mrows=mrows, cp=cp,
                  scr_rows=scr_rows, flops=flops, bytes_accessed=bytes_accessed,
                  vmem_limit=vmem_limit)
    try:
        out_flat = _fused_block_call(kernel, inputs, single_buffer=True, **kwargs)
        out_flat = jax.block_until_ready(out_flat)
    except Exception:
        # pipeline_mode=pl.Buffered(1) unsupported on this JAX build: fall back
        # to default double buffering (identical results, slightly more VMEM).
        out_flat = _fused_block_call(kernel, inputs, single_buffer=False, **kwargs)

    out = out_flat.reshape(B, ho, pitch, cp)[:, :, :wo, :cout]
    out = jnp.transpose(out, (0, 3, 1, 2)).astype(jnp.float32)   # -> NCHW
    return out


# --------------------------- pure-JAX reference ------------------------------ #

def _reference(x_nchw, params, stride):
    def conv(x, w, b, s, pad):
        y = jax.lax.conv_general_dilated(
            x, w, window_strides=(s, s), padding=[(pad, pad), (pad, pad)],
            dimension_numbers=("NCHW", "OIHW", "NCHW"))
        return y + b.reshape(1, -1, 1, 1)

    def bn(x, p):
        r = lambda a: a.reshape(1, -1, 1, 1)
        return (x - r(p["mean"])) / jnp.sqrt(r(p["var"]) + _BN_EPS) * r(p["gamma"]) + r(p["beta"])

    extra = bn(conv(x_nchw, params["wsc"], params["bsc"], stride[0], 0), params["bnsc"])
    h = jax.nn.relu(bn(conv(x_nchw, params["w1"], params["b1"], stride[0], 1), params["bn1"]))
    out = bn(conv(h, params["w2"], params["b2"], stride[1], 1), params["bn2"])
    return jax.nn.relu(extra + out)


# ------------------------------------ main ----------------------------------- #

if __name__ == "__main__":
    key = jax.random.PRNGKey(0)
    k_x, k_p = jax.random.split(key)

    B, CIN, COUT, H, W = 2, 4, 8, 16, 16
    STRIDE = (2, 1)

    x = jax.random.normal(k_x, (B, CIN, H, W), jnp.float32)
    params = init_params(k_p, CIN, COUT)

    out = restnet_down_block(x, params, STRIDE)
    out = jax.block_until_ready(out)

    ref = jax.block_until_ready(_reference(x, params, STRIDE))
    # Tolerance accommodates bf16 MXU inputs (f32 accumulation / epilogue)
    # and the bf16 kernel output.
    np.testing.assert_allclose(np.asarray(out), np.asarray(ref), atol=3e-2, rtol=3e-2)

    print("KERNEL_OK")
</pallas_src>

<mosaic_0001>
module attributes {stable_mosaic.version = 11 : i64} {
  func.func @kernel(%arg0: i32, %arg1: memref<1x640x128xf32, #tpu.memory_space<vmem>>, %arg2: memref<9x128x128xbf16, #tpu.memory_space<vmem>>, %arg3: memref<9x128x128xbf16, #tpu.memory_space<vmem>>, %arg4: memref<128x128xbf16, #tpu.memory_space<vmem>>, %arg5: memref<1x128xf32, #tpu.memory_space<vmem>>, %arg6: memref<1x128xf32, #tpu.memory_space<vmem>>, %arg7: memref<128x1xf32, #tpu.memory_space<vmem>>, %arg8: memref<1x128x128xbf16, #tpu.memory_space<vmem>>, %arg9: memref<192x128xf32, #tpu.memory_space<vmem>>) attributes {dimension_semantics = [#tpu.dimension_semantics<parallel>], iteration_bounds = array<i64: 2>, scalar_prefetch = 0 : i64, scratch_operands = 1 : i64, tpu.core_type = #tpu.core_type<tc>, window_params = [{transform_indices = @transform_0, window_bounds = array<i64: 1, 640, 128>}, {pipeline_mode = #tpu.pipeline_mode<synchronous>, transform_indices = @transform_1, window_bounds = array<i64: 9, 128, 128>}, {pipeline_mode = #tpu.pipeline_mode<synchronous>, transform_indices = @transform_2, window_bounds = array<i64: 9, 128, 128>}, {pipeline_mode = #tpu.pipeline_mode<synchronous>, transform_indices = @transform_3, window_bounds = array<i64: 128, 128>}, {pipeline_mode = #tpu.pipeline_mode<synchronous>, transform_indices = @transform_4, window_bounds = array<i64: 1, 128>}, {pipeline_mode = #tpu.pipeline_mode<synchronous>, transform_indices = @transform_5, window_bounds = array<i64: 1, 128>}, {pipeline_mode = #tpu.pipeline_mode<synchronous>, transform_indices = @transform_6, window_bounds = array<i64: 128, 1>}, {transform_indices = @transform_7, window_bounds = array<i64: 1, 128, 128>}]} {
    %cst = arith.constant 0.000000e+00 : f32
    %0 = vector.broadcast %cst : f32 to vector<32x128xf32>
    %c0 = arith.constant 0 : index
    %c0_0 = arith.constant 0 : index
    %1 = vector.load %arg9[%c0, %c0_0] : memref<192x128xf32, #tpu.memory_space<vmem>>, vector<32x128xf32>
    tpu.vector_store %arg9[%c0, %c0_0], %0 {strides = array<i32>} : memref<192x128xf32, #tpu.memory_space<vmem>>, vector<32x128xf32>,
    %cst_1 = arith.constant 0.000000e+00 : f32
    %2 = vector.broadcast %cst_1 : f32 to vector<32x128xf32>
    %c160 = arith.constant 160 : index
    %c0_2 = arith.constant 0 : index
    %3 = vector.load %arg9[%c160, %c0_2] : memref<192x128xf32, #tpu.memory_space<vmem>>, vector<32x128xf32>
    tpu.vector_store %arg9[%c160, %c0_2], %2 {strides = array<i32>} : memref<192x128xf32, #tpu.memory_space<vmem>>, vector<32x128xf32>,
    %cst_3 = arith.constant 0.000000e+00 : f32
    %4 = vector.broadcast %cst_3 : f32 to vector<128x128xf32>
    %c0_4 = arith.constant 0 : index
    %c0_5 = arith.constant 0 : index
    %c0_6 = arith.constant 0 : index
    %5 = vector.load %arg1[%c0_4, %c0_5, %c0_6] : memref<1x640x128xf32, #tpu.memory_space<vmem>>, vector<1x128x128xf32>
    %6 = vector.shape_cast %5 : vector<1x128x128xf32> to vector<128x128xf32>
    %7 = arith.truncf %6 : vector<128x128xf32> to vector<128x128xbf16>
    %c0_7 = arith.constant 0 : index
    %c0_8 = arith.constant 0 : index
    %c0_9 = arith.constant 0 : index
    %8 = vector.load %arg2[%c0_7, %c0_8, %c0_9] : memref<9x128x128xbf16, #tpu.memory_space<vmem>>, vector<1x128x128xbf16>
    %9 = vector.shape_cast %8 : vector<1x128x128xbf16> to vector<128x128xbf16>
    %cst_10 = arith.constant dense<0.000000e+00> : vector<128x128xf32>
    %10 = tpu.matmul %7, %9, %cst_10 {dimension_numbers = #tpu.dot_dimension_numbers<[1], [0], [0], [1], [0, 0, 1, 1], [], []>} : vector<128x128xbf16>, vector<128x128xbf16>, vector<128x128xf32> -> vector<128x128xf32>
    %11 = arith.addf %4, %10 : vector<128x128xf32>
    %c0_11 = arith.constant 0 : index
    %c160_12 = arith.constant 160 : index
    %c0_13 = arith.constant 0 : index
    %12 = vector.load %arg1[%c0_11, %c160_12, %c0_13] : memref<1x640x128xf32, #tpu.memory_space<vmem>>, vector<1x128x128xf32>
    %13 = vector.shape_cast %12 : vector<1x128x128xf32> to vector<128x128xf32>
    %14 = arith.truncf %13 : vector<128x128xf32> to vector<128x128xbf16>
    %c1 = arith.constant 1 : index
    %c0_14 = arith.constant 0 : index
    %c0_15 = arith.constant 0 : index
    %15 = vector.load %arg2[%c1, %c0_14, %c0_15] : memref<9x128x128xbf16, #tpu.memory_space<vmem>>, vector<1x128x128xbf16>
    %16 = vector.shape_cast %15 : vector<1x128x128xbf16> to vector<128x128xbf16>
    %cst_16 = arith.constant dense<0.000000e+00> : vector<128x128xf32>
    %17 = tpu.matmul %14, %16, %cst_16 {dimension_numbers = #tpu.dot_dimension_numbers<[1], [0], [0], [1], [0, 0, 1, 1], [], []>} : vector<128x128xbf16>, vector<128x128xbf16>, vector<128x128xf32> -> vector<128x128xf32>
    %18 = arith.addf %11, %17 : vector<128x128xf32>
    %c0_17 = arith.constant 0 : index
    %c1_18 = arith.constant 1 : index
    %c0_19 = arith.constant 0 : index
    %19 = vector.load %arg1[%c0_17, %c1_18, %c0_19] : memref<1x640x128xf32, #tpu.memory_space<vmem>>, vector<1x128x128xf32>
    %20 = vector.shape_cast %19 : vector<1x128x128xf32> to vector<128x128xf32>
    %21 = arith.truncf %20 : vector<128x128xf32> to vector<128x128xbf16>
    %c2 = arith.constant 2 : index
    %c0_20 = arith.constant 0 : index
    %c0_21 = arith.constant 0 : index
    %22 = vector.load %arg2[%c2, %c0_20, %c0_21] : memref<9x128x128xbf16, #tpu.memory_space<vmem>>, vector<1x128x128xbf16>
    %23 = vector.shape_cast %22 : vector<1x128x128xbf16> to vector<128x128xbf16>
    %cst_22 = arith.constant dense<0.000000e+00> : vector<128x128xf32>
    %24 = tpu.matmul %21, %23, %cst_22 {dimension_numbers = #tpu.dot_dimension_numbers<[1], [0], [0], [1], [0, 0, 1, 1], [], []>} : vector<128x128xbf16>, vector<128x128xbf16>, vector<128x128xf32> -> vector<128x128xf32>
    %25 = arith.addf %18, %24 : vector<128x128xf32>
    %c0_23 = arith.constant 0 : index
    %c320 = arith.constant 320 : index
    %c0_24 = arith.constant 0 : index
    %26 = vector.load %arg1[%c0_23, %c320, %c0_24] : memref<1x640x128xf32, #tpu.memory_space<vmem>>, vector<1x128x128xf32>
    %27 = vector.shape_cast %26 : vector<1x128x128xf32> to vector<128x128xf32>
    %28 = arith.truncf %27 : vector<128x128xf32> to vector<128x128xbf16>
    %c3 = arith.constant 3 : index
    %c0_25 = arith.constant 0 : index
    %c0_26 = arith.constant 0 : index
    %29 = vector.load %arg2[%c3, %c0_25, %c0_26] : memref<9x128x128xbf16, #tpu.memory_space<vmem>>, vector<1x128x128xbf16>
    %30 = vector.shape_cast %29 : vector<1x128x128xbf16> to vector<128x128xbf16>
    %cst_27 = arith.constant dense<0.000000e+00> : vector<128x128xf32>
    %31 = tpu.matmul %28, %30, %cst_27 {dimension_numbers = #tpu.dot_dimension_numbers<[1], [0], [0], [1], [0, 0, 1, 1], [], []>} : vector<128x128xbf16>, vector<128x128xbf16>, vector<128x128xf32> -> vector<128x128xf32>
    %32 = arith.addf %25, %31 : vector<128x128xf32>
    %c0_28 = arith.constant 0 : index
    %c480 = arith.constant 480 : index
    %c0_29 = arith.constant 0 : index
    %33 = vector.load %arg1[%c0_28, %c480, %c0_29] : memref<1x640x128xf32, #tpu.memory_space<vmem>>, vector<1x128x128xf32>
    %34 = vector.shape_cast %33 : vector<1x128x128xf32> to vector<128x128xf32>
    %35 = arith.truncf %34 : vector<128x128xf32> to vector<128x128xbf16>
    %c4 = arith.constant 4 : index
    %c0_30 = arith.constant 0 : index
    %c0_31 = arith.constant 0 : index
    %36 = vector.load %arg2[%c4, %c0_30, %c0_31] : memref<9x128x128xbf16, #tpu.memory_space<vmem>>, vector<1x128x128xbf16>
    %37 = vector.shape_cast %36 : vector<1x128x128xbf16> to vector<128x128xbf16>
    %cst_32 = arith.constant dense<0.000000e+00> : vector<128x128xf32>
    %38 = tpu.matmul %35, %37, %cst_32 {dimension_numbers = #tpu.dot_dimension_numbers<[1], [0], [0], [1], [0, 0, 1, 1], [], []>} : vector<128x128xbf16>, vector<128x128xbf16>, vector<128x128xf32> -> vector<128x128xf32>
    %39 = arith.addf %32, %38 : vector<128x128xf32>
    %c0_33 = arith.constant 0 : index
    %c321 = arith.constant 321 : index
    %c0_34 = arith.constant 0 : index
    %40 = vector.load %arg1[%c0_33, %c321, %c0_34] : memref<1x640x128xf32, #tpu.memory_space<vmem>>, vector<1x128x128xf32>
    %41 = vector.shape_cast %40 : vector<1x128x128xf32> to vector<128x128xf32>
    %42 = arith.truncf %41 : vector<128x128xf32> to vector<128x128xbf16>
    %c5 = arith.constant 5 : index
    %c0_35 = arith.constant 0 : index
    %c0_36 = arith.constant 0 : index
    %43 = vector.load %arg2[%c5, %c0_35, %c0_36] : memref<9x128x128xbf16, #tpu.memory_space<vmem>>, vector<1x128x128xbf16>
    %44 = vector.shape_cast %43 : vector<1x128x128xbf16> to vector<128x128xbf16>
    %cst_37 = arith.constant dense<0.000000e+00> : vector<128x128xf32>
    %45 = tpu.matmul %42, %44, %cst_37 {dimension_numbers = #tpu.dot_dimension_numbers<[1], [0], [0], [1], [0, 0, 1, 1], [], []>} : vector<128x128xbf16>, vector<128x128xbf16>, vector<128x128xf32> -> vector<128x128xf32>
    %46 = arith.addf %39, %45 : vector<128x128xf32>
    %c0_38 = arith.constant 0 : index
    %c16 = arith.constant 16 : index
    %c0_39 = arith.constant 0 : index
    %47 = vector.load %arg1[%c0_38, %c16, %c0_39] : memref<1x640x128xf32, #tpu.memory_space<vmem>>, vector<1x128x128xf32>
    %48 = vector.shape_cast %47 : vector<1x128x128xf32> to vector<128x128xf32>
    %49 = arith.truncf %48 : vector<128x128xf32> to vector<128x128xbf16>
    %c6 = arith.constant 6 : index
    %c0_40 = arith.constant 0 : index
    %c0_41 = arith.constant 0 : index
    %50 = vector.load %arg2[%c6, %c0_40, %c0_41] : memref<9x128x128xbf16, #tpu.memory_space<vmem>>, vector<1x128x128xbf16>
    %51 = vector.shape_cast %50 : vector<1x128x128xbf16> to vector<128x128xbf16>
    %cst_42 = arith.constant dense<0.000000e+00> : vector<128x128xf32>
    %52 = tpu.matmul %49, %51, %cst_42 {dimension_numbers = #tpu.dot_dimension_numbers<[1], [0], [0], [1], [0, 0, 1, 1], [], []>} : vector<128x128xbf16>, vector<128x128xbf16>, vector<128x128xf32> -> vector<128x128xf32>
    %53 = arith.addf %46, %52 : vector<128x128xf32>
    %c0_43 = arith.constant 0 : index
    %c176 = arith.constant 176 : index
    %c0_44 = arith.constant 0 : index
    %54 = vector.load %arg1[%c0_43, %c176, %c0_44] : memref<1x640x128xf32, #tpu.memory_space<vmem>>, vector<1x128x128xf32>
    %55 = vector.shape_cast %54 : vector<1x128x128xf32> to vector<128x128xf32>
    %56 = arith.truncf %55 : vector<128x128xf32> to vector<128x128xbf16>
    %c7 = arith.constant 7 : index
    %c0_45 = arith.constant 0 : index
    %c0_46 = arith.constant 0 : index
    %57 = vector.load %arg2[%c7, %c0_45, %c0_46] : memref<9x128x128xbf16, #tpu.memory_space<vmem>>, vector<1x128x128xbf16>
    %58 = vector.shape_cast %57 : vector<1x128x128xbf16> to vector<128x128xbf16>
    %cst_47 = arith.constant dense<0.000000e+00> : vector<128x128xf32>
    %59 = tpu.matmul %56, %58, %cst_47 {dimension_numbers = #tpu.dot_dimension_numbers<[1], [0], [0], [1], [0, 0, 1, 1], [], []>} : vector<128x128xbf16>, vector<128x128xbf16>, vector<128x128xf32> -> vector<128x128xf32>
    %60 = arith.addf %53, %59 : vector<128x128xf32>
    %c0_48 = arith.constant 0 : index
    %c17 = arith.constant 17 : index
    %c0_49 = arith.constant 0 : index
    %61 = vector.load %arg1[%c0_48, %c17, %c0_49] : memref<1x640x128xf32, #tpu.memory_space<vmem>>, vector<1x128x128xf32>
    %62 = vector.shape_cast %61 : vector<1x128x128xf32> to vector<128x128xf32>
    %63 = arith.truncf %62 : vector<128x128xf32> to vector<128x128xbf16>
    %c8 = arith.constant 8 : index
    %c0_50 = arith.constant 0 : index
    %c0_51 = arith.constant 0 : index
    %64 = vector.load %arg2[%c8, %c0_50, %c0_51] : memref<9x128x128xbf16, #tpu.memory_space<vmem>>, vector<1x128x128xbf16>
    %65 = vector.shape_cast %64 : vector<1x128x128xbf16> to vector<128x128xbf16>
    %cst_52 = arith.constant dense<0.000000e+00> : vector<128x128xf32>
    %66 = tpu.matmul %63, %65, %cst_52 {dimension_numbers = #tpu.dot_dimension_numbers<[1], [0], [0], [1], [0, 0, 1, 1], [], []>} : vector<128x128xbf16>, vector<128x128xbf16>, vector<128x128xf32> -> vector<128x128xf32>
    %67 = arith.addf %60, %66 : vector<128x128xf32>
    %c0_53 = arith.constant 0 : index
    %c0_54 = arith.constant 0 : index
    %68 = vector.load %arg5[%c0_53, %c0_54] : memref<1x128xf32, #tpu.memory_space<vmem>>, vector<1x128xf32>
    %69 = vector.broadcast %68 : vector<1x128xf32> to vector<128x128xf32>
    %70 = arith.addf %67, %69 : vector<128x128xf32>
    %cst_55 = arith.constant 0.000000e+00 : f32
    %71 = vector.broadcast %cst_55 : f32 to vector<128x128xf32>
    %72 = arith.maximumf %70, %71 : vector<128x128xf32>
    %c0_56 = arith.constant 0 : index
    %c0_57 = arith.constant 0 : index
    %73 = vector.load %arg7[%c0_56, %c0_57] : memref<128x1xf32, #tpu.memory_space<vmem>>, vector<128x1xf32>
    %74 = vector.broadcast %73 : vector<128x1xf32> to vector<128x128xf32>
    %75 = arith.mulf %72, %74 : vector<128x128xf32>
    %c32 = arith.constant 32 : index
    %c0_58 = arith.constant 0 : index
    %76 = vector.load %arg9[%c32, %c0_58] : memref<192x128xf32, #tpu.memory_space<vmem>>, vector<128x128xf32>
    tpu.vector_store %arg9[%c32, %c0_58], %75 {strides = array<i32>} : memref<192x128xf32, #tpu.memory_space<vmem>>, vector<128x128xf32>,
    %cst_59 = arith.constant 0.000000e+00 : f32
    %77 = vector.broadcast %cst_59 : f32 to vector<128x128xf32>
    %c15 = arith.constant 15 : index
    %c0_60 = arith.constant 0 : index
    %78 = vector.load %arg9[%c15, %c0_60] : memref<192x128xf32, #tpu.memory_space<vmem>>, vector<128x128xf32>
    %79 = arith.truncf %78 : vector<128x128xf32> to vector<128x128xbf16>
    %c0_61 = arith.constant 0 : index
    %c0_62 = arith.constant 0 : index
    %c0_63 = arith.constant 0 : index
    %80 = vector.load %arg3[%c0_61, %c0_62, %c0_63] : memref<9x128x128xbf16, #tpu.memory_space<vmem>>, vector<1x128x128xbf16>
    %81 = vector.shape_cast %80 : vector<1x128x128xbf16> to vector<128x128xbf16>
    %cst_64 = arith.constant dense<0.000000e+00> : vector<128x128xf32>
    %82 = tpu.matmul %79, %81, %cst_64 {dimension_numbers = #tpu.dot_dimension_numbers<[1], [0], [0], [1], [0, 0, 1, 1], [], []>} : vector<128x128xbf16>, vector<128x128xbf16>, vector<128x128xf32> -> vector<128x128xf32>
    %83 = arith.addf %77, %82 : vector<128x128xf32>
    %c16_65 = arith.constant 16 : index
    %c0_66 = arith.constant 0 : index
    %84 = vector.load %arg9[%c16_65, %c0_66] : memref<192x128xf32, #tpu.memory_space<vmem>>, vector<128x128xf32>
    %85 = arith.truncf %84 : vector<128x128xf32> to vector<128x128xbf16>
    %c1_67 = arith.constant 1 : index
    %c0_68 = arith.constant 0 : index
    %c0_69 = arith.constant 0 : index
    %86 = vector.load %arg3[%c1_67, %c0_68, %c0_69] : memref<9x128x128xbf16, #tpu.memory_space<vmem>>, vector<1x128x128xbf16>
    %87 = vector.shape_cast %86 : vector<1x128x128xbf16> to vector<128x128xbf16>
    %cst_70 = arith.constant dense<0.000000e+00> : vector<128x128xf32>
    %88 = tpu.matmul %85, %87, %cst_70 {dimension_numbers = #tpu.dot_dimension_numbers<[1], [0], [0], [1], [0, 0, 1, 1], [], []>} : vector<128x128xbf16>, vector<128x128xbf16>, vector<128x128xf32> -> vector<128x128xf32>
    %89 = arith.addf %83, %88 : vector<128x128xf32>
    %c17_71 = arith.constant 17 : index
    %c0_72 = arith.constant 0 : index
    %90 = vector.load %arg9[%c17_71, %c0_72] : memref<192x128xf32, #tpu.memory_space<vmem>>, vector<128x128xf32>
    %91 = arith.truncf %90 : vector<128x128xf32> to vector<128x128xbf16>
    %c2_73 = arith.constant 2 : index
    %c0_74 = arith.constant 0 : index
    %c0_75 = arith.constant 0 : index
    %92 = vector.load %arg3[%c2_73, %c0_74, %c0_75] : memref<9x128x128xbf16, #tpu.memory_space<vmem>>, vector<1x128x128xbf16>
    %93 = vector.shape_cast %92 : vector<1x128x128xbf16> to vector<128x128xbf16>
    %cst_76 = arith.constant dense<0.000000e+00> : vector<128x128xf32>
    %94 = tpu.matmul %91, %93, %cst_76 {dimension_numbers = #tpu.dot_dimension_numbers<[1], [0], [0], [1], [0, 0, 1, 1], [], []>} : vector<128x128xbf16>, vector<128x128xbf16>, vector<128x128xf32> -> vector<128x128xf32>
    %95 = arith.addf %89, %94 : vector<128x128xf32>
    %c31 = arith.constant 31 : index
    %c0_77 = arith.constant 0 : index
    %96 = vector.load %arg9[%c31, %c0_77] : memref<192x128xf32, #tpu.memory_space<vmem>>, vector<128x128xf32>
    %97 = arith.truncf %96 : vector<128x128xf32> to vector<128x128xbf16>
    %c3_78 = arith.constant 3 : index
    %c0_79 = arith.constant 0 : index
    %c0_80 = arith.constant 0 : index
    %98 = vector.load %arg3[%c3_78, %c0_79, %c0_80] : memref<9x128x128xbf16, #tpu.memory_space<vmem>>, vector<1x128x128xbf16>
    %99 = vector.shape_cast %98 : vector<1x128x128xbf16> to vector<128x128xbf16>
    %cst_81 = arith.constant dense<0.000000e+00> : vector<128x128xf32>
    %100 = tpu.matmul %97, %99, %cst_81 {dimension_numbers = #tpu.dot_dimension_numbers<[1], [0], [0], [1], [0, 0, 1, 1], [], []>} : vector<128x128xbf16>, vector<128x128xbf16>, vector<128x128xf32> -> vector<128x128xf32>
    %101 = arith.addf %95, %100 : vector<128x128xf32>
    %c32_82 = arith.constant 32 : index
    %c0_83 = arith.constant 0 : index
    %102 = vector.load %arg9[%c32_82, %c0_83] : memref<192x128xf32, #tpu.memory_space<vmem>>, vector<128x128xf32>
    %103 = arith.truncf %102 : vector<128x128xf32> to vector<128x128xbf16>
    %c4_84 = arith.constant 4 : index
    %c0_85 = arith.constant 0 : index
    %c0_86 = arith.constant 0 : index
    %104 = vector.load %arg3[%c4_84, %c0_85, %c0_86] : memref<9x128x128xbf16, #tpu.memory_space<vmem>>, vector<1x128x128xbf16>
    %105 = vector.shape_cast %104 : vector<1x128x128xbf16> to vector<128x128xbf16>
    %cst_87 = arith.constant dense<0.000000e+00> : vector<128x128xf32>
    %106 = tpu.matmul %103, %105, %cst_87 {dimension_numbers = #tpu.dot_dimension_numbers<[1], [0], [0], [1], [0, 0, 1, 1], [], []>} : vector<128x128xbf16>, vector<128x128xbf16>, vector<128x128xf32> -> vector<128x128xf32>
    %107 = arith.addf %101, %106 : vector<128x128xf32>
    %c33 = arith.constant 33 : index
    %c0_88 = arith.constant 0 : index
    %108 = vector.load %arg9[%c33, %c0_88] : memref<192x128xf32, #tpu.memory_space<vmem>>, vector<128x128xf32>
    %109 = arith.truncf %108 : vector<128x128xf32> to vector<128x128xbf16>
    %c5_89 = arith.constant 5 : index
    %c0_90 = arith.constant 0 : index
    %c0_91 = arith.constant 0 : index
    %110 = vector.load %arg3[%c5_89, %c0_90, %c0_91] : memref<9x128x128xbf16, #tpu.memory_space<vmem>>, vector<1x128x128xbf16>
    %111 = vector.shape_cast %110 : vector<1x128x128xbf16> to vector<128x128xbf16>
    %cst_92 = arith.constant dense<0.000000e+00> : vector<128x128xf32>
    %112 = tpu.matmul %109, %111, %cst_92 {dimension_numbers = #tpu.dot_dimension_numbers<[1], [0], [0], [1], [0, 0, 1, 1], [], []>} : vector<128x128xbf16>, vector<128x128xbf16>, vector<128x128xf32> -> vector<128x128xf32>
    %113 = arith.addf %107, %112 : vector<128x128xf32>
    %c47 = arith.constant 47 : index
    %c0_93 = arith.constant 0 : index
    %114 = vector.load %arg9[%c47, %c0_93] : memref<192x128xf32, #tpu.memory_space<vmem>>, vector<128x128xf32>
    %115 = arith.truncf %114 : vector<128x128xf32> to vector<128x128xbf16>
    %c6_94 = arith.constant 6 : index
    %c0_95 = arith.constant 0 : index
    %c0_96 = arith.constant 0 : index
    %116 = vector.load %arg3[%c6_94, %c0_95, %c0_96] : memref<9x128x128xbf16, #tpu.memory_space<vmem>>, vector<1x128x128xbf16>
    %117 = vector.shape_cast %116 : vector<1x128x128xbf16> to vector<128x128xbf16>
    %cst_97 = arith.constant dense<0.000000e+00> : vector<128x128xf32>
    %118 = tpu.matmul %115, %117, %cst_97 {dimension_numbers = #tpu.dot_dimension_numbers<[1], [0], [0], [1], [0, 0, 1, 1], [], []>} : vector<128x128xbf16>, vector<128x128xbf16>, vector<128x128xf32> -> vector<128x128xf32>
    %119 = arith.addf %113, %118 : vector<128x128xf32>
    %c48 = arith.constant 48 : index
    %c0_98 = arith.constant 0 : index
    %120 = vector.load %arg9[%c48, %c0_98] : memref<192x128xf32, #tpu.memory_space<vmem>>, vector<128x128xf32>
    %121 = arith.truncf %120 : vector<128x128xf32> to vector<128x128xbf16>
    %c7_99 = arith.constant 7 : index
    %c0_100 = arith.constant 0 : index
    %c0_101 = arith.constant 0 : index
    %122 = vector.load %arg3[%c7_99, %c0_100, %c0_101] : memref<9x128x128xbf16, #tpu.memory_space<vmem>>, vector<1x128x128xbf16>
    %123 = vector.shape_cast %122 : vector<1x128x128xbf16> to vector<128x128xbf16>
    %cst_102 = arith.constant dense<0.000000e+00> : vector<128x128xf32>
    %124 = tpu.matmul %121, %123, %cst_102 {dimension_numbers = #tpu.dot_dimension_numbers<[1], [0], [0], [1], [0, 0, 1, 1], [], []>} : vector<128x128xbf16>, vector<128x128xbf16>, vector<128x128xf32> -> vector<128x128xf32>
    %125 = arith.addf %119, %124 : vector<128x128xf32>
    %c49 = arith.constant 49 : index
    %c0_103 = arith.constant 0 : index
    %126 = vector.load %arg9[%c49, %c0_103] : memref<192x128xf32, #tpu.memory_space<vmem>>, vector<128x128xf32>
    %127 = arith.truncf %126 : vector<128x128xf32> to vector<128x128xbf16>
    %c8_104 = arith.constant 8 : index
    %c0_105 = arith.constant 0 : index
    %c0_106 = arith.constant 0 : index
    %128 = vector.load %arg3[%c8_104, %c0_105, %c0_106] : memref<9x128x128xbf16, #tpu.memory_space<vmem>>, vector<1x128x128xbf16>
    %129 = vector.shape_cast %128 : vector<1x128x128xbf16> to vector<128x128xbf16>
    %cst_107 = arith.constant dense<0.000000e+00> : vector<128x128xf32>
    %130 = tpu.matmul %127, %129, %cst_107 {dimension_numbers = #tpu.dot_dimension_numbers<[1], [0], [0], [1], [0, 0, 1, 1], [], []>} : vector<128x128xbf16>, vector<128x128xbf16>, vector<128x128xf32> -> vector<128x128xf32>
    %131 = arith.addf %125, %130 : vector<128x128xf32>
    %c0_108 = arith.constant 0 : index
    %c480_109 = arith.constant 480 : index
    %c0_110 = arith.constant 0 : index
    %132 = vector.load %arg1[%c0_108, %c480_109, %c0_110] : memref<1x640x128xf32, #tpu.memory_space<vmem>>, vector<1x128x128xf32>
    %133 = vector.shape_cast %132 : vector<1x128x128xf32> to vector<128x128xf32>
    %134 = arith.truncf %133 : vector<128x128xf32> to vector<128x128xbf16>
    %c0_111 = arith.constant 0 : index
    %c0_112 = arith.constant 0 : index
    %135 = vector.load %arg4[%c0_111, %c0_112] : memref<128x128xbf16, #tpu.memory_space<vmem>>, vector<128x128xbf16>
    %cst_113 = arith.constant dense<0.000000e+00> : vector<128x128xf32>
    %136 = tpu.matmul %134, %135, %cst_113 {dimension_numbers = #tpu.dot_dimension_numbers<[1], [0], [0], [1], [0, 0, 1, 1], [], []>} : vector<128x128xbf16>, vector<128x128xbf16>, vector<128x128xf32> -> vector<128x128xf32>
    %137 = arith.addf %131, %136 : vector<128x128xf32>
    %c0_114 = arith.constant 0 : index
    %c0_115 = arith.constant 0 : index
    %138 = vector.load %arg6[%c0_114, %c0_115] : memref<1x128xf32, #tpu.memory_space<vmem>>, vector<1x128xf32>
    %139 = vector.broadcast %138 : vector<1x128xf32> to vector<128x128xf32>
    %140 = arith.addf %137, %139 : vector<128x128xf32>
    %cst_116 = arith.constant 0.000000e+00 : f32
    %141 = vector.broadcast %cst_116 : f32 to vector<128x128xf32>
    %142 = arith.maximumf %140, %141 : vector<128x128xf32>
    %143 = arith.truncf %142 : vector<128x128xf32> to vector<128x128xbf16>
    %c0_117 = arith.constant 0 : index
    %c0_118 = arith.constant 0 : index
    %c0_119 = arith.constant 0 : index
    %144 = vector.load %arg8[%c0_117, %c0_118, %c0_119] : memref<1x128x128xbf16, #tpu.memory_space<vmem>>, vector<1x128x128xbf16>
    %145 = vector.shape_cast %144 : vector<1x128x128xbf16> to vector<128x128xbf16>
    %146 = vector.shape_cast %143 : vector<128x128xbf16> to vector<1x128x128xbf16>
    tpu.vector_store %arg8[%c0_117, %c0_118, %c0_119], %146 {strides = array<i32>} : memref<1x128x128xbf16, #tpu.memory_space<vmem>>, vector<1x128x128xbf16>,
    return
  }
  func.func @transform_0(%arg0: i32) -> (i32, i32, i32) {
    %c0_i32 = arith.constant 0 : i32
    %c0_i32_0 = arith.constant 0 : i32
    %c0_i32_1 = arith.constant 0 : i32
    return %arg0, %c0_i32, %c0_i32_0 : i32, i32, i32
  }
  func.func @transform_1(%arg0: i32) -> (i32, i32, i32) {
    %c0_i32 = arith.constant 0 : i32
    %c0_i32_0 = arith.constant 0 : i32
    %c0_i32_1 = arith.constant 0 : i32
    %c0_i32_2 = arith.constant 0 : i32
    return %c0_i32, %c0_i32_0, %c0_i32_1 : i32, i32, i32
  }
  func.func @transform_2(%arg0: i32) -> (i32, i32, i32) {
    %c0_i32 = arith.constant 0 : i32
    %c0_i32_0 = arith.constant 0 : i32
    %c0_i32_1 = arith.constant 0 : i32
    %c0_i32_2 = arith.constant 0 : i32
    return %c0_i32, %c0_i32_0, %c0_i32_1 : i32, i32, i32
  }
  func.func @transform_3(%arg0: i32) -> (i32, i32) {
    %c0_i32 = arith.constant 0 : i32
    %c0_i32_0 = arith.constant 0 : i32
    %c0_i32_1 = arith.constant 0 : i32
    return %c0_i32, %c0_i32_0 : i32, i32
  }
  func.func @transform_4(%arg0: i32) -> (i32, i32) {
    %c0_i32 = arith.constant 0 : i32
    %c0_i32_0 = arith.constant 0 : i32
    %c0_i32_1 = arith.constant 0 : i32
    return %c0_i32, %c0_i32_0 : i32, i32
  }
  func.func @transform_5(%arg0: i32) -> (i32, i32) {
    %c0_i32 = arith.constant 0 : i32
    %c0_i32_0 = arith.constant 0 : i32
    %c0_i32_1 = arith.constant 0 : i32
    return %c0_i32, %c0_i32_0 : i32, i32
  }
  func.func @transform_6(%arg0: i32) -> (i32, i32) {
    %c0_i32 = arith.constant 0 : i32
    %c0_i32_0 = arith.constant 0 : i32
    %c0_i32_1 = arith.constant 0 : i32
    return %c0_i32, %c0_i32_0 : i32, i32
  }
  func.func @transform_7(%arg0: i32) -> (i32, i32, i32) {
    %c0_i32 = arith.constant 0 : i32
    %c0_i32_0 = arith.constant 0 : i32
    %c0_i32_1 = arith.constant 0 : i32
    return %arg0, %c0_i32, %c0_i32_0 : i32, i32, i32
  }
}

module attributes {stable_mosaic.version = 11 : i64} {
  func.func @kernel(%arg0: i32, %arg1: memref<1x640x128xf32, #tpu.memory_space<vmem>>, %arg2: memref<9x128x128xbf16, #tpu.memory_space<vmem>>, %arg3: memref<9x128x128xbf16, #tpu.memory_space<vmem>>, %arg4: memref<128x128xbf16, #tpu.memory_space<vmem>>, %arg5: memref<1x128xf32, #tpu.memory_space<vmem>>, %arg6: memref<1x128xf32, #tpu.memory_space<vmem>>, %arg7: memref<128x1xf32, #tpu.memory_space<vmem>>, %arg8: memref<1x128x128xbf16, #tpu.memory_space<vmem>>, %arg9: memref<192x128xf32, #tpu.memory_space<vmem>>) attributes {dimension_semantics = [#tpu.dimension_semantics<parallel>], iteration_bounds = array<i64: 2>, scalar_prefetch = 0 : i64, scratch_operands = 1 : i64, tpu.core_type = #tpu.core_type<tc>, window_params = [{transform_indices = @transform_0, window_bounds = array<i64: 1, 640, 128>}, {pipeline_mode = #tpu.pipeline_mode<synchronous>, transform_indices = @transform_1, window_bounds = array<i64: 9, 128, 128>}, {pipeline_mode = #tpu.pipeline_mode<synchronous>, transform_indices = @transform_2, window_bounds = array<i64: 9, 128, 128>}, {pipeline_mode = #tpu.pipeline_mode<synchronous>, transform_indices = @transform_3, window_bounds = array<i64: 128, 128>}, {pipeline_mode = #tpu.pipeline_mode<synchronous>, transform_indices = @transform_4, window_bounds = array<i64: 1, 128>}, {pipeline_mode = #tpu.pipeline_mode<synchronous>, transform_indices = @transform_5, window_bounds = array<i64: 1, 128>}, {pipeline_mode = #tpu.pipeline_mode<synchronous>, transform_indices = @transform_6, window_bounds = array<i64: 128, 1>}, {transform_indices = @transform_7, window_bounds = array<i64: 1, 128, 128>}]} {
    %cst = arith.constant 0.000000e+00 : f32
    %0 = vector.broadcast %cst : f32 to vector<32x128xf32>
    %c0 = arith.constant 0 : index
    %c0_0 = arith.constant 0 : index
    %1 = vector.load %arg9[%c0, %c0_0] : memref<192x128xf32, #tpu.memory_space<vmem>>, vector<32x128xf32>
    tpu.vector_store %arg9[%c0, %c0_0], %0 {strides = array<i32>} : memref<192x128xf32, #tpu.memory_space<vmem>>, vector<32x128xf32>,
    %cst_1 = arith.constant 0.000000e+00 : f32
    %2 = vector.broadcast %cst_1 : f32 to vector<32x128xf32>
    %c160 = arith.constant 160 : index
    %c0_2 = arith.constant 0 : index
    %3 = vector.load %arg9[%c160, %c0_2] : memref<192x128xf32, #tpu.memory_space<vmem>>, vector<32x128xf32>
    tpu.vector_store %arg9[%c160, %c0_2], %2 {strides = array<i32>} : memref<192x128xf32, #tpu.memory_space<vmem>>, vector<32x128xf32>,
    %cst_3 = arith.constant 0.000000e+00 : f32
    %4 = vector.broadcast %cst_3 : f32 to vector<128x128xf32>
    %c0_4 = arith.constant 0 : index
    %c0_5 = arith.constant 0 : index
    %c0_6 = arith.constant 0 : index
    %5 = vector.load %arg1[%c0_4, %c0_5, %c0_6] : memref<1x640x128xf32, #tpu.memory_space<vmem>>, vector<1x128x128xf32>
    %6 = vector.shape_cast %5 : vector<1x128x128xf32> to vector<128x128xf32>
    %7 = arith.truncf %6 : vector<128x128xf32> to vector<128x128xbf16>
    %c0_7 = arith.constant 0 : index
    %c0_8 = arith.constant 0 : index
    %c0_9 = arith.constant 0 : index
    %8 = vector.load %arg2[%c0_7, %c0_8, %c0_9] : memref<9x128x128xbf16, #tpu.memory_space<vmem>>, vector<1x128x128xbf16>
    %9 = vector.shape_cast %8 : vector<1x128x128xbf16> to vector<128x128xbf16>
    %cst_10 = arith.constant dense<0.000000e+00> : vector<128x128xf32>
    %10 = tpu.matmul %7, %9, %cst_10 {dimension_numbers = #tpu.dot_dimension_numbers<[1], [0], [0], [1], [0, 0, 1, 1], [], []>} : vector<128x128xbf16>, vector<128x128xbf16>, vector<128x128xf32> -> vector<128x128xf32>
    %11 = arith.addf %4, %10 : vector<128x128xf32>
    %c0_11 = arith.constant 0 : index
    %c160_12 = arith.constant 160 : index
    %c0_13 = arith.constant 0 : index
    %12 = vector.load %arg1[%c0_11, %c160_12, %c0_13] : memref<1x640x128xf32, #tpu.memory_space<vmem>>, vector<1x128x128xf32>
    %13 = vector.shape_cast %12 : vector<1x128x128xf32> to vector<128x128xf32>
    %14 = arith.truncf %13 : vector<128x128xf32> to vector<128x128xbf16>
    %c1 = arith.constant 1 : index
    %c0_14 = arith.constant 0 : index
    %c0_15 = arith.constant 0 : index
    %15 = vector.load %arg2[%c1, %c0_14, %c0_15] : memref<9x128x128xbf16, #tpu.memory_space<vmem>>, vector<1x128x128xbf16>
    %16 = vector.shape_cast %15 : vector<1x128x128xbf16> to vector<128x128xbf16>
    %cst_16 = arith.constant dense<0.000000e+00> : vector<128x128xf32>
    %17 = tpu.matmul %14, %16, %cst_16 {dimension_numbers = #tpu.dot_dimension_numbers<[1], [0], [0], [1], [0, 0, 1, 1], [], []>} : vector<128x128xbf16>, vector<128x128xbf16>, vector<128x128xf32> -> vector<128x128xf32>
    %18 = arith.addf %11, %17 : vector<128x128xf32>
    %c0_17 = arith.constant 0 : index
    %c1_18 = arith.constant 1 : index
    %c0_19 = arith.constant 0 : index
    %19 = vector.load %arg1[%c0_17, %c1_18, %c0_19] : memref<1x640x128xf32, #tpu.memory_space<vmem>>, vector<1x128x128xf32>
    %20 = vector.shape_cast %19 : vector<1x128x128xf32> to vector<128x128xf32>
    %21 = arith.truncf %20 : vector<128x128xf32> to vector<128x128xbf16>
    %c2 = arith.constant 2 : index
    %c0_20 = arith.constant 0 : index
    %c0_21 = arith.constant 0 : index
    %22 = vector.load %arg2[%c2, %c0_20, %c0_21] : memref<9x128x128xbf16, #tpu.memory_space<vmem>>, vector<1x128x128xbf16>
    %23 = vector.shape_cast %22 : vector<1x128x128xbf16> to vector<128x128xbf16>
    %cst_22 = arith.constant dense<0.000000e+00> : vector<128x128xf32>
    %24 = tpu.matmul %21, %23, %cst_22 {dimension_numbers = #tpu.dot_dimension_numbers<[1], [0], [0], [1], [0, 0, 1, 1], [], []>} : vector<128x128xbf16>, vector<128x128xbf16>, vector<128x128xf32> -> vector<128x128xf32>
    %25 = arith.addf %18, %24 : vector<128x128xf32>
    %c0_23 = arith.constant 0 : index
    %c320 = arith.constant 320 : index
    %c0_24 = arith.constant 0 : index
    %26 = vector.load %arg1[%c0_23, %c320, %c0_24] : memref<1x640x128xf32, #tpu.memory_space<vmem>>, vector<1x128x128xf32>
    %27 = vector.shape_cast %26 : vector<1x128x128xf32> to vector<128x128xf32>
    %28 = arith.truncf %27 : vector<128x128xf32> to vector<128x128xbf16>
    %c3 = arith.constant 3 : index
    %c0_25 = arith.constant 0 : index
    %c0_26 = arith.constant 0 : index
    %29 = vector.load %arg2[%c3, %c0_25, %c0_26] : memref<9x128x128xbf16, #tpu.memory_space<vmem>>, vector<1x128x128xbf16>
    %30 = vector.shape_cast %29 : vector<1x128x128xbf16> to vector<128x128xbf16>
    %cst_27 = arith.constant dense<0.000000e+00> : vector<128x128xf32>
    %31 = tpu.matmul %28, %30, %cst_27 {dimension_numbers = #tpu.dot_dimension_numbers<[1], [0], [0], [1], [0, 0, 1, 1], [], []>} : vector<128x128xbf16>, vector<128x128xbf16>, vector<128x128xf32> -> vector<128x128xf32>
    %32 = arith.addf %25, %31 : vector<128x128xf32>
    %c0_28 = arith.constant 0 : index
    %c480 = arith.constant 480 : index
    %c0_29 = arith.constant 0 : index
    %33 = vector.load %arg1[%c0_28, %c480, %c0_29] : memref<1x640x128xf32, #tpu.memory_space<vmem>>, vector<1x128x128xf32>
    %34 = vector.shape_cast %33 : vector<1x128x128xf32> to vector<128x128xf32>
    %35 = arith.truncf %34 : vector<128x128xf32> to vector<128x128xbf16>
    %c4 = arith.constant 4 : index
    %c0_30 = arith.constant 0 : index
    %c0_31 = arith.constant 0 : index
    %36 = vector.load %arg2[%c4, %c0_30, %c0_31] : memref<9x128x128xbf16, #tpu.memory_space<vmem>>, vector<1x128x128xbf16>
    %37 = vector.shape_cast %36 : vector<1x128x128xbf16> to vector<128x128xbf16>
    %cst_32 = arith.constant dense<0.000000e+00> : vector<128x128xf32>
    %38 = tpu.matmul %35, %37, %cst_32 {dimension_numbers = #tpu.dot_dimension_numbers<[1], [0], [0], [1], [0, 0, 1, 1], [], []>} : vector<128x128xbf16>, vector<128x128xbf16>, vector<128x128xf32> -> vector<128x128xf32>
    %39 = arith.addf %32, %38 : vector<128x128xf32>
    %c0_33 = arith.constant 0 : index
    %c321 = arith.constant 321 : index
    %c0_34 = arith.constant 0 : index
    %40 = vector.load %arg1[%c0_33, %c321, %c0_34] : memref<1x640x128xf32, #tpu.memory_space<vmem>>, vector<1x128x128xf32>
    %41 = vector.shape_cast %40 : vector<1x128x128xf32> to vector<128x128xf32>
    %42 = arith.truncf %41 : vector<128x128xf32> to vector<128x128xbf16>
    %c5 = arith.constant 5 : index
    %c0_35 = arith.constant 0 : index
    %c0_36 = arith.constant 0 : index
    %43 = vector.load %arg2[%c5, %c0_35, %c0_36] : memref<9x128x128xbf16, #tpu.memory_space<vmem>>, vector<1x128x128xbf16>
    %44 = vector.shape_cast %43 : vector<1x128x128xbf16> to vector<128x128xbf16>
    %cst_37 = arith.constant dense<0.000000e+00> : vector<128x128xf32>
    %45 = tpu.matmul %42, %44, %cst_37 {dimension_numbers = #tpu.dot_dimension_numbers<[1], [0], [0], [1], [0, 0, 1, 1], [], []>} : vector<128x128xbf16>, vector<128x128xbf16>, vector<128x128xf32> -> vector<128x128xf32>
    %46 = arith.addf %39, %45 : vector<128x128xf32>
    %c0_38 = arith.constant 0 : index
    %c16 = arith.constant 16 : index
    %c0_39 = arith.constant 0 : index
    %47 = vector.load %arg1[%c0_38, %c16, %c0_39] : memref<1x640x128xf32, #tpu.memory_space<vmem>>, vector<1x128x128xf32>
    %48 = vector.shape_cast %47 : vector<1x128x128xf32> to vector<128x128xf32>
    %49 = arith.truncf %48 : vector<128x128xf32> to vector<128x128xbf16>
    %c6 = arith.constant 6 : index
    %c0_40 = arith.constant 0 : index
    %c0_41 = arith.constant 0 : index
    %50 = vector.load %arg2[%c6, %c0_40, %c0_41] : memref<9x128x128xbf16, #tpu.memory_space<vmem>>, vector<1x128x128xbf16>
    %51 = vector.shape_cast %50 : vector<1x128x128xbf16> to vector<128x128xbf16>
    %cst_42 = arith.constant dense<0.000000e+00> : vector<128x128xf32>
    %52 = tpu.matmul %49, %51, %cst_42 {dimension_numbers = #tpu.dot_dimension_numbers<[1], [0], [0], [1], [0, 0, 1, 1], [], []>} : vector<128x128xbf16>, vector<128x128xbf16>, vector<128x128xf32> -> vector<128x128xf32>
    %53 = arith.addf %46, %52 : vector<128x128xf32>
    %c0_43 = arith.constant 0 : index
    %c176 = arith.constant 176 : index
    %c0_44 = arith.constant 0 : index
    %54 = vector.load %arg1[%c0_43, %c176, %c0_44] : memref<1x640x128xf32, #tpu.memory_space<vmem>>, vector<1x128x128xf32>
    %55 = vector.shape_cast %54 : vector<1x128x128xf32> to vector<128x128xf32>
    %56 = arith.truncf %55 : vector<128x128xf32> to vector<128x128xbf16>
    %c7 = arith.constant 7 : index
    %c0_45 = arith.constant 0 : index
    %c0_46 = arith.constant 0 : index
    %57 = vector.load %arg2[%c7, %c0_45, %c0_46] : memref<9x128x128xbf16, #tpu.memory_space<vmem>>, vector<1x128x128xbf16>
    %58 = vector.shape_cast %57 : vector<1x128x128xbf16> to vector<128x128xbf16>
    %cst_47 = arith.constant dense<0.000000e+00> : vector<128x128xf32>
    %59 = tpu.matmul %56, %58, %cst_47 {dimension_numbers = #tpu.dot_dimension_numbers<[1], [0], [0], [1], [0, 0, 1, 1], [], []>} : vector<128x128xbf16>, vector<128x128xbf16>, vector<128x128xf32> -> vector<128x128xf32>
    %60 = arith.addf %53, %59 : vector<128x128xf32>
    %c0_48 = arith.constant 0 : index
    %c17 = arith.constant 17 : index
    %c0_49 = arith.constant 0 : index
    %61 = vector.load %arg1[%c0_48, %c17, %c0_49] : memref<1x640x128xf32, #tpu.memory_space<vmem>>, vector<1x128x128xf32>
    %62 = vector.shape_cast %61 : vector<1x128x128xf32> to vector<128x128xf32>
    %63 = arith.truncf %62 : vector<128x128xf32> to vector<128x128xbf16>
    %c8 = arith.constant 8 : index
    %c0_50 = arith.constant 0 : index
    %c0_51 = arith.constant 0 : index
    %64 = vector.load %arg2[%c8, %c0_50, %c0_51] : memref<9x128x128xbf16, #tpu.memory_space<vmem>>, vector<1x128x128xbf16>
    %65 = vector.shape_cast %64 : vector<1x128x128xbf16> to vector<128x128xbf16>
    %cst_52 = arith.constant dense<0.000000e+00> : vector<128x128xf32>
    %66 = tpu.matmul %63, %65, %cst_52 {dimension_numbers = #tpu.dot_dimension_numbers<[1], [0], [0], [1], [0, 0, 1, 1], [], []>} : vector<128x128xbf16>, vector<128x128xbf16>, vector<128x128xf32> -> vector<128x128xf32>
    %67 = arith.addf %60, %66 : vector<128x128xf32>
    %c0_53 = arith.constant 0 : index
    %c0_54 = arith.constant 0 : index
    %68 = vector.load %arg5[%c0_53, %c0_54] : memref<1x128xf32, #tpu.memory_space<vmem>>, vector<1x128xf32>
    %69 = vector.broadcast %68 : vector<1x128xf32> to vector<128x128xf32>
    %70 = arith.addf %67, %69 : vector<128x128xf32>
    %cst_55 = arith.constant 0.000000e+00 : f32
    %71 = vector.broadcast %cst_55 : f32 to vector<128x128xf32>
    %72 = arith.maximumf %70, %71 : vector<128x128xf32>
    %c0_56 = arith.constant 0 : index
    %c0_57 = arith.constant 0 : index
    %73 = vector.load %arg7[%c0_56, %c0_57] : memref<128x1xf32, #tpu.memory_space<vmem>>, vector<128x1xf32>
    %74 = vector.broadcast %73 : vector<128x1xf32> to vector<128x128xf32>
    %75 = arith.mulf %72, %74 : vector<128x128xf32>
    %c32 = arith.constant 32 : index
    %c0_58 = arith.constant 0 : index
    %76 = vector.load %arg9[%c32, %c0_58] : memref<192x128xf32, #tpu.memory_space<vmem>>, vector<128x128xf32>
    tpu.vector_store %arg9[%c32, %c0_58], %75 {strides = array<i32>} : memref<192x128xf32, #tpu.memory_space<vmem>>, vector<128x128xf32>,
    %cst_59 = arith.constant 0.000000e+00 : f32
    %77 = vector.broadcast %cst_59 : f32 to vector<128x128xf32>
    %c15 = arith.constant 15 : index
    %c0_60 = arith.constant 0 : index
    %78 = vector.load %arg9[%c15, %c0_60] : memref<192x128xf32, #tpu.memory_space<vmem>>, vector<128x128xf32>
    %79 = arith.truncf %78 : vector<128x128xf32> to vector<128x128xbf16>
    %c0_61 = arith.constant 0 : index
    %c0_62 = arith.constant 0 : index
    %c0_63 = arith.constant 0 : index
    %80 = vector.load %arg3[%c0_61, %c0_62, %c0_63] : memref<9x128x128xbf16, #tpu.memory_space<vmem>>, vector<1x128x128xbf16>
    %81 = vector.shape_cast %80 : vector<1x128x128xbf16> to vector<128x128xbf16>
    %cst_64 = arith.constant dense<0.000000e+00> : vector<128x128xf32>
    %82 = tpu.matmul %79, %81, %cst_64 {dimension_numbers = #tpu.dot_dimension_numbers<[1], [0], [0], [1], [0, 0, 1, 1], [], []>} : vector<128x128xbf16>, vector<128x128xbf16>, vector<128x128xf32> -> vector<128x128xf32>
    %83 = arith.addf %77, %82 : vector<128x128xf32>
    %c16_65 = arith.constant 16 : index
    %c0_66 = arith.constant 0 : index
    %84 = vector.load %arg9[%c16_65, %c0_66] : memref<192x128xf32, #tpu.memory_space<vmem>>, vector<128x128xf32>
    %85 = arith.truncf %84 : vector<128x128xf32> to vector<128x128xbf16>
    %c1_67 = arith.constant 1 : index
    %c0_68 = arith.constant 0 : index
    %c0_69 = arith.constant 0 : index
    %86 = vector.load %arg3[%c1_67, %c0_68, %c0_69] : memref<9x128x128xbf16, #tpu.memory_space<vmem>>, vector<1x128x128xbf16>
    %87 = vector.shape_cast %86 : vector<1x128x128xbf16> to vector<128x128xbf16>
    %cst_70 = arith.constant dense<0.000000e+00> : vector<128x128xf32>
    %88 = tpu.matmul %85, %87, %cst_70 {dimension_numbers = #tpu.dot_dimension_numbers<[1], [0], [0], [1], [0, 0, 1, 1], [], []>} : vector<128x128xbf16>, vector<128x128xbf16>, vector<128x128xf32> -> vector<128x128xf32>
    %89 = arith.addf %83, %88 : vector<128x128xf32>
    %c17_71 = arith.constant 17 : index
    %c0_72 = arith.constant 0 : index
    %90 = vector.load %arg9[%c17_71, %c0_72] : memref<192x128xf32, #tpu.memory_space<vmem>>, vector<128x128xf32>
    %91 = arith.truncf %90 : vector<128x128xf32> to vector<128x128xbf16>
    %c2_73 = arith.constant 2 : index
    %c0_74 = arith.constant 0 : index
    %c0_75 = arith.constant 0 : index
    %92 = vector.load %arg3[%c2_73, %c0_74, %c0_75] : memref<9x128x128xbf16, #tpu.memory_space<vmem>>, vector<1x128x128xbf16>
    %93 = vector.shape_cast %92 : vector<1x128x128xbf16> to vector<128x128xbf16>
    %cst_76 = arith.constant dense<0.000000e+00> : vector<128x128xf32>
    %94 = tpu.matmul %91, %93, %cst_76 {dimension_numbers = #tpu.dot_dimension_numbers<[1], [0], [0], [1], [0, 0, 1, 1], [], []>} : vector<128x128xbf16>, vector<128x128xbf16>, vector<128x128xf32> -> vector<128x128xf32>
    %95 = arith.addf %89, %94 : vector<128x128xf32>
    %c31 = arith.constant 31 : index
    %c0_77 = arith.constant 0 : index
    %96 = vector.load %arg9[%c31, %c0_77] : memref<192x128xf32, #tpu.memory_space<vmem>>, vector<128x128xf32>
    %97 = arith.truncf %96 : vector<128x128xf32> to vector<128x128xbf16>
    %c3_78 = arith.constant 3 : index
    %c0_79 = arith.constant 0 : index
    %c0_80 = arith.constant 0 : index
    %98 = vector.load %arg3[%c3_78, %c0_79, %c0_80] : memref<9x128x128xbf16, #tpu.memory_space<vmem>>, vector<1x128x128xbf16>
    %99 = vector.shape_cast %98 : vector<1x128x128xbf16> to vector<128x128xbf16>
    %cst_81 = arith.constant dense<0.000000e+00> : vector<128x128xf32>
    %100 = tpu.matmul %97, %99, %cst_81 {dimension_numbers = #tpu.dot_dimension_numbers<[1], [0], [0], [1], [0, 0, 1, 1], [], []>} : vector<128x128xbf16>, vector<128x128xbf16>, vector<128x128xf32> -> vector<128x128xf32>
    %101 = arith.addf %95, %100 : vector<128x128xf32>
    %c32_82 = arith.constant 32 : index
    %c0_83 = arith.constant 0 : index
    %102 = vector.load %arg9[%c32_82, %c0_83] : memref<192x128xf32, #tpu.memory_space<vmem>>, vector<128x128xf32>
    %103 = arith.truncf %102 : vector<128x128xf32> to vector<128x128xbf16>
    %c4_84 = arith.constant 4 : index
    %c0_85 = arith.constant 0 : index
    %c0_86 = arith.constant 0 : index
    %104 = vector.load %arg3[%c4_84, %c0_85, %c0_86] : memref<9x128x128xbf16, #tpu.memory_space<vmem>>, vector<1x128x128xbf16>
    %105 = vector.shape_cast %104 : vector<1x128x128xbf16> to vector<128x128xbf16>
    %cst_87 = arith.constant dense<0.000000e+00> : vector<128x128xf32>
    %106 = tpu.matmul %103, %105, %cst_87 {dimension_numbers = #tpu.dot_dimension_numbers<[1], [0], [0], [1], [0, 0, 1, 1], [], []>} : vector<128x128xbf16>, vector<128x128xbf16>, vector<128x128xf32> -> vector<128x128xf32>
    %107 = arith.addf %101, %106 : vector<128x128xf32>
    %c33 = arith.constant 33 : index
    %c0_88 = arith.constant 0 : index
    %108 = vector.load %arg9[%c33, %c0_88] : memref<192x128xf32, #tpu.memory_space<vmem>>, vector<128x128xf32>
    %109 = arith.truncf %108 : vector<128x128xf32> to vector<128x128xbf16>
    %c5_89 = arith.constant 5 : index
    %c0_90 = arith.constant 0 : index
    %c0_91 = arith.constant 0 : index
    %110 = vector.load %arg3[%c5_89, %c0_90, %c0_91] : memref<9x128x128xbf16, #tpu.memory_space<vmem>>, vector<1x128x128xbf16>
    %111 = vector.shape_cast %110 : vector<1x128x128xbf16> to vector<128x128xbf16>
    %cst_92 = arith.constant dense<0.000000e+00> : vector<128x128xf32>
    %112 = tpu.matmul %109, %111, %cst_92 {dimension_numbers = #tpu.dot_dimension_numbers<[1], [0], [0], [1], [0, 0, 1, 1], [], []>} : vector<128x128xbf16>, vector<128x128xbf16>, vector<128x128xf32> -> vector<128x128xf32>
    %113 = arith.addf %107, %112 : vector<128x128xf32>
    %c47 = arith.constant 47 : index
    %c0_93 = arith.constant 0 : index
    %114 = vector.load %arg9[%c47, %c0_93] : memref<192x128xf32, #tpu.memory_space<vmem>>, vector<128x128xf32>
    %115 = arith.truncf %114 : vector<128x128xf32> to vector<128x128xbf16>
    %c6_94 = arith.constant 6 : index
    %c0_95 = arith.constant 0 : index
    %c0_96 = arith.constant 0 : index
    %116 = vector.load %arg3[%c6_94, %c0_95, %c0_96] : memref<9x128x128xbf16, #tpu.memory_space<vmem>>, vector<1x128x128xbf16>
    %117 = vector.shape_cast %116 : vector<1x128x128xbf16> to vector<128x128xbf16>
    %cst_97 = arith.constant dense<0.000000e+00> : vector<128x128xf32>
    %118 = tpu.matmul %115, %117, %cst_97 {dimension_numbers = #tpu.dot_dimension_numbers<[1], [0], [0], [1], [0, 0, 1, 1], [], []>} : vector<128x128xbf16>, vector<128x128xbf16>, vector<128x128xf32> -> vector<128x128xf32>
    %119 = arith.addf %113, %118 : vector<128x128xf32>
    %c48 = arith.constant 48 : index
    %c0_98 = arith.constant 0 : index
    %120 = vector.load %arg9[%c48, %c0_98] : memref<192x128xf32, #tpu.memory_space<vmem>>, vector<128x128xf32>
    %121 = arith.truncf %120 : vector<128x128xf32> to vector<128x128xbf16>
    %c7_99 = arith.constant 7 : index
    %c0_100 = arith.constant 0 : index
    %c0_101 = arith.constant 0 : index
    %122 = vector.load %arg3[%c7_99, %c0_100, %c0_101] : memref<9x128x128xbf16, #tpu.memory_space<vmem>>, vector<1x128x128xbf16>
    %123 = vector.shape_cast %122 : vector<1x128x128xbf16> to vector<128x128xbf16>
    %cst_102 = arith.constant dense<0.000000e+00> : vector<128x128xf32>
    %124 = tpu.matmul %121, %123, %cst_102 {dimension_numbers = #tpu.dot_dimension_numbers<[1], [0], [0], [1], [0, 0, 1, 1], [], []>} : vector<128x128xbf16>, vector<128x128xbf16>, vector<128x128xf32> -> vector<128x128xf32>
    %125 = arith.addf %119, %124 : vector<128x128xf32>
    %c49 = arith.constant 49 : index
    %c0_103 = arith.constant 0 : index
    %126 = vector.load %arg9[%c49, %c0_103] : memref<192x128xf32, #tpu.memory_space<vmem>>, vector<128x128xf32>
    %127 = arith.truncf %126 : vector<128x128xf32> to vector<128x128xbf16>
    %c8_104 = arith.constant 8 : index
    %c0_105 = arith.constant 0 : index
    %c0_106 = arith.constant 0 : index
    %128 = vector.load %arg3[%c8_104, %c0_105, %c0_106] : memref<9x128x128xbf16, #tpu.memory_space<vmem>>, vector<1x128x128xbf16>
    %129 = vector.shape_cast %128 : vector<1x128x128xbf16> to vector<128x128xbf16>
    %cst_107 = arith.constant dense<0.000000e+00> : vector<128x128xf32>
    %130 = tpu.matmul %127, %129, %cst_107 {dimension_numbers = #tpu.dot_dimension_numbers<[1], [0], [0], [1], [0, 0, 1, 1], [], []>} : vector<128x128xbf16>, vector<128x128xbf16>, vector<128x128xf32> -> vector<128x128xf32>
    %131 = arith.addf %125, %130 : vector<128x128xf32>
    %c0_108 = arith.constant 0 : index
    %c480_109 = arith.constant 480 : index
    %c0_110 = arith.constant 0 : index
    %132 = vector.load %arg1[%c0_108, %c480_109, %c0_110] : memref<1x640x128xf32, #tpu.memory_space<vmem>>, vector<1x128x128xf32>
    %133 = vector.shape_cast %132 : vector<1x128x128xf32> to vector<128x128xf32>
    %134 = arith.truncf %133 : vector<128x128xf32> to vector<128x128xbf16>
    %c0_111 = arith.constant 0 : index
    %c0_112 = arith.constant 0 : index
    %135 = vector.load %arg4[%c0_111, %c0_112] : memref<128x128xbf16, #tpu.memory_space<vmem>>, vector<128x128xbf16>
    %cst_113 = arith.constant dense<0.000000e+00> : vector<128x128xf32>
    %136 = tpu.matmul %134, %135, %cst_113 {dimension_numbers = #tpu.dot_dimension_numbers<[1], [0], [0], [1], [0, 0, 1, 1], [], []>} : vector<128x128xbf16>, vector<128x128xbf16>, vector<128x128xf32> -> vector<128x128xf32>
    %137 = arith.addf %131, %136 : vector<128x128xf32>
    %c0_114 = arith.constant 0 : index
    %c0_115 = arith.constant 0 : index
    %138 = vector.load %arg6[%c0_114, %c0_115] : memref<1x128xf32, #tpu.memory_space<vmem>>, vector<1x128xf32>
    %139 = vector.broadcast %138 : vector<1x128xf32> to vector<128x128xf32>
    %140 = arith.addf %137, %139 : vector<128x128xf32>
    %cst_116 = arith.constant 0.000000e+00 : f32
    %141 = vector.broadcast %cst_116 : f32 to vector<128x128xf32>
    %142 = arith.maximumf %140, %141 : vector<128x128xf32>
    %143 = arith.truncf %142 : vector<128x128xf32> to vector<128x128xbf16>
    %c0_117 = arith.constant 0 : index
    %c0_118 = arith.constant 0 : index
    %c0_119 = arith.constant 0 : index
    %144 = vector.load %arg8[%c0_117, %c0_118, %c0_119] : memref<1x128x128xbf16, #tpu.memory_space<vmem>>, vector<1x128x128xbf16>
    %145 = vector.shape_cast %144 : vector<1x128x128xbf16> to vector<128x128xbf16>
    %146 = vector.shape_cast %143 : vector<128x128xbf16> to vector<1x128x128xbf16>
    tpu.vector_store %arg8[%c0_117, %c0_118, %c0_119], %146 {strides = array<i32>} : memref<1x128x128xbf16, #tpu.memory_space<vmem>>, vector<1x128x128xbf16>,
    return
  }
  func.func @transform_0(%arg0: i32) -> (i32, i32, i32) {
    %c0_i32 = arith.constant 0 : i32
    %c0_i32_0 = arith.constant 0 : i32
    %c0_i32_1 = arith.constant 0 : i32
    return %arg0, %c0_i32, %c0_i32_0 : i32, i32, i32
  }
  func.func @transform_1(%arg0: i32) -> (i32, i32, i32) {
    %c0_i32 = arith.constant 0 : i32
    %c0_i32_0 = arith.constant 0 : i32
    %c0_i32_1 = arith.constant 0 : i32
    %c0_i32_2 = arith.constant 0 : i32
    return %c0_i32, %c0_i32_0, %c0_i32_1 : i32, i32, i32
  }
  func.func @transform_2(%arg0: i32) -> (i32, i32, i32) {
    %c0_i32 = arith.constant 0 : i32
    %c0_i32_0 = arith.constant 0 : i32
    %c0_i32_1 = arith.constant 0 : i32
    %c0_i32_2 = arith.constant 0 : i32
    return %c0_i32, %c0_i32_0, %c0_i32_1 : i32, i32, i32
  }
  func.func @transform_3(%arg0: i32) -> (i32, i32) {
    %c0_i32 = arith.constant 0 : i32
    %c0_i32_0 = arith.constant 0 : i32
    %c0_i32_1 = arith.constant 0 : i32
    return %c0_i32, %c0_i32_0 : i32, i32
  }
  func.func @transform_4(%arg0: i32) -> (i32, i32) {
    %c0_i32 = arith.constant 0 : i32
    %c0_i32_0 = arith.constant 0 : i32
    %c0_i32_1 = arith.constant 0 : i32
    return %c0_i32, %c0_i32_0 : i32, i32
  }
  func.func @transform_5(%arg0: i32) -> (i32, i32) {
    %c0_i32 = arith.constant 0 : i32
    %c0_i32_0 = arith.constant 0 : i32
    %c0_i32_1 = arith.constant 0 : i32
    return %c0_i32, %c0_i32_0 : i32, i32
  }
  func.func @transform_6(%arg0: i32) -> (i32, i32) {
    %c0_i32 = arith.constant 0 : i32
    %c0_i32_0 = arith.constant 0 : i32
    %c0_i32_1 = arith.constant 0 : i32
    return %c0_i32, %c0_i32_0 : i32, i32
  }
  func.func @transform_7(%arg0: i32) -> (i32, i32, i32) {
    %c0_i32 = arith.constant 0 : i32
    %c0_i32_0 = arith.constant 0 : i32
    %c0_i32_1 = arith.constant 0 : i32
    return %arg0, %c0_i32, %c0_i32_0 : i32, i32, i32
  }
}

</mosaic_0001>

<bundles_post_ra>
// kernel: tpu_custom_call.1
= control target key start
LH: loop header
LB: loop body
LE: loop exit
PB: predicated region body
PF: predicated region fallthrough
CT: control target
= control target key end

     0   :  { %s7261_s0 = inlined_call_operand.hbm [shape: f32[2,640,128], index: 0, kind: input, shape index: {}]   ;;  %s7262_s1 = inlined_call_operand.hbm [shape: bf16[9,128,128], index: 1, kind: input, shape index: {}]   ;;  %s7263_s2 = inlined_call_operand.hbm [shape: bf16[9,128,128], index: 2, kind: input, shape index: {}]   ;;  %s7264_s3 = inlined_call_operand.vmem [shape: bf16[128,128], index: 3, kind: input, shape index: {}]   ;;  %s7265_s4 = inlined_call_operand.vmem [shape: f32[1,128], index: 4, kind: input, shape index: {}]   ;;  %s7266_s5 = inlined_call_operand.vmem [shape: f32[1,128], index: 5, kind: input, shape index: {}]   ;;  %s7267_s6 = inlined_call_operand.vmem [shape: f32[128,1], index: 6, kind: input, shape index: {}]   ;;  %s7268_s7 = inlined_call_operand.hbm [shape: bf16[2,128,128], index: 7, kind: output, shape index: {}]  }
   0x1   :  { %7275 = sst [smem:[#allocation49_spill]] %s7262_s1 }
   0x2   :  { %12 = vsyncpa [#allocation4], 0 }
   0x3   :  { %14 = vsyncpa [#allocation4 + $0x1], 0 }
   0x4   :  { %15 = vsyncpa [#allocation7], 0 }
   0x5   :  { %16 = vsyncpa [#allocation5], 0 }
   0x6   :  { %18 = vsyncpa [#allocation5 + $0x1], 0  ;;  %s6111_s24 = smov 0   ;;  %s6113_s25 = smov 0  }
   0x7   :  { %s6115_s26 = smov 0   ;;  %s6117_s27 = smov 0  }
   0x8 LB: > { %s6132_s28 = sadd.s32 4294967295, %s6056_s27   ;;  %s4498_s29 = sadd.s32 4294967294, %s6056_s27   ;;  %s6056_s27 = sphi %s6117_s27, %s7382_s27   ;;  %s6052_s26 = sphi %s6115_s26, %s7381_s26   ;;  %s6048_s25 = sphi %s6113_s25, %s7380_s25   ;;  %s6044_s24 = sphi %s6111_s24, %s7379_s24  }
   0x9   : > { %p44_p0 = scmp.ne.s32.totalorder %s6048_s25, %s6044_s24  ;;  %p7269_p1 = scmp.eq.s32.totalorder %s6132_s28, 0 }
   0xa   : > { %p200_p3 = scmp.eq.s32.totalorder %s4498_s29, 1  ;;  %p4499_p5 = scmp.ge.s32.totalorder %s6056_s27, 1 }
   0xb   : > { %p6141_p4 = por %p7269_p1, %p44_p0  ;;  %p207_p7 = scmp.lt.s32.totalorder %s6056_s27, 3 }
   0xc   : > { %p6146_p6 = por %p200_p3, %p44_p0  ;;  %s6058_s10 = smov [#allocation6]  }
   0xd   : > { %s7276_s30 = scalar_select %p6141_p4, 1, 0 }
   0xe   : > { %s7277_s8 = scalar_select %p6146_p6, 1, 0 }
   0xf   : > { %p6151_p8 = pnand %p4499_p5, %p207_p7  ;;  %s219_s11 = sshll.u32 %s6058_s10, 4  ;;  %s220_s11 = int_to_ptr.vmem [resolvable:$true] %s219_s11 }
  0x10   : > { %s6059_s13 = smov [#allocation8]   ;;  %s5919_s15 = scalar_lea.vmem %s220_s11, 9216 }
  0x11   : > { %s7278_s9 = scalar_select %p6151_p8, 1, 0 }
  0x12   : > { %p5690_p9 = pneg %p6151_p8  ;;  %s232_s14 = sshll.u32 %s6059_s13, 4  ;;  %s233_s14 = int_to_ptr.vmem [resolvable:$true] %s232_s14 }
  0x13   : > { %p5920_p13 = scmp.ne.s32.totalorder %s220_s11, %s5919_s15  ;;  %p5927_p5 = scmp.lt.s32.totalorder %s220_s11, %s220_s11 }
  0x14   : > { %p6160_p11 = pnand %p5690_p9, %p7269_p1  ;;  %p5928_p7 = scmp.lt.s32.totalorder %s5919_s15, %s5919_s15 }
  0x16   : > { %p5910_p12 = pneg %p6160_p11  ;;  %p5929_p10 = por %p5928_p7, %p5927_p5 }
  0x18   : > { %p5922_p0 = pnand %p5920_p13, %p5910_p12 }
  0x1a   : > { %p5923_p3 = pneg %p5922_p0 }
  0x1c   : > { %p5930_p9 = pnand %p5929_p10, %p5923_p3 }
  0x1e   : > { %5933 = shalt.err (!%p5930_p9)
}
  0x1f   : > { %s6060_s16 = smov 64   ;;  %s6061_s17 = smov 4  }
  0x20   : > { %s7280_s1 = sld [smem:[#allocation49_spill]]  ;;  %s5945_s20 = scalar_lea.vmem %s233_s14, 9216 }
  0x21   : > { %p5946_p1 = scmp.ne.s32.totalorder %s233_s14, %s5945_s20  ;;  %p5953_p2 = scmp.lt.s32.totalorder %s233_s14, %s233_s14 }
  0x22   : > { %p5954_p6 = scmp.lt.s32.totalorder %s5945_s20, %s5945_s20 }
  0x23   : > { %p5948_p13 = pnand %p5946_p1, %p5910_p12 }
  0x24   : > { %p5955_p5 = por %p5954_p6, %p5953_p2 }
  0x25   : > { %p5949_p0 = pneg %p5948_p13 }
  0x26   : > { %5693 = dma.hbm_to_vmem [thread:$0]  (!%p6160_p11), %s7280_s1, 9216, %s220_s11, [#allocation7], %s6060_s16, %s6060_s16, %s6061_s17  }
  0x27   : > { %p5956_p10 = pnand %p5955_p5, %p5949_p0 }
  0x29   : > { %5959 = shalt.err (!%p5956_p10)
}
  0x2a   : > { %5696 = dma.hbm_to_vmem [thread:$0]  (!%p6160_p11), %s7263_s2, 9216, %s233_s14, [#allocation7], %s6060_s16, %s6060_s16, %s6061_s17  }
  0x2b   : > { %s6183_s23 = sadd.s32 1, %s6056_s27   ;;  %s31_s29 = sadd.s32 1, %s6052_s26 }
  0x2c   : > { %s28_s10 = ssub.s32 %s6056_s27, %s6183_s23  ;;  %p38_p1 = scmp.ne.s32.totalorder %s6052_s26, %s6048_s25 }
  0x2d   : > { %p29_p2 = scmp.eq.s32.totalorder %s28_s10, 0  ;;  %p39_p6 = scmp.eq.s32.totalorder %s6056_s27, 0 }
  0x2e   : > { %p7281_p12 = scmp.eq.s32.totalorder %s6132_s28, 1  ;;  %p5707_p7 = scmp.lt.s32.totalorder %s6056_s27, 2 }
  0x2f   : > { %s6199_s12 = scalar_select %p29_p2, %s6052_s26, %s31_s29  }
  0x30   : > { %p6193_p3 = por %p7281_p12, %p38_p1  ;;  %p40_p9 = por %p39_p6, %p38_p1 }
  0x31   : > { %s258_s13 = sand.u32 1, %s6052_s26   ;;  %s5676_s14 = smul.u32 10240, %s6056_s27 }
  0x32   : > { %s7282_s11 = scalar_select %p6193_p3, 1, 0 }
  0x33   : > { %s5675_s15 = smul.u32 640, %s258_s13  ;;  %p6203_p11 = pnand %p5707_p7, %p40_p9 }
  0x34   : > { %s6210_s19 = scalar_lea.hbm %s7261_s0, %s5676_s14  ;;  %s6214_s22 = scalar_lea.sflag [#allocation4], %s258_s13 }
  0x35   : > { %s262_s20 = scalar_lea.vmem [#allocation3], %s5675_s15  ;;  %s5960_s29 = scalar_lea.hbm %s6210_s19, 10240 }
  0x36   : > { %s269_s21 = sshll.u32 %s262_s20, 4  ;;  %p5961_p13 = scmp.ne.s32.totalorder %s6210_s19, %s5960_s29  ;;  %s6212_s21 = int_to_ptr.vmem [resolvable:$true] %s269_s21 }
  0x37   : > { %p5962_p0 = pneg %p6203_p11  ;;  %s5965_s14 = scalar_lea.hbm %s7261_s0, 20480 }
  0x38   : > { %p5966_p1 = scmp.lt.s32.totalorder %s6210_s19, %s7261_s0  ;;  %p5967_p2 = scmp.lt.s32.totalorder %s5965_s14, %s5960_s29 }
  0x39   : > { %p5963_p5 = pnand %p5962_p0, %p5961_p13 }
  0x3a   : > { %p5968_p6 = por %p5967_p2, %p5966_p1 }
  0x3b   : > { %p5964_p10 = pneg %p5963_p5 }
  0x3d   : > { %p5969_p12 = pnand %p5968_p6, %p5964_p10 }
  0x3f   : > { %5972 = shalt.err (!%p5969_p12)
}
  0x40   : > { %s5973_s13 = scalar_lea.vmem %s6212_s21, 10240  ;;  %s6062_s15 = smov [#allocation3]  }
  0x41   : > { %p5974_p7 = scmp.ne.s32.totalorder %s6212_s21, %s5973_s13  ;;  %s5978_s20 = sshll.u32 %s6062_s15, 4  ;;  %s5979_s20 = int_to_ptr.vmem [resolvable:$false] %s5978_s20 }
  0x42   : > { %s5980_s10 = scalar_lea.vmem %s5979_s20, 20480  ;;  %p5981_p5 = scmp.lt.s32.totalorder %s6212_s21, %s5979_s20 }
  0x43   : > { %p5976_p9 = pnand %p5974_p7, %p5962_p0  ;;  %p5982_p3 = scmp.lt.s32.totalorder %s5980_s10, %s5973_s13 }
  0x45   : > { %p5977_p13 = pneg %p5976_p9  ;;  %p5983_p4 = por %p5982_p3, %p5981_p5 }
  0x47   : > { %p5984_p8 = pnand %p5983_p4, %p5977_p13 }
  0x49   : > { %5987 = shalt.err (!%p5984_p8)
}
  0x4a   : > { %s6063_s1 = smov 128   ;;  %s6064_s29 = smov 8  }
  0x4b   : > { %5700 = dma.hbm_to_vmem [thread:$0]  (!%p6203_p11), %s6210_s19, 10240, %s6212_s21, %s6214_s22, %s6063_s1, %s6063_s1, %s6064_s29  }
  0x4c   : > { %p7284_p0 = scmp.ne.s32.totalorder %s7278_s9, 0 }
  0x4e   : > { %281 = sbr.rel (%p7284_p0) target bundleno = 854 (0x356), region = 48 }
  0x53   : > { %s6238_s17 = sand.u32 1, %s6048_s25   ;;  %p7285_p4 = scmp.ne.s32.totalorder %s7276_s30, 0 }
  0x54   : > { %s5677_s14 = smul.u32 640, %s6238_s17  ;;  %s284_s18 = scalar_lea.sflag [#allocation4], %s6238_s17 }
  0x56   : > { %s6242_s13 = scalar_lea.vmem [#allocation3], %s5677_s14 }
  0x57   : > { %6031 = dma.done.wait (%p7285_p4), %s284_s18, 10240  }
  0x58   : > { %6033 = vsyncadd (%p7285_p4), %s284_s18, 4294957056  ;;  %p7286_p8 = scmp.eq.s32.totalorder %s6132_s28, 0 }
  0x5a   : > { %6035 = dma.done.wait (%p7286_p8), [#allocation7], 18432   ;;  %p7287_p3 = pmov %p7286_p8 }
  0x5b   : > { %v5755_v0 = vld [vmem:[#allocation6 + $0x78] sm:$0xff]   ;;  %v5757_v2 = vld [vmem:[#allocation6 + $0x70] sm:$0xff]   ;;  %v5759_v4 = vld [vmem:[#allocation6 + $0x68] sm:$0xff]   ;;  %s4507_s18 = sshll.u32 %s6238_s17, 6  ;;  %s4699_s9 = sshll.u32 %s6132_s28, 10 }
  0x5c   : > { %6037 = vsyncadd (%p7287_p3), [#allocation7], 4294948864  ;;  %v5756_v1 = vld [vmem:[#allocation6 + $0x38] sm:$0xff]   ;;  %5051 = vmatprep.subr.bf16.mxu0 %v5755_v0  ;;  %v5758_v3 = vld [vmem:[#allocation6 + $0x30] sm:$0xff]   ;;  %s7165_s30 = scalar_lea.vmem [#allocation9], %s4507_s18  ;;  %s7214_s22 = scalar_lea.hbm %s7268_s7, %s4699_s9 }
  0x5d   : > { %5083 = vmatprep.subr.bf16.mxu1 %v5756_v1  ;;  %5052 = vmatpush3.bf16.msra.mxu0 %v5755_v0  ;;  %v5760_v5 = vld [vmem:[#allocation6 + $0x28] sm:$0xff]   ;;  %v5761_v6 = vld [vmem:[#allocation6 + $0x60] sm:$0xff]   ;;  %v5763_v8 = vld [vmem:[#allocation6 + $0x58] sm:$0xff]   ;;  %s4406_s16 = sshll.u32 %s7165_s30, 4  ;;  %s4393_s15 = scalar_lea.sflag [#allocation5], %s6238_s17  ;;  %s7216_s16 = int_to_ptr.vmem [resolvable:$true] %s4406_s16 }
  0x5e   : > { %5084 = vmatpush3.bf16.msra.mxu1 %v5756_v1  ;;  %5053 = vmatprep.subr.bf16.mxu0 %v5757_v2  ;;  %v5762_v7 = vld [vmem:[#allocation6 + $0x20] sm:$0xff]   ;;  %v5764_v9 = vld [vmem:[#allocation6 + $0x18] sm:$0xff]   ;;  %v5765_v10 = vld [vmem:[#allocation6 + $0x50] sm:$0xff]   ;;  %s5988_s20 = scalar_lea.vmem %s7216_s16, 1024  ;;  %p7376_p10 = scmp.ne.s32.totalorder %s7282_s11, 0 }
  0x5f   : > { %5085 = vmatprep.subr.bf16.mxu1 %v5758_v3  ;;  %v375_v11 = vld [vmem:[%s6242_s13 + $0xa0] sm:$0xff]  ;;  %v376_v12 = vld [vmem:[%s6242_s13 + $0xa8] sm:$0xff]  ;;  %v5766_v14 = vld [vmem:[#allocation6 + $0x10] sm:$0xff]   ;;  %p5989_p11 = scmp.ne.s32.totalorder %s7216_s16, %s5988_s20  ;;  %s6068_s28 = smov [#allocation9]  }
  0x60   : > { %v335_v13 = vld [vmem:[%s6242_s13] sm:$0xff]  ;;  %v391_v15 = vpack.c.bf16 %v376_v12, %v375_v11  ;;  %v336_v16 = vld [vmem:[%s6242_s13 + $0x8] sm:$0xff]  ;;  %v377_v22 = vld [vmem:[%s6242_s13 + $0xb0] sm:$0xff]  ;;  %s5992_s10 = sshll.u32 %s6068_s28, 4  ;;  %s5993_s10 = int_to_ptr.vmem [resolvable:$false] %s5992_s10 }
  0x61   : > { %5054 = vmatpush3.bf16.msra.mxu0 %v5757_v2  ;;  %v351_v17 = vpack.c.bf16 %v336_v16, %v335_v13  ;;  %v5767_v18 = vld [vmem:[#allocation6 + $0x48] sm:$0xff]   ;;  %v5769_v20 = vld [vmem:[#allocation6 + $0x40] sm:$0xff]   ;;  %v378_v23 = vld [vmem:[%s6242_s13 + $0xb8] sm:$0xff]  ;;  %p5990_p1 = pnand %p5989_p11, %p7376_p10  ;;  %s5994_s1 = scalar_lea.vmem %s5993_s10, 2048 }
  0x62   : > { %5086 = vmatpush3.bf16.msra.mxu1 %v5758_v3  ;;  %5055 = vmatprep.subr.bf16.mxu0 %v5759_v4  ;;  %v5768_v19 = vld [vmem:[#allocation6 + $0x8] sm:$0xff]   ;;  %v5770_v21 = vld [vmem:[#allocation6] sm:$0xff]   ;;  %v337_v24 = vld [vmem:[%s6242_s13 + $0x10] sm:$0xff]  ;;  %v6260_v28 = vpack.c.bf16 %v378_v23, %v377_v22  ;;  %p5995_p6 = scmp.lt.s32.totalorder %s7216_s16, %s5993_s10  ;;  %p5996_p12 = scmp.lt.s32.totalorder %s5994_s1, %s5988_s20 }
  0x63   : > { %5087 = vmatprep.subr.bf16.mxu1 %v5760_v5  ;;  %5067 = vmatprep.mubr.bf16.mxu0 %v391_v15  ;;  %v338_v25 = vld [vmem:[%s6242_s13 + $0x18] sm:$0xff]  ;;  %v379_v29 = vld [vmem:[%s6242_s13 + $0xc0] sm:$0xff]  ;;  %v380_v30 = vld [vmem:[%s6242_s13 + $0xc8] sm:$0xff]  ;;  %p5991_p2 = pneg %p5990_p1 }
  0x64   : > { %5099 = vmatprep.mubr.bf16.mxu1 %v351_v17  ;;  %v5771_v26 = vld [vmem:[#allocation6 + $0xb8] sm:$0xff]   ;;  %v6264_v31 = vpack.c.bf16 %v338_v25, %v337_v24  ;;  %v339_v32 = vld [vmem:[%s6242_s13 + $0x20] sm:$0xff]  ;;  %v340_v33 = vld [vmem:[%s6242_s13 + $0x28] sm:$0xff]  ;;  %v6268_v36 = vpack.c.bf16 %v380_v30, %v379_v29  ;;  %p5997_p7 = por %p5996_p12, %p5995_p6 }
  0x65   : > { %5056 = vmatpush3.bf16.msra.mxu0 %v5759_v4  ;;  %v5772_v27 = vld [vmem:[#allocation6 + $0xf8] sm:$0xff]   ;;  %v5773_v34 = vld [vmem:[#allocation6 + $0xb0] sm:$0xff]   ;;  %v6271_v37 = vpack.c.bf16 %v340_v33, %v339_v32  ;;  %v5775_v42 = vld [vmem:[#allocation6 + $0xa8] sm:$0xff]   ;;  %v6065_v33 = vmov 0  }
  0x66   : > { %5088 = vmatpush3.bf16.msra.mxu1 %v5760_v5  ;;  %5057 = vmatprep.subr.bf16.mxu0 %v5761_v6  ;;  %v5774_v35 = vld [vmem:[#allocation6 + $0xf0] sm:$0xff]   ;;  %v382_v39 = vld [vmem:[%s6242_s13 + $0xd8] sm:$0xff]  ;;  %v5776_v43 = vld [vmem:[#allocation6 + $0xe8] sm:$0xff]   ;;  %p5998_p9 = pnand %p5997_p7, %p5991_p2 }
  0x67   : > { %5089 = vmatprep.subr.bf16.mxu1 %v5762_v7  ;;  %v381_v38 = vld [vmem:[%s6242_s13 + $0xd0] sm:$0xff]  ;;  %v342_v41 = vld [vmem:[%s6242_s13 + $0x38] sm:$0xff]  ;;  %v383_v44 = vld [vmem:[%s6242_s13 + $0xe0] sm:$0xff]  ;;  %5753 = vset.pattern.permute.xlu0 %v6065_v33 }
  0x68   : > { %v341_v40 = vld [vmem:[%s6242_s13 + $0x30] sm:$0xff]  ;;  %v6281_v45 = vpack.c.bf16 %v382_v39, %v381_v38  ;;  %v384_v46 = vld [vmem:[%s6242_s13 + $0xe8] sm:$0xff]  ;;  %v343_v47 = vld [vmem:[%s6242_s13 + $0x40] sm:$0xff]  ;;  %5754 = vset.pattern.permute.xlu1 %v6065_v33 }
  0x69   : > { %5058 = vmatpush3.bf16.msra.mxu0 %v5761_v6  ;;  %v6285_v48 = vpack.c.bf16 %v342_v41, %v341_v40  ;;  %v344_v49 = vld [vmem:[%s6242_s13 + $0x48] sm:$0xff]  ;;  %v5777_v50 = vld [vmem:[#allocation6 + $0xa0] sm:$0xff]   ;;  %v6288_v52 = vpack.c.bf16 %v384_v46, %v383_v44  ;;  %v385_v54 = vld [vmem:[%s6242_s13 + $0xf0] sm:$0xff] }
  0x6a   : > { %5090 = vmatpush3.bf16.msra.mxu1 %v5762_v7  ;;  %5059 = vmatprep.subr.bf16.mxu0 %v5763_v8  ;;  %v5778_v51 = vld [vmem:[#allocation6 + $0xe0] sm:$0xff]   ;;  %v6291_v53 = vpack.c.bf16 %v344_v49, %v343_v47  ;;  %v386_v55 = vld [vmem:[%s6242_s13 + $0xf8] sm:$0xff]  ;;  %v345_v56 = vld [vmem:[%s6242_s13 + $0x50] sm:$0xff] }
  0x6b   : > { %5091 = vmatprep.subr.bf16.mxu1 %v5764_v9  ;;  %v346_v57 = vld [vmem:[%s6242_s13 + $0x58] sm:$0xff]  ;;  %v387_v60 = vld [vmem:[%s6242_s13 + $0x100] sm:$0xff]  ;;  %v388_v61 = vld [vmem:[%s6242_s13 + $0x108] sm:$0xff]  ;;  %v6302_v62 = vpack.c.bf16 %v386_v55, %v385_v54 }
  0x6c   : > { %v5779_v58 = vld [vmem:[#allocation6 + $0x98] sm:$0xff]   ;;  %v347_v63 = vld [vmem:[%s6242_s13 + $0x60] sm:$0xff]  ;;  %v6305_v0 = vpack.c.bf16 %v346_v57, %v345_v56  ;;  %v348_v1 = vld [vmem:[%s6242_s13 + $0x68] sm:$0xff]  ;;  %v6308_v4 = vpack.c.bf16 %v388_v61, %v387_v60 }
  0x6d   : > { %5060 = vmatpush3.bf16.msra.mxu0 %v5763_v8  ;;  %v5780_v59 = vld [vmem:[#allocation6 + $0xd8] sm:$0xff]   ;;  %v5781_v2 = vld [vmem:[#allocation6 + $0x90] sm:$0xff]   ;;  %v6311_v5 = vpack.c.bf16 %v348_v1, %v347_v63  ;;  %v5784_v11 = vld [vmem:[#allocation6 + $0xc8] sm:$0xff]  }
  0x6e   : > { %5092 = vmatpush3.bf16.msra.mxu1 %v5764_v9  ;;  %5061 = vmatprep.subr.bf16.mxu0 %v5765_v10  ;;  %v5782_v3 = vld [vmem:[#allocation6 + $0xd0] sm:$0xff]   ;;  %v390_v7 = vld [vmem:[%s6242_s13 + $0x118] sm:$0xff]  ;;  %v706_v12 = vld [vmem:[%s6242_s13 + $0x1] sm:$0xff] }
  0x6f   : > { %5093 = vmatprep.subr.bf16.mxu1 %v5766_v14  ;;  %v389_v6 = vld [vmem:[%s6242_s13 + $0x110] sm:$0xff]  ;;  %v350_v9 = vld [vmem:[%s6242_s13 + $0x78] sm:$0xff]  ;;  %v908_v15 = vld [vmem:[%s6242_s13 + $0x140] sm:$0xff] }
  0x70   : > { %v349_v8 = vld [vmem:[%s6242_s13 + $0x70] sm:$0xff]  ;;  %v909_v17 = vld [vmem:[%s6242_s13 + $0x148] sm:$0xff]  ;;  %v709_v22 = vld [vmem:[%s6242_s13 + $0x19] sm:$0xff] }
  0x71   : > { %5062 = vmatpush3.bf16.msra.mxu0 %v5765_v10  ;;  %v5783_v10 = vld [vmem:[#allocation6 + $0x88] sm:$0xff]   ;;  %v6325_v16 = vpack.c.bf16 %v350_v9, %v349_v8  ;;  %v924_v23 = vpack.c.bf16 %v909_v17, %v908_v15  ;;  %v5787_v24 = vld [vmem:[#allocation6 + $0x138] sm:$0xff]   ;;  %v910_v25 = vld [vmem:[%s6242_s13 + $0x150] sm:$0xff] }
  0x72   : > { %5094 = vmatpush3.bf16.msra.mxu1 %v5766_v14  ;;  %5063 = vmatprep.subr.bf16.mxu0 %v5767_v18  ;;  %v707_v13 = vld [vmem:[%s6242_s13 + $0x9] sm:$0xff]  ;;  %v6322_v14 = vpack.c.bf16 %v390_v7, %v389_v6  ;;  %v710_v30 = vld [vmem:[%s6242_s13 + $0x21] sm:$0xff]  ;;  %v915_v49 = vld [vmem:[%s6242_s13 + $0x178] sm:$0xff] }
  0x73   : > { %5095 = vmatprep.subr.bf16.mxu1 %v5768_v19  ;;  %v711_v32 = vld [vmem:[%s6242_s13 + $0x29] sm:$0xff]  ;;  %v714_v54 = vld [vmem:[%s6242_s13 + $0x41] sm:$0xff]  ;;  %v716_v63 = vld [vmem:[%s6242_s13 + $0x51] sm:$0xff] }
  0x74   : > { %v913_v38 = vld [vmem:[%s6242_s13 + $0x168] sm:$0xff]  ;;  %v5789_v39 = vld [vmem:[#allocation6 + $0x130] sm:$0xff]   ;;  %v6340_v41 = vpack.c.bf16 %v711_v32, %v710_v30  ;;  %v916_v57 = vld [vmem:[%s6242_s13 + $0x180] sm:$0xff] }
  0x75   : > { %5064 = vmatpush3.bf16.msra.mxu0 %v5767_v18  ;;  %v5785_v18 = vld [vmem:[#allocation6 + $0x80] sm:$0xff]   ;;  %v5790_v40 = vld [vmem:[#allocation6 + $0x170] sm:$0xff]   ;;  %v5791_v44 = vld [vmem:[#allocation6 + $0x128] sm:$0xff]  }
  0x76   : > { %5096 = vmatpush3.bf16.msra.mxu1 %v5768_v19  ;;  %5065 = vmatprep.subr.bf16.mxu0 %v5769_v20  ;;  %v5786_v19 = vld [vmem:[#allocation6 + $0xc0] sm:$0xff]   ;;  %v914_v47 = vld [vmem:[%s6242_s13 + $0x170] sm:$0xff]  ;;  %v919_v7 = vld [vmem:[%s6242_s13 + $0x198] sm:$0xff] }
  0x77   : > { %5097 = vmatprep.subr.bf16.mxu1 %v5770_v21  ;;  %v715_v55 = vld [vmem:[%s6242_s13 + $0x49] sm:$0xff]  ;;  %v927_v56 = vpack.c.bf16 %v915_v49, %v914_v47  ;;  %v5794_v60 = vld [vmem:[#allocation6 + $0x160] sm:$0xff]   ;;  %v5796_v8 = vld [vmem:[#allocation6 + $0x158] sm:$0xff]  }
  0x78   : > { %v6354_v61 = vpack.c.bf16 %v715_v55, %v714_v54  ;;  %v918_v6 = vld [vmem:[%s6242_s13 + $0x190] sm:$0xff]  ;;  %v921_v15 = vld [vmem:[%s6242_s13 + $0x1a8] sm:$0xff]  ;;  %v1315_v49 = vld [vmem:[%s6242_s13 + $0x159] sm:$0xff] }
  0x79   : > { %5066 = vmatpush3.bf16.msra.mxu0 %v5769_v20  ;;  %v722_v20 = vpack.c.bf16 %v707_v13, %v706_v12  ;;  %v929_v12 = vpack.c.bf16 %v919_v7, %v918_v6  ;;  %v920_v13 = vld [vmem:[%s6242_s13 + $0x1a0] sm:$0xff]  ;;  %v5797_v17 = vld [vmem:[#allocation6 + $0x110] sm:$0xff]   ;;  %v1111_v30 = vld [vmem:[%s6242_s13 + $0x1e8] sm:$0xff] }
  0x7a   : > { %5098 = vmatpush3.bf16.msra.mxu1 %v5770_v21  ;;  %5115 = vmatprep.subr.bf16.mxu0 %v5771_v26  ;;  %v708_v21 = vld [vmem:[%s6242_s13 + $0x11] sm:$0xff]  ;;  %v1312_v33 = vld [vmem:[%s6242_s13 + $0x141] sm:$0xff] }
  0x7b   : > { %5147 = vmatprep.subr.bf16.mxu1 %v5772_v27  ;;  %v6334_v29 = vpack.c.bf16 %v709_v22, %v708_v21  ;;  %v930_v21 = vpack.c.bf16 %v921_v15, %v920_v13  ;;  %v721_v22 = vld [vmem:[%s6242_s13 + $0x79] sm:$0xff]  ;;  %v1314_v47 = vld [vmem:[%s6242_s13 + $0x151] sm:$0xff]  ;;  %v1115_v55 = vld [vmem:[%s6242_s13 + $0x208] sm:$0xff] }
  0x7c   : > { %5068 = vmatmul.mubr.bf16.vlgmr.msra.gmra.mxu0 %v6260_v28  ;;  %v1114_v54 = vld [vmem:[%s6242_s13 + $0x200] sm:$0xff]  ;;  %v5807_v6 = vld [vmem:[#allocation6 + $0x1a8] sm:$0xff]  }
  0x7d   : > { %5100 = vmatmul.mubr.bf16.vlgmr.msra.gmra.mxu1 %v6264_v31  ;;  %5116 = vmatpush3.bf16.msra.mxu0 %v5771_v26  ;;  %v911_v26 = vld [vmem:[%s6242_s13 + $0x158] sm:$0xff]  ;;  %v1118_v13 = vld [vmem:[%s6242_s13 + $0x220] sm:$0xff]  ;;  %v1119_v15 = vld [vmem:[%s6242_s13 + $0x228] sm:$0xff] }
  0x7e   : > { %5148 = vmatpush3.bf16.msra.mxu1 %v5772_v27  ;;  %5117 = vmatprep.subr.bf16.mxu0 %v5773_v34  ;;  %v5788_v27 = vld [vmem:[#allocation6 + $0x178] sm:$0xff]  }
  0x7f   : > { %5149 = vmatprep.subr.bf16.mxu1 %v5774_v35  ;;  %5071 = vmatprep.mubr.bf16.mxu0 %v6268_v36 }
  0x80   : > { %5103 = vmatprep.mubr.bf16.mxu1 %v6271_v37 }
  0x81   : > { %5118 = vmatpush3.bf16.msra.mxu0 %v5773_v34  ;;  %v925_v34 = vpack.c.bf16 %v911_v26, %v910_v25  ;;  %v923_v25 = vld [vmem:[%s6242_s13 + $0x1b8] sm:$0xff]  ;;  %v5800_v26 = vld [vmem:[#allocation6 + $0x148] sm:$0xff]  }
  0x82   : > { %5150 = vmatpush3.bf16.msra.mxu1 %v5774_v35  ;;  %5119 = vmatprep.subr.bf16.mxu0 %v5775_v42  ;;  %v912_v35 = vld [vmem:[%s6242_s13 + $0x160] sm:$0xff] }
  0x83   : > { %5151 = vmatprep.subr.bf16.mxu1 %v5776_v43  ;;  %v926_v46 = vpack.c.bf16 %v913_v38, %v912_v35  ;;  %v1313_v35 = vld [vmem:[%s6242_s13 + $0x149] sm:$0xff]  ;;  %v5801_v38 = vld [vmem:[#allocation6 + $0x100] sm:$0xff]  }
  0x84   : > { %5072 = vmatmul.mubr.bf16.gmra.mxu0 %v6281_v45 }
  0x85   : > { %5104 = vmatmul.mubr.bf16.gmra.mxu1 %v6285_v48  ;;  %5120 = vmatpush3.bf16.msra.mxu0 %v5775_v42  ;;  %v712_v42 = vld [vmem:[%s6242_s13 + $0x31] sm:$0xff] }
  0x86   : > { %5152 = vmatpush3.bf16.msra.mxu1 %v5776_v43  ;;  %5121 = vmatprep.subr.bf16.mxu0 %v5777_v50  ;;  %v713_v43 = vld [vmem:[%s6242_s13 + $0x39] sm:$0xff] }
  0x87   : > { %5153 = vmatprep.subr.bf16.mxu1 %v5778_v51  ;;  %5075 = vmatprep.mubr.bf16.mxu0 %v6288_v52 }
  0x88   : > { %5107 = vmatprep.mubr.bf16.mxu1 %v6291_v53 }
  0x89   : > { %5122 = vmatpush3.bf16.msra.mxu0 %v5777_v50  ;;  %v5792_v50 = vld [vmem:[#allocation6 + $0x168] sm:$0xff]  }
  0x8a   : > { %5154 = vmatpush3.bf16.msra.mxu1 %v5778_v51  ;;  %5123 = vmatprep.subr.bf16.mxu0 %v5779_v58  ;;  %v6348_v51 = vpack.c.bf16 %v713_v43, %v712_v42  ;;  %v1112_v42 = vld [vmem:[%s6242_s13 + $0x1f0] sm:$0xff]  ;;  %v1113_v43 = vld [vmem:[%s6242_s13 + $0x1f8] sm:$0xff] }
  0x8b   : > { %5155 = vmatprep.subr.bf16.mxu1 %v5780_v59 }
  0x8c   : > { %5076 = vmatmul.mubr.bf16.gmra.mxu0 %v6302_v62 }
  0x8d   : > { %5108 = vmatmul.mubr.bf16.gmra.mxu1 %v6305_v0  ;;  %5124 = vmatpush3.bf16.msra.mxu0 %v5779_v58  ;;  %v917_v58 = vld [vmem:[%s6242_s13 + $0x188] sm:$0xff] }
  0x8e   : > { %5156 = vmatpush3.bf16.msra.mxu1 %v5780_v59  ;;  %5125 = vmatprep.subr.bf16.mxu0 %v5781_v2  ;;  %v5793_v59 = vld [vmem:[#allocation6 + $0x120] sm:$0xff]   ;;  %v928_v1 = vpack.c.bf16 %v917_v58, %v916_v57  ;;  %v5805_v57 = vld [vmem:[#allocation6 + $0x1b0] sm:$0xff]  }
  0x8f   : > { %5157 = vmatprep.subr.bf16.mxu1 %v5782_v3  ;;  %5079 = vmatprep.mubr.bf16.mxu0 %v6308_v4  ;;  %v1316_v58 = vld [vmem:[%s6242_s13 + $0x161] sm:$0xff] }
  0x90   : > { %5111 = vmatprep.mubr.bf16.mxu1 %v6311_v5 }
  0x91   : > { %5126 = vmatpush3.bf16.msra.mxu0 %v5781_v2  ;;  %v717_v2 = vld [vmem:[%s6242_s13 + $0x59] sm:$0xff] }
  0x92   : > { %5158 = vmatpush3.bf16.msra.mxu1 %v5782_v3  ;;  %5127 = vmatprep.subr.bf16.mxu0 %v5783_v10  ;;  %v5795_v3 = vld [vmem:[#allocation6 + $0x118] sm:$0xff]   ;;  %v6362_v9 = vpack.c.bf16 %v717_v2, %v716_v63  ;;  %v5806_v63 = vld [vmem:[#allocation6 + $0x1f0] sm:$0xff]  }
  0x93   : > { %5159 = vmatprep.subr.bf16.mxu1 %v5784_v11  ;;  %v1116_v2 = vld [vmem:[%s6242_s13 + $0x210] sm:$0xff] }
  0x94   : > { %5080 = vmatmul.mubr.bf16.gmra.mxu0 %v6322_v14 }
  0x95   : > { %5112 = vmatmul.mubr.bf16.gmra.mxu1 %v6325_v16  ;;  %5128 = vmatpush3.bf16.msra.mxu0 %v5783_v10  ;;  %v718_v10 = vld [vmem:[%s6242_s13 + $0x61] sm:$0xff] }
  0x96   : > { %5160 = vmatpush3.bf16.msra.mxu1 %v5784_v11  ;;  %5129 = vmatprep.subr.bf16.mxu0 %v5785_v18  ;;  %v719_v11 = vld [vmem:[%s6242_s13 + $0x69] sm:$0xff] }
  0x97   : > { %5161 = vmatprep.subr.bf16.mxu1 %v5786_v19  ;;  %5131 = vmatprep.mubr.bf16.mxu0 %v722_v20  ;;  %v720_v20 = vld [vmem:[%s6242_s13 + $0x71] sm:$0xff] }
  0x98   : > { %5163 = vmatprep.mubr.bf16.mxu1 %v924_v23  ;;  %v5799_v23 = vld [vmem:[#allocation6 + $0x108] sm:$0xff]   ;;  %v6378_v32 = vpack.c.bf16 %v721_v22, %v720_v20  ;;  %v5810_v22 = vld [vmem:[#allocation6 + $0x1e0] sm:$0xff]  }
  0x99   : > { %5130 = vmatpush3.bf16.msra.mxu0 %v5785_v18  ;;  %v5798_v18 = vld [vmem:[#allocation6 + $0x150] sm:$0xff]  }
  0x9a   : > { %5162 = vmatpush3.bf16.msra.mxu1 %v5786_v19  ;;  %5179 = vmatprep.subr.bf16.mxu0 %v5787_v24  ;;  %v6368_v19 = vpack.c.bf16 %v719_v11, %v718_v10  ;;  %v1319_v10 = vld [vmem:[%s6242_s13 + $0x179] sm:$0xff]  ;;  %v5808_v11 = vld [vmem:[#allocation6 + $0x1e8] sm:$0xff]  }
  0x9b   : > { %5211 = vmatprep.subr.bf16.mxu1 %v5788_v27  ;;  %v1321_v20 = vld [vmem:[%s6242_s13 + $0x189] sm:$0xff] }
  0x9c   : > { %5132 = vmatmul.mubr.bf16.vlgmr.msra.gmra.mxu0 %v6334_v29 }
  0x9d   : > { %5180 = vmatpush3.bf16.msra.mxu0 %v5787_v24  ;;  %5164 = vmatmul.mubr.bf16.vlgmr.msra.gmra.mxu1 %v925_v34  ;;  %v922_v24 = vld [vmem:[%s6242_s13 + $0x1b0] sm:$0xff] }
  0x9e   : > { %5212 = vmatpush3.bf16.msra.mxu1 %v5788_v27  ;;  %5181 = vmatprep.subr.bf16.mxu0 %v5789_v39  ;;  %v1110_v27 = vld [vmem:[%s6242_s13 + $0x1e0] sm:$0xff]  ;;  %v931_v34 = vpack.c.bf16 %v923_v25, %v922_v24  ;;  %v1120_v24 = vld [vmem:[%s6242_s13 + $0x230] sm:$0xff] }
  0x9f   : > { %5213 = vmatprep.subr.bf16.mxu1 %v5790_v40  ;;  %5135 = vmatprep.mubr.bf16.mxu0 %v6340_v41 }
  0xa0   : > { %5167 = vmatprep.mubr.bf16.mxu1 %v926_v46  ;;  %v5803_v46 = vld [vmem:[#allocation6 + $0x1b8] sm:$0xff]  }
  0xa1   : > { %5182 = vmatpush3.bf16.msra.mxu0 %v5789_v39  ;;  %v5802_v39 = vld [vmem:[#allocation6 + $0x140] sm:$0xff]  }
  0xa2   : > { %5214 = vmatpush3.bf16.msra.mxu1 %v5790_v40  ;;  %5183 = vmatprep.subr.bf16.mxu0 %v5791_v44  ;;  %v1126_v40 = vpack.c.bf16 %v1111_v30, %v1110_v27  ;;  %v5811_v27 = vld [vmem:[#allocation6 + $0x198] sm:$0xff]   ;;  %v2159_v30 = vld [vmem:[%s7267_s6] sm:$0xff] }
  0xa3   : > { %5215 = vmatprep.subr.bf16.mxu1 %v5792_v50  ;;  %2177 = vperm.xlu0 %5753, %v2159_v30   ;;  %v5835_v30 = vld [vmem:[#allocation8 + $0x58] sm:$0xff]  }
  0xa4   : > { %5136 = vmatmul.mubr.bf16.gmra.mxu0 %v6348_v51 }
  0xa5   : > { %5184 = vmatpush3.bf16.msra.mxu0 %v5791_v44  ;;  %5168 = vmatmul.mubr.bf16.gmra.mxu1 %v927_v56  ;;  %v1328_v44 = vpack.c.bf16 %v1313_v35, %v1312_v33  ;;  %v1127_v56 = vpack.c.bf16 %v1113_v43, %v1112_v42  ;;  %v1322_v33 = vld [vmem:[%s6242_s13 + $0x191] sm:$0xff] }
  0xa6   : > { %5216 = vmatpush3.bf16.msra.mxu1 %v5792_v50  ;;  %5185 = vmatprep.subr.bf16.mxu0 %v5793_v59  ;;  %v5804_v50 = vld [vmem:[#allocation6 + $0x1f8] sm:$0xff]   ;;  %v2161_v35 = vld [vmem:[%s7267_s6 + $0x10] sm:$0xff] }
  0xa7   : > { %5217 = vmatprep.subr.bf16.mxu1 %v5794_v60  ;;  %5139 = vmatprep.mubr.bf16.mxu0 %v6354_v61  ;;  %v5813_v43 = vld [vmem:[#allocation6 + $0x190] sm:$0xff]  }
  0xa8   : > { %5171 = vmatprep.mubr.bf16.mxu1 %v928_v1  ;;  %v1128_v1 = vpack.c.bf16 %v1115_v55, %v1114_v54  ;;  %2187 = vperm.xlu1 %5754, %v2161_v35   ;;  %v1124_v55 = vld [vmem:[%s6242_s13 + $0x250] sm:$0xff] }
  0xa9   : > { %5186 = vmatpush3.bf16.msra.mxu0 %v5793_v59  ;;  %v1329_v59 = vpack.c.bf16 %v1315_v49, %v1314_v47  ;;  %v5814_v47 = vld [vmem:[#allocation6 + $0x1d0] sm:$0xff]  }
  0xaa   : > { %5218 = vmatpush3.bf16.msra.mxu1 %v5794_v60  ;;  %5187 = vmatprep.subr.bf16.mxu0 %v5795_v3  ;;  %v1317_v60 = vld [vmem:[%s6242_s13 + $0x169] sm:$0xff] }
  0xab   : > { %5219 = vmatprep.subr.bf16.mxu1 %v5796_v8  ;;  %v1330_v7 = vpack.c.bf16 %v1317_v60, %v1316_v58  ;;  %v1325_v49 = vld [vmem:[%s6242_s13 + $0x1a9] sm:$0xff]  ;;  %v1326_v60 = vld [vmem:[%s6242_s13 + $0x1b1] sm:$0xff] }
  0xac   : > { %5140 = vmatmul.mubr.bf16.gmra.mxu0 %v6362_v9  ;;  %v5815_v58 = vld [vmem:[#allocation6 + $0x188] sm:$0xff]  }
  0xad   : > { %5188 = vmatpush3.bf16.msra.mxu0 %v5795_v3  ;;  %5172 = vmatmul.mubr.bf16.gmra.mxu1 %v929_v12  ;;  %v1117_v3 = vld [vmem:[%s6242_s13 + $0x218] sm:$0xff] }
  0xae   : > { %5220 = vmatpush3.bf16.msra.mxu1 %v5796_v8  ;;  %5189 = vmatprep.subr.bf16.mxu0 %v5797_v17  ;;  %v1318_v8 = vld [vmem:[%s6242_s13 + $0x171] sm:$0xff]  ;;  %v1129_v12 = vpack.c.bf16 %v1117_v3, %v1116_v2  ;;  %v2163_v2 = vld [vmem:[%s7267_s6 + $0x20] sm:$0xff]  ;;  %v2164_v3 = vld [vmem:[%s7267_s6 + $0x28] sm:$0xff] }
  0xaf   : > { %5221 = vmatprep.subr.bf16.mxu1 %v5798_v18  ;;  %5143 = vmatprep.mubr.bf16.mxu0 %v6368_v19 }
  0xb0   : > { %5175 = vmatprep.mubr.bf16.mxu1 %v930_v21  ;;  %v5809_v21 = vld [vmem:[#allocation6 + $0x1a0] sm:$0xff]  }
  0xb1   : > { %5190 = vmatpush3.bf16.msra.mxu0 %v5797_v17  ;;  %v1331_v17 = vpack.c.bf16 %v1319_v10, %v1318_v8  ;;  %v5818_v10 = vld [vmem:[#allocation6 + $0x1c0] sm:$0xff]  }
  0xb2   : > { %5222 = vmatpush3.bf16.msra.mxu1 %v5798_v18  ;;  %5191 = vmatprep.subr.bf16.mxu0 %v5799_v23  ;;  %v1320_v18 = vld [vmem:[%s6242_s13 + $0x181] sm:$0xff] }
  0xb3   : > { %5223 = vmatprep.subr.bf16.mxu1 %v5800_v26  ;;  %v1332_v25 = vpack.c.bf16 %v1321_v20, %v1320_v18  ;;  %v2168_v18 = vld [vmem:[%s7267_s6 + $0x48] sm:$0xff] }
  0xb4   : > { %5144 = vmatmul.mubr.bf16.gmra.mxu0 %v6378_v32  ;;  %v5821_v20 = vld [vmem:[#allocation6 + $0x228] sm:$0xff]  }
  0xb5   : > { %5192 = vmatpush3.bf16.msra.mxu0 %v5799_v23  ;;  %5176 = vmatmul.mubr.bf16.gmra.mxu1 %v931_v34  ;;  %v1130_v23 = vpack.c.bf16 %v1119_v15, %v1118_v13  ;;  %v1323_v34 = vld [vmem:[%s6242_s13 + $0x199] sm:$0xff] }
  0xb6   : > { %5224 = vmatpush3.bf16.msra.mxu1 %v5800_v26  ;;  %5193 = vmatprep.subr.bf16.mxu0 %v5801_v38  ;;  %v1121_v26 = vld [vmem:[%s6242_s13 + $0x238] sm:$0xff]  ;;  %v2167_v15 = vld [vmem:[%s7267_s6 + $0x40] sm:$0xff] }
  0xb7   : > { %5225 = vmatprep.subr.bf16.mxu1 %v5802_v39  ;;  %5195 = vmatprep.mubr.bf16.mxu0 %v1126_v40  ;;  %v1123_v40 = vld [vmem:[%s6242_s13 + $0x248] sm:$0xff]  ;;  %v1131_v42 = vpack.c.bf16 %v1121_v26, %v1120_v24  ;;  %v2166_v13 = vld [vmem:[%s7267_s6 + $0x38] sm:$0xff] }
  0xb8   : > { %5227 = vmatprep.mubr.bf16.mxu1 %v1328_v44  ;;  %v1324_v44 = vld [vmem:[%s6242_s13 + $0x1a1] sm:$0xff] }
  0xb9   : > { %5194 = vmatpush3.bf16.msra.mxu0 %v5801_v38  ;;  %v5812_v38 = vld [vmem:[#allocation6 + $0x1d8] sm:$0xff]   ;;  %v1529_v24 = vld [vmem:[%s6242_s13 + $0x88] sm:$0xff] }
  0xba   : > { %5226 = vmatpush3.bf16.msra.mxu1 %v5802_v39  ;;  %5243 = vmatprep.subr.bf16.mxu0 %v5803_v46  ;;  %v1122_v39 = vld [vmem:[%s6242_s13 + $0x240] sm:$0xff]  ;;  %v1731_v26 = vld [vmem:[%s6242_s13 + $0x128] sm:$0xff] }
  0xbb   : > { %5275 = vmatprep.subr.bf16.mxu1 %v5804_v50  ;;  %v1132_v54 = vpack.c.bf16 %v1123_v40, %v1122_v39 }
  0xbc   : > { %5196 = vmatmul.mubr.bf16.vlgmr.msra.gmra.mxu0 %v1127_v56  ;;  %v1125_v56 = vld [vmem:[%s6242_s13 + $0x258] sm:$0xff] }
  0xbd   : > { %5244 = vmatpush3.bf16.msra.mxu0 %v5803_v46  ;;  %5228 = vmatmul.mubr.bf16.vlgmr.msra.gmra.mxu1 %v1329_v59  ;;  %v1333_v46 = vpack.c.bf16 %v1323_v34, %v1322_v33  ;;  %v1334_v59 = vpack.c.bf16 %v1325_v49, %v1324_v44 }
  0xbe   : > { %5276 = vmatpush3.bf16.msra.mxu1 %v5804_v50  ;;  %5245 = vmatprep.subr.bf16.mxu0 %v5805_v57  ;;  %v2160_v50 = vld [vmem:[%s7267_s6 + $0x8] sm:$0xff] }
  0xbf   : > { %5277 = vmatprep.subr.bf16.mxu1 %v5806_v63  ;;  %5199 = vmatprep.mubr.bf16.mxu0 %v1128_v1  ;;  %v5816_v1 = vld [vmem:[#allocation6 + $0x1c8] sm:$0xff]  }
  0xc0   : > { %5231 = vmatprep.mubr.bf16.mxu1 %v1330_v7  ;;  %2182 = vperm.xlu0 %5753, %v2160_v50   ;;  %v5817_v7 = vld [vmem:[#allocation6 + $0x180] sm:$0xff]  }
  0xc1   : > { %5246 = vmatpush3.bf16.msra.mxu0 %v5805_v57  ;;  %v2162_v57 = vld [vmem:[%s7267_s6 + $0x18] sm:$0xff] }
  0xc2   : > { %5278 = vmatpush3.bf16.msra.mxu1 %v5806_v63  ;;  %5247 = vmatprep.subr.bf16.mxu0 %v5807_v6  ;;  %v1327_v63 = vld [vmem:[%s6242_s13 + $0x1b9] sm:$0xff] }
  0xc3   : > { %5279 = vmatprep.subr.bf16.mxu1 %v5808_v11  ;;  %2192 = vperm.xlu1 %5754, %v2162_v57   ;;  %v1335_v8 = vpack.c.bf16 %v1327_v63, %v1326_v60 }
  0xc4   : > { %5200 = vmatmul.mubr.bf16.gmra.mxu0 %v1129_v12  ;;  %2197 = vperm.xlu0 %5753, %v2163_v2   ;;  %v5819_v12 = vld [vmem:[#allocation6 + $0x238] sm:$0xff]   ;;  %v5841_v2 = vld [vmem:[#allocation8 + $0x40] sm:$0xff]  }
  0xc5   : > { %5248 = vmatpush3.bf16.msra.mxu0 %v5807_v6  ;;  %5232 = vmatmul.mubr.bf16.gmra.mxu1 %v1331_v17  ;;  %v1133_v6 = vpack.c.bf16 %v1125_v56, %v1124_v55  ;;  %v5820_v17 = vld [vmem:[#allocation6 + $0x230] sm:$0xff]   ;;  %v5839_v55 = vld [vmem:[#allocation8 + $0x48] sm:$0xff]  }
  0xc6   : > { %5280 = vmatpush3.bf16.msra.mxu1 %v5808_v11  ;;  %5249 = vmatprep.subr.bf16.mxu0 %v5809_v21  ;;  %v2165_v11 = vld [vmem:[%s7267_s6 + $0x30] sm:$0xff] }
  0xc7   : > { %5281 = vmatprep.subr.bf16.mxu1 %v5810_v22  ;;  %5203 = vmatprep.mubr.bf16.mxu0 %v1130_v23  ;;  %v5824_v23 = vld [vmem:[#allocation6 + $0x210] sm:$0xff]  }
  0xc8   : > { %5235 = vmatprep.mubr.bf16.mxu1 %v1332_v25  ;;  %2202 = vperm.xlu1 %5754, %v2164_v3   ;;  %v1730_v25 = vld [vmem:[%s6242_s13 + $0x120] sm:$0xff]  ;;  %v6066_v3 = vmov 0.0  }
  0xc9   : > { %5250 = vmatpush3.bf16.msra.mxu0 %v5809_v21  ;;  %2207 = vperm.xlu0 %5753, %v2165_v11   ;;  %v2171_v21 = vld [vmem:[%s7267_s6 + $0x60] sm:$0xff]  ;;  %327 = vst [vmem:[#allocation2] sm:$0xff] %v6066_v3  ;;  %329 = vst [vmem:[#allocation2 + $0x10] sm:$0xff] %v6066_v3 }
  0xca   : > { %5282 = vmatpush3.bf16.msra.mxu1 %v5810_v22  ;;  %5251 = vmatprep.subr.bf16.mxu0 %v5811_v27  ;;  %v2174_v22 = vld [vmem:[%s7267_s6 + $0x78] sm:$0xff]  ;;  %330 = vst [vmem:[#allocation2 + $0x18] sm:$0xff] %v6066_v3  ;;  %328 = vst [vmem:[#allocation2 + $0x8] sm:$0xff] %v6066_v3 }
  0xcb   : > { %5283 = vmatprep.subr.bf16.mxu1 %v5812_v38  ;;  %331 = vst [vmem:[#allocation2 + $0xa0] sm:$0xff] %v6066_v3  ;;  %332 = vst [vmem:[#allocation2 + $0xa8] sm:$0xff] %v6066_v3 }
  0xcc   : > { %5204 = vmatmul.mubr.bf16.gmra.mxu0 %v1131_v42  ;;  %2212 = vperm.xlu1 %5754, %v2166_v13   ;;  %v5834_v42 = vld [vmem:[#allocation8 + $0x20] sm:$0xff]   ;;  %333 = vst [vmem:[#allocation2 + $0xb0] sm:$0xff] %v6066_v3  ;;  %v6506_v13 = vld [vmem:[#allocation8 + $0xb8] sm:$0xff]  }
  0xcd   : > { %5252 = vmatpush3.bf16.msra.mxu0 %v5811_v27  ;;  %5236 = vmatmul.mubr.bf16.gmra.mxu1 %v1333_v46  ;;  %v1739_v27 = vpack.c.bf16 %v1731_v26, %v1730_v25  ;;  %7288 = vst [vmem:[#allocation13_spill] sm:$0xff] %v6506_v13  ;;  %v6513_v25 = vld [vmem:[#allocation8 + $0xf8] sm:$0xff]  }
  0xce   : > { %5284 = vmatpush3.bf16.msra.mxu1 %v5812_v38  ;;  %5253 = vmatprep.subr.bf16.mxu0 %v5813_v43  ;;  %7289 = vst [vmem:[#allocation14_spill] sm:$0xff] %v6513_v25 }
  0xcf   : > { %5285 = vmatprep.subr.bf16.mxu1 %v5814_v47  ;;  %5207 = vmatprep.mubr.bf16.mxu0 %v1132_v54  ;;  %v5836_v54 = vld [vmem:[#allocation8 + $0x18] sm:$0xff]  }
  0xd0   : > { %5239 = vmatprep.mubr.bf16.mxu1 %v1334_v59  ;;  %2217 = vperm.xlu0 %5753, %v2167_v15  }
  0xd1   : > { %5254 = vmatpush3.bf16.msra.mxu0 %v5813_v43  ;;  %2222 = vperm.xlu1 %5754, %v2168_v18   ;;  %v5837_v43 = vld [vmem:[#allocation8 + $0x50] sm:$0xff]  }
  0xd2   : > { %5286 = vmatpush3.bf16.msra.mxu1 %v5814_v47  ;;  %5255 = vmatprep.subr.bf16.mxu0 %v5815_v58 }
  0xd3   : > { %5287 = vmatprep.subr.bf16.mxu1 %v5816_v1 }
  0xd4   : > { %5208 = vmatmul.mubr.bf16.gmra.mxu0 %v1133_v6 }
  0xd5   : > { %5256 = vmatpush3.bf16.msra.mxu0 %v5815_v58  ;;  %5240 = vmatmul.mubr.bf16.gmra.mxu1 %v1335_v8 }
  0xd6   : > { %5288 = vmatpush3.bf16.msra.mxu1 %v5816_v1  ;;  %5257 = vmatprep.subr.bf16.mxu0 %v5817_v7  ;;  %v5838_v1 = vld [vmem:[#allocation8 + $0x10] sm:$0xff]  }
  0xd7   : > { %5289 = vmatprep.subr.bf16.mxu1 %v5818_v10  ;;  %5259 = vmatprep.mubr.bf16.mxu0 %v6264_v31  ;;  %v2169_v31 = vld [vmem:[%s7267_s6 + $0x50] sm:$0xff] }
  0xd8   : > { %5291 = vmatprep.mubr.bf16.mxu1 %v6260_v28  ;;  %v2170_v28 = vld [vmem:[%s7267_s6 + $0x58] sm:$0xff]  ;;  %2227 = vperm.xlu0 %5753, %v2169_v31  }
  0xd9   : > { %5258 = vmatpush3.bf16.msra.mxu0 %v5817_v7  ;;  %2232 = vperm.xlu1 %5754, %v2170_v28  }
  0xda   : > { %5290 = vmatpush3.bf16.msra.mxu1 %v5818_v10  ;;  %5307 = vmatprep.subr.bf16.mxu0 %v5819_v12 }
  0xdc   : > { %5260 = vmatmul.mubr.bf16.vlgmr.msra.gmra.mxu0 %v6271_v37  ;;  %v5822_v37 = vld [vmem:[#allocation6 + $0x220] sm:$0xff]   ;;  %2237 = vperm.xlu0 %5753, %v2171_v21  }
  0xdd   : > { %5308 = vmatpush3.bf16.msra.mxu0 %v5819_v12  ;;  %5292 = vmatmul.mubr.bf16.vlgmr.msra.gmra.mxu1 %v6268_v36  ;;  %v2172_v36 = vld [vmem:[%s7267_s6 + $0x68] sm:$0xff] }
  0xde   : > { %5309 = vmatprep.subr.bf16.mxu0 %v5820_v17  ;;  %5263 = vmatprep.mubr.bf16.mxu0 %v6285_v48  ;;  %v2173_v48 = vld [vmem:[%s7267_s6 + $0x70] sm:$0xff]  ;;  %v5840_v12 = vld [vmem:[#allocation8 + $0x8] sm:$0xff]  }
  0xdf   : > { %5295 = vmatprep.mubr.bf16.mxu1 %v6281_v45  ;;  %v5823_v45 = vld [vmem:[#allocation6 + $0x218] sm:$0xff]   ;;  %2242 = vperm.xlu1 %5754, %v2172_v36  }
  0xe0   : > { %2247 = vperm.xlu0 %5753, %v2173_v48  }
  0xe1   : > { %5310 = vmatpush3.bf16.msra.mxu0 %v5820_v17  ;;  %v6067_v17 = vmov 0.0|0.0  }
  0xe2   : > { %5311 = vmatprep.subr.bf16.mxu0 %v5821_v20 }
  0xe3   : > { %2252 = vperm.xlu1 %5754, %v2174_v22   ;;  %v2287_v22 = vld [vmem:[#allocation2 + $0xf] sm:$0xff] }
  0xe4   : > { %5264 = vmatmul.mubr.bf16.gmra.mxu0 %v6291_v53  ;;  %v1528_v53 = vld [vmem:[%s6242_s13 + $0x80] sm:$0xff] }
  0xe5   : > { %5312 = vmatpush3.bf16.msra.mxu0 %v5821_v20  ;;  %5296 = vmatmul.mubr.bf16.gmra.mxu1 %v6288_v52  ;;  %v5825_v52 = vld [vmem:[#allocation6 + $0x208] sm:$0xff]  }
  0xe6   : > { %5313 = vmatprep.subr.bf16.mxu0 %v5822_v37  ;;  %5267 = vmatprep.mubr.bf16.mxu0 %v6305_v0  ;;  %v5826_v0 = vld [vmem:[#allocation6 + $0x200] sm:$0xff]  }
  0xe7   : > { %5299 = vmatprep.mubr.bf16.mxu1 %v6302_v62  ;;  %v1537_v62 = vpack.c.bf16 %v1529_v24, %v1528_v53 }
  0xe9   : > { %5314 = vmatpush3.bf16.msra.mxu0 %v5822_v37  ;;  %v5842_v37 = vld [vmem:[#allocation8] sm:$0xff]  }
  0xea   : > { %5315 = vmatprep.subr.bf16.mxu0 %v5823_v45 }
  0xec   : > { %5268 = vmatmul.mubr.bf16.gmra.mxu0 %v6311_v5  ;;  %v1933_v5 = vld [vmem:[%s6242_s13 + $0x89] sm:$0xff] }
  0xed   : > { %5316 = vmatpush3.bf16.msra.mxu0 %v5823_v45  ;;  %5300 = vmatmul.mubr.bf16.gmra.mxu1 %v6308_v4  ;;  %v1932_v4 = vld [vmem:[%s6242_s13 + $0x81] sm:$0xff] }
  0xee   : > { %5317 = vmatprep.subr.bf16.mxu0 %v5824_v23  ;;  %5271 = vmatprep.mubr.bf16.mxu0 %v6325_v16  ;;  %v5827_v16 = vld [vmem:[#allocation8 + $0x78] sm:$0xff]  }
  0xef   : > { %5303 = vmatprep.mubr.bf16.mxu1 %v6322_v14  ;;  %v1941_v14 = vpack.c.bf16 %v1933_v5, %v1932_v4  ;;  %5339 = vmatprep.subr.bf16.mxu1 %v5827_v16 }
  0xf0   : > { %5340 = vmatpush3.bf16.msra.mxu1 %v5827_v16 }
  0xf1   : > { %5318 = vmatpush3.bf16.msra.mxu0 %v5824_v23  ;;  %v2288_v23 = vld [vmem:[#allocation2 + $0x17] sm:$0xff] }
  0xf2   : > { %5319 = vmatprep.subr.bf16.mxu0 %v5825_v52  ;;  %v2303_v24 = vpack.c.bf16 %v2288_v23, %v2287_v22 }
  0xf4   : > { %5272 = vmatmul.mubr.bf16.gmra.mxu0 %v1537_v62 }
  0xf5   : > { %5320 = vmatpush3.bf16.msra.mxu0 %v5825_v52  ;;  %5304 = vmatmul.mubr.bf16.gmra.mxu1 %v1739_v27 }
  0xf6   : > { %5321 = vmatprep.subr.bf16.mxu0 %v5826_v0  ;;  %5323 = vmatprep.mubr.bf16.mxu0 %v6334_v29  ;;  %v5829_v29 = vld [vmem:[#allocation8 + $0x70] sm:$0xff]  }
  0xf7   : > { %5341 = vmatprep.subr.bf16.mxu1 %v5829_v29  ;;  %5355 = vmatprep.mubr.bf16.mxu1 %v6067_v17 }
  0xf8   : > { %5342 = vmatpush3.bf16.msra.mxu1 %v5829_v29 }
  0xf9   : > { %5322 = vmatpush3.bf16.msra.mxu0 %v5826_v0 }
  0xfc   : > { %5324 = vmatmul.mubr.bf16.vlgmr.msra.gmra.mxu0 %v6340_v41  ;;  %v5828_v41 = vld [vmem:[#allocation8 + $0x38] sm:$0xff]  }
  0xfd   : > { %5327 = vmatprep.mubr.bf16.mxu0 %v6348_v51  ;;  %v5831_v51 = vld [vmem:[#allocation8 + $0x68] sm:$0xff]   ;;  %5371 = vmatprep.subr.bf16.mxu0 %v5828_v41 }
  0xfe   : > { %5343 = vmatprep.subr.bf16.mxu1 %v5831_v51  ;;  %5372 = vmatpush3.bf16.msra.mxu0 %v5828_v41 }
  0xff   : > { %5344 = vmatpush3.bf16.msra.mxu1 %v5831_v51 }
 0x104   : > { %5328 = vmatmul.mubr.bf16.gmra.mxu0 %v6354_v61  ;;  %v5830_v61 = vld [vmem:[#allocation8 + $0x30] sm:$0xff]  }
 0x105   : > { %5331 = vmatprep.mubr.bf16.mxu0 %v6362_v9  ;;  %v5833_v9 = vld [vmem:[#allocation8 + $0x60] sm:$0xff]   ;;  %5373 = vmatprep.subr.bf16.mxu0 %v5830_v61 }
 0x106   : > { %5345 = vmatprep.subr.bf16.mxu1 %v5833_v9  ;;  %5374 = vmatpush3.bf16.msra.mxu0 %v5830_v61 }
 0x107   : > { %5346 = vmatpush3.bf16.msra.mxu1 %v5833_v9 }
 0x108   : > { %5347 = vmatprep.subr.bf16.mxu1 %v5835_v30 }
 0x10b   : > { %5348 = vmatpush3.bf16.msra.mxu1 %v5835_v30 }
 0x10c   : > { %5332 = vmatmul.mubr.bf16.gmra.mxu0 %v6368_v19  ;;  %5349 = vmatprep.subr.bf16.mxu1 %v5837_v43 }
 0x10d   : > { %5335 = vmatprep.mubr.bf16.mxu0 %v6378_v32  ;;  %v5832_v32 = vld [vmem:[#allocation8 + $0x28] sm:$0xff]  }
 0x10e   : > { %5375 = vmatprep.subr.bf16.mxu0 %v5832_v32 }
 0x10f   : > { %5376 = vmatpush3.bf16.msra.mxu0 %v5832_v32  ;;  %5350 = vmatpush3.bf16.msra.mxu1 %v5837_v43 }
 0x110   : > { %5377 = vmatprep.subr.bf16.mxu0 %v5834_v42  ;;  %5351 = vmatprep.subr.bf16.mxu1 %v5839_v55 }
 0x113   : > { %5378 = vmatpush3.bf16.msra.mxu0 %v5834_v42  ;;  %5352 = vmatpush3.bf16.msra.mxu1 %v5839_v55 }
 0x114   : > { %5336 = vmatmul.mubr.bf16.gmra.mxu0 %v1941_v14  ;;  %5379 = vmatprep.subr.bf16.mxu0 %v5836_v54 }
 0x115   : > { %5353 = vmatprep.subr.bf16.mxu1 %v5841_v2  ;;  %5387 = vmatprep.mubr.bf16.mxu0 %v2303_v24 }
 0x117   : > { %5380 = vmatpush3.bf16.msra.mxu0 %v5836_v54  ;;  %5354 = vmatpush3.bf16.msra.mxu1 %v5841_v2 }
 0x118   : > { %5381 = vmatprep.subr.bf16.mxu0 %v5838_v1  ;;  %5403 = vmatprep.subr.bf16.mxu1 %v6506_v13 }
 0x11b   : > { %5382 = vmatpush3.bf16.msra.mxu0 %v5838_v1 }
 0x11c   : > { %5383 = vmatprep.subr.bf16.mxu0 %v5840_v12 }
 0x11f   : > { %5384 = vmatpush3.bf16.msra.mxu0 %v5840_v12 }
 0x120   : > { %5385 = vmatprep.subr.bf16.mxu0 %v5842_v37 }
 0x123   : > { %5386 = vmatpush3.bf16.msra.mxu0 %v5842_v37 }
 0x124   : > { %5435 = vmatprep.subr.bf16.mxu0 %v6513_v25 }
 0x13c   : > { %v5069_v19 = vpop.f32.mrf.mxu0 }
 0x13d   : > { %v5101_v33 = vpop.f32.mrf.mxu1 }
 0x13e   : > { %v6486_v34 = vadd.f32 %v5101_v33, %v5069_v19  ;;  %v498_v35 = vpop.f32.mrf.mxu0 }
 0x13f   : > { %v643_v38 = vpop.f32.mrf.mxu1 }
 0x140   : > { %v6488_v39 = vadd.f32 %v643_v38, %v498_v35  ;;  %v5070_v40 = vpop.f32.mrf.mxu0 }
 0x141   : > { %v5102_v44 = vpop.f32.mrf.mxu1 }
 0x142   : > { %v6490_v46 = vadd.f32 %v5102_v44, %v5070_v40  ;;  %v6492_v47 = vpop.f32.mrf.mxu0 }
 0x143   : > { %v6494_v49 = vpop.f32.mrf.mxu1 }
 0x144   : > { %v5073_v50 = vpop.f32.mrf.mxu0 }
 0x145   : > { %v5105_v56 = vpop.f32.mrf.mxu1 }
 0x146   : > { %v6496_v57 = vadd.f32 %v5105_v56, %v5073_v50  ;;  %v514_v58 = vpop.f32.mrf.mxu0 }
 0x147   : > { %v659_v59 = vpop.f32.mrf.mxu1 }
 0x148   : > { %v6498_v60 = vadd.f32 %v659_v59, %v514_v58  ;;  %v5074_v63 = vpop.f32.mrf.mxu0 }
 0x149   : > { %v5106_v6 = vpop.f32.mrf.mxu1 }
 0x14a   : > { %v6500_v7 = vadd.f32 %v5106_v6, %v5074_v63  ;;  %v6502_v8 = vpop.f32.mrf.mxu0 }
 0x14b   : > { %v6504_v10 = vpop.f32.mrf.mxu1 }
 0x14c   : > { %v5077_v11 = vpop.f32.mrf.mxu0 }
 0x14d   : > { %v5109_v15 = vpop.f32.mrf.mxu1 }
 0x14e   : > { %v684_v18 = vadd.f32 %v5109_v15, %v5077_v11  ;;  %v530_v31 = vpop.f32.mrf.mxu0 }
 0x14f   : > { %v675_v20 = vpop.f32.mrf.mxu1 }
 0x150   : > { %v676_v28 = vadd.f32 %v675_v20, %v530_v31  ;;  %v5078_v21 = vpop.f32.mrf.mxu0 }
 0x151   : > { %v5110_v36 = vpop.f32.mrf.mxu1 }
 0x152   : > { %v687_v48 = vadd.f32 %v5110_v36, %v5078_v21  ;;  %v6509_v45 = vpop.f32.mrf.mxu0 }
 0x153   : > { %v6511_v53 = vpop.f32.mrf.mxu1 }
 0x154   : > { %v5081_v52 = vpop.f32.mrf.mxu0 }
 0x155   : > { %v5113_v26 = vpop.f32.mrf.mxu1 }
 0x156   : > { %v700_v62 = vadd.f32 %v5113_v26, %v5081_v52  ;;  %v546_v0 = vpop.f32.mrf.mxu0 }
 0x157   : > { %v691_v27 = vpop.f32.mrf.mxu1 }
 0x158   : > { %v692_v4 = vadd.f32 %v691_v27, %v546_v0  ;;  %v5082_v5 = vpop.f32.mrf.mxu0 }
 0x159   : > { %v5114_v14 = vpop.f32.mrf.mxu1 }
 0x15a   : > { %v703_v16 = vadd.f32 %v5114_v14, %v5082_v5  ;;  %v6516_v29 = vpop.f32.mrf.mxu0 }
 0x15b   : > { %v6518_v41 = vpop.f32.mrf.mxu1 }
 0x15c   : > { %v5133_v51 = vpop.f32.mrf.mxu0 }
 0x15d   : > { %v6521_v61 = vadd.f32 %v5133_v51, %v6486_v34  ;;  %v6523_v9 = vpop.f32.mrf.mxu1 }
 0x15e   : > { %v829_v19 = vpop.f32.mrf.mxu0 }
 0x15f   : > { %v6526_v32 = vadd.f32 %v829_v19, %v6488_v39  ;;  %v6528_v30 = vpop.f32.mrf.mxu1 }
 0x160   : > { %v5134_v33 = vpop.f32.mrf.mxu0 }
 0x161   : > { %v6531_v35 = vadd.f32 %v5134_v33, %v6490_v46  ;;  %v6533_v38 = vpop.f32.mrf.mxu1 }
 0x162   : > { %v6535_v40 = vpop.f32.mrf.mxu0 }
 0x163   : > { %v6537_v42 = vpop.f32.mrf.mxu1 }
 0x164   : > { %v5137_v34 = vpop.f32.mrf.mxu0 }
 0x165   : > { %v6540_v43 = vadd.f32 %v5137_v34, %v6496_v57  ;;  %v6542_v44 = vpop.f32.mrf.mxu1 }
 0x166   : > { %v845_v39 = vpop.f32.mrf.mxu0 }
 0x167   : > { %v6545_v50 = vadd.f32 %v845_v39, %v6498_v60  ;;  %v6547_v54 = vpop.f32.mrf.mxu1 }
 0x168   : > { %v5138_v46 = vpop.f32.mrf.mxu0 }
 0x169   : > { %v6550_v55 = vadd.f32 %v5138_v46, %v6500_v7  ;;  %v6552_v56 = vpop.f32.mrf.mxu1 }
 0x16a   : > { %v6554_v58 = vpop.f32.mrf.mxu0 }
 0x16b   : > { %v6556_v59 = vpop.f32.mrf.mxu1 }
 0x16c   : > { %v5141_v57 = vpop.f32.mrf.mxu0 }
 0x16d   : > { %v6558_v63 = vadd.f32 %v5141_v57, %v684_v18  ;;  %v6560_v1 = vpop.f32.mrf.mxu1 }
 0x16e   : > { %v861_v2 = vpop.f32.mrf.mxu0 }
 0x16f   : > { %v6562_v60 = vadd.f32 %v861_v2, %v676_v28  ;;  %v6564_v3 = vpop.f32.mrf.mxu1 }
 0x170   : > { %v5142_v6 = vpop.f32.mrf.mxu0 }
 0x171   : > { %v6566_v11 = vadd.f32 %v5142_v6, %v687_v48  ;;  %v6568_v7 = vpop.f32.mrf.mxu1 }
 0x172   : > { %v6570_v12 = vpop.f32.mrf.mxu0 }
 0x173   : > { %v6572_v15 = vpop.f32.mrf.mxu1 }
 0x174   : > { %v5145_v17 = vpop.f32.mrf.mxu0 }
 0x175   : > { %v6574_v31 = vadd.f32 %v5145_v17, %v700_v62  ;;  %v6576_v18 = vpop.f32.mrf.mxu1 }
 0x176   : > { %v877_v20 = vpop.f32.mrf.mxu0 }
 0x177   : > { %v6578_v21 = vadd.f32 %v877_v20, %v692_v4  ;;  %v6580_v28 = vpop.f32.mrf.mxu1 }
 0x178   : > { %v5146_v37 = vpop.f32.mrf.mxu0 }
 0x179   : > { %v6582_v36 = vadd.f32 %v5146_v37, %v703_v16  ;;  %v6584_v48 = vpop.f32.mrf.mxu1 }
 0x17a   : > { %7291 = vst [vmem:[#allocation16_spill] sm:$0xff] %v6584_v48  ;;  %v6586_v22 = vpop.f32.mrf.mxu0 }
 0x17b   : > { %7290 = vst [vmem:[#allocation15_spill] sm:$0xff] %v6582_v36  ;;  %v6588_v23 = vpop.f32.mrf.mxu1 }
 0x17c   : > { %7292 = vst [vmem:[#allocation17_spill] sm:$0xff] %v6588_v23  ;;  %v5197_v24 = vpop.f32.mrf.mxu0 }
 0x17d   : > { %v6590_v52 = vpop.f32.mrf.mxu1 }
 0x17e   : > { %v1233_v26 = vpop.f32.mrf.mxu0 }
 0x17f   : > { %v6592_v62 = vpop.f32.mrf.mxu1 }
 0x180   : > { %v5198_v0 = vpop.f32.mrf.mxu0 }
 0x181   : > { %v6594_v27 = vpop.f32.mrf.mxu1 }
 0x182   : > { %v6596_v4 = vpop.f32.mrf.mxu0 }
 0x183   : > { %v6598_v5 = vpop.f32.mrf.mxu1 }
 0x184   : > { %v6600_v14 = vpop.f32.mrf.mxu0 }
 0x185   : > { %v6602_v16 = vpop.f32.mrf.mxu1 }
 0x186   : > { %v6604_v51 = vpop.f32.mrf.mxu0 }
 0x187   : > { %v6606_v19 = vpop.f32.mrf.mxu1 }
 0x188   : > { %7293 = vst [vmem:[#allocation18_spill] sm:$0xff] %v6606_v19  ;;  %v6608_v33 = vpop.f32.mrf.mxu0 }
 0x189   : > { %v6610_v34 = vpop.f32.mrf.mxu1 }
 0x18a   : > { %7294 = vst [vmem:[#allocation19_spill] sm:$0xff] %v6610_v34  ;;  %v6612_v39 = vpop.f32.mrf.mxu0 }
 0x18b   : > { %7295 = vst [vmem:[#allocation20_spill] sm:$0xff] %v6612_v39  ;;  %v6614_v46 = vpop.f32.mrf.mxu1 }
 0x18c   : > { %7296 = vst [vmem:[#allocation21_spill] sm:$0xff] %v6614_v46  ;;  %v6616_v57 = vpop.f32.mrf.mxu0 }
 0x18d   : > { %7297 = vst [vmem:[#allocation22_spill] sm:$0xff] %v6616_v57  ;;  %v6618_v2 = vpop.f32.mrf.mxu1 }
 0x18e   : > { %7298 = vst [vmem:[#allocation23_spill] sm:$0xff] %v6618_v2  ;;  %v6620_v6 = vpop.f32.mrf.mxu0 }
 0x18f   : > { %7299 = vst [vmem:[#allocation24_spill] sm:$0xff] %v6620_v6  ;;  %v6622_v17 = vpop.f32.mrf.mxu1 }
 0x190   : > { %7300 = vst [vmem:[#allocation25_spill] sm:$0xff] %v6622_v17  ;;  %v6624_v20 = vpop.f32.mrf.mxu0 }
 0x191   : > { %7301 = vst [vmem:[#allocation26_spill] sm:$0xff] %v6624_v20  ;;  %v6626_v37 = vpop.f32.mrf.mxu1 }
 0x192   : > { %7302 = vst [vmem:[#allocation27_spill] sm:$0xff] %v6626_v37  ;;  %v6628_v25 = vpop.f32.mrf.mxu0 }
 0x193   : > { %7303 = vst [vmem:[#allocation28_spill] sm:$0xff] %v6628_v25  ;;  %v6630_v13 = vpop.f32.mrf.mxu1 }
 0x194   : > { %7304 = vst [vmem:[#allocation29_spill] sm:$0xff] %v6630_v13  ;;  %v6632_v34 = vpop.f32.mrf.mxu0 }
 0x195   : > { %7305 = vst [vmem:[#allocation30_spill] sm:$0xff] %v6632_v34  ;;  %v6634_v19 = vpop.f32.mrf.mxu1 }
 0x196   : > { %7306 = vst [vmem:[#allocation31_spill] sm:$0xff] %v6634_v19  ;;  %v6636_v46 = vpop.f32.mrf.mxu0 }
 0x197   : > { %7307 = vst [vmem:[#allocation32_spill] sm:$0xff] %v6636_v46  ;;  %v6638_v23 = vpop.f32.mrf.mxu1 }
 0x198   : > { %7308 = vst [vmem:[#allocation33_spill] sm:$0xff] %v6638_v23  ;;  %v6640_v2 = vpop.f32.mrf.mxu0 }
 0x199   : > { %7309 = vst [vmem:[#allocation34_spill] sm:$0xff] %v6640_v2  ;;  %v6642_v6 = vpop.f32.mrf.mxu1 }
 0x19a   : > { %7310 = vst [vmem:[#allocation35_spill] sm:$0xff] %v6642_v6  ;;  %v6644_v17 = vpop.f32.mrf.mxu0 }
 0x19b   : > { %7311 = vst [vmem:[#allocation36_spill] sm:$0xff] %v6644_v17  ;;  %v6646_v20 = vpop.f32.mrf.mxu1 }
 0x19c   : > { %7312 = vst [vmem:[#allocation37_spill] sm:$0xff] %v6646_v20  ;;  %v5261_v37 = vpop.f32.mrf.mxu0 }
 0x19d   : > { %v5293_v25 = vpop.f32.mrf.mxu1 }
 0x19e   : > { %v1637_v48 = vpop.f32.mrf.mxu0 }
 0x19f   : > { %v6648_v13 = vpop.f32.mrf.mxu1 }
 0x1a0   : > { %7313 = vst [vmem:[#allocation38_spill] sm:$0xff] %v6648_v13  ;;  %v5262_v34 = vpop.f32.mrf.mxu0 }
 0x1a1   : > { %v6650_v36 = vpop.f32.mrf.mxu1 }
 0x1a2   : > { %7314 = vst [vmem:[#allocation39_spill] sm:$0xff] %v6650_v36  ;;  %v6652_v19 = vpop.f32.mrf.mxu0  ;;  %v647_v36 = vadd.f32 %v6494_v49, %v6492_v47  ;;  %v1097_v47 = vadd.f32 %v6533_v38, %v6531_v35  ;;  %v695_v35 = vadd.f32 %v6518_v41, %v6516_v29  ;;  %v1100_v38 = vadd.f32 %v6542_v44, %v6540_v43 }
 0x1a3   : > { %v6656_v23 = vpop.f32.mrf.mxu1  ;;  %v1101_v29 = vadd.f32 %v6552_v56, %v6550_v55  ;;  %v1104_v43 = vadd.f32 %v6560_v1, %v6558_v63  ;;  %v1108_v56 = vadd.f32 %v6576_v18, %v6574_v31  ;;  %v7324_v31 = vld [vmem:[#allocation20_spill] sm:$0xff] }
 0x1a4   : > { %v6654_v46 = vpop.f32.mrf.mxu0  ;;  %7316 = vst [vmem:[#allocation41_spill] sm:$0xff] %v6656_v23  ;;  %v1096_v23 = vadd.f32 %v6523_v9, %v6521_v61  ;;  %v679_v61 = vadd.f32 %v6511_v53, %v6509_v45  ;;  %v1302_v44 = vadd.f32 %v6600_v14, %v1100_v38 }
 0x1a5   : > { %7315 = vst [vmem:[#allocation40_spill] sm:$0xff] %v6654_v46  ;;  %v6662_v17 = vpop.f32.mrf.mxu1  ;;  %v6676_v46 = vpop.permute.xlu0 %2177 }
 0x1a6   : > { %v6658_v2 = vpop.f32.mrf.mxu0  ;;  %7319 = vst [vmem:[#allocation44_spill] sm:$0xff] %v6662_v17  ;;  %v901_v45 = vadd.f32 %v6570_v12, %v679_v61 }
 0x1a7   : > { %7317 = vst [vmem:[#allocation42_spill] sm:$0xff] %v6658_v2  ;;  %v6668_v13 = vpop.f32.mrf.mxu1 }
 0x1a8   : > { %v6660_v6 = vpop.f32.mrf.mxu0  ;;  %7322 = vst [vmem:[#allocation47_spill] sm:$0xff] %v6668_v13  ;;  %v1103_v55 = vadd.f32 %v6572_v15, %v901_v45  ;;  %v1106_v15 = vadd.f32 %v6580_v28, %v6578_v21 }
 0x1a9   : > { %7318 = vst [vmem:[#allocation43_spill] sm:$0xff] %v6660_v6  ;;  %v1094_v6 = vadd.f32 %v6528_v30, %v6526_v32  ;;  %v6683_v17 = vpop.f32.mrf.mxu1  ;;  %v6694_v32 = vpop.permute.xlu1 %2187  ;;  %v7334_v38 = vld [vmem:[#allocation39_spill] sm:$0xff] }
 0x1aa   : > { %v6664_v20 = vpop.f32.mrf.mxu0  ;;  %v6707_v53 = vpop.permute.xlu0 %2182 }
 0x1ab   : > { %7320 = vst [vmem:[#allocation45_spill] sm:$0xff] %v6664_v20  ;;  %v893_v20 = vadd.f32 %v6535_v40, %v647_v36  ;;  %v1296_v49 = vadd.f32 %v1233_v26, %v1094_v6  ;;  %v7329_v6 = vld [vmem:[#allocation17_spill] sm:$0xff] }
 0x1ac   : > { %v6666_v57 = vpop.f32.mrf.mxu0 }
 0x1ad   : > { %7321 = vst [vmem:[#allocation46_spill] sm:$0xff] %v6666_v57  ;;  %v1298_v57 = vadd.f32 %v5197_v24, %v1096_v23  ;;  %v1095_v40 = vadd.f32 %v6537_v42, %v893_v20  ;;  %v1098_v42 = vadd.f32 %v6547_v54, %v6545_v50  ;;  %v1498_v23 = vadd.f32 %v6592_v62, %v1296_v49  ;;  %v6735_v1 = vpop.permute.xlu1 %2192  ;;  %v7331_v49 = vld [vmem:[#allocation24_spill] sm:$0xff] }
 0x1ae   : > { %v6670_v39 = vpop.f32.mrf.mxu0  ;;  %v1102_v50 = vadd.f32 %v6564_v3, %v6562_v60  ;;  %v1105_v54 = vadd.f32 %v6568_v7, %v6566_v11  ;;  %v1303_v11 = vadd.f32 %v6608_v33, %v1101_v29  ;;  %v6746_v14 = vpop.permute.xlu0 %2197  ;;  %v7326_v33 = vld [vmem:[#allocation15_spill] sm:$0xff] }
 0x1af   : > { %7323 = vst [vmem:[#allocation48_spill] sm:$0xff] %v6670_v39  ;;  %v663_v39 = vadd.f32 %v6504_v10, %v6502_v8  ;;  %v1500_v36 = vadd.f32 %v6590_v52, %v1298_v57  ;;  %v1299_v8 = vadd.f32 %v5198_v0, %v1097_v47  ;;  %v6700_v10 = vpop.f32.mrf.mxu1  ;;  %v1297_v24 = vadd.f32 %v6596_v4, %v1095_v40 }
 0x1b0   : > { %v6678_v2 = vpop.f32.mrf.mxu0  ;;  %v1700_v62 = vadd.f32 %v1637_v48, %v1498_v23  ;;  %v1300_v63 = vadd.f32 %v6604_v51, %v1098_v42  ;;  %v1304_v61 = vadd.f32 %v7331_v49, %v1102_v50  ;;  %v7335_v23 = vld [vmem:[#allocation21_spill] sm:$0xff]  ;;  %v7345_v49 = vld [vmem:[#allocation30_spill] sm:$0xff] }
 0x1b1   : > { %v897_v9 = vadd.f32 %v6554_v58, %v663_v39  ;;  %v1702_v52 = vadd.f32 %v5261_v37, %v1500_v36  ;;  %v1501_v26 = vadd.f32 %v6594_v27, %v1299_v8  ;;  %v6728_v0 = vpop.f32.mrf.mxu1  ;;  %v1499_v3 = vadd.f32 %v6598_v5, %v1297_v24  ;;  %v6751_v5 = vld [vmem:[%s7265_s4] ss:$0 sm:$0xff]  ;;  %v7328_v39 = vld [vmem:[#allocation38_spill] sm:$0xff]  ;;  %v7333_v8 = vld [vmem:[#allocation19_spill] sm:$0xff] }
 0x1b2   : > { %v6687_v13 = vpop.f32.mrf.mxu0  ;;  %v1504_v27 = vadd.f32 %v6602_v16, %v1302_v44  ;;  %v1902_v57 = vadd.f32 %v7328_v39, %v1700_v62  ;;  %v7330_v37 = vld [vmem:[#allocation18_spill] sm:$0xff]  ;;  %v6772_v62 = vpop.permute.xlu1 %2202 }
 0x1b3   : > { %v1099_v41 = vadd.f32 %v6556_v59, %v897_v9  ;;  %v905_v59 = vadd.f32 %v6586_v22, %v695_v35  ;;  %v1904_v7 = vadd.f32 %v5293_v25, %v1702_v52  ;;  %v1703_v48 = vadd.f32 %v5262_v34, %v1501_v26  ;;  %v7325_v22 = vld [vmem:[#allocation22_spill] sm:$0xff]  ;;  %v7327_v25 = vld [vmem:[#allocation16_spill] sm:$0xff]  ;;  %v6757_v28 = vpop.f32.mrf.mxu1  ;;  %v7336_v52 = vld [vmem:[#allocation23_spill] sm:$0xff] }
 0x1b4   : > { %v6696_v30 = vpop.f32.mrf.mxu0  ;;  %v1306_v4 = vadd.f32 %v7325_v22, %v1104_v43  ;;  %v1109_v34 = vadd.f32 %v7327_v25, %v7326_v33  ;;  %v1701_v21 = vadd.f32 %v6652_v19, %v1499_v3  ;;  %v1502_v47 = vadd.f32 %v7330_v37, %v1300_v63  ;;  %v7332_v9 = vld [vmem:[#allocation40_spill] sm:$0xff]  ;;  %v7338_v44 = vld [vmem:[#allocation42_spill] sm:$0xff]  ;;  %v2208_v25 = vpop.permute.xlu0 %2207  ;;  %v7344_v37 = vld [vmem:[#allocation27_spill] sm:$0xff] }
 0x1b5   : > { %v1301_v18 = vadd.f32 %v7324_v31, %v1099_v41  ;;  %v6760_v20 = vadd.f32 %v7329_v6, %v905_v59  ;;  %v1706_v40 = vadd.f32 %v7332_v9, %v1504_v27  ;;  %v1505_v35 = vadd.f32 %v7333_v8, %v1303_v11  ;;  %v7337_v41 = vld [vmem:[#allocation26_spill] sm:$0xff]  ;;  %v7339_v59 = vld [vmem:[#allocation41_spill] sm:$0xff]  ;;  %v6775_v3 = vpop.f32.mrf.mxu1 }
 0x1b6   : > { %v6709_v58 = vpop.f32.mrf.mxu0  ;;  %v1905_v45 = vadd.f32 %v7334_v38, %v1703_v48  ;;  %v1508_v29 = vadd.f32 %v7336_v52, %v1306_v4  ;;  %v1307_v43 = vadd.f32 %v7337_v41, %v1105_v54  ;;  %v1704_v26 = vadd.f32 %v7338_v44, %v1502_v47  ;;  %v7340_v27 = vld [vmem:[#allocation25_spill] sm:$0xff]  ;;  %v7342_v4 = vld [vmem:[#allocation44_spill] sm:$0xff]  ;;  %v7343_v54 = vld [vmem:[#allocation43_spill] sm:$0xff] }
 0x1b7   : > { %v1503_v24 = vadd.f32 %v7335_v23, %v1301_v18  ;;  %v1903_v63 = vadd.f32 %v7339_v59, %v1701_v21  ;;  %v1506_v31 = vadd.f32 %v7340_v27, %v1304_v61  ;;  %v7341_v18 = vld [vmem:[#allocation28_spill] sm:$0xff]  ;;  %v1707_v33 = vadd.f32 %v7343_v54, %v1505_v35  ;;  %v7347_v8 = vld [vmem:[#allocation45_spill] sm:$0xff] }
 0x1b8   : > { %v6721_v12 = vpop.f32.mrf.mxu0  ;;  %v1305_v22 = vadd.f32 %v7341_v18, %v1103_v55  ;;  %v1509_v47 = vadd.f32 %v7344_v37, %v1307_v43  ;;  %v1310_v9 = vadd.f32 %v7345_v49, %v1108_v56  ;;  %v7349_v52 = vld [vmem:[#allocation32_spill] sm:$0xff]  ;;  %v7350_v43 = vld [vmem:[#allocation46_spill] sm:$0xff] }
 0x1b9   : > { %v1705_v55 = vadd.f32 %v7347_v8, %v1503_v24  ;;  %v1308_v41 = vadd.f32 %v7349_v52, %v1106_v15  ;;  %v1909_v56 = vadd.f32 %v6683_v17, %v1707_v33  ;;  %v1710_v44 = vadd.f32 %v7350_v43, %v1508_v29  ;;  %v7353_v15 = vld [vmem:[#allocation48_spill] sm:$0xff]  ;;  %v6802_v17 = vpop.permute.xlu0 %2217  ;;  %v7358_v43 = vld [vmem:[#allocation37_spill] sm:$0xff] }
 0x1ba   : > { %v6737_v60 = vpop.f32.mrf.mxu0 }
 0x1bb   : > { %v1907_v18 = vadd.f32 %v6700_v10, %v1705_v55 }
 0x1bc   : > { %v5325_v51 = vpop.f32.mrf.mxu0 }
 0x1bd   : > { %v2106_v16 = vadd.f32 %v5325_v51, %v1904_v7  ;;  %v1908_v51 = vadd.f32 %v7342_v4, %v1706_v40  ;;  %v6788_v40 = vpop.f32.mrf.mxu1 }
 0x1be   : > { %v2041_v36 = vpop.f32.mrf.mxu0 }
 0x1bf   : > { %v2129_v42 = vadd.f32 %v6751_v5, %v2106_v16  ;;  %v2104_v19 = vadd.f32 %v2041_v36, %v1902_v57  ;;  %v7346_v36 = vld [vmem:[#allocation47_spill] sm:$0xff]  ;;  %v5305_v4 = vpop.f32.mrf.mxu1 }
 0x1c0   : > { %v5326_v50 = vpop.f32.mrf.mxu0  ;;  %v1906_v61 = vadd.f32 %v7346_v36, %v1704_v26  ;;  %v2213_v26 = vpop.permute.xlu1 %2212 }
 0x1c1   : > { %v2145_v11 = vmax.f32 %v2129_v42, 0.0  ;;  %v2127_v7 = vadd.f32 %v6751_v5, %v2104_v19  ;;  %v2107_v48 = vadd.f32 %v5326_v50, %v1905_v45  ;;  %v7348_v19 = vld [vmem:[#allocation29_spill] sm:$0xff] }
 0x1c2   : > { %v2044_v39 = vpop.f32.mrf.mxu0  ;;  %v1507_v23 = vadd.f32 %v7348_v19, %v1305_v22  ;;  %v1708_v22 = vadd.f32 %v7353_v15, %v1506_v31 }
 0x1c3   : > { %v2257_v57 = vmul.f32 %v6694_v32, %v2145_v11  ;;  %v2143_v16 = vmax.f32 %v2127_v7, 0.0  ;;  %v2130_v21 = vadd.f32 %v6751_v5, %v2107_v48  ;;  %v2105_v6 = vadd.f32 %v2044_v39, %v1903_v63  ;;  %v7351_v11 = vld [vmem:[#allocation31_spill] sm:$0xff]  ;;  %v7352_v48 = vld [vmem:[#allocation34_spill] sm:$0xff]  ;;  %v7354_v39 = vld [vmem:[#allocation33_spill] sm:$0xff] }
 0x1c4   : > { %v5329_v38 = vpop.f32.mrf.mxu0  ;;  %v1512_v7 = vadd.f32 %v7351_v11, %v1310_v9  ;;  %v1311_v27 = vadd.f32 %v7352_v48, %v1109_v34  ;;  %v1711_v34 = vadd.f32 %v6678_v2, %v1509_v47  ;;  %v1709_v8 = vadd.f32 %v6687_v13, %v1507_v23  ;;  %v6816_v55 = vpop.permute.xlu1 %2222 }
 0x1c5   : > { %2273 = vst [vmem:[#allocation2 + $0x30] sm:$0xff] %v2257_v57  ;;  %v2255_v35 = vmul.f32 %v6676_v46, %v2143_v16  ;;  %v2146_v45 = vmax.f32 %v2130_v21, 0.0  ;;  %v2128_v32 = vadd.f32 %v6751_v5, %v2105_v6  ;;  %v2110_v42 = vadd.f32 %v5329_v38, %v1908_v51  ;;  %v1887_v47 = vpop.f32.mrf.mxu1 }
 0x1c6   : > { %v2057_v24 = vpop.f32.mrf.mxu0  ;;  %v1510_v16 = vadd.f32 %v7354_v39, %v1308_v41  ;;  %v1912_v21 = vadd.f32 %v6728_v0, %v1710_v44  ;;  %v7356_v41 = vld [vmem:[#allocation13_spill] sm:$0xff] }
 0x1c7   : > { %2271 = vst [vmem:[#allocation2 + $0x20] sm:$0xff] %v2255_v35  ;;  %v2258_v50 = vmul.f32 %v6735_v1, %v2146_v45  ;;  %v2144_v59 = vmax.f32 %v2128_v32, 0.0  ;;  %v2133_v46 = vadd.f32 %v6751_v5, %v2110_v42  ;;  %v2108_v63 = vadd.f32 %v2057_v24, %v1906_v61  ;;  %v2228_v42 = vpop.permute.xlu0 %2227  ;;  %v5847_v24 = vld [vmem:[#allocation8 + $0xa8] sm:$0xff]  }
 0x1c8   : > { %v5330_v29 = vpop.f32.mrf.mxu0  ;;  %v1910_v61 = vadd.f32 %v6757_v28, %v1708_v22  ;;  %v1714_v28 = vadd.f32 %v6696_v30, %v1512_v7  ;;  %v1712_v13 = vadd.f32 %v6709_v58, %v1510_v16  ;;  %v1911_v58 = vadd.f32 %v6788_v40, %v1709_v8 }
 0x1c9   : > { %2274 = vst [vmem:[#allocation2 + $0x38] sm:$0xff] %v2258_v50  ;;  %v2256_v51 = vmul.f32 %v6707_v53, %v2144_v59  ;;  %v2149_v1 = vmax.f32 %v2133_v46, 0.0  ;;  %v2131_v54 = vadd.f32 %v6751_v5, %v2108_v63  ;;  %v2111_v33 = vadd.f32 %v5330_v29, %v1909_v56  ;;  %v7355_v53 = vld [vmem:[#allocation36_spill] sm:$0xff]  ;;  %v7357_v56 = vld [vmem:[#allocation35_spill] sm:$0xff] }
 0x1ca   : > { %v2060_v10 = vpop.f32.mrf.mxu0  ;;  %v6809_v6 = vpack.c.bf16 %v2258_v50, %v2257_v57  ;;  %v1309_v36 = vadd.f32 %v7355_v53, %v6760_v20  ;;  %v5845_v57 = vld [vmem:[#allocation8 + $0xb0] sm:$0xff]   ;;  %v1913_v20 = vadd.f32 %v6775_v3, %v1711_v34  ;;  %v1513_v3 = vadd.f32 %v7357_v56, %v1311_v27  ;;  %v5306_v50 = vpop.f32.mrf.mxu1 }
 0x1cb   : > { %2272 = vst [vmem:[#allocation2 + $0x28] sm:$0xff] %v2256_v51  ;;  %v2261_v31 = vmul.f32 %v2208_v25, %v2149_v1  ;;  %v2147_v37 = vmax.f32 %v2131_v54, 0.0  ;;  %v2134_v49 = vadd.f32 %v6751_v5, %v2111_v33  ;;  %v2109_v9 = vadd.f32 %v2060_v10, %v1907_v18  ;;  %v2233_v27 = vpop.permute.xlu1 %2232  ;;  %v2238_v39 = vpop.permute.xlu0 %2237  ;;  %v5846_v34 = vld [vmem:[#allocation8 + $0xf0] sm:$0xff]  }
 0x1cc   : > { %v5333_v0 = vpop.f32.mrf.mxu0  ;;  %v6818_v2 = vpack.c.bf16 %v2256_v51, %v2255_v35  ;;  %v1511_v30 = vadd.f32 %v7358_v43, %v1309_v36  ;;  %v1916_v11 = vadd.f32 %v5305_v4, %v1714_v28  ;;  %v1715_v7 = vadd.f32 %v6721_v12, %v1513_v3 }
 0x1cd   : > { %2277 = vst [vmem:[#allocation2 + $0x50] sm:$0xff] %v2261_v31  ;;  %v2259_v25 = vmul.f32 %v6746_v14, %v2147_v37  ;;  %v2150_v38 = vmax.f32 %v2134_v49, 0.0  ;;  %v2132_v45 = vadd.f32 %v6751_v5, %v2109_v9  ;;  %v2114_v32 = vadd.f32 %v5333_v0, %v1912_v21 }
 0x1ce   : > { %v2073_v19 = vpop.f32.mrf.mxu0  ;;  %5356 = vmatmul.mubr.bf16.vlgmr.msra.gmra.mxu1 %v6818_v2  ;;  %v1914_v48 = vadd.f32 %v1887_v47, %v1712_v13  ;;  %v2289_v54 = vld [vmem:[#allocation2 + $0x1f] sm:$0xff]  ;;  %v1713_v4 = vadd.f32 %v6737_v60, %v1511_v30  ;;  %v1917_v36 = vadd.f32 %v5306_v50, %v1715_v7  ;;  %v5853_v7 = vld [vmem:[#allocation8 + $0x90] sm:$0xff]  }
 0x1cf   : > { %2275 = vst [vmem:[#allocation2 + $0x40] sm:$0xff] %v2259_v25  ;;  %v2262_v35 = vmul.f32 %v2213_v26, %v2150_v38  ;;  %v2148_v23 = vmax.f32 %v2132_v45, 0.0  ;;  %v2137_v52 = vadd.f32 %v6751_v5, %v2114_v32  ;;  %v2112_v14 = vadd.f32 %v2073_v19, %v1910_v61  ;;  %5359 = vmatprep.mubr.bf16.mxu1 %v6809_v6  ;;  %v5849_v61 = vld [vmem:[#allocation8 + $0xa0] sm:$0xff]   ;;  %v2243_v38 = vpop.permute.xlu1 %2242  ;;  %v5848_v32 = vld [vmem:[#allocation8 + $0xe8] sm:$0xff]   ;;  %v2248_v19 = vpop.permute.xlu0 %2247 }
 0x1d0   : > { %5404 = vmatpush3.bf16.msra.mxu1 %v7356_v41  ;;  %v5334_v44 = vpop.f32.mrf.mxu0  ;;  %v2292_v33 = vld [vmem:[#allocation2 + $0x37] sm:$0xff] }
 0x1d1   : > { %5405 = vmatprep.subr.bf16.mxu1 %v5845_v57  ;;  %2278 = vst [vmem:[#allocation2 + $0x58] sm:$0xff] %v2262_v35  ;;  %v2260_v26 = vmul.f32 %v6772_v62, %v2148_v23  ;;  %v2153_v59 = vmax.f32 %v2137_v52, 0.0  ;;  %v2135_v46 = vadd.f32 %v6751_v5, %v2112_v14  ;;  %v2115_v63 = vadd.f32 %v5334_v44, %v1913_v20 }
 0x1d2   : > { %v2076_v18 = vpop.f32.mrf.mxu0  ;;  %v2290_v15 = vld [vmem:[#allocation2 + $0x27] sm:$0xff]  ;;  %v2291_v22 = vld [vmem:[#allocation2 + $0x2f] sm:$0xff]  ;;  %v6835_v40 = vpack.c.bf16 %v2262_v35, %v2261_v31  ;;  %v1890_v31 = vpop.f32.mrf.mxu1 }
 0x1d3   : > { %2276 = vst [vmem:[#allocation2 + $0x48] sm:$0xff] %v2260_v26  ;;  %v2265_v29 = vmul.f32 %v2228_v42, %v2153_v59  ;;  %v2151_v51 = vmax.f32 %v2135_v46, 0.0  ;;  %v2138_v1 = vadd.f32 %v6751_v5, %v2115_v63  ;;  %v2113_v62 = vadd.f32 %v2076_v18, %v1911_v58  ;;  %v5852_v18 = vld [vmem:[#allocation8 + $0xd8] sm:$0xff]  }
 0x1d4   : > { %5406 = vmatpush3.bf16.msra.mxu1 %v5845_v57  ;;  %v5337_v12 = vpop.f32.mrf.mxu0  ;;  %v6839_v16 = vpack.c.bf16 %v2290_v15, %v2289_v54  ;;  %v6841_v21 = vpack.c.bf16 %v2292_v33, %v2291_v22  ;;  %v6843_v10 = vpack.c.bf16 %v2260_v26, %v2259_v25  ;;  %v1915_v25 = vadd.f32 %v1890_v31, %v1713_v4  ;;  %v5851_v26 = vld [vmem:[#allocation8 + $0x98] sm:$0xff]   ;;  %v5857_v31 = vld [vmem:[#allocation8 + $0x80] sm:$0xff]  }
 0x1d5   : > { %5407 = vmatprep.subr.bf16.mxu1 %v5847_v24  ;;  %2281 = vst [vmem:[#allocation2 + $0x70] sm:$0xff] %v2265_v29  ;;  %v2263_v37 = vmul.f32 %v6802_v17, %v2151_v51  ;;  %v2154_v49 = vmax.f32 %v2138_v1, 0.0  ;;  %v2136_v9 = vadd.f32 %v6751_v5, %v2113_v62  ;;  %v2118_v53 = vadd.f32 %v5337_v12, %v1916_v11  ;;  %v7359_v17 = vld [vmem:[#allocation14_spill] sm:$0xff]  ;;  %v2253_v11 = vpop.permute.xlu1 %2252  ;;  %v2658_v4 = vld [vmem:[#allocation2 + $0x11] sm:$0xff] }
 0x1d6   : > { %5388 = vmatmul.mubr.bf16.vlgmr.msra.gmra.mxu0 %v6839_v16  ;;  %v2089_v60 = vpop.f32.mrf.mxu0  ;;  %5360 = vmatmul.mubr.bf16.gmra.mxu1 %v6843_v10  ;;  %v5855_v12 = vld [vmem:[#allocation8 + $0x88] sm:$0xff]  }
 0x1d7   : > { %2279 = vst [vmem:[#allocation2 + $0x60] sm:$0xff] %v2263_v37  ;;  %v2266_v8 = vmul.f32 %v2233_v27, %v2154_v49  ;;  %v2152_v0 = vmax.f32 %v2136_v9, 0.0  ;;  %v2141_v57 = vadd.f32 %v6751_v5, %v2118_v53  ;;  %v2116_v47 = vadd.f32 %v2089_v60, %v1914_v48  ;;  %5391 = vmatprep.mubr.bf16.mxu0 %v6841_v21  ;;  %v5856_v49 = vld [vmem:[#allocation8 + $0xc8] sm:$0xff]  }
 0x1d8   : > { %5436 = vmatpush3.bf16.msra.mxu0 %v7359_v17  ;;  %v5338_v45 = vpop.f32.mrf.mxu0  ;;  %5363 = vmatprep.mubr.bf16.mxu1 %v6835_v40  ;;  %v2296_v30 = vld [vmem:[#allocation2 + $0x57] sm:$0xff] }
 0x1d9   : > { %5437 = vmatprep.subr.bf16.mxu0 %v5846_v34  ;;  %2282 = vst [vmem:[#allocation2 + $0x78] sm:$0xff] %v2266_v8  ;;  %v2264_v20 = vmul.f32 %v6816_v55, %v2152_v0  ;;  %v2157_v28 = vmax.f32 %v2141_v57, 0.0  ;;  %v2139_v13 = vadd.f32 %v6751_v5, %v2116_v47  ;;  %v2119_v42 = vadd.f32 %v5338_v45, %v1917_v36  ;;  %v2293_v55 = vld [vmem:[#allocation2 + $0x3f] sm:$0xff]  ;;  %v2662_v17 = vld [vmem:[#allocation2 + $0x31] sm:$0xff] }
 0x1da   : > { %5408 = vmatpush3.bf16.msra.mxu1 %v5847_v24  ;;  %v2092_v35 = vpop.f32.mrf.mxu0  ;;  %v2294_v23 = vld [vmem:[#allocation2 + $0x47] sm:$0xff]  ;;  %v2295_v52 = vld [vmem:[#allocation2 + $0x4f] sm:$0xff]  ;;  %v6855_v14 = vpack.c.bf16 %v2266_v8, %v2265_v29  ;;  %v5859_v36 = vld [vmem:[#allocation8 + $0x138] sm:$0xff]  }
 0x1db   : > { %5409 = vmatprep.subr.bf16.mxu1 %v5849_v61  ;;  %2280 = vst [vmem:[#allocation2 + $0x68] sm:$0xff] %v2264_v20  ;;  %v6857_v41 = vmul.f32 %v2248_v19, %v2157_v28  ;;  %v2155_v56 = vmax.f32 %v2139_v13, 0.0  ;;  %v2142_v3 = vadd.f32 %v6751_v5, %v2119_v42  ;;  %v2117_v43 = vadd.f32 %v2092_v35, %v1915_v25  ;;  %v5850_v24 = vld [vmem:[#allocation8 + $0xe0] sm:$0xff]   ;;  %v2661_v8 = vld [vmem:[#allocation2 + $0x29] sm:$0xff]  ;;  %v5860_v45 = vld [vmem:[#allocation8 + $0x178] sm:$0xff]  }
 0x1dc   : > { %5438 = vmatpush3.bf16.msra.mxu0 %v5846_v34  ;;  %v6860_v58 = vpack.c.bf16 %v2294_v23, %v2293_v55  ;;  %v6862_v44 = vpack.c.bf16 %v2296_v30, %v2295_v52  ;;  %v6864_v50 = vpack.c.bf16 %v2264_v20, %v2263_v37  ;;  %v2659_v34 = vld [vmem:[#allocation2 + $0x19] sm:$0xff]  ;;  %v5861_v25 = vld [vmem:[#allocation8 + $0x130] sm:$0xff]   ;;  %v2664_v20 = vld [vmem:[#allocation2 + $0x41] sm:$0xff] }
 0x1dd   : > { %5439 = vmatprep.subr.bf16.mxu0 %v5848_v32  ;;  %2285 = vst [vmem:[#allocation2 + $0x90] sm:$0xff] %v6857_v41  ;;  %v2267_v59 = vmul.f32 %v2238_v39, %v2155_v56  ;;  %v2158_v46 = vmax.f32 %v2142_v3, 0.0  ;;  %v2140_v63 = vadd.f32 %v6751_v5, %v2117_v43  ;;  %v5854_v39 = vld [vmem:[#allocation8 + $0xd0] sm:$0xff]   ;;  %v2674_v37 = vpack.c.bf16 %v2659_v34, %v2658_v4  ;;  %v5858_v0 = vld [vmem:[#allocation8 + $0xc0] sm:$0xff]   ;;  %v5864_v52 = vld [vmem:[#allocation8 + $0x168] sm:$0xff]  }
 0x1de   : > { %5410 = vmatpush3.bf16.msra.mxu1 %v5849_v61  ;;  %5392 = vmatmul.mubr.bf16.gmra.mxu0 %v6860_v58  ;;  %v2297_v15 = vld [vmem:[#allocation2 + $0x5f] sm:$0xff]  ;;  %v2665_v28 = vld [vmem:[#allocation2 + $0x49] sm:$0xff]  ;;  %v2666_v19 = vld [vmem:[#allocation2 + $0x51] sm:$0xff] }
 0x1df   : > { %5364 = vmatmul.mubr.bf16.gmra.mxu1 %v6864_v50  ;;  %2283 = vst [vmem:[#allocation2 + $0x80] sm:$0xff] %v2267_v59  ;;  %v6870_v48 = vmul.f32 %v2253_v11, %v2158_v46  ;;  %v2156_v27 = vmax.f32 %v2140_v63, 0.0  ;;  %5395 = vmatprep.mubr.bf16.mxu0 %v6862_v44  ;;  %v2660_v61 = vld [vmem:[#allocation2 + $0x21] sm:$0xff]  ;;  %v2663_v57 = vld [vmem:[#allocation2 + $0x39] sm:$0xff]  ;;  %v5862_v13 = vld [vmem:[#allocation8 + $0x170] sm:$0xff]  }
 0x1e0   : > { %5440 = vmatpush3.bf16.msra.mxu0 %v5848_v32  ;;  %5411 = vmatprep.subr.bf16.mxu1 %v5851_v26  ;;  %v2300_v1 = vld [vmem:[#allocation2 + $0x77] sm:$0xff]  ;;  %v6889_v47 = vpack.c.bf16 %v2661_v8, %v2660_v61  ;;  %v5863_v32 = vld [vmem:[#allocation8 + $0x128] sm:$0xff]   ;;  %v5865_v35 = vld [vmem:[#allocation8 + $0x120] sm:$0xff]  }
 0x1e1   : > { %5441 = vmatprep.subr.bf16.mxu0 %v5850_v24  ;;  %2286 = vst [vmem:[#allocation2 + $0x98] sm:$0xff] %v6870_v48  ;;  %v2268_v5 = vmul.f32 %v2243_v38, %v2156_v27  ;;  %5367 = vmatprep.mubr.bf16.mxu1 %v6855_v14  ;;  %v3085_v22 = vpack.c.bf16 %v6870_v48, %v6857_v41  ;;  %v2667_v42 = vld [vmem:[#allocation2 + $0x59] sm:$0xff]  ;;  %v5871_v11 = vld [vmem:[#allocation8 + $0x108] sm:$0xff]   ;;  %v5877_v34 = vld [vmem:[#allocation8 + $0x1b0] sm:$0xff]  }
 0x1e2   : > { %5412 = vmatpush3.bf16.msra.mxu1 %v5851_v26  ;;  %v2298_v29 = vld [vmem:[#allocation2 + $0x67] sm:$0xff]  ;;  %v2299_v51 = vld [vmem:[#allocation2 + $0x6f] sm:$0xff]  ;;  %v6892_v38 = vpack.c.bf16 %v2663_v57, %v2662_v17  ;;  %v6900_v23 = vpack.c.bf16 %v2667_v42, %v2666_v19  ;;  %v5867_v56 = vld [vmem:[#allocation8 + $0x118] sm:$0xff]  }
 0x1e3   : > { %5413 = vmatprep.subr.bf16.mxu1 %v5853_v7  ;;  %2284 = vst [vmem:[#allocation2 + $0x88] sm:$0xff] %v2268_v5  ;;  %v6877_v62 = vpack.c.bf16 %v2298_v29, %v2297_v15  ;;  %v6879_v54 = vpack.c.bf16 %v2300_v1, %v2299_v51  ;;  %v6881_v33 = vpack.c.bf16 %v2268_v5, %v2267_v59  ;;  %v2668_v3 = vld [vmem:[#allocation2 + $0x61] sm:$0xff]  ;;  %v2669_v43 = vld [vmem:[#allocation2 + $0x69] sm:$0xff]  ;;  %v2670_v26 = vld [vmem:[#allocation2 + $0x71] sm:$0xff] }
 0x1e4   : > { %5442 = vmatpush3.bf16.msra.mxu0 %v5850_v24  ;;  %v5866_v55 = vld [vmem:[#allocation8 + $0x160] sm:$0xff]   ;;  %v6905_v24 = vpack.c.bf16 %v2669_v43, %v2668_v3  ;;  %v5869_v59 = vld [vmem:[#allocation8 + $0x110] sm:$0xff]   ;;  %v5868_v63 = vld [vmem:[#allocation8 + $0x158] sm:$0xff]  }
 0x1e5   : > { %5443 = vmatprep.subr.bf16.mxu0 %v5852_v18  ;;  %v5873_v15 = vld [vmem:[#allocation8 + $0x100] sm:$0xff]   ;;  %v5872_v29 = vld [vmem:[#allocation8 + $0x148] sm:$0xff]   ;;  %v5875_v1 = vld [vmem:[#allocation8 + $0x1b8] sm:$0xff]  }
 0x1e6   : > { %5414 = vmatpush3.bf16.msra.mxu1 %v5853_v7  ;;  %5396 = vmatmul.mubr.bf16.gmra.mxu0 %v6877_v62  ;;  %v2301_v9 = vld [vmem:[#allocation2 + $0x7f] sm:$0xff]  ;;  %v5893_v41 = vld [vmem:[#allocation8 + $0x230] sm:$0xff]  }
 0x1e7   : > { %5368 = vmatmul.mubr.bf16.gmra.mxu1 %v6881_v33  ;;  %5399 = vmatprep.mubr.bf16.mxu0 %v6879_v54  ;;  %v2671_v30 = vld [vmem:[#allocation2 + $0x79] sm:$0xff]  ;;  %v3672_v19 = vld [vmem:[#allocation2 + $0x50] sm:$0xff] }
 0x1e8   : > { %5444 = vmatpush3.bf16.msra.mxu0 %v5852_v18  ;;  %5415 = vmatprep.subr.bf16.mxu1 %v5855_v12  ;;  %v6908_v46 = vpack.c.bf16 %v2671_v30, %v2670_v26  ;;  %v5870_v18 = vld [vmem:[#allocation8 + $0x150] sm:$0xff]   ;;  %v5889_v61 = vld [vmem:[#allocation8 + $0x180] sm:$0xff]   ;;  %v3669_v57 = vld [vmem:[#allocation2 + $0x38] sm:$0xff] }
 0x1e9   : > { %5445 = vmatprep.subr.bf16.mxu0 %v5854_v39  ;;  %5419 = vmatprep.mubr.bf16.mxu1 %v2674_v37  ;;  %v2875_v4 = vld [vmem:[#allocation2 + $0x97] sm:$0xff] }
 0x1ea   : > { %5416 = vmatpush3.bf16.msra.mxu1 %v5855_v12  ;;  %v2302_v53 = vld [vmem:[#allocation2 + $0x87] sm:$0xff]  ;;  %v2874_v51 = vld [vmem:[#allocation2 + $0x8f] sm:$0xff]  ;;  %v3677_v3 = vld [vmem:[#allocation2 + $0x78] sm:$0xff] }
 0x1eb   : > { %5417 = vmatprep.subr.bf16.mxu1 %v5857_v31  ;;  %v6886_v60 = vpack.c.bf16 %v2302_v53, %v2301_v9  ;;  %v2672_v7 = vld [vmem:[#allocation2 + $0x81] sm:$0xff]  ;;  %v2673_v27 = vld [vmem:[#allocation2 + $0x89] sm:$0xff]  ;;  %v3278_v8 = vld [vmem:[#allocation2 + $0x91] sm:$0xff] }
 0x1ec   : > { %5446 = vmatpush3.bf16.msra.mxu0 %v5854_v39  ;;  %v6913_v5 = vpack.c.bf16 %v2673_v27, %v2672_v7  ;;  %v6918_v39 = vpack.c.bf16 %v2875_v4, %v2874_v51  ;;  %v5874_v12 = vld [vmem:[#allocation8 + $0x140] sm:$0xff]   ;;  %v5878_v37 = vld [vmem:[#allocation8 + $0x1f0] sm:$0xff]   ;;  %v5899_v43 = vld [vmem:[#allocation8 + $0x218] sm:$0xff]  }
 0x1ed   : > { %5447 = vmatprep.subr.bf16.mxu0 %v5856_v49  ;;  %v5882_v9 = vld [vmem:[#allocation8 + $0x1e0] sm:$0xff]   ;;  %v5885_v53 = vld [vmem:[#allocation8 + $0x190] sm:$0xff]   ;;  %v5903_v7 = vld [vmem:[#allocation8 + $0x208] sm:$0xff]  }
 0x1ee   : > { %5418 = vmatpush3.bf16.msra.mxu1 %v5857_v31  ;;  %5400 = vmatmul.mubr.bf16.gmra.mxu0 %v6886_v60  ;;  %v5879_v31 = vld [vmem:[#allocation8 + $0x1a8] sm:$0xff]   ;;  %v3676_v26 = vld [vmem:[#allocation2 + $0x70] sm:$0xff]  ;;  %v3480_v27 = vld [vmem:[#allocation2 + $0x9f] sm:$0xff] }
 0x1ef   : > { %5467 = vmatprep.subr.bf16.mxu1 %v5859_v36  ;;  %5451 = vmatprep.mubr.bf16.mxu0 %v6839_v16  ;;  %v6897_v16 = vpack.c.bf16 %v2665_v28, %v2664_v20  ;;  %v3673_v20 = vld [vmem:[#allocation2 + $0x58] sm:$0xff]  ;;  %v5895_v28 = vld [vmem:[#allocation8 + $0x228] sm:$0xff]   ;;  %v5905_v51 = vld [vmem:[#allocation8 + $0x200] sm:$0xff]  }
 0x1f0   : > { %5448 = vmatpush3.bf16.msra.mxu0 %v5856_v49  ;;  %v5881_v49 = vld [vmem:[#allocation8 + $0x1a0] sm:$0xff]  }
 0x1f1   : > { %5449 = vmatprep.subr.bf16.mxu0 %v5858_v0  ;;  %5420 = vmatmul.mubr.bf16.vlgmr.msra.gmra.mxu1 %v6889_v47  ;;  %v4072_v4 = vld [vmem:[%s6242_s13 + $0x1e0] sm:$0xff] }
 0x1f2   : > { %5423 = vmatprep.mubr.bf16.mxu1 %v6892_v38  ;;  %5468 = vmatpush3.bf16.msra.mxu1 %v5859_v36  ;;  %v5886_v36 = vld [vmem:[#allocation8 + $0x1d0] sm:$0xff]  }
 0x1f3   : > { %5469 = vmatprep.subr.bf16.mxu1 %v5861_v25 }
 0x1f4   : > { %5450 = vmatpush3.bf16.msra.mxu0 %v5858_v0  ;;  %v3279_v0 = vld [vmem:[#allocation2 + $0x99] sm:$0xff] }
 0x1f5   : > { %5499 = vmatprep.subr.bf16.mxu0 %v5860_v45  ;;  %v6938_v17 = vpack.c.bf16 %v3279_v0, %v3278_v8 }
 0x1f6   : > { %5470 = vmatpush3.bf16.msra.mxu1 %v5861_v25  ;;  %v3668_v25 = vld [vmem:[#allocation2 + $0x30] sm:$0xff] }
 0x1f7   : > { %5452 = vmatmul.mubr.bf16.vlgmr.msra.gmra.mxu0 %v6841_v21  ;;  %5471 = vmatprep.subr.bf16.mxu1 %v5863_v32 }
 0x1f8   : > { %5455 = vmatprep.mubr.bf16.mxu0 %v6860_v58  ;;  %5500 = vmatpush3.bf16.msra.mxu0 %v5860_v45  ;;  %v5890_v45 = vld [vmem:[#allocation8 + $0x1c0] sm:$0xff]  }
 0x1f9   : > { %5501 = vmatprep.subr.bf16.mxu0 %v5862_v13  ;;  %5424 = vmatmul.mubr.bf16.gmra.mxu1 %v6897_v16 }
 0x1fa   : > { %5427 = vmatprep.mubr.bf16.mxu1 %v6900_v23  ;;  %5472 = vmatpush3.bf16.msra.mxu1 %v5863_v32  ;;  %v3684_v32 = vpack.c.bf16 %v3669_v57, %v3668_v25  ;;  %v4086_v57 = vld [vmem:[%s6242_s13 + $0x250] sm:$0xff] }
 0x1fb   : > { %5473 = vmatprep.subr.bf16.mxu1 %v5865_v35 }
 0x1fc   : > { %5502 = vmatpush3.bf16.msra.mxu0 %v5862_v13  ;;  %v3670_v13 = vld [vmem:[#allocation2 + $0x40] sm:$0xff] }
 0x1fd   : > { %5503 = vmatprep.subr.bf16.mxu0 %v5864_v52 }
 0x1fe   : > { %5474 = vmatpush3.bf16.msra.mxu1 %v5865_v35  ;;  %v3686_v35 = vpack.c.bf16 %v3673_v20, %v3672_v19 }
 0x1ff   : > { %5456 = vmatmul.mubr.bf16.gmra.mxu0 %v6862_v44  ;;  %5475 = vmatprep.subr.bf16.mxu1 %v5867_v56 }
 0x200   : > { %5459 = vmatprep.mubr.bf16.mxu0 %v6877_v62  ;;  %5504 = vmatpush3.bf16.msra.mxu0 %v5864_v52  ;;  %v6960_v52 = vld [vmem:[%s7264_s3 + $0x28] sm:$0xff]  }
 0x201   : > { %5505 = vmatprep.subr.bf16.mxu0 %v5866_v55  ;;  %5428 = vmatmul.mubr.bf16.gmra.mxu1 %v6905_v24 }
 0x202   : > { %5431 = vmatprep.mubr.bf16.mxu1 %v6908_v46  ;;  %5476 = vmatpush3.bf16.msra.mxu1 %v5867_v56  ;;  %v3675_v56 = vld [vmem:[#allocation2 + $0x68] sm:$0xff] }
 0x203   : > { %5477 = vmatprep.subr.bf16.mxu1 %v5869_v59 }
 0x204   : > { %5506 = vmatpush3.bf16.msra.mxu0 %v5866_v55  ;;  %v3674_v55 = vld [vmem:[#allocation2 + $0x60] sm:$0xff] }
 0x205   : > { %5507 = vmatprep.subr.bf16.mxu0 %v5868_v63  ;;  %v3687_v30 = vpack.c.bf16 %v3675_v56, %v3674_v55 }
 0x206   : > { %5478 = vmatpush3.bf16.msra.mxu1 %v5869_v59  ;;  %v3688_v59 = vpack.c.bf16 %v3677_v3, %v3676_v26 }
 0x207   : > { %5460 = vmatmul.mubr.bf16.gmra.mxu0 %v6879_v54  ;;  %5479 = vmatprep.subr.bf16.mxu1 %v5871_v11 }
 0x208   : > { %5463 = vmatprep.mubr.bf16.mxu0 %v6886_v60  ;;  %5508 = vmatpush3.bf16.msra.mxu0 %v5868_v63  ;;  %v6976_v63 = vld [vmem:[%s7264_s3 + $0x18] sm:$0xff]  }
 0x209   : > { %5509 = vmatprep.subr.bf16.mxu0 %v5870_v18  ;;  %5432 = vmatmul.mubr.bf16.gmra.mxu1 %v6913_v5 }
 0x20a   : > { %5480 = vmatpush3.bf16.msra.mxu1 %v5871_v11  ;;  %5483 = vmatprep.mubr.bf16.mxu1 %v6818_v2  ;;  %v5876_v2 = vld [vmem:[#allocation8 + $0x1f8] sm:$0xff]   ;;  %v3680_v11 = vld [vmem:[#allocation2 + $0x90] sm:$0xff] }
 0x20b   : > { %5481 = vmatprep.subr.bf16.mxu1 %v5873_v15 }
 0x20c   : > { %5510 = vmatpush3.bf16.msra.mxu0 %v5870_v18  ;;  %v3481_v18 = vld [vmem:[#allocation2 + $0xa7] sm:$0xff] }
 0x20d   : > { %5511 = vmatprep.subr.bf16.mxu0 %v5872_v29 }
 0x20e   : > { %5482 = vmatpush3.bf16.msra.mxu1 %v5873_v15  ;;  %v3690_v15 = vpack.c.bf16 %v6870_v48, %v3680_v11  ;;  %v5907_v48 = vld [vmem:[#allocation2] sm:$0xff] }
 0x20f   : > { %5464 = vmatmul.mubr.bf16.gmra.mxu0 %v6918_v39  ;;  %5531 = vmatprep.subr.bf16.mxu1 %v5875_v1 }
 0x210   : > { %5512 = vmatpush3.bf16.msra.mxu0 %v5872_v29  ;;  %5515 = vmatprep.mubr.bf16.mxu0 %v6889_v47  ;;  %v5891_v47 = vld [vmem:[#allocation8 + $0x238] sm:$0xff]   ;;  %v3489_v29 = vpack.c.bf16 %v3481_v18, %v3480_v27 }
 0x211   : > { %5513 = vmatprep.subr.bf16.mxu0 %v5874_v12  ;;  %5484 = vmatmul.mubr.bf16.vlgmr.msra.gmra.mxu1 %v6809_v6  ;;  %v5880_v6 = vld [vmem:[#allocation8 + $0x1e8] sm:$0xff]  }
 0x212   : > { %5487 = vmatprep.mubr.bf16.mxu1 %v6843_v10  ;;  %5532 = vmatpush3.bf16.msra.mxu1 %v5875_v1  ;;  %v5883_v10 = vld [vmem:[#allocation8 + $0x198] sm:$0xff]   ;;  %v5904_v1 = vld [vmem:[%s7264_s3 + $0x8] sm:$0xff]  }
 0x213   : > { %5533 = vmatprep.subr.bf16.mxu1 %v5877_v34 }
 0x214   : > { %5514 = vmatpush3.bf16.msra.mxu0 %v5874_v12 }
 0x215   : > { %5563 = vmatprep.subr.bf16.mxu0 %v5876_v2 }
 0x216   : > { %5534 = vmatpush3.bf16.msra.mxu1 %v5877_v34  ;;  %v5906_v34 = vld [vmem:[%s7264_s3] sm:$0xff]  }
 0x217   : > { %5516 = vmatmul.mubr.bf16.vlgmr.msra.gmra.mxu0 %v6892_v38  ;;  %5535 = vmatprep.subr.bf16.mxu1 %v5879_v31 }
 0x218   : > { %5519 = vmatprep.mubr.bf16.mxu0 %v6897_v16  ;;  %5564 = vmatpush3.bf16.msra.mxu0 %v5876_v2  ;;  %v4075_v2 = vld [vmem:[%s6242_s13 + $0x1f8] sm:$0xff] }
 0x219   : > { %5565 = vmatprep.subr.bf16.mxu0 %v5878_v37  ;;  %5488 = vmatmul.mubr.bf16.gmra.mxu1 %v6835_v40  ;;  %v5884_v40 = vld [vmem:[#allocation8 + $0x1d8] sm:$0xff]  }
 0x21a   : > { %5491 = vmatprep.mubr.bf16.mxu1 %v6864_v50  ;;  %5536 = vmatpush3.bf16.msra.mxu1 %v5879_v31  ;;  %v5887_v50 = vld [vmem:[#allocation8 + $0x188] sm:$0xff]   ;;  %v4076_v31 = vld [vmem:[%s6242_s13 + $0x200] sm:$0xff] }
 0x21b   : > { %5537 = vmatprep.subr.bf16.mxu1 %v5881_v49 }
 0x21c   : > { %5566 = vmatpush3.bf16.msra.mxu0 %v5878_v37  ;;  %v4077_v37 = vld [vmem:[%s6242_s13 + $0x208] sm:$0xff] }
 0x21d   : > { %5567 = vmatprep.subr.bf16.mxu0 %v5880_v6 }
 0x21e   : > { %5538 = vmatpush3.bf16.msra.mxu1 %v5881_v49 }
 0x21f   : > { %5520 = vmatmul.mubr.bf16.gmra.mxu0 %v6900_v23  ;;  %5539 = vmatprep.subr.bf16.mxu1 %v5883_v10 }
 0x220   : > { %5523 = vmatprep.mubr.bf16.mxu0 %v6905_v24  ;;  %5568 = vmatpush3.bf16.msra.mxu0 %v5880_v6  ;;  %v4090_v6 = vpack.c.bf16 %v4077_v37, %v4076_v31 }
 0x221   : > { %5569 = vmatprep.subr.bf16.mxu0 %v5882_v9  ;;  %5492 = vmatmul.mubr.bf16.gmra.mxu1 %v6855_v14  ;;  %v5888_v14 = vld [vmem:[#allocation8 + $0x1c8] sm:$0xff]  }
 0x222   : > { %5495 = vmatprep.mubr.bf16.mxu1 %v6881_v33  ;;  %5540 = vmatpush3.bf16.msra.mxu1 %v5883_v10  ;;  %v4078_v10 = vld [vmem:[%s6242_s13 + $0x210] sm:$0xff] }
 0x223   : > { %5541 = vmatprep.subr.bf16.mxu1 %v5885_v53 }
 0x224   : > { %5570 = vmatpush3.bf16.msra.mxu0 %v5882_v9  ;;  %v4080_v9 = vld [vmem:[%s6242_s13 + $0x220] sm:$0xff] }
 0x225   : > { %5571 = vmatprep.subr.bf16.mxu0 %v5884_v40 }
 0x226   : > { %5542 = vmatpush3.bf16.msra.mxu1 %v5885_v53  ;;  %v4081_v53 = vld [vmem:[%s6242_s13 + $0x228] sm:$0xff] }
 0x227   : > { %5524 = vmatmul.mubr.bf16.gmra.mxu0 %v6908_v46  ;;  %5543 = vmatprep.subr.bf16.mxu1 %v5887_v50 }
 0x228   : > { %5527 = vmatprep.mubr.bf16.mxu0 %v6913_v5  ;;  %5572 = vmatpush3.bf16.msra.mxu0 %v5884_v40 }
 0x229   : > { %5573 = vmatprep.subr.bf16.mxu0 %v5886_v36  ;;  %5496 = vmatmul.mubr.bf16.gmra.mxu1 %v3085_v22  ;;  %v3671_v22 = vld [vmem:[#allocation2 + $0x48] sm:$0xff] }
 0x22a   : > { %5544 = vmatpush3.bf16.msra.mxu1 %v5887_v50  ;;  %5547 = vmatprep.mubr.bf16.mxu1 %v6841_v21  ;;  %v6945_v21 = vld [vmem:[%s7264_s3 + $0x38] sm:$0xff]   ;;  %v3685_v42 = vpack.c.bf16 %v3671_v22, %v3670_v13  ;;  %v4092_v50 = vpack.c.bf16 %v4081_v53, %v4080_v9 }
 0x22b   : > { %5545 = vmatprep.subr.bf16.mxu1 %v5889_v61 }
 0x22c   : > { %5574 = vmatpush3.bf16.msra.mxu0 %v5886_v36  ;;  %v4083_v36 = vld [vmem:[%s6242_s13 + $0x238] sm:$0xff] }
 0x22d   : > { %5575 = vmatprep.subr.bf16.mxu0 %v5888_v14 }
 0x22e   : > { %5546 = vmatpush3.bf16.msra.mxu1 %v5889_v61  ;;  %v4084_v61 = vld [vmem:[%s6242_s13 + $0x240] sm:$0xff] }
 0x22f   : > { %5528 = vmatmul.mubr.bf16.gmra.mxu0 %v6938_v17  ;;  %5595 = vmatprep.subr.bf16.mxu1 %v5891_v47 }
 0x230   : > { %5576 = vmatpush3.bf16.msra.mxu0 %v5888_v14  ;;  %5579 = vmatprep.mubr.bf16.mxu0 %v3684_v32  ;;  %v4085_v14 = vld [vmem:[%s6242_s13 + $0x248] sm:$0xff] }
 0x231   : > { %5577 = vmatprep.subr.bf16.mxu0 %v5890_v45  ;;  %5548 = vmatmul.mubr.bf16.vlgmr.msra.gmra.mxu1 %v6860_v58  ;;  %v6952_v58 = vld [vmem:[%s7264_s3 + $0x30] sm:$0xff]   ;;  %v4094_v0 = vpack.c.bf16 %v4085_v14, %v4084_v61 }
 0x232   : > { %5551 = vmatprep.mubr.bf16.mxu1 %v6862_v44  ;;  %5596 = vmatpush3.bf16.msra.mxu1 %v5891_v47  ;;  %v5897_v44 = vld [vmem:[#allocation8 + $0x220] sm:$0xff]   ;;  %v4087_v47 = vld [vmem:[%s6242_s13 + $0x258] sm:$0xff] }
 0x233   : > { %5597 = vmatprep.subr.bf16.mxu1 %v5893_v41 }
 0x234   : > { %5578 = vmatpush3.bf16.msra.mxu0 %v5890_v45 }
 0x235   : > { %5627 = vmatprep.subr.bf16.mxu0 %v6945_v21 }
 0x236   : > { %5598 = vmatpush3.bf16.msra.mxu1 %v5893_v41 }
 0x237   : > { %5580 = vmatmul.mubr.bf16.vlgmr.msra.gmra.mxu0 %v3685_v42  ;;  %5599 = vmatprep.subr.bf16.mxu1 %v5895_v28 }
 0x238   : > { %5583 = vmatprep.mubr.bf16.mxu0 %v3686_v35  ;;  %5628 = vmatpush3.bf16.msra.mxu0 %v6945_v21 }
 0x239   : > { %5629 = vmatprep.subr.bf16.mxu0 %v6952_v58  ;;  %5552 = vmatmul.mubr.bf16.gmra.mxu1 %v6877_v62  ;;  %v6968_v62 = vld [vmem:[%s7264_s3 + $0x20] sm:$0xff]  }
 0x23a   : > { %5555 = vmatprep.mubr.bf16.mxu1 %v6879_v54  ;;  %5600 = vmatpush3.bf16.msra.mxu1 %v5895_v28  ;;  %v5901_v54 = vld [vmem:[#allocation8 + $0x210] sm:$0xff]  }
 0x23b   : > { %5601 = vmatprep.subr.bf16.mxu1 %v5897_v44 }
 0x23c   : > { %5630 = vmatpush3.bf16.msra.mxu0 %v6952_v58 }
 0x23d   : > { %5631 = vmatprep.subr.bf16.mxu0 %v6960_v52 }
 0x23e   : > { %5602 = vmatpush3.bf16.msra.mxu1 %v5897_v44 }
 0x23f   : > { %5584 = vmatmul.mubr.bf16.gmra.mxu0 %v3687_v30  ;;  %5603 = vmatprep.subr.bf16.mxu1 %v5899_v43 }
 0x240   : > { %5587 = vmatprep.mubr.bf16.mxu0 %v3688_v59  ;;  %5632 = vmatpush3.bf16.msra.mxu0 %v6960_v52 }
 0x241   : > { %5633 = vmatprep.subr.bf16.mxu0 %v6968_v62  ;;  %5556 = vmatmul.mubr.bf16.gmra.mxu1 %v6886_v60  ;;  %v6984_v60 = vld [vmem:[%s7264_s3 + $0x10] sm:$0xff]  }
 0x242   : > { %5559 = vmatprep.mubr.bf16.mxu1 %v6918_v39  ;;  %5604 = vmatpush3.bf16.msra.mxu1 %v5899_v43  ;;  %v4073_v39 = vld [vmem:[%s6242_s13 + $0x1e8] sm:$0xff] }
 0x243   : > { %5605 = vmatprep.subr.bf16.mxu1 %v5901_v54  ;;  %v4088_v12 = vpack.c.bf16 %v4073_v39, %v4072_v4 }
 0x244   : > { %5634 = vmatpush3.bf16.msra.mxu0 %v6968_v62 }
 0x245   : > { %5635 = vmatprep.subr.bf16.mxu0 %v6976_v63 }
 0x246   : > { %5606 = vmatpush3.bf16.msra.mxu1 %v5901_v54 }
 0x247   : > { %5588 = vmatmul.mubr.bf16.gmra.mxu0 %v6881_v33  ;;  %5607 = vmatprep.subr.bf16.mxu1 %v5903_v7  ;;  %v3691_v33 = vpack.c.bf16 %v5907_v48, %v5907_v48 }
 0x248   : > { %5591 = vmatprep.mubr.bf16.mxu0 %v3690_v15  ;;  %5636 = vmatpush3.bf16.msra.mxu0 %v6976_v63 }
 0x249   : > { %5637 = vmatprep.subr.bf16.mxu0 %v6984_v60  ;;  %5560 = vmatmul.mubr.bf16.gmra.mxu1 %v3489_v29 }
 0x24a   : > { %5608 = vmatpush3.bf16.msra.mxu1 %v5903_v7  ;;  %5611 = vmatprep.mubr.bf16.mxu1 %v6892_v38  ;;  %v4074_v38 = vld [vmem:[%s6242_s13 + $0x1f0] sm:$0xff] }
 0x24b   : > { %5609 = vmatprep.subr.bf16.mxu1 %v5905_v51  ;;  %v4089_v49 = vpack.c.bf16 %v4075_v2, %v4074_v38 }
 0x24c   : > { %5638 = vmatpush3.bf16.msra.mxu0 %v6984_v60 }
 0x24d   : > { %5639 = vmatprep.subr.bf16.mxu0 %v5904_v1 }
 0x24e   : > { %5610 = vmatpush3.bf16.msra.mxu1 %v5905_v51 }
 0x24f   : > { %5592 = vmatmul.mubr.bf16.gmra.mxu0 %v3691_v33  ;;  %5659 = vmatprep.subr.bf16.mxu1 %v6945_v21 }
 0x250   : > { %5640 = vmatpush3.bf16.msra.mxu0 %v5904_v1  ;;  %5643 = vmatprep.mubr.bf16.mxu0 %v4088_v12 }
 0x251   : > { %5641 = vmatprep.subr.bf16.mxu0 %v5906_v34  ;;  %5612 = vmatmul.mubr.bf16.vlgmr.msra.gmra.mxu1 %v6897_v16  ;;  %v4079_v16 = vld [vmem:[%s6242_s13 + $0x218] sm:$0xff] }
 0x252   : > { %5615 = vmatprep.mubr.bf16.mxu1 %v6900_v23  ;;  %5667 = vmatpush3.bf16.msra.mxu1 %v6945_v21  ;;  %v4091_v23 = vpack.c.bf16 %v4079_v16, %v4078_v10 }
 0x253   : > { %5660 = vmatprep.subr.bf16.mxu1 %v6952_v58 }
 0x254   : > { %5642 = vmatpush3.bf16.msra.mxu0 %v5906_v34 }
 0x256   : > { %5668 = vmatpush3.bf16.msra.mxu1 %v6952_v58 }
 0x257   : > { %5644 = vmatmul.mubr.bf16.vlgmr.msra.gmra.mxu0 %v4089_v49  ;;  %5661 = vmatprep.subr.bf16.mxu1 %v6960_v52 }
 0x258   : > { %5647 = vmatprep.mubr.bf16.mxu0 %v4090_v6 }
 0x259   : > { %5616 = vmatmul.mubr.bf16.gmra.mxu1 %v6905_v24  ;;  %v3884_v24 = vld [vmem:[#allocation2 + $0xa1] sm:$0xff] }
 0x25a   : > { %5619 = vmatprep.mubr.bf16.mxu1 %v6908_v46  ;;  %5669 = vmatpush3.bf16.msra.mxu1 %v6960_v52  ;;  %v3885_v46 = vld [vmem:[#allocation2 + $0xa9] sm:$0xff] }
 0x25b   : > { %5662 = vmatprep.subr.bf16.mxu1 %v6968_v62  ;;  %v3893_v40 = vpack.c.bf16 %v3885_v46, %v3884_v24 }
 0x25e   : > { %5670 = vmatpush3.bf16.msra.mxu1 %v6968_v62 }
 0x25f   : > { %5648 = vmatmul.mubr.bf16.gmra.mxu0 %v4091_v23  ;;  %5663 = vmatprep.subr.bf16.mxu1 %v6976_v63 }
 0x261   : > { %5620 = vmatmul.mubr.bf16.gmra.mxu1 %v6913_v5  ;;  %v4082_v5 = vld [vmem:[%s6242_s13 + $0x230] sm:$0xff] }
 0x262   : > { %5623 = vmatprep.mubr.bf16.mxu1 %v6938_v17  ;;  %5671 = vmatpush3.bf16.msra.mxu1 %v6976_v63  ;;  %v4093_v8 = vpack.c.bf16 %v4083_v36, %v4082_v5  ;;  %v4095_v17 = vpack.c.bf16 %v4087_v47, %v4086_v57 }
 0x263   : > { %5664 = vmatprep.subr.bf16.mxu1 %v6984_v60 }
 0x266   : > { %5672 = vmatpush3.bf16.msra.mxu1 %v6984_v60 }
 0x267   : > { %5665 = vmatprep.subr.bf16.mxu1 %v5904_v1 }
 0x269   : > { %5624 = vmatmul.mubr.bf16.gmra.mxu1 %v3893_v40 }
 0x26a   : > { %5673 = vmatpush3.bf16.msra.mxu1 %v5904_v1  ;;  %5651 = vmatprep.mubr.bf16.mxu1 %v4092_v50 }
 0x26b   : > { %5666 = vmatprep.subr.bf16.mxu1 %v5906_v34 }
 0x26e   : > { %5674 = vmatpush3.bf16.msra.mxu1 %v5906_v34 }
 0x271   : > { %5652 = vmatmul.mubr.bf16.vlgmr.msra.gmra.mxu1 %v4093_v8 }
 0x272   : > { %5655 = vmatprep.mubr.bf16.mxu1 %v4094_v0 }
 0x279   : > { %5656 = vmatmul.mubr.bf16.gmra.mxu1 %v4095_v17 }
 0x28e   : > { %v5357_v25 = vpop.f32.mrf.mxu1 }
 0x290   : > { %v2450_v45 = vpop.f32.mrf.mxu1 }
 0x292   : > { %v5358_v32 = vpop.f32.mrf.mxu1 }
 0x294   : > { %v2453_v41 = vpop.f32.mrf.mxu1 }
 0x296   : > { %v5389_v21 = vpop.f32.mrf.mxu0  ;;  %v5361_v22 = vpop.f32.mrf.mxu1 }
 0x297   : > { %v2604_v20 = vadd.f32 %v5389_v21, %v5357_v25 }
 0x298   : > { %v2595_v28 = vpop.f32.mrf.mxu0  ;;  %v2466_v13 = vpop.f32.mrf.mxu1 }
 0x299   : > { %v2596_v42 = vadd.f32 %v2595_v28, %v2450_v45 }
 0x29a   : > { %v5390_v19 = vpop.f32.mrf.mxu0  ;;  %v5362_v58 = vpop.f32.mrf.mxu1 }
 0x29b   : > { %v2607_v35 = vadd.f32 %v5390_v19, %v5358_v32 }
 0x29c   : > { %v2598_v44 = vpop.f32.mrf.mxu0  ;;  %v2469_v52 = vpop.f32.mrf.mxu1 }
 0x29d   : > { %v2599_v56 = vadd.f32 %v2598_v44, %v2453_v41 }
 0x29e   : > { %v5393_v3 = vpop.f32.mrf.mxu0 }
 0x29f   : > { %v5365_v43 = vpop.f32.mrf.mxu1  ;;  %v2620_v55 = vadd.f32 %v5393_v3, %v5361_v22 }
 0x2a0   : > { %v2611_v30 = vpop.f32.mrf.mxu0 }
 0x2a1   : > { %v2482_v26 = vpop.f32.mrf.mxu1  ;;  %v2612_v62 = vadd.f32 %v2611_v30, %v2466_v13 }
 0x2a2   : > { %v5394_v59 = vpop.f32.mrf.mxu0 }
 0x2a3   : > { %v5366_v54 = vpop.f32.mrf.mxu1  ;;  %v2623_v63 = vadd.f32 %v5394_v59, %v5362_v58 }
 0x2a4   : > { %v2614_v11 = vpop.f32.mrf.mxu0 }
 0x2a5   : > { %v2485_v7 = vpop.f32.mrf.mxu1  ;;  %v2615_v27 = vadd.f32 %v2614_v11, %v2469_v52 }
 0x2a6   : > { %v5397_v18 = vpop.f32.mrf.mxu0 }
 0x2a7   : > { %v5369_v60 = vpop.f32.mrf.mxu1  ;;  %v2636_v15 = vadd.f32 %v5397_v18, %v5365_v43 }
 0x2a8   : > { %v2627_v29 = vpop.f32.mrf.mxu0 }
 0x2a9   : > { %v2498_v51 = vpop.f32.mrf.mxu1  ;;  %v2628_v1 = vadd.f32 %v2627_v29, %v2482_v26 }
 0x2aa   : > { %v5398_v4 = vpop.f32.mrf.mxu0 }
 0x2ab   : > { %v5370_v39 = vpop.f32.mrf.mxu1  ;;  %v2639_v48 = vadd.f32 %v5398_v4, %v5366_v54 }
 0x2ac   : > { %v2630_v33 = vpop.f32.mrf.mxu0 }
 0x2ad   : > { %v2501_v12 = vpop.f32.mrf.mxu1  ;;  %v2631_v34 = vadd.f32 %v2630_v33, %v2485_v7 }
 0x2ae   : > { %v5401_v38 = vpop.f32.mrf.mxu0 }
 0x2af   : > { %v2652_v2 = vadd.f32 %v5401_v38, %v5369_v60 }
 0x2b0   : > { %v2643_v31 = vpop.f32.mrf.mxu0 }
 0x2b1   : > { %v5421_v37 = vpop.f32.mrf.mxu1  ;;  %v2644_v49 = vadd.f32 %v2643_v31, %v2498_v51 }
 0x2b2   : > { %v2846_v6 = vadd.f32 %v5421_v37, %v2604_v20  ;;  %v5402_v10 = vpop.f32.mrf.mxu0 }
 0x2b3   : > { %v2781_v16 = vpop.f32.mrf.mxu1  ;;  %v2655_v23 = vadd.f32 %v5402_v10, %v5370_v39 }
 0x2b4   : > { %v2844_v24 = vadd.f32 %v2781_v16, %v2596_v42  ;;  %v2646_v46 = vpop.f32.mrf.mxu0 }
 0x2b5   : > { %v5422_v9 = vpop.f32.mrf.mxu1  ;;  %v2647_v53 = vadd.f32 %v2646_v46, %v2501_v12 }
 0x2b6   : > { %v2847_v40 = vadd.f32 %v5422_v9, %v2607_v35 }
 0x2b7   : > { %v5453_v50 = vpop.f32.mrf.mxu0  ;;  %v2784_v5 = vpop.f32.mrf.mxu1 }
 0x2b8   : > { %v3048_v36 = vadd.f32 %v5453_v50, %v2846_v6  ;;  %v2845_v61 = vadd.f32 %v2784_v5, %v2599_v56 }
 0x2b9   : > { %v2983_v14 = vpop.f32.mrf.mxu0  ;;  %v5425_v8 = vpop.f32.mrf.mxu1 }
 0x2ba   : > { %v3046_v0 = vadd.f32 %v2983_v14, %v2844_v24  ;;  %v2850_v57 = vadd.f32 %v5425_v8, %v2620_v55 }
 0x2bb   : > { %v5454_v47 = vpop.f32.mrf.mxu0  ;;  %v2797_v17 = vpop.f32.mrf.mxu1 }
 0x2bc   : > { %v7032_v25 = vadd.f32 %v5454_v47, %v2847_v40  ;;  %v2848_v45 = vadd.f32 %v2797_v17, %v2612_v62 }
 0x2bd   : > { %v2986_v32 = vpop.f32.mrf.mxu0  ;;  %v5426_v41 = vpop.f32.mrf.mxu1 }
 0x2be   : > { %v7034_v21 = vadd.f32 %v2986_v32, %v2845_v61  ;;  %v2851_v22 = vadd.f32 %v5426_v41, %v2623_v63 }
 0x2bf   : > { %v5457_v20 = vpop.f32.mrf.mxu0  ;;  %v2800_v28 = vpop.f32.mrf.mxu1 }
 0x2c0   : > { %v3052_v13 = vadd.f32 %v5457_v20, %v2850_v57  ;;  %v2849_v42 = vadd.f32 %v2800_v28, %v2615_v27 }
 0x2c1   : > { %v2999_v19 = vpop.f32.mrf.mxu0  ;;  %v5429_v58 = vpop.f32.mrf.mxu1 }
 0x2c2   : > { %v3050_v35 = vadd.f32 %v2999_v19, %v2848_v45  ;;  %v2854_v44 = vadd.f32 %v5429_v58, %v2636_v15 }
 0x2c3   : > { %v5458_v52 = vpop.f32.mrf.mxu0  ;;  %v2813_v56 = vpop.f32.mrf.mxu1 }
 0x2c4   : > { %v7036_v3 = vadd.f32 %v5458_v52, %v2851_v22  ;;  %v2852_v43 = vadd.f32 %v2813_v56, %v2628_v1 }
 0x2c5   : > { %v3002_v55 = vpop.f32.mrf.mxu0  ;;  %v5430_v30 = vpop.f32.mrf.mxu1 }
 0x2c6   : > { %v7038_v26 = vadd.f32 %v3002_v55, %v2849_v42  ;;  %v2855_v62 = vadd.f32 %v5430_v30, %v2639_v48 }
 0x2c7   : > { %v5461_v59 = vpop.f32.mrf.mxu0  ;;  %v2816_v54 = vpop.f32.mrf.mxu1 }
 0x2c8   : > { %v3056_v63 = vadd.f32 %v5461_v59, %v2854_v44  ;;  %v2853_v11 = vadd.f32 %v2816_v54, %v2631_v34 }
 0x2c9   : > { %v3015_v7 = vpop.f32.mrf.mxu0  ;;  %v5433_v27 = vpop.f32.mrf.mxu1 }
 0x2ca   : > { %v3054_v18 = vadd.f32 %v3015_v7, %v2852_v43  ;;  %v2858_v60 = vadd.f32 %v5433_v27, %v2652_v2 }
 0x2cb   : > { %v5462_v29 = vpop.f32.mrf.mxu0  ;;  %v2829_v15 = vpop.f32.mrf.mxu1 }
 0x2cc   : > { %v3057_v51 = vadd.f32 %v5462_v29, %v2855_v62  ;;  %v2856_v4 = vadd.f32 %v2829_v15, %v2644_v49 }
 0x2cd   : > { %v3018_v39 = vpop.f32.mrf.mxu0  ;;  %v5434_v33 = vpop.f32.mrf.mxu1 }
 0x2ce   : > { %v3055_v1 = vadd.f32 %v3018_v39, %v2853_v11  ;;  %v2859_v12 = vadd.f32 %v5434_v33, %v2655_v23 }
 0x2cf   : > { %v5465_v38 = vpop.f32.mrf.mxu0  ;;  %v2832_v31 = vpop.f32.mrf.mxu1 }
 0x2d0   : > { %v3060_v37 = vadd.f32 %v5465_v38, %v2858_v60  ;;  %v2857_v48 = vadd.f32 %v2832_v31, %v2647_v53 }
 0x2d1   : > { %v3031_v6 = vpop.f32.mrf.mxu0  ;;  %v5485_v10 = vpop.f32.mrf.mxu1 }
 0x2d2   : > { %v3058_v16 = vadd.f32 %v3031_v6, %v2856_v4  ;;  %v7040_v34 = vadd.f32 %v5485_v10, %v3048_v36 }
 0x2d3   : > { %v5466_v24 = vpop.f32.mrf.mxu0  ;;  %v3185_v46 = vpop.f32.mrf.mxu1 }
 0x2d4   : > { %v3061_v2 = vadd.f32 %v5466_v24, %v2859_v12  ;;  %v7042_v9 = vadd.f32 %v3185_v46, %v3046_v0 }
 0x2d5   : > { %v3034_v40 = vpop.f32.mrf.mxu0  ;;  %v7044_v49 = vpop.f32.mrf.mxu1 }
 0x2d6   : > { %v3059_v50 = vadd.f32 %v3034_v40, %v2857_v48 }
 0x2d7   : > { %v7046_v5 = vpop.f32.mrf.mxu0  ;;  %v7048_v23 = vpop.f32.mrf.mxu1 }
 0x2d9   : > { %v7050_v61 = vpop.f32.mrf.mxu0  ;;  %v5489_v53 = vpop.f32.mrf.mxu1 }
 0x2da   : > { %v7052_v14 = vadd.f32 %v5489_v53, %v3052_v13 }
 0x2db   : > { %v7054_v36 = vpop.f32.mrf.mxu0  ;;  %v3201_v8 = vpop.f32.mrf.mxu1 }
 0x2dc   : > { %v7056_v57 = vadd.f32 %v3201_v8, %v3050_v35 }
 0x2dd   : > { %v7058_v0 = vpop.f32.mrf.mxu0  ;;  %v7060_v47 = vpop.f32.mrf.mxu1 }
 0x2df   : > { %v7062_v17 = vpop.f32.mrf.mxu0  ;;  %v7064_v45 = vpop.f32.mrf.mxu1 }
 0x2e1   : > { %v7066_v32 = vpop.f32.mrf.mxu0  ;;  %v5493_v41 = vpop.f32.mrf.mxu1 }
 0x2e2   : > { %v3258_v22 = vadd.f32 %v5493_v41, %v3056_v63 }
 0x2e3   : > { %v7068_v20 = vpop.f32.mrf.mxu0  ;;  %v3217_v28 = vpop.f32.mrf.mxu1 }
 0x2e4   : > { %v3256_v13 = vadd.f32 %v3217_v28, %v3054_v18 }
 0x2e5   : > { %v7070_v42 = vpop.f32.mrf.mxu0  ;;  %v5494_v19 = vpop.f32.mrf.mxu1 }
 0x2e6   : > { %v3259_v58 = vadd.f32 %v5494_v19, %v3057_v51 }
 0x2e7   : > { %v5525_v35 = vpop.f32.mrf.mxu0  ;;  %v3220_v44 = vpop.f32.mrf.mxu1 }
 0x2e8   : > { %v7072_v52 = vadd.f32 %v5525_v35, %v3258_v22  ;;  %v3257_v56 = vadd.f32 %v3220_v44, %v3055_v1 }
 0x2e9   : > { %v3419_v43 = vpop.f32.mrf.mxu0  ;;  %v5497_v55 = vpop.f32.mrf.mxu1 }
 0x2ea   : > { %v7074_v30 = vadd.f32 %v3419_v43, %v3256_v13  ;;  %v3262_v62 = vadd.f32 %v5497_v55, %v3060_v37 }
 0x2eb   : > { %v5526_v59 = vpop.f32.mrf.mxu0  ;;  %v3233_v54 = vpop.f32.mrf.mxu1 }
 0x2ec   : > { %v7076_v63 = vadd.f32 %v5526_v59, %v3259_v58  ;;  %v3260_v11 = vadd.f32 %v3233_v54, %v3058_v16 }
 0x2ed   : > { %v3422_v7 = vpop.f32.mrf.mxu0  ;;  %v5498_v27 = vpop.f32.mrf.mxu1 }
 0x2ee   : > { %v7078_v18 = vadd.f32 %v3422_v7, %v3257_v56  ;;  %v3263_v60 = vadd.f32 %v5498_v27, %v3061_v2 }
 0x2ef   : > { %v5529_v29 = vpop.f32.mrf.mxu0  ;;  %v3236_v15 = vpop.f32.mrf.mxu1 }
 0x2f0   : > { %v7080_v51 = vadd.f32 %v5529_v29, %v3262_v62  ;;  %v3261_v4 = vadd.f32 %v3236_v15, %v3059_v50 }
 0x2f1   : > { %v3435_v39 = vpop.f32.mrf.mxu0  ;;  %v5549_v33 = vpop.f32.mrf.mxu1 }
 0x2f2   : > { %v7082_v1 = vadd.f32 %v3435_v39, %v3260_v11  ;;  %v3251_v39 = vadd.f32 %v7044_v49, %v7032_v25  ;;  %v3456_v25 = vadd.f32 %v7062_v17, %v7052_v14 }
 0x2f3   : > { %v5530_v12 = vpop.f32.mrf.mxu0  ;;  %v3589_v38 = vpop.f32.mrf.mxu1 }
 0x2f4   : > { %v7084_v31 = vadd.f32 %v5530_v12, %v3263_v60  ;;  %v3452_v60 = vadd.f32 %v7046_v5, %v7040_v34 }
 0x2f5   : > { %v3438_v37 = vpop.f32.mrf.mxu0  ;;  %v5550_v48 = vpop.f32.mrf.mxu1 }
 0x2f6   : > { %7360 = vst [vmem:[#allocation20_spill] sm:$0xff] %v7084_v31  ;;  %v7086_v6 = vadd.f32 %v3438_v37, %v3261_v4  ;;  %v3450_v4 = vadd.f32 %v7050_v61, %v7042_v9  ;;  %v3654_v12 = vadd.f32 %v5549_v33, %v3452_v60 }
 0x2f7   : > { %v5581_v10 = vpop.f32.mrf.mxu0  ;;  %v3592_v16 = vpop.f32.mrf.mxu1 }
 0x2f8   : > { %7361 = vst [vmem:[#allocation22_spill] sm:$0xff] %v7086_v6  ;;  %v3856_v31 = vadd.f32 %v5581_v10, %v3654_v12  ;;  %v3652_v34 = vadd.f32 %v3589_v38, %v3450_v4 }
 0x2f9   : > { %v3791_v24 = vpop.f32.mrf.mxu0  ;;  %v5553_v46 = vpop.f32.mrf.mxu1 }
 0x2fa   : > { %v3854_v9 = vadd.f32 %v3791_v24, %v3652_v34  ;;  %v3658_v17 = vadd.f32 %v5553_v46, %v3456_v25 }
 0x2fb   : > { %v5582_v2 = vpop.f32.mrf.mxu0  ;;  %v3605_v40 = vpop.f32.mrf.mxu1 }
 0x2fd   : > { %v3794_v53 = vpop.f32.mrf.mxu0  ;;  %v7088_v50 = vpop.f32.mrf.mxu1 }
 0x2ff   : > { %v5585_v8 = vpop.f32.mrf.mxu0  ;;  %v7090_v41 = vpop.f32.mrf.mxu1 }
 0x301   : > { %v7092_v22 = vpop.f32.mrf.mxu0  ;;  %v7094_v28 = vpop.f32.mrf.mxu1 }
 0x303   : > { %v7096_v13 = vpop.f32.mrf.mxu0  ;;  %v7098_v19 = vpop.f32.mrf.mxu1 }
 0x305   : > { %v7100_v58 = vpop.f32.mrf.mxu0  ;;  %v7102_v35 = vpop.f32.mrf.mxu1 }
 0x307   : > { %v7104_v44 = vpop.f32.mrf.mxu0  ;;  %v7106_v56 = vpop.f32.mrf.mxu1 }
 0x309   : > { %v7108_v43 = vpop.f32.mrf.mxu0  ;;  %v7110_v55 = vpop.f32.mrf.mxu1 }
 0x30b   : > { %v7112_v62 = vpop.f32.mrf.mxu0  ;;  %v7114_v59 = vpop.f32.mrf.mxu1 }
 0x30c   : > { %7362 = vst [vmem:[#allocation15_spill] sm:$0xff] %v7114_v59 }
 0x30d   : > { %v7116_v54 = vpop.f32.mrf.mxu0  ;;  %v7118_v11 = vpop.f32.mrf.mxu1 }
 0x30e   : > { %7363 = vst [vmem:[#allocation16_spill] sm:$0xff] %v7118_v11  ;;  %v3453_v11 = vadd.f32 %v7054_v36, %v3251_v39 }
 0x30f   : > { %v7120_v7 = vpop.f32.mrf.mxu0  ;;  %v7122_v27 = vpop.f32.mrf.mxu1 }
 0x310   : > { %7364 = vst [vmem:[#allocation38_spill] sm:$0xff] %v7120_v7  ;;  %7365 = vst [vmem:[#allocation17_spill] sm:$0xff] %v7122_v27  ;;  %v3249_v27 = vadd.f32 %v7048_v23, %v7034_v21  ;;  %v3655_v61 = vadd.f32 %v5550_v48, %v3453_v11  ;;  %v7145_v21 = vld [vmem:[%s7266_s5] ss:$0 sm:$0xff]  ;;  %v3454_v23 = vadd.f32 %v7066_v32, %v7056_v57 }
 0x311   : > { %v7126_v29 = vpop.f32.mrf.mxu0  ;;  %v5613_v15 = vpop.f32.mrf.mxu1  ;;  %v3860_v57 = vadd.f32 %v5585_v8, %v3658_v17 }
 0x312   : > { %7366 = vst [vmem:[#allocation18_spill] sm:$0xff] %v7126_v29  ;;  %v3451_v7 = vadd.f32 %v7058_v0, %v3249_v27  ;;  %v4058_v59 = vadd.f32 %v5613_v15, %v3856_v31  ;;  %v3857_v60 = vadd.f32 %v5582_v2, %v3655_v61  ;;  %v3255_v0 = vadd.f32 %v7060_v47, %v7036_v3 }
 0x313   : > { %v7132_v37 = vpop.f32.mrf.mxu0  ;;  %v3993_v6 = vpop.f32.mrf.mxu1  ;;  %v3656_v32 = vadd.f32 %v3605_v40, %v3454_v23 }
 0x314   : > { %7367 = vst [vmem:[#allocation24_spill] sm:$0xff] %v7132_v37  ;;  %v3653_v36 = vadd.f32 %v3592_v16, %v3451_v7  ;;  %v4056_v39 = vadd.f32 %v3993_v6, %v3854_v9  ;;  %v3457_v6 = vadd.f32 %v7068_v20, %v3255_v0  ;;  %v3253_v16 = vadd.f32 %v7064_v45, %v7038_v26 }
 0x315   : > { %v7137_v5 = vpop.f32.mrf.mxu0  ;;  %v5614_v29 = vpop.f32.mrf.mxu1  ;;  %v3858_v20 = vadd.f32 %v7092_v22, %v3656_v32 }
 0x316   : > { %v3855_v14 = vadd.f32 %v3794_v53, %v3653_v36  ;;  %v4059_v48 = vadd.f32 %v5614_v29, %v3857_v60  ;;  %v3455_v47 = vadd.f32 %v7070_v42, %v3253_v16  ;;  %v3659_v46 = vadd.f32 %v7088_v50, %v3457_v6 }
 0x317   : > { %v5645_v49 = vpop.f32.mrf.mxu0  ;;  %v3996_v33 = vpop.f32.mrf.mxu1 }
 0x318   : > { %v4259_v37 = vadd.f32 %v5645_v49, %v4058_v59  ;;  %v4057_v11 = vadd.f32 %v3996_v33, %v3855_v14  ;;  %v3861_v8 = vadd.f32 %v7096_v13, %v3659_v46  ;;  %v3657_v40 = vadd.f32 %v7090_v41, %v3455_v47 }
 0x319   : > { %v4194_v38 = vpop.f32.mrf.mxu0  ;;  %v5617_v31 = vpop.f32.mrf.mxu1 }
 0x31a   : > { %v4257_v10 = vadd.f32 %v4194_v38, %v4056_v39  ;;  %v4282_v24 = vadd.f32 %v7145_v21, %v4259_v37  ;;  %v4062_v45 = vadd.f32 %v5617_v31, %v3860_v57  ;;  %v3859_v9 = vadd.f32 %v7100_v58, %v3657_v40 }
 0x31b   : > { %v5646_v2 = vpop.f32.mrf.mxu0  ;;  %v4009_v59 = vpop.f32.mrf.mxu1 }
 0x31c   : > { %v4260_v3 = vadd.f32 %v5646_v2, %v4059_v48  ;;  %v4280_v53 = vadd.f32 %v7145_v21, %v4257_v10  ;;  %v4298_v15 = vmax.f32 %v4282_v24, 0.0  ;;  %v4060_v37 = vadd.f32 %v4009_v59, %v3858_v20 }
 0x31d   : > { %v4197_v7 = vpop.f32.mrf.mxu0  ;;  %v5618_v27 = vpop.f32.mrf.mxu1 }
 0x31e   : > { %v4283_v26 = vadd.f32 %v7145_v21, %v4260_v3  ;;  %v4258_v29 = vadd.f32 %v4197_v7, %v4057_v11  ;;  %v4296_v22 = vmax.f32 %v4280_v53, 0.0  ;;  %v4063_v60 = vadd.f32 %v5618_v27, %v3861_v8 }
 0x31f   : > { %v5649_v4 = vpop.f32.mrf.mxu0  ;;  %v4012_v42 = vpop.f32.mrf.mxu1  ;;  %v3662_v3 = vadd.f32 %v7094_v28, %v7072_v52  ;;  %v3660_v7 = vadd.f32 %v7098_v19, %v7074_v30  ;;  %v3661_v52 = vadd.f32 %v7106_v56, %v7078_v18  ;;  %v3666_v30 = vadd.f32 %v7110_v55, %v7080_v51  ;;  %v7370_v56 = vld [vmem:[#allocation20_spill] sm:$0xff] }
 0x320   : > { %v4299_v12 = vmax.f32 %v4283_v26, 0.0  ;;  %v4281_v50 = vadd.f32 %v7145_v21, %v4258_v29  ;;  %v4263_v34 = vadd.f32 %v5649_v4, %v4062_v45  ;;  %v4061_v0 = vadd.f32 %v4012_v42, %v3859_v9  ;;  %v7368_v4 = vld [vmem:[#allocation15_spill] sm:$0xff]  ;;  %v7369_v42 = vld [vmem:[#allocation38_spill] sm:$0xff] }
 0x321   : > { %v4210_v61 = vpop.f32.mrf.mxu0  ;;  %v5621_v25 = vpop.f32.mrf.mxu1  ;;  %v3864_v53 = vadd.f32 %v7104_v44, %v3662_v3  ;;  %v3862_v20 = vadd.f32 %v7108_v43, %v3660_v7  ;;  %v3663_v26 = vadd.f32 %v7102_v35, %v7076_v63  ;;  %v3664_v63 = vadd.f32 %v7368_v4, %v7082_v1  ;;  %v7372_v9 = vld [vmem:[#allocation18_spill] sm:$0xff] }
 0x322   : > { %v4708_v49 = vpack.c.bf16 %v4299_v12, %v4298_v15  ;;  %v4297_v33 = vmax.f32 %v4281_v50, 0.0  ;;  %v4261_v36 = vadd.f32 %v4210_v61, %v4060_v37  ;;  %v4286_v23 = vadd.f32 %v7145_v21, %v4263_v34  ;;  %v7371_v37 = vld [vmem:[#allocation16_spill] sm:$0xff]  ;;  %v7373_v1 = vld [vmem:[#allocation22_spill] sm:$0xff] }
 0x323   : > { %v5650_v13 = vpop.f32.mrf.mxu0  ;;  %v4025_v39 = vpop.f32.mrf.mxu1  ;;  %v4066_v45 = vadd.f32 %v5621_v25, %v3864_v53  ;;  %v3865_v8 = vadd.f32 %v7112_v62, %v3663_v26  ;;  %v3863_v15 = vadd.f32 %v7116_v54, %v3661_v52  ;;  %v3868_v12 = vadd.f32 %v7369_v42, %v3666_v30 }
 0x324   : > { %4740 = vst [vmem:[%s7165_s30 + $0x8] sm:$0xff] %v4708_v49   ;;  %v4703_v41 = vpack.c.bf16 %v4297_v33, %v4296_v22  ;;  %v4264_v38 = vadd.f32 %v5650_v13, %v4063_v60  ;;  %v4284_v14 = vadd.f32 %v7145_v21, %v4261_v36  ;;  %v4302_v6 = vmax.f32 %v4286_v23, 0.0  ;;  %v7374_v49 = vld [vmem:[#allocation17_spill] sm:$0xff]  ;;  %v7375_v60 = vld [vmem:[#allocation24_spill] sm:$0xff] }
 0x325   : > { %v4213_v58 = vpop.f32.mrf.mxu0  ;;  %v5622_v31 = vpop.f32.mrf.mxu1  ;;  %v4064_v28 = vadd.f32 %v4025_v39, %v3862_v20  ;;  %v3667_v34 = vadd.f32 %v7371_v37, %v7370_v56  ;;  %v3866_v54 = vadd.f32 %v7372_v9, %v3664_v63  ;;  %v3665_v33 = vadd.f32 %v7374_v49, %v7373_v1 }
 0x326   : > { %4704 = vst [vmem:[%s7165_s30] sm:$0xff] %v4703_v41   ;;  %v4287_v17 = vadd.f32 %v7145_v21, %v4264_v38  ;;  %v4262_v48 = vadd.f32 %v4213_v58, %v4061_v0  ;;  %v4300_v59 = vmax.f32 %v4284_v14, 0.0  ;;  %v4067_v19 = vadd.f32 %v5622_v31, %v3865_v8 }
 0x327   : > { %v4028_v10 = vpop.f32.mrf.mxu1  ;;  %v3869_v36 = vadd.f32 %v7375_v60, %v3667_v34  ;;  %v3867_v58 = vadd.f32 %v7137_v5, %v3665_v33 }
 0x328   : > { %v4303_v16 = vmax.f32 %v4287_v17, 0.0  ;;  %v4285_v24 = vadd.f32 %v7145_v21, %v4262_v48  ;;  %v4065_v62 = vadd.f32 %v4028_v10, %v3863_v15 }
 0x329   : > { %v5625_v2 = vpop.f32.mrf.mxu1 }
 0x32a   : > { %v4718_v57 = vpack.c.bf16 %v4303_v16, %v4302_v6  ;;  %v4301_v32 = vmax.f32 %v4285_v24, 0.0  ;;  %v4070_v61 = vadd.f32 %v5625_v2, %v3868_v12 }
 0x32b   : > { %v4041_v11 = vpop.f32.mrf.mxu1 }
 0x32c   : > { %4742 = vst [vmem:[%s7165_s30 + $0x18] sm:$0xff] %v4718_v57   ;;  %v4713_v47 = vpack.c.bf16 %v4301_v32, %v4300_v59  ;;  %v4068_v13 = vadd.f32 %v4041_v11, %v3866_v54 }
 0x32d   : > { %v5626_v46 = vpop.f32.mrf.mxu1 }
 0x32e   : > { %4741 = vst [vmem:[%s7165_s30 + $0x10] sm:$0xff] %v4713_v47   ;;  %v4071_v31 = vadd.f32 %v5626_v46, %v3869_v36 }
 0x32f   : > { %v4044_v27 = vpop.f32.mrf.mxu1 }
 0x330   : > { %v4069_v24 = vadd.f32 %v4044_v27, %v3867_v58 }
 0x331   : > { %v5653_v29 = vpop.f32.mrf.mxu1 }
 0x332   : > { %v4267_v40 = vadd.f32 %v5653_v29, %v4066_v45 }
 0x333   : > { %v4226_v44 = vpop.f32.mrf.mxu1 }
 0x334   : > { %v4265_v43 = vadd.f32 %v4226_v44, %v4064_v28  ;;  %v4290_v50 = vadd.f32 %v7145_v21, %v4267_v40 }
 0x335   : > { %v5654_v35 = vpop.f32.mrf.mxu1 }
 0x336   : > { %v4268_v18 = vadd.f32 %v5654_v35, %v4067_v19  ;;  %v4288_v51 = vadd.f32 %v7145_v21, %v4265_v43  ;;  %v4306_v41 = vmax.f32 %v4290_v50, 0.0 }
 0x337   : > { %v4229_v22 = vpop.f32.mrf.mxu1 }
 0x338   : > { %v4291_v55 = vadd.f32 %v7145_v21, %v4268_v18  ;;  %v4266_v25 = vadd.f32 %v4229_v22, %v4065_v62  ;;  %v4304_v17 = vmax.f32 %v4288_v51, 0.0 }
 0x339   : > { %v5657_v39 = vpop.f32.mrf.mxu1 }
 0x33a   : > { %v4307_v23 = vmax.f32 %v4291_v55, 0.0  ;;  %v4289_v0 = vadd.f32 %v7145_v21, %v4266_v25  ;;  %v4271_v38 = vadd.f32 %v5657_v39, %v4070_v61 }
 0x33b   : > { %v4242_v14 = vpop.f32.mrf.mxu1 }
 0x33c   : > { %v4728_v48 = vpack.c.bf16 %v4307_v23, %v4306_v41  ;;  %v4305_v10 = vmax.f32 %v4289_v0, 0.0  ;;  %v4269_v6 = vadd.f32 %v4242_v14, %v4068_v13  ;;  %v4294_v59 = vadd.f32 %v7145_v21, %v4271_v38 }
 0x33d   : > { %v5658_v16 = vpop.f32.mrf.mxu1 }
 0x33e   : > { %4744 = vst [vmem:[%s7165_s30 + $0x28] sm:$0xff] %v4728_v48   ;;  %v4723_v2 = vpack.c.bf16 %v4305_v10, %v4304_v17  ;;  %v4272_v57 = vadd.f32 %v5658_v16, %v4071_v31  ;;  %v4292_v5 = vadd.f32 %v7145_v21, %v4269_v6  ;;  %v4310_v47 = vmax.f32 %v4294_v59, 0.0 }
 0x33f   : > { %v4245_v32 = vpop.f32.mrf.mxu1 }
 0x340   : > { %4743 = vst [vmem:[%s7165_s30 + $0x20] sm:$0xff] %v4723_v2   ;;  %v4295_v11 = vadd.f32 %v7145_v21, %v4272_v57  ;;  %v4270_v3 = vadd.f32 %v4245_v32, %v4069_v24  ;;  %v4308_v7 = vmax.f32 %v4292_v5, 0.0 }
 0x342   : > { %v4311_v46 = vmax.f32 %v4295_v11, 0.0  ;;  %v4293_v53 = vadd.f32 %v7145_v21, %v4270_v3 }
 0x344   : > { %v4738_v27 = vpack.c.bf16 %v4311_v46, %v4310_v47  ;;  %v4309_v20 = vmax.f32 %v4293_v53, 0.0 }
 0x346   : > { %4746 = vst [vmem:[%s7165_s30 + $0x38] sm:$0xff] %v4738_v27   ;;  %v4733_v26 = vpack.c.bf16 %v4309_v20, %v4308_v7 }
 0x348   : > { %4745 = vst [vmem:[%s7165_s30 + $0x30] sm:$0xff] %v4733_v26  }
 0x349   : > { %6001 = shalt.err (!%p5998_p9)
}
 0x34a   : > { %s6002_s29 = scalar_lea.hbm %s7214_s22, 1024  ;;  %s6006_s18 = scalar_lea.hbm %s7268_s7, 2048 }
 0x34b   : > { %p6003_p13 = scmp.ne.s32.totalorder %s7214_s22, %s6002_s29  ;;  %p6007_p4 = scmp.lt.s32.totalorder %s7214_s22, %s7268_s7 }
 0x34c   : > { %p6008_p8 = scmp.lt.s32.totalorder %s6006_s18, %s6002_s29 }
 0x34d   : > { %p6004_p5 = pnand %p6003_p13, %p7376_p10 }
 0x34e   : > { %p6009_p3 = por %p6008_p8, %p6007_p4 }
 0x34f   : > { %p6005_p0 = pneg %p6004_p5 }
 0x351   : > { %p6010_p11 = pnand %p6009_p3, %p6005_p0 }
 0x353   : > { %6013 = shalt.err (!%p6010_p11)
}
 0x354   : > { %s6069_s19 = smov 64   ;;  %s6070_s21 = smov 4  }
 0x355   : > { %5688 = dma.vmem_to_hbm [thread:$0]  (%p7376_p10), %s7216_s16, 1024, %s7214_s22, %s4393_s15, %s6069_s19, %s6069_s19, %s6070_s21  }
 0x356 PF: > { %s4421_s20 = sand.u32 1, %s6044_s24   ;;  %p7377_p1 = scmp.ne.s32.totalorder %s7277_s8, 0 }
 0x357   : > { %p7378_p2 = scmp.ge.s32.totalorder %s6056_s27, 2  ;;  %s4422_s28 = scalar_lea.sflag [#allocation5], %s4421_s20 }
 0x359   : > { %p5702_p6 = pnand %p7378_p2, %p7377_p1 }
 0x35b   : > { %p5703_p12 = pneg %p5702_p6 }
 0x35d   : > { %6039 = dma.done.wait (%p5703_p12), %s4422_s28, 1024  }
 0x35e   : > { %6041 = vsyncadd (%p5703_p12), %s4422_s28, 4294966272  ;;  %p21_p7 = scmp.ge.s32.totalorder %s6183_s23, 4   ;;  %s7379_s24 = smov %s6048_s25 }
 0x35f   : > { %s7380_s25 = smov %s6052_s26  ;;  %s7381_s26 = smov %s6199_s12 }
 0x360   : > { %s7382_s27 = smov %s6183_s23  ;;  %23 = sbr.rel (!%p21_p7) target bundleno = 8 (0x8), region = 117 }
 0x365   :  { %4427 = vsyncpa [#allocation4], 1 }
 0x366   :  { %4429 = vsyncpa [#allocation4 + $0x1], 1 }
 0x367   :  { %4430 = vsyncpa [#allocation7], 1 }
 0x368   :  { %4431 = vsyncpa [#allocation5], 1 }
 0x369   :  { %4433 = vsyncpa [#allocation5 + $0x1], 1 }

// kernel: tpu_custom_call.1
= control target key start
LH: loop header
LB: loop body
LE: loop exit
PB: predicated region body
PF: predicated region fallthrough
CT: control target
= control target key end

     0   :  { %s7261_s0 = inlined_call_operand.hbm [shape: f32[2,640,128], index: 0, kind: input, shape index: {}]   ;;  %s7262_s1 = inlined_call_operand.hbm [shape: bf16[9,128,128], index: 1, kind: input, shape index: {}]   ;;  %s7263_s2 = inlined_call_operand.hbm [shape: bf16[9,128,128], index: 2, kind: input, shape index: {}]   ;;  %s7264_s3 = inlined_call_operand.vmem [shape: bf16[128,128], index: 3, kind: input, shape index: {}]   ;;  %s7265_s4 = inlined_call_operand.vmem [shape: f32[1,128], index: 4, kind: input, shape index: {}]   ;;  %s7266_s5 = inlined_call_operand.vmem [shape: f32[1,128], index: 5, kind: input, shape index: {}]   ;;  %s7267_s6 = inlined_call_operand.vmem [shape: f32[128,1], index: 6, kind: input, shape index: {}]   ;;  %s7268_s7 = inlined_call_operand.hbm [shape: bf16[2,128,128], index: 7, kind: output, shape index: {}]  }
   0x1   :  { %7275 = sst [smem:[#allocation49_spill]] %s7262_s1 }
   0x2   :  { %12 = vsyncpa [#allocation4], 0 }
   0x3   :  { %14 = vsyncpa [#allocation4 + $0x1], 0 }
   0x4   :  { %15 = vsyncpa [#allocation7], 0 }
   0x5   :  { %16 = vsyncpa [#allocation5], 0 }
   0x6   :  { %18 = vsyncpa [#allocation5 + $0x1], 0  ;;  %s6111_s24 = smov 0   ;;  %s6113_s25 = smov 0  }
   0x7   :  { %s6115_s26 = smov 0   ;;  %s6117_s27 = smov 0  }
   0x8 LB: > { %s6132_s28 = sadd.s32 4294967295, %s6056_s27   ;;  %s4498_s29 = sadd.s32 4294967294, %s6056_s27   ;;  %s6056_s27 = sphi %s6117_s27, %s7382_s27   ;;  %s6052_s26 = sphi %s6115_s26, %s7381_s26   ;;  %s6048_s25 = sphi %s6113_s25, %s7380_s25   ;;  %s6044_s24 = sphi %s6111_s24, %s7379_s24  }
   0x9   : > { %p44_p0 = scmp.ne.s32.totalorder %s6048_s25, %s6044_s24  ;;  %p7269_p1 = scmp.eq.s32.totalorder %s6132_s28, 0 }
   0xa   : > { %p200_p3 = scmp.eq.s32.totalorder %s4498_s29, 1  ;;  %p4499_p5 = scmp.ge.s32.totalorder %s6056_s27, 1 }
   0xb   : > { %p6141_p4 = por %p7269_p1, %p44_p0  ;;  %p207_p7 = scmp.lt.s32.totalorder %s6056_s27, 3 }
   0xc   : > { %p6146_p6 = por %p200_p3, %p44_p0  ;;  %s6058_s10 = smov [#allocation6]  }
   0xd   : > { %s7276_s30 = scalar_select %p6141_p4, 1, 0 }
   0xe   : > { %s7277_s8 = scalar_select %p6146_p6, 1, 0 }
   0xf   : > { %p6151_p8 = pnand %p4499_p5, %p207_p7  ;;  %s219_s11 = sshll.u32 %s6058_s10, 4  ;;  %s220_s11 = int_to_ptr.vmem [resolvable:$true] %s219_s11 }
  0x10   : > { %s6059_s13 = smov [#allocation8]   ;;  %s5919_s15 = scalar_lea.vmem %s220_s11, 9216 }
  0x11   : > { %s7278_s9 = scalar_select %p6151_p8, 1, 0 }
  0x12   : > { %p5690_p9 = pneg %p6151_p8  ;;  %s232_s14 = sshll.u32 %s6059_s13, 4  ;;  %s233_s14 = int_to_ptr.vmem [resolvable:$true] %s232_s14 }
  0x13   : > { %p5920_p13 = scmp.ne.s32.totalorder %s220_s11, %s5919_s15  ;;  %p5927_p5 = scmp.lt.s32.totalorder %s220_s11, %s220_s11 }
  0x14   : > { %p6160_p11 = pnand %p5690_p9, %p7269_p1  ;;  %p5928_p7 = scmp.lt.s32.totalorder %s5919_s15, %s5919_s15 }
  0x16   : > { %p5910_p12 = pneg %p6160_p11  ;;  %p5929_p10 = por %p5928_p7, %p5927_p5 }
  0x18   : > { %p5922_p0 = pnand %p5920_p13, %p5910_p12 }
  0x1a   : > { %p5923_p3 = pneg %p5922_p0 }
  0x1c   : > { %p5930_p9 = pnand %p5929_p10, %p5923_p3 }
  0x1e   : > { %5933 = shalt.err (!%p5930_p9)
}
  0x1f   : > { %s6060_s16 = smov 64   ;;  %s6061_s17 = smov 4  }
  0x20   : > { %s7280_s1 = sld [smem:[#allocation49_spill]]  ;;  %s5945_s20 = scalar_lea.vmem %s233_s14, 9216 }
  0x21   : > { %p5946_p1 = scmp.ne.s32.totalorder %s233_s14, %s5945_s20  ;;  %p5953_p2 = scmp.lt.s32.totalorder %s233_s14, %s233_s14 }
  0x22   : > { %p5954_p6 = scmp.lt.s32.totalorder %s5945_s20, %s5945_s20 }
  0x23   : > { %p5948_p13 = pnand %p5946_p1, %p5910_p12 }
  0x24   : > { %p5955_p5 = por %p5954_p6, %p5953_p2 }
  0x25   : > { %p5949_p0 = pneg %p5948_p13 }
  0x26   : > { %5693 = dma.hbm_to_vmem [thread:$0]  (!%p6160_p11), %s7280_s1, 9216, %s220_s11, [#allocation7], %s6060_s16, %s6060_s16, %s6061_s17  }
  0x27   : > { %p5956_p10 = pnand %p5955_p5, %p5949_p0 }
  0x29   : > { %5959 = shalt.err (!%p5956_p10)
}
  0x2a   : > { %5696 = dma.hbm_to_vmem [thread:$0]  (!%p6160_p11), %s7263_s2, 9216, %s233_s14, [#allocation7], %s6060_s16, %s6060_s16, %s6061_s17  }
  0x2b   : > { %s6183_s23 = sadd.s32 1, %s6056_s27   ;;  %s31_s29 = sadd.s32 1, %s6052_s26 }
  0x2c   : > { %s28_s10 = ssub.s32 %s6056_s27, %s6183_s23  ;;  %p38_p1 = scmp.ne.s32.totalorder %s6052_s26, %s6048_s25 }
  0x2d   : > { %p29_p2 = scmp.eq.s32.totalorder %s28_s10, 0  ;;  %p39_p6 = scmp.eq.s32.totalorder %s6056_s27, 0 }
  0x2e   : > { %p7281_p12 = scmp.eq.s32.totalorder %s6132_s28, 1  ;;  %p5707_p7 = scmp.lt.s32.totalorder %s6056_s27, 2 }
  0x2f   : > { %s6199_s12 = scalar_select %p29_p2, %s6052_s26, %s31_s29  }
  0x30   : > { %p6193_p3 = por %p7281_p12, %p38_p1  ;;  %p40_p9 = por %p39_p6, %p38_p1 }
  0x31   : > { %s258_s13 = sand.u32 1, %s6052_s26   ;;  %s5676_s14 = smul.u32 10240, %s6056_s27 }
  0x32   : > { %s7282_s11 = scalar_select %p6193_p3, 1, 0 }
  0x33   : > { %s5675_s15 = smul.u32 640, %s258_s13  ;;  %p6203_p11 = pnand %p5707_p7, %p40_p9 }
  0x34   : > { %s6210_s19 = scalar_lea.hbm %s7261_s0, %s5676_s14  ;;  %s6214_s22 = scalar_lea.sflag [#allocation4], %s258_s13 }
  0x35   : > { %s262_s20 = scalar_lea.vmem [#allocation3], %s5675_s15  ;;  %s5960_s29 = scalar_lea.hbm %s6210_s19, 10240 }
  0x36   : > { %s269_s21 = sshll.u32 %s262_s20, 4  ;;  %p5961_p13 = scmp.ne.s32.totalorder %s6210_s19, %s5960_s29  ;;  %s6212_s21 = int_to_ptr.vmem [resolvable:$true] %s269_s21 }
  0x37   : > { %p5962_p0 = pneg %p6203_p11  ;;  %s5965_s14 = scalar_lea.hbm %s7261_s0, 20480 }
  0x38   : > { %p5966_p1 = scmp.lt.s32.totalorder %s6210_s19, %s7261_s0  ;;  %p5967_p2 = scmp.lt.s32.totalorder %s5965_s14, %s5960_s29 }
  0x39   : > { %p5963_p5 = pnand %p5962_p0, %p5961_p13 }
  0x3a   : > { %p5968_p6 = por %p5967_p2, %p5966_p1 }
  0x3b   : > { %p5964_p10 = pneg %p5963_p5 }
  0x3d   : > { %p5969_p12 = pnand %p5968_p6, %p5964_p10 }
  0x3f   : > { %5972 = shalt.err (!%p5969_p12)
}
  0x40   : > { %s5973_s13 = scalar_lea.vmem %s6212_s21, 10240  ;;  %s6062_s15 = smov [#allocation3]  }
  0x41   : > { %p5974_p7 = scmp.ne.s32.totalorder %s6212_s21, %s5973_s13  ;;  %s5978_s20 = sshll.u32 %s6062_s15, 4  ;;  %s5979_s20 = int_to_ptr.vmem [resolvable:$false] %s5978_s20 }
  0x42   : > { %s5980_s10 = scalar_lea.vmem %s5979_s20, 20480  ;;  %p5981_p5 = scmp.lt.s32.totalorder %s6212_s21, %s5979_s20 }
  0x43   : > { %p5976_p9 = pnand %p5974_p7, %p5962_p0  ;;  %p5982_p3 = scmp.lt.s32.totalorder %s5980_s10, %s5973_s13 }
  0x45   : > { %p5977_p13 = pneg %p5976_p9  ;;  %p5983_p4 = por %p5982_p3, %p5981_p5 }
  0x47   : > { %p5984_p8 = pnand %p5983_p4, %p5977_p13 }
  0x49   : > { %5987 = shalt.err (!%p5984_p8)
}
  0x4a   : > { %s6063_s1 = smov 128   ;;  %s6064_s29 = smov 8  }
  0x4b   : > { %5700 = dma.hbm_to_vmem [thread:$0]  (!%p6203_p11), %s6210_s19, 10240, %s6212_s21, %s6214_s22, %s6063_s1, %s6063_s1, %s6064_s29  }
  0x4c   : > { %p7284_p0 = scmp.ne.s32.totalorder %s7278_s9, 0 }
  0x4e   : > { %281 = sbr.rel (%p7284_p0) target bundleno = 854 (0x356), region = 48 }
  0x53   : > { %s6238_s17 = sand.u32 1, %s6048_s25   ;;  %p7285_p4 = scmp.ne.s32.totalorder %s7276_s30, 0 }
  0x54   : > { %s5677_s14 = smul.u32 640, %s6238_s17  ;;  %s284_s18 = scalar_lea.sflag [#allocation4], %s6238_s17 }
  0x56   : > { %s6242_s13 = scalar_lea.vmem [#allocation3], %s5677_s14 }
  0x57   : > { %6031 = dma.done.wait (%p7285_p4), %s284_s18, 10240  }
  0x58   : > { %6033 = vsyncadd (%p7285_p4), %s284_s18, 4294957056  ;;  %p7286_p8 = scmp.eq.s32.totalorder %s6132_s28, 0 }
  0x5a   : > { %6035 = dma.done.wait (%p7286_p8), [#allocation7], 18432   ;;  %p7287_p3 = pmov %p7286_p8 }
  0x5b   : > { %v5755_v0 = vld [vmem:[#allocation6 + $0x78] sm:$0xff]   ;;  %v5757_v2 = vld [vmem:[#allocation6 + $0x70] sm:$0xff]   ;;  %v5759_v4 = vld [vmem:[#allocation6 + $0x68] sm:$0xff]   ;;  %s4507_s18 = sshll.u32 %s6238_s17, 6  ;;  %s4699_s9 = sshll.u32 %s6132_s28, 10 }
  0x5c   : > { %6037 = vsyncadd (%p7287_p3), [#allocation7], 4294948864  ;;  %v5756_v1 = vld [vmem:[#allocation6 + $0x38] sm:$0xff]   ;;  %5051 = vmatprep.subr.bf16.mxu0 %v5755_v0  ;;  %v5758_v3 = vld [vmem:[#allocation6 + $0x30] sm:$0xff]   ;;  %s7165_s30 = scalar_lea.vmem [#allocation9], %s4507_s18  ;;  %s7214_s22 = scalar_lea.hbm %s7268_s7, %s4699_s9 }
  0x5d   : > { %5083 = vmatprep.subr.bf16.mxu1 %v5756_v1  ;;  %5052 = vmatpush3.bf16.msra.mxu0 %v5755_v0  ;;  %v5760_v5 = vld [vmem:[#allocation6 + $0x28] sm:$0xff]   ;;  %v5761_v6 = vld [vmem:[#allocation6 + $0x60] sm:$0xff]   ;;  %v5763_v8 = vld [vmem:[#allocation6 + $0x58] sm:$0xff]   ;;  %s4406_s16 = sshll.u32 %s7165_s30, 4  ;;  %s4393_s15 = scalar_lea.sflag [#allocation5], %s6238_s17  ;;  %s7216_s16 = int_to_ptr.vmem [resolvable:$true] %s4406_s16 }
  0x5e   : > { %5084 = vmatpush3.bf16.msra.mxu1 %v5756_v1  ;;  %5053 = vmatprep.subr.bf16.mxu0 %v5757_v2  ;;  %v5762_v7 = vld [vmem:[#allocation6 + $0x20] sm:$0xff]   ;;  %v5764_v9 = vld [vmem:[#allocation6 + $0x18] sm:$0xff]   ;;  %v5765_v10 = vld [vmem:[#allocation6 + $0x50] sm:$0xff]   ;;  %s5988_s20 = scalar_lea.vmem %s7216_s16, 1024  ;;  %p7376_p10 = scmp.ne.s32.totalorder %s7282_s11, 0 }
  0x5f   : > { %5085 = vmatprep.subr.bf16.mxu1 %v5758_v3  ;;  %v375_v11 = vld [vmem:[%s6242_s13 + $0xa0] sm:$0xff]  ;;  %v376_v12 = vld [vmem:[%s6242_s13 + $0xa8] sm:$0xff]  ;;  %v5766_v14 = vld [vmem:[#allocation6 + $0x10] sm:$0xff]   ;;  %p5989_p11 = scmp.ne.s32.totalorder %s7216_s16, %s5988_s20  ;;  %s6068_s28 = smov [#allocation9]  }
  0x60   : > { %v335_v13 = vld [vmem:[%s6242_s13] sm:$0xff]  ;;  %v391_v15 = vpack.c.bf16 %v376_v12, %v375_v11  ;;  %v336_v16 = vld [vmem:[%s6242_s13 + $0x8] sm:$0xff]  ;;  %v377_v22 = vld [vmem:[%s6242_s13 + $0xb0] sm:$0xff]  ;;  %s5992_s10 = sshll.u32 %s6068_s28, 4  ;;  %s5993_s10 = int_to_ptr.vmem [resolvable:$false] %s5992_s10 }
  0x61   : > { %5054 = vmatpush3.bf16.msra.mxu0 %v5757_v2  ;;  %v351_v17 = vpack.c.bf16 %v336_v16, %v335_v13  ;;  %v5767_v18 = vld [vmem:[#allocation6 + $0x48] sm:$0xff]   ;;  %v5769_v20 = vld [vmem:[#allocation6 + $0x40] sm:$0xff]   ;;  %v378_v23 = vld [vmem:[%s6242_s13 + $0xb8] sm:$0xff]  ;;  %p5990_p1 = pnand %p5989_p11, %p7376_p10  ;;  %s5994_s1 = scalar_lea.vmem %s5993_s10, 2048 }
  0x62   : > { %5086 = vmatpush3.bf16.msra.mxu1 %v5758_v3  ;;  %5055 = vmatprep.subr.bf16.mxu0 %v5759_v4  ;;  %v5768_v19 = vld [vmem:[#allocation6 + $0x8] sm:$0xff]   ;;  %v5770_v21 = vld [vmem:[#allocation6] sm:$0xff]   ;;  %v337_v24 = vld [vmem:[%s6242_s13 + $0x10] sm:$0xff]  ;;  %v6260_v28 = vpack.c.bf16 %v378_v23, %v377_v22  ;;  %p5995_p6 = scmp.lt.s32.totalorder %s7216_s16, %s5993_s10  ;;  %p5996_p12 = scmp.lt.s32.totalorder %s5994_s1, %s5988_s20 }
  0x63   : > { %5087 = vmatprep.subr.bf16.mxu1 %v5760_v5  ;;  %5067 = vmatprep.mubr.bf16.mxu0 %v391_v15  ;;  %v338_v25 = vld [vmem:[%s6242_s13 + $0x18] sm:$0xff]  ;;  %v379_v29 = vld [vmem:[%s6242_s13 + $0xc0] sm:$0xff]  ;;  %v380_v30 = vld [vmem:[%s6242_s13 + $0xc8] sm:$0xff]  ;;  %p5991_p2 = pneg %p5990_p1 }
  0x64   : > { %5099 = vmatprep.mubr.bf16.mxu1 %v351_v17  ;;  %v5771_v26 = vld [vmem:[#allocation6 + $0xb8] sm:$0xff]   ;;  %v6264_v31 = vpack.c.bf16 %v338_v25, %v337_v24  ;;  %v339_v32 = vld [vmem:[%s6242_s13 + $0x20] sm:$0xff]  ;;  %v340_v33 = vld [vmem:[%s6242_s13 + $0x28] sm:$0xff]  ;;  %v6268_v36 = vpack.c.bf16 %v380_v30, %v379_v29  ;;  %p5997_p7 = por %p5996_p12, %p5995_p6 }
  0x65   : > { %5056 = vmatpush3.bf16.msra.mxu0 %v5759_v4  ;;  %v5772_v27 = vld [vmem:[#allocation6 + $0xf8] sm:$0xff]   ;;  %v5773_v34 = vld [vmem:[#allocation6 + $0xb0] sm:$0xff]   ;;  %v6271_v37 = vpack.c.bf16 %v340_v33, %v339_v32  ;;  %v5775_v42 = vld [vmem:[#allocation6 + $0xa8] sm:$0xff]   ;;  %v6065_v33 = vmov 0  }
  0x66   : > { %5088 = vmatpush3.bf16.msra.mxu1 %v5760_v5  ;;  %5057 = vmatprep.subr.bf16.mxu0 %v5761_v6  ;;  %v5774_v35 = vld [vmem:[#allocation6 + $0xf0] sm:$0xff]   ;;  %v382_v39 = vld [vmem:[%s6242_s13 + $0xd8] sm:$0xff]  ;;  %v5776_v43 = vld [vmem:[#allocation6 + $0xe8] sm:$0xff]   ;;  %p5998_p9 = pnand %p5997_p7, %p5991_p2 }
  0x67   : > { %5089 = vmatprep.subr.bf16.mxu1 %v5762_v7  ;;  %v381_v38 = vld [vmem:[%s6242_s13 + $0xd0] sm:$0xff]  ;;  %v342_v41 = vld [vmem:[%s6242_s13 + $0x38] sm:$0xff]  ;;  %v383_v44 = vld [vmem:[%s6242_s13 + $0xe0] sm:$0xff]  ;;  %5753 = vset.pattern.permute.xlu0 %v6065_v33 }
  0x68   : > { %v341_v40 = vld [vmem:[%s6242_s13 + $0x30] sm:$0xff]  ;;  %v6281_v45 = vpack.c.bf16 %v382_v39, %v381_v38  ;;  %v384_v46 = vld [vmem:[%s6242_s13 + $0xe8] sm:$0xff]  ;;  %v343_v47 = vld [vmem:[%s6242_s13 + $0x40] sm:$0xff]  ;;  %5754 = vset.pattern.permute.xlu1 %v6065_v33 }
  0x69   : > { %5058 = vmatpush3.bf16.msra.mxu0 %v5761_v6  ;;  %v6285_v48 = vpack.c.bf16 %v342_v41, %v341_v40  ;;  %v344_v49 = vld [vmem:[%s6242_s13 + $0x48] sm:$0xff]  ;;  %v5777_v50 = vld [vmem:[#allocation6 + $0xa0] sm:$0xff]   ;;  %v6288_v52 = vpack.c.bf16 %v384_v46, %v383_v44  ;;  %v385_v54 = vld [vmem:[%s6242_s13 + $0xf0] sm:$0xff] }
  0x6a   : > { %5090 = vmatpush3.bf16.msra.mxu1 %v5762_v7  ;;  %5059 = vmatprep.subr.bf16.mxu0 %v5763_v8  ;;  %v5778_v51 = vld [vmem:[#allocation6 + $0xe0] sm:$0xff]   ;;  %v6291_v53 = vpack.c.bf16 %v344_v49, %v343_v47  ;;  %v386_v55 = vld [vmem:[%s6242_s13 + $0xf8] sm:$0xff]  ;;  %v345_v56 = vld [vmem:[%s6242_s13 + $0x50] sm:$0xff] }
  0x6b   : > { %5091 = vmatprep.subr.bf16.mxu1 %v5764_v9  ;;  %v346_v57 = vld [vmem:[%s6242_s13 + $0x58] sm:$0xff]  ;;  %v387_v60 = vld [vmem:[%s6242_s13 + $0x100] sm:$0xff]  ;;  %v388_v61 = vld [vmem:[%s6242_s13 + $0x108] sm:$0xff]  ;;  %v6302_v62 = vpack.c.bf16 %v386_v55, %v385_v54 }
  0x6c   : > { %v5779_v58 = vld [vmem:[#allocation6 + $0x98] sm:$0xff]   ;;  %v347_v63 = vld [vmem:[%s6242_s13 + $0x60] sm:$0xff]  ;;  %v6305_v0 = vpack.c.bf16 %v346_v57, %v345_v56  ;;  %v348_v1 = vld [vmem:[%s6242_s13 + $0x68] sm:$0xff]  ;;  %v6308_v4 = vpack.c.bf16 %v388_v61, %v387_v60 }
  0x6d   : > { %5060 = vmatpush3.bf16.msra.mxu0 %v5763_v8  ;;  %v5780_v59 = vld [vmem:[#allocation6 + $0xd8] sm:$0xff]   ;;  %v5781_v2 = vld [vmem:[#allocation6 + $0x90] sm:$0xff]   ;;  %v6311_v5 = vpack.c.bf16 %v348_v1, %v347_v63  ;;  %v5784_v11 = vld [vmem:[#allocation6 + $0xc8] sm:$0xff]  }
  0x6e   : > { %5092 = vmatpush3.bf16.msra.mxu1 %v5764_v9  ;;  %5061 = vmatprep.subr.bf16.mxu0 %v5765_v10  ;;  %v5782_v3 = vld [vmem:[#allocation6 + $0xd0] sm:$0xff]   ;;  %v390_v7 = vld [vmem:[%s6242_s13 + $0x118] sm:$0xff]  ;;  %v706_v12 = vld [vmem:[%s6242_s13 + $0x1] sm:$0xff] }
  0x6f   : > { %5093 = vmatprep.subr.bf16.mxu1 %v5766_v14  ;;  %v389_v6 = vld [vmem:[%s6242_s13 + $0x110] sm:$0xff]  ;;  %v350_v9 = vld [vmem:[%s6242_s13 + $0x78] sm:$0xff]  ;;  %v908_v15 = vld [vmem:[%s6242_s13 + $0x140] sm:$0xff] }
  0x70   : > { %v349_v8 = vld [vmem:[%s6242_s13 + $0x70] sm:$0xff]  ;;  %v909_v17 = vld [vmem:[%s6242_s13 + $0x148] sm:$0xff]  ;;  %v709_v22 = vld [vmem:[%s6242_s13 + $0x19] sm:$0xff] }
  0x71   : > { %5062 = vmatpush3.bf16.msra.mxu0 %v5765_v10  ;;  %v5783_v10 = vld [vmem:[#allocation6 + $0x88] sm:$0xff]   ;;  %v6325_v16 = vpack.c.bf16 %v350_v9, %v349_v8  ;;  %v924_v23 = vpack.c.bf16 %v909_v17, %v908_v15  ;;  %v5787_v24 = vld [vmem:[#allocation6 + $0x138] sm:$0xff]   ;;  %v910_v25 = vld [vmem:[%s6242_s13 + $0x150] sm:$0xff] }
  0x72   : > { %5094 = vmatpush3.bf16.msra.mxu1 %v5766_v14  ;;  %5063 = vmatprep.subr.bf16.mxu0 %v5767_v18  ;;  %v707_v13 = vld [vmem:[%s6242_s13 + $0x9] sm:$0xff]  ;;  %v6322_v14 = vpack.c.bf16 %v390_v7, %v389_v6  ;;  %v710_v30 = vld [vmem:[%s6242_s13 + $0x21] sm:$0xff]  ;;  %v915_v49 = vld [vmem:[%s6242_s13 + $0x178] sm:$0xff] }
  0x73   : > { %5095 = vmatprep.subr.bf16.mxu1 %v5768_v19  ;;  %v711_v32 = vld [vmem:[%s6242_s13 + $0x29] sm:$0xff]  ;;  %v714_v54 = vld [vmem:[%s6242_s13 + $0x41] sm:$0xff]  ;;  %v716_v63 = vld [vmem:[%s6242_s13 + $0x51] sm:$0xff] }
  0x74   : > { %v913_v38 = vld [vmem:[%s6242_s13 + $0x168] sm:$0xff]  ;;  %v5789_v39 = vld [vmem:[#allocation6 + $0x130] sm:$0xff]   ;;  %v6340_v41 = vpack.c.bf16 %v711_v32, %v710_v30  ;;  %v916_v57 = vld [vmem:[%s6242_s13 + $0x180] sm:$0xff] }
  0x75   : > { %5064 = vmatpush3.bf16.msra.mxu0 %v5767_v18  ;;  %v5785_v18 = vld [vmem:[#allocation6 + $0x80] sm:$0xff]   ;;  %v5790_v40 = vld [vmem:[#allocation6 + $0x170] sm:$0xff]   ;;  %v5791_v44 = vld [vmem:[#allocation6 + $0x128] sm:$0xff]  }
  0x76   : > { %5096 = vmatpush3.bf16.msra.mxu1 %v5768_v19  ;;  %5065 = vmatprep.subr.bf16.mxu0 %v5769_v20  ;;  %v5786_v19 = vld [vmem:[#allocation6 + $0xc0] sm:$0xff]   ;;  %v914_v47 = vld [vmem:[%s6242_s13 + $0x170] sm:$0xff]  ;;  %v919_v7 = vld [vmem:[%s6242_s13 + $0x198] sm:$0xff] }
  0x77   : > { %5097 = vmatprep.subr.bf16.mxu1 %v5770_v21  ;;  %v715_v55 = vld [vmem:[%s6242_s13 + $0x49] sm:$0xff]  ;;  %v927_v56 = vpack.c.bf16 %v915_v49, %v914_v47  ;;  %v5794_v60 = vld [vmem:[#allocation6 + $0x160] sm:$0xff]   ;;  %v5796_v8 = vld [vmem:[#allocation6 + $0x158] sm:$0xff]  }
  0x78   : > { %v6354_v61 = vpack.c.bf16 %v715_v55, %v714_v54  ;;  %v918_v6 = vld [vmem:[%s6242_s13 + $0x190] sm:$0xff]  ;;  %v921_v15 = vld [vmem:[%s6242_s13 + $0x1a8] sm:$0xff]  ;;  %v1315_v49 = vld [vmem:[%s6242_s13 + $0x159] sm:$0xff] }
  0x79   : > { %5066 = vmatpush3.bf16.msra.mxu0 %v5769_v20  ;;  %v722_v20 = vpack.c.bf16 %v707_v13, %v706_v12  ;;  %v929_v12 = vpack.c.bf16 %v919_v7, %v918_v6  ;;  %v920_v13 = vld [vmem:[%s6242_s13 + $0x1a0] sm:$0xff]  ;;  %v5797_v17 = vld [vmem:[#allocation6 + $0x110] sm:$0xff]   ;;  %v1111_v30 = vld [vmem:[%s6242_s13 + $0x1e8] sm:$0xff] }
  0x7a   : > { %5098 = vmatpush3.bf16.msra.mxu1 %v5770_v21  ;;  %5115 = vmatprep.subr.bf16.mxu0 %v5771_v26  ;;  %v708_v21 = vld [vmem:[%s6242_s13 + $0x11] sm:$0xff]  ;;  %v1312_v33 = vld [vmem:[%s6242_s13 + $0x141] sm:$0xff] }
  0x7b   : > { %5147 = vmatprep.subr.bf16.mxu1 %v5772_v27  ;;  %v6334_v29 = vpack.c.bf16 %v709_v22, %v708_v21  ;;  %v930_v21 = vpack.c.bf16 %v921_v15, %v920_v13  ;;  %v721_v22 = vld [vmem:[%s6242_s13 + $0x79] sm:$0xff]  ;;  %v1314_v47 = vld [vmem:[%s6242_s13 + $0x151] sm:$0xff]  ;;  %v1115_v55 = vld [vmem:[%s6242_s13 + $0x208] sm:$0xff] }
  0x7c   : > { %5068 = vmatmul.mubr.bf16.vlgmr.msra.gmra.mxu0 %v6260_v28  ;;  %v1114_v54 = vld [vmem:[%s6242_s13 + $0x200] sm:$0xff]  ;;  %v5807_v6 = vld [vmem:[#allocation6 + $0x1a8] sm:$0xff]  }
  0x7d   : > { %5100 = vmatmul.mubr.bf16.vlgmr.msra.gmra.mxu1 %v6264_v31  ;;  %5116 = vmatpush3.bf16.msra.mxu0 %v5771_v26  ;;  %v911_v26 = vld [vmem:[%s6242_s13 + $0x158] sm:$0xff]  ;;  %v1118_v13 = vld [vmem:[%s6242_s13 + $0x220] sm:$0xff]  ;;  %v1119_v15 = vld [vmem:[%s6242_s13 + $0x228] sm:$0xff] }
  0x7e   : > { %5148 = vmatpush3.bf16.msra.mxu1 %v5772_v27  ;;  %5117 = vmatprep.subr.bf16.mxu0 %v5773_v34  ;;  %v5788_v27 = vld [vmem:[#allocation6 + $0x178] sm:$0xff]  }
  0x7f   : > { %5149 = vmatprep.subr.bf16.mxu1 %v5774_v35  ;;  %5071 = vmatprep.mubr.bf16.mxu0 %v6268_v36 }
  0x80   : > { %5103 = vmatprep.mubr.bf16.mxu1 %v6271_v37 }
  0x81   : > { %5118 = vmatpush3.bf16.msra.mxu0 %v5773_v34  ;;  %v925_v34 = vpack.c.bf16 %v911_v26, %v910_v25  ;;  %v923_v25 = vld [vmem:[%s6242_s13 + $0x1b8] sm:$0xff]  ;;  %v5800_v26 = vld [vmem:[#allocation6 + $0x148] sm:$0xff]  }
  0x82   : > { %5150 = vmatpush3.bf16.msra.mxu1 %v5774_v35  ;;  %5119 = vmatprep.subr.bf16.mxu0 %v5775_v42  ;;  %v912_v35 = vld [vmem:[%s6242_s13 + $0x160] sm:$0xff] }
  0x83   : > { %5151 = vmatprep.subr.bf16.mxu1 %v5776_v43  ;;  %v926_v46 = vpack.c.bf16 %v913_v38, %v912_v35  ;;  %v1313_v35 = vld [vmem:[%s6242_s13 + $0x149] sm:$0xff]  ;;  %v5801_v38 = vld [vmem:[#allocation6 + $0x100] sm:$0xff]  }
  0x84   : > { %5072 = vmatmul.mubr.bf16.gmra.mxu0 %v6281_v45 }
  0x85   : > { %5104 = vmatmul.mubr.bf16.gmra.mxu1 %v6285_v48  ;;  %5120 = vmatpush3.bf16.msra.mxu0 %v5775_v42  ;;  %v712_v42 = vld [vmem:[%s6242_s13 + $0x31] sm:$0xff] }
  0x86   : > { %5152 = vmatpush3.bf16.msra.mxu1 %v5776_v43  ;;  %5121 = vmatprep.subr.bf16.mxu0 %v5777_v50  ;;  %v713_v43 = vld [vmem:[%s6242_s13 + $0x39] sm:$0xff] }
  0x87   : > { %5153 = vmatprep.subr.bf16.mxu1 %v5778_v51  ;;  %5075 = vmatprep.mubr.bf16.mxu0 %v6288_v52 }
  0x88   : > { %5107 = vmatprep.mubr.bf16.mxu1 %v6291_v53 }
  0x89   : > { %5122 = vmatpush3.bf16.msra.mxu0 %v5777_v50  ;;  %v5792_v50 = vld [vmem:[#allocation6 + $0x168] sm:$0xff]  }
  0x8a   : > { %5154 = vmatpush3.bf16.msra.mxu1 %v5778_v51  ;;  %5123 = vmatprep.subr.bf16.mxu0 %v5779_v58  ;;  %v6348_v51 = vpack.c.bf16 %v713_v43, %v712_v42  ;;  %v1112_v42 = vld [vmem:[%s6242_s13 + $0x1f0] sm:$0xff]  ;;  %v1113_v43 = vld [vmem:[%s6242_s13 + $0x1f8] sm:$0xff] }
  0x8b   : > { %5155 = vmatprep.subr.bf16.mxu1 %v5780_v59 }
  0x8c   : > { %5076 = vmatmul.mubr.bf16.gmra.mxu0 %v6302_v62 }
  0x8d   : > { %5108 = vmatmul.mubr.bf16.gmra.mxu1 %v6305_v0  ;;  %5124 = vmatpush3.bf16.msra.mxu0 %v5779_v58  ;;  %v917_v58 = vld [vmem:[%s6242_s13 + $0x188] sm:$0xff] }
  0x8e   : > { %5156 = vmatpush3.bf16.msra.mxu1 %v5780_v59  ;;  %5125 = vmatprep.subr.bf16.mxu0 %v5781_v2  ;;  %v5793_v59 = vld [vmem:[#allocation6 + $0x120] sm:$0xff]   ;;  %v928_v1 = vpack.c.bf16 %v917_v58, %v916_v57  ;;  %v5805_v57 = vld [vmem:[#allocation6 + $0x1b0] sm:$0xff]  }
  0x8f   : > { %5157 = vmatprep.subr.bf16.mxu1 %v5782_v3  ;;  %5079 = vmatprep.mubr.bf16.mxu0 %v6308_v4  ;;  %v1316_v58 = vld [vmem:[%s6242_s13 + $0x161] sm:$0xff] }
  0x90   : > { %5111 = vmatprep.mubr.bf16.mxu1 %v6311_v5 }
  0x91   : > { %5126 = vmatpush3.bf16.msra.mxu0 %v5781_v2  ;;  %v717_v2 = vld [vmem:[%s6242_s13 + $0x59] sm:$0xff] }
  0x92   : > { %5158 = vmatpush3.bf16.msra.mxu1 %v5782_v3  ;;  %5127 = vmatprep.subr.bf16.mxu0 %v5783_v10  ;;  %v5795_v3 = vld [vmem:[#allocation6 + $0x118] sm:$0xff]   ;;  %v6362_v9 = vpack.c.bf16 %v717_v2, %v716_v63  ;;  %v5806_v63 = vld [vmem:[#allocation6 + $0x1f0] sm:$0xff]  }
  0x93   : > { %5159 = vmatprep.subr.bf16.mxu1 %v5784_v11  ;;  %v1116_v2 = vld [vmem:[%s6242_s13 + $0x210] sm:$0xff] }
  0x94   : > { %5080 = vmatmul.mubr.bf16.gmra.mxu0 %v6322_v14 }
  0x95   : > { %5112 = vmatmul.mubr.bf16.gmra.mxu1 %v6325_v16  ;;  %5128 = vmatpush3.bf16.msra.mxu0 %v5783_v10  ;;  %v718_v10 = vld [vmem:[%s6242_s13 + $0x61] sm:$0xff] }
  0x96   : > { %5160 = vmatpush3.bf16.msra.mxu1 %v5784_v11  ;;  %5129 = vmatprep.subr.bf16.mxu0 %v5785_v18  ;;  %v719_v11 = vld [vmem:[%s6242_s13 + $0x69] sm:$0xff] }
  0x97   : > { %5161 = vmatprep.subr.bf16.mxu1 %v5786_v19  ;;  %5131 = vmatprep.mubr.bf16.mxu0 %v722_v20  ;;  %v720_v20 = vld [vmem:[%s6242_s13 + $0x71] sm:$0xff] }
  0x98   : > { %5163 = vmatprep.mubr.bf16.mxu1 %v924_v23  ;;  %v5799_v23 = vld [vmem:[#allocation6 + $0x108] sm:$0xff]   ;;  %v6378_v32 = vpack.c.bf16 %v721_v22, %v720_v20  ;;  %v5810_v22 = vld [vmem:[#allocation6 + $0x1e0] sm:$0xff]  }
  0x99   : > { %5130 = vmatpush3.bf16.msra.mxu0 %v5785_v18  ;;  %v5798_v18 = vld [vmem:[#allocation6 + $0x150] sm:$0xff]  }
  0x9a   : > { %5162 = vmatpush3.bf16.msra.mxu1 %v5786_v19  ;;  %5179 = vmatprep.subr.bf16.mxu0 %v5787_v24  ;;  %v6368_v19 = vpack.c.bf16 %v719_v11, %v718_v10  ;;  %v1319_v10 = vld [vmem:[%s6242_s13 + $0x179] sm:$0xff]  ;;  %v5808_v11 = vld [vmem:[#allocation6 + $0x1e8] sm:$0xff]  }
  0x9b   : > { %5211 = vmatprep.subr.bf16.mxu1 %v5788_v27  ;;  %v1321_v20 = vld [vmem:[%s6242_s13 + $0x189] sm:$0xff] }
  0x9c   : > { %5132 = vmatmul.mubr.bf16.vlgmr.msra.gmra.mxu0 %v6334_v29 }
  0x9d   : > { %5180 = vmatpush3.bf16.msra.mxu0 %v5787_v24  ;;  %5164 = vmatmul.mubr.bf16.vlgmr.msra.gmra.mxu1 %v925_v34  ;;  %v922_v24 = vld [vmem:[%s6242_s13 + $0x1b0] sm:$0xff] }
  0x9e   : > { %5212 = vmatpush3.bf16.msra.mxu1 %v5788_v27  ;;  %5181 = vmatprep.subr.bf16.mxu0 %v5789_v39  ;;  %v1110_v27 = vld [vmem:[%s6242_s13 + $0x1e0] sm:$0xff]  ;;  %v931_v34 = vpack.c.bf16 %v923_v25, %v922_v24  ;;  %v1120_v24 = vld [vmem:[%s6242_s13 + $0x230] sm:$0xff] }
  0x9f   : > { %5213 = vmatprep.subr.bf16.mxu1 %v5790_v40  ;;  %5135 = vmatprep.mubr.bf16.mxu0 %v6340_v41 }
  0xa0   : > { %5167 = vmatprep.mubr.bf16.mxu1 %v926_v46  ;;  %v5803_v46 = vld [vmem:[#allocation6 + $0x1b8] sm:$0xff]  }
  0xa1   : > { %5182 = vmatpush3.bf16.msra.mxu0 %v5789_v39  ;;  %v5802_v39 = vld [vmem:[#allocation6 + $0x140] sm:$0xff]  }
  0xa2   : > { %5214 = vmatpush3.bf16.msra.mxu1 %v5790_v40  ;;  %5183 = vmatprep.subr.bf16.mxu0 %v5791_v44  ;;  %v1126_v40 = vpack.c.bf16 %v1111_v30, %v1110_v27  ;;  %v5811_v27 = vld [vmem:[#allocation6 + $0x198] sm:$0xff]   ;;  %v2159_v30 = vld [vmem:[%s7267_s6] sm:$0xff] }
  0xa3   : > { %5215 = vmatprep.subr.bf16.mxu1 %v5792_v50  ;;  %2177 = vperm.xlu0 %5753, %v2159_v30   ;;  %v5835_v30 = vld [vmem:[#allocation8 + $0x58] sm:$0xff]  }
  0xa4   : > { %5136 = vmatmul.mubr.bf16.gmra.mxu0 %v6348_v51 }
  0xa5   : > { %5184 = vmatpush3.bf16.msra.mxu0 %v5791_v44  ;;  %5168 = vmatmul.mubr.bf16.gmra.mxu1 %v927_v56  ;;  %v1328_v44 = vpack.c.bf16 %v1313_v35, %v1312_v33  ;;  %v1127_v56 = vpack.c.bf16 %v1113_v43, %v1112_v42  ;;  %v1322_v33 = vld [vmem:[%s6242_s13 + $0x191] sm:$0xff] }
  0xa6   : > { %5216 = vmatpush3.bf16.msra.mxu1 %v5792_v50  ;;  %5185 = vmatprep.subr.bf16.mxu0 %v5793_v59  ;;  %v5804_v50 = vld [vmem:[#allocation6 + $0x1f8] sm:$0xff]   ;;  %v2161_v35 = vld [vmem:[%s7267_s6 + $0x10] sm:$0xff] }
  0xa7   : > { %5217 = vmatprep.subr.bf16.mxu1 %v5794_v60  ;;  %5139 = vmatprep.mubr.bf16.mxu0 %v6354_v61  ;;  %v5813_v43 = vld [vmem:[#allocation6 + $0x190] sm:$0xff]  }
  0xa8   : > { %5171 = vmatprep.mubr.bf16.mxu1 %v928_v1  ;;  %v1128_v1 = vpack.c.bf16 %v1115_v55, %v1114_v54  ;;  %2187 = vperm.xlu1 %5754, %v2161_v35   ;;  %v1124_v55 = vld [vmem:[%s6242_s13 + $0x250] sm:$0xff] }
  0xa9   : > { %5186 = vmatpush3.bf16.msra.mxu0 %v5793_v59  ;;  %v1329_v59 = vpack.c.bf16 %v1315_v49, %v1314_v47  ;;  %v5814_v47 = vld [vmem:[#allocation6 + $0x1d0] sm:$0xff]  }
  0xaa   : > { %5218 = vmatpush3.bf16.msra.mxu1 %v5794_v60  ;;  %5187 = vmatprep.subr.bf16.mxu0 %v5795_v3  ;;  %v1317_v60 = vld [vmem:[%s6242_s13 + $0x169] sm:$0xff] }
  0xab   : > { %5219 = vmatprep.subr.bf16.mxu1 %v5796_v8  ;;  %v1330_v7 = vpack.c.bf16 %v1317_v60, %v1316_v58  ;;  %v1325_v49 = vld [vmem:[%s6242_s13 + $0x1a9] sm:$0xff]  ;;  %v1326_v60 = vld [vmem:[%s6242_s13 + $0x1b1] sm:$0xff] }
  0xac   : > { %5140 = vmatmul.mubr.bf16.gmra.mxu0 %v6362_v9  ;;  %v5815_v58 = vld [vmem:[#allocation6 + $0x188] sm:$0xff]  }
  0xad   : > { %5188 = vmatpush3.bf16.msra.mxu0 %v5795_v3  ;;  %5172 = vmatmul.mubr.bf16.gmra.mxu1 %v929_v12  ;;  %v1117_v3 = vld [vmem:[%s6242_s13 + $0x218] sm:$0xff] }
  0xae   : > { %5220 = vmatpush3.bf16.msra.mxu1 %v5796_v8  ;;  %5189 = vmatprep.subr.bf16.mxu0 %v5797_v17  ;;  %v1318_v8 = vld [vmem:[%s6242_s13 + $0x171] sm:$0xff]  ;;  %v1129_v12 = vpack.c.bf16 %v1117_v3, %v1116_v2  ;;  %v2163_v2 = vld [vmem:[%s7267_s6 + $0x20] sm:$0xff]  ;;  %v2164_v3 = vld [vmem:[%s7267_s6 + $0x28] sm:$0xff] }
  0xaf   : > { %5221 = vmatprep.subr.bf16.mxu1 %v5798_v18  ;;  %5143 = vmatprep.mubr.bf16.mxu0 %v6368_v19 }
  0xb0   : > { %5175 = vmatprep.mubr.bf16.mxu1 %v930_v21  ;;  %v5809_v21 = vld [vmem:[#allocation6 + $0x1a0] sm:$0xff]  }
  0xb1   : > { %5190 = vmatpush3.bf16.msra.mxu0 %v5797_v17  ;;  %v1331_v17 = vpack.c.bf16 %v1319_v10, %v1318_v8  ;;  %v5818_v10 = vld [vmem:[#allocation6 + $0x1c0] sm:$0xff]  }
  0xb2   : > { %5222 = vmatpush3.bf16.msra.mxu1 %v5798_v18  ;;  %5191 = vmatprep.subr.bf16.mxu0 %v5799_v23  ;;  %v1320_v18 = vld [vmem:[%s6242_s13 + $0x181] sm:$0xff] }
  0xb3   : > { %5223 = vmatprep.subr.bf16.mxu1 %v5800_v26  ;;  %v1332_v25 = vpack.c.bf16 %v1321_v20, %v1320_v18  ;;  %v2168_v18 = vld [vmem:[%s7267_s6 + $0x48] sm:$0xff] }
  0xb4   : > { %5144 = vmatmul.mubr.bf16.gmra.mxu0 %v6378_v32  ;;  %v5821_v20 = vld [vmem:[#allocation6 + $0x228] sm:$0xff]  }
  0xb5   : > { %5192 = vmatpush3.bf16.msra.mxu0 %v5799_v23  ;;  %5176 = vmatmul.mubr.bf16.gmra.mxu1 %v931_v34  ;;  %v1130_v23 = vpack.c.bf16 %v1119_v15, %v1118_v13  ;;  %v1323_v34 = vld [vmem:[%s6242_s13 + $0x199] sm:$0xff] }
  0xb6   : > { %5224 = vmatpush3.bf16.msra.mxu1 %v5800_v26  ;;  %5193 = vmatprep.subr.bf16.mxu0 %v5801_v38  ;;  %v1121_v26 = vld [vmem:[%s6242_s13 + $0x238] sm:$0xff]  ;;  %v2167_v15 = vld [vmem:[%s7267_s6 + $0x40] sm:$0xff] }
  0xb7   : > { %5225 = vmatprep.subr.bf16.mxu1 %v5802_v39  ;;  %5195 = vmatprep.mubr.bf16.mxu0 %v1126_v40  ;;  %v1123_v40 = vld [vmem:[%s6242_s13 + $0x248] sm:$0xff]  ;;  %v1131_v42 = vpack.c.bf16 %v1121_v26, %v1120_v24  ;;  %v2166_v13 = vld [vmem:[%s7267_s6 + $0x38] sm:$0xff] }
  0xb8   : > { %5227 = vmatprep.mubr.bf16.mxu1 %v1328_v44  ;;  %v1324_v44 = vld [vmem:[%s6242_s13 + $0x1a1] sm:$0xff] }
  0xb9   : > { %5194 = vmatpush3.bf16.msra.mxu0 %v5801_v38  ;;  %v5812_v38 = vld [vmem:[#allocation6 + $0x1d8] sm:$0xff]   ;;  %v1529_v24 = vld [vmem:[%s6242_s13 + $0x88] sm:$0xff] }
  0xba   : > { %5226 = vmatpush3.bf16.msra.mxu1 %v5802_v39  ;;  %5243 = vmatprep.subr.bf16.mxu0 %v5803_v46  ;;  %v1122_v39 = vld [vmem:[%s6242_s13 + $0x240] sm:$0xff]  ;;  %v1731_v26 = vld [vmem:[%s6242_s13 + $0x128] sm:$0xff] }
  0xbb   : > { %5275 = vmatprep.subr.bf16.mxu1 %v5804_v50  ;;  %v1132_v54 = vpack.c.bf16 %v1123_v40, %v1122_v39 }
  0xbc   : > { %5196 = vmatmul.mubr.bf16.vlgmr.msra.gmra.mxu0 %v1127_v56  ;;  %v1125_v56 = vld [vmem:[%s6242_s13 + $0x258] sm:$0xff] }
  0xbd   : > { %5244 = vmatpush3.bf16.msra.mxu0 %v5803_v46  ;;  %5228 = vmatmul.mubr.bf16.vlgmr.msra.gmra.mxu1 %v1329_v59  ;;  %v1333_v46 = vpack.c.bf16 %v1323_v34, %v1322_v33  ;;  %v1334_v59 = vpack.c.bf16 %v1325_v49, %v1324_v44 }
  0xbe   : > { %5276 = vmatpush3.bf16.msra.mxu1 %v5804_v50  ;;  %5245 = vmatprep.subr.bf16.mxu0 %v5805_v57  ;;  %v2160_v50 = vld [vmem:[%s7267_s6 + $0x8] sm:$0xff] }
  0xbf   : > { %5277 = vmatprep.subr.bf16.mxu1 %v5806_v63  ;;  %5199 = vmatprep.mubr.bf16.mxu0 %v1128_v1  ;;  %v5816_v1 = vld [vmem:[#allocation6 + $0x1c8] sm:$0xff]  }
  0xc0   : > { %5231 = vmatprep.mubr.bf16.mxu1 %v1330_v7  ;;  %2182 = vperm.xlu0 %5753, %v2160_v50   ;;  %v5817_v7 = vld [vmem:[#allocation6 + $0x180] sm:$0xff]  }
  0xc1   : > { %5246 = vmatpush3.bf16.msra.mxu0 %v5805_v57  ;;  %v2162_v57 = vld [vmem:[%s7267_s6 + $0x18] sm:$0xff] }
  0xc2   : > { %5278 = vmatpush3.bf16.msra.mxu1 %v5806_v63  ;;  %5247 = vmatprep.subr.bf16.mxu0 %v5807_v6  ;;  %v1327_v63 = vld [vmem:[%s6242_s13 + $0x1b9] sm:$0xff] }
  0xc3   : > { %5279 = vmatprep.subr.bf16.mxu1 %v5808_v11  ;;  %2192 = vperm.xlu1 %5754, %v2162_v57   ;;  %v1335_v8 = vpack.c.bf16 %v1327_v63, %v1326_v60 }
  0xc4   : > { %5200 = vmatmul.mubr.bf16.gmra.mxu0 %v1129_v12  ;;  %2197 = vperm.xlu0 %5753, %v2163_v2   ;;  %v5819_v12 = vld [vmem:[#allocation6 + $0x238] sm:$0xff]   ;;  %v5841_v2 = vld [vmem:[#allocation8 + $0x40] sm:$0xff]  }
  0xc5   : > { %5248 = vmatpush3.bf16.msra.mxu0 %v5807_v6  ;;  %5232 = vmatmul.mubr.bf16.gmra.mxu1 %v1331_v17  ;;  %v1133_v6 = vpack.c.bf16 %v1125_v56, %v1124_v55  ;;  %v5820_v17 = vld [vmem:[#allocation6 + $0x230] sm:$0xff]   ;;  %v5839_v55 = vld [vmem:[#allocation8 + $0x48] sm:$0xff]  }
  0xc6   : > { %5280 = vmatpush3.bf16.msra.mxu1 %v5808_v11  ;;  %5249 = vmatprep.subr.bf16.mxu0 %v5809_v21  ;;  %v2165_v11 = vld [vmem:[%s7267_s6 + $0x30] sm:$0xff] }
  0xc7   : > { %5281 = vmatprep.subr.bf16.mxu1 %v5810_v22  ;;  %5203 = vmatprep.mubr.bf16.mxu0 %v1130_v23  ;;  %v5824_v23 = vld [vmem:[#allocation6 + $0x210] sm:$0xff]  }
  0xc8   : > { %5235 = vmatprep.mubr.bf16.mxu1 %v1332_v25  ;;  %2202 = vperm.xlu1 %5754, %v2164_v3   ;;  %v1730_v25 = vld [vmem:[%s6242_s13 + $0x120] sm:$0xff]  ;;  %v6066_v3 = vmov 0.0  }
  0xc9   : > { %5250 = vmatpush3.bf16.msra.mxu0 %v5809_v21  ;;  %2207 = vperm.xlu0 %5753, %v2165_v11   ;;  %v2171_v21 = vld [vmem:[%s7267_s6 + $0x60] sm:$0xff]  ;;  %327 = vst [vmem:[#allocation2] sm:$0xff] %v6066_v3  ;;  %329 = vst [vmem:[#allocation2 + $0x10] sm:$0xff] %v6066_v3 }
  0xca   : > { %5282 = vmatpush3.bf16.msra.mxu1 %v5810_v22  ;;  %5251 = vmatprep.subr.bf16.mxu0 %v5811_v27  ;;  %v2174_v22 = vld [vmem:[%s7267_s6 + $0x78] sm:$0xff]  ;;  %330 = vst [vmem:[#allocation2 + $0x18] sm:$0xff] %v6066_v3  ;;  %328 = vst [vmem:[#allocation2 + $0x8] sm:$0xff] %v6066_v3 }
  0xcb   : > { %5283 = vmatprep.subr.bf16.mxu1 %v5812_v38  ;;  %331 = vst [vmem:[#allocation2 + $0xa0] sm:$0xff] %v6066_v3  ;;  %332 = vst [vmem:[#allocation2 + $0xa8] sm:$0xff] %v6066_v3 }
  0xcc   : > { %5204 = vmatmul.mubr.bf16.gmra.mxu0 %v1131_v42  ;;  %2212 = vperm.xlu1 %5754, %v2166_v13   ;;  %v5834_v42 = vld [vmem:[#allocation8 + $0x20] sm:$0xff]   ;;  %333 = vst [vmem:[#allocation2 + $0xb0] sm:$0xff] %v6066_v3  ;;  %v6506_v13 = vld [vmem:[#allocation8 + $0xb8] sm:$0xff]  }
  0xcd   : > { %5252 = vmatpush3.bf16.msra.mxu0 %v5811_v27  ;;  %5236 = vmatmul.mubr.bf16.gmra.mxu1 %v1333_v46  ;;  %v1739_v27 = vpack.c.bf16 %v1731_v26, %v1730_v25  ;;  %7288 = vst [vmem:[#allocation13_spill] sm:$0xff] %v6506_v13  ;;  %v6513_v25 = vld [vmem:[#allocation8 + $0xf8] sm:$0xff]  }
  0xce   : > { %5284 = vmatpush3.bf16.msra.mxu1 %v5812_v38  ;;  %5253 = vmatprep.subr.bf16.mxu0 %v5813_v43  ;;  %7289 = vst [vmem:[#allocation14_spill] sm:$0xff] %v6513_v25 }
  0xcf   : > { %5285 = vmatprep.subr.bf16.mxu1 %v5814_v47  ;;  %5207 = vmatprep.mubr.bf16.mxu0 %v1132_v54  ;;  %v5836_v54 = vld [vmem:[#allocation8 + $0x18] sm:$0xff]  }
  0xd0   : > { %5239 = vmatprep.mubr.bf16.mxu1 %v1334_v59  ;;  %2217 = vperm.xlu0 %5753, %v2167_v15  }
  0xd1   : > { %5254 = vmatpush3.bf16.msra.mxu0 %v5813_v43  ;;  %2222 = vperm.xlu1 %5754, %v2168_v18   ;;  %v5837_v43 = vld [vmem:[#allocation8 + $0x50] sm:$0xff]  }
  0xd2   : > { %5286 = vmatpush3.bf16.msra.mxu1 %v5814_v47  ;;  %5255 = vmatprep.subr.bf16.mxu0 %v5815_v58 }
  0xd3   : > { %5287 = vmatprep.subr.bf16.mxu1 %v5816_v1 }
  0xd4   : > { %5208 = vmatmul.mubr.bf16.gmra.mxu0 %v1133_v6 }
  0xd5   : > { %5256 = vmatpush3.bf16.msra.mxu0 %v5815_v58  ;;  %5240 = vmatmul.mubr.bf16.gmra.mxu1 %v1335_v8 }
  0xd6   : > { %5288 = vmatpush3.bf16.msra.mxu1 %v5816_v1  ;;  %5257 = vmatprep.subr.bf16.mxu0 %v5817_v7  ;;  %v5838_v1 = vld [vmem:[#allocation8 + $0x10] sm:$0xff]  }
  0xd7   : > { %5289 = vmatprep.subr.bf16.mxu1 %v5818_v10  ;;  %5259 = vmatprep.mubr.bf16.mxu0 %v6264_v31  ;;  %v2169_v31 = vld [vmem:[%s7267_s6 + $0x50] sm:$0xff] }
  0xd8   : > { %5291 = vmatprep.mubr.bf16.mxu1 %v6260_v28  ;;  %v2170_v28 = vld [vmem:[%s7267_s6 + $0x58] sm:$0xff]  ;;  %2227 = vperm.xlu0 %5753, %v2169_v31  }
  0xd9   : > { %5258 = vmatpush3.bf16.msra.mxu0 %v5817_v7  ;;  %2232 = vperm.xlu1 %5754, %v2170_v28  }
  0xda   : > { %5290 = vmatpush3.bf16.msra.mxu1 %v5818_v10  ;;  %5307 = vmatprep.subr.bf16.mxu0 %v5819_v12 }
  0xdc   : > { %5260 = vmatmul.mubr.bf16.vlgmr.msra.gmra.mxu0 %v6271_v37  ;;  %v5822_v37 = vld [vmem:[#allocation6 + $0x220] sm:$0xff]   ;;  %2237 = vperm.xlu0 %5753, %v2171_v21  }
  0xdd   : > { %5308 = vmatpush3.bf16.msra.mxu0 %v5819_v12  ;;  %5292 = vmatmul.mubr.bf16.vlgmr.msra.gmra.mxu1 %v6268_v36  ;;  %v2172_v36 = vld [vmem:[%s7267_s6 + $0x68] sm:$0xff] }
  0xde   : > { %5309 = vmatprep.subr.bf16.mxu0 %v5820_v17  ;;  %5263 = vmatprep.mubr.bf16.mxu0 %v6285_v48  ;;  %v2173_v48 = vld [vmem:[%s7267_s6 + $0x70] sm:$0xff]  ;;  %v5840_v12 = vld [vmem:[#allocation8 + $0x8] sm:$0xff]  }
  0xdf   : > { %5295 = vmatprep.mubr.bf16.mxu1 %v6281_v45  ;;  %v5823_v45 = vld [vmem:[#allocation6 + $0x218] sm:$0xff]   ;;  %2242 = vperm.xlu1 %5754, %v2172_v36  }
  0xe0   : > { %2247 = vperm.xlu0 %5753, %v2173_v48  }
  0xe1   : > { %5310 = vmatpush3.bf16.msra.mxu0 %v5820_v17  ;;  %v6067_v17 = vmov 0.0|0.0  }
  0xe2   : > { %5311 = vmatprep.subr.bf16.mxu0 %v5821_v20 }
  0xe3   : > { %2252 = vperm.xlu1 %5754, %v2174_v22   ;;  %v2287_v22 = vld [vmem:[#allocation2 + $0xf] sm:$0xff] }
  0xe4   : > { %5264 = vmatmul.mubr.bf16.gmra.mxu0 %v6291_v53  ;;  %v1528_v53 = vld [vmem:[%s6242_s13 + $0x80] sm:$0xff] }
  0xe5   : > { %5312 = vmatpush3.bf16.msra.mxu0 %v5821_v20  ;;  %5296 = vmatmul.mubr.bf16.gmra.mxu1 %v6288_v52  ;;  %v5825_v52 = vld [vmem:[#allocation6 + $0x208] sm:$0xff]  }
  0xe6   : > { %5313 = vmatprep.subr.bf16.mxu0 %v5822_v37  ;;  %5267 = vmatprep.mubr.bf16.mxu0 %v6305_v0  ;;  %v5826_v0 = vld [vmem:[#allocation6 + $0x200] sm:$0xff]  }
  0xe7   : > { %5299 = vmatprep.mubr.bf16.mxu1 %v6302_v62  ;;  %v1537_v62 = vpack.c.bf16 %v1529_v24, %v1528_v53 }
  0xe9   : > { %5314 = vmatpush3.bf16.msra.mxu0 %v5822_v37  ;;  %v5842_v37 = vld [vmem:[#allocation8] sm:$0xff]  }
  0xea   : > { %5315 = vmatprep.subr.bf16.mxu0 %v5823_v45 }
  0xec   : > { %5268 = vmatmul.mubr.bf16.gmra.mxu0 %v6311_v5  ;;  %v1933_v5 = vld [vmem:[%s6242_s13 + $0x89] sm:$0xff] }
  0xed   : > { %5316 = vmatpush3.bf16.msra.mxu0 %v5823_v45  ;;  %5300 = vmatmul.mubr.bf16.gmra.mxu1 %v6308_v4  ;;  %v1932_v4 = vld [vmem:[%s6242_s13 + $0x81] sm:$0xff] }
  0xee   : > { %5317 = vmatprep.subr.bf16.mxu0 %v5824_v23  ;;  %5271 = vmatprep.mubr.bf16.mxu0 %v6325_v16  ;;  %v5827_v16 = vld [vmem:[#allocation8 + $0x78] sm:$0xff]  }
  0xef   : > { %5303 = vmatprep.mubr.bf16.mxu1 %v6322_v14  ;;  %v1941_v14 = vpack.c.bf16 %v1933_v5, %v1932_v4  ;;  %5339 = vmatprep.subr.bf16.mxu1 %v5827_v16 }
  0xf0   : > { %5340 = vmatpush3.bf16.msra.mxu1 %v5827_v16 }
  0xf1   : > { %5318 = vmatpush3.bf16.msra.mxu0 %v5824_v23  ;;  %v2288_v23 = vld [vmem:[#allocation2 + $0x17] sm:$0xff] }
  0xf2   : > { %5319 = vmatprep.subr.bf16.mxu0 %v5825_v52  ;;  %v2303_v24 = vpack.c.bf16 %v2288_v23, %v2287_v22 }
  0xf4   : > { %5272 = vmatmul.mubr.bf16.gmra.mxu0 %v1537_v62 }
  0xf5   : > { %5320 = vmatpush3.bf16.msra.mxu0 %v5825_v52  ;;  %5304 = vmatmul.mubr.bf16.gmra.mxu1 %v1739_v27 }
  0xf6   : > { %5321 = vmatprep.subr.bf16.mxu0 %v5826_v0  ;;  %5323 = vmatprep.mubr.bf16.mxu0 %v6334_v29  ;;  %v5829_v29 = vld [vmem:[#allocation8 + $0x70] sm:$0xff]  }
  0xf7   : > { %5341 = vmatprep.subr.bf16.mxu1 %v5829_v29  ;;  %5355 = vmatprep.mubr.bf16.mxu1 %v6067_v17 }
  0xf8   : > { %5342 = vmatpush3.bf16.msra.mxu1 %v5829_v29 }
  0xf9   : > { %5322 = vmatpush3.bf16.msra.mxu0 %v5826_v0 }
  0xfc   : > { %5324 = vmatmul.mubr.bf16.vlgmr.msra.gmra.mxu0 %v6340_v41  ;;  %v5828_v41 = vld [vmem:[#allocation8 + $0x38] sm:$0xff]  }
  0xfd   : > { %5327 = vmatprep.mubr.bf16.mxu0 %v6348_v51  ;;  %v5831_v51 = vld [vmem:[#allocation8 + $0x68] sm:$0xff]   ;;  %5371 = vmatprep.subr.bf16.mxu0 %v5828_v41 }
  0xfe   : > { %5343 = vmatprep.subr.bf16.mxu1 %v5831_v51  ;;  %5372 = vmatpush3.bf16.msra.mxu0 %v5828_v41 }
  0xff   : > { %5344 = vmatpush3.bf16.msra.mxu1 %v5831_v51 }
 0x104   : > { %5328 = vmatmul.mubr.bf16.gmra.mxu0 %v6354_v61  ;;  %v5830_v61 = vld [vmem:[#allocation8 + $0x30] sm:$0xff]  }
 0x105   : > { %5331 = vmatprep.mubr.bf16.mxu0 %v6362_v9  ;;  %v5833_v9 = vld [vmem:[#allocation8 + $0x60] sm:$0xff]   ;;  %5373 = vmatprep.subr.bf16.mxu0 %v5830_v61 }
 0x106   : > { %5345 = vmatprep.subr.bf16.mxu1 %v5833_v9  ;;  %5374 = vmatpush3.bf16.msra.mxu0 %v5830_v61 }
 0x107   : > { %5346 = vmatpush3.bf16.msra.mxu1 %v5833_v9 }
 0x108   : > { %5347 = vmatprep.subr.bf16.mxu1 %v5835_v30 }
 0x10b   : > { %5348 = vmatpush3.bf16.msra.mxu1 %v5835_v30 }
 0x10c   : > { %5332 = vmatmul.mubr.bf16.gmra.mxu0 %v6368_v19  ;;  %5349 = vmatprep.subr.bf16.mxu1 %v5837_v43 }
 0x10d   : > { %5335 = vmatprep.mubr.bf16.mxu0 %v6378_v32  ;;  %v5832_v32 = vld [vmem:[#allocation8 + $0x28] sm:$0xff]  }
 0x10e   : > { %5375 = vmatprep.subr.bf16.mxu0 %v5832_v32 }
 0x10f   : > { %5376 = vmatpush3.bf16.msra.mxu0 %v5832_v32  ;;  %5350 = vmatpush3.bf16.msra.mxu1 %v5837_v43 }
 0x110   : > { %5377 = vmatprep.subr.bf16.mxu0 %v5834_v42  ;;  %5351 = vmatprep.subr.bf16.mxu1 %v5839_v55 }
 0x113   : > { %5378 = vmatpush3.bf16.msra.mxu0 %v5834_v42  ;;  %5352 = vmatpush3.bf16.msra.mxu1 %v5839_v55 }
 0x114   : > { %5336 = vmatmul.mubr.bf16.gmra.mxu0 %v1941_v14  ;;  %5379 = vmatprep.subr.bf16.mxu0 %v5836_v54 }
 0x115   : > { %5353 = vmatprep.subr.bf16.mxu1 %v5841_v2  ;;  %5387 = vmatprep.mubr.bf16.mxu0 %v2303_v24 }
 0x117   : > { %5380 = vmatpush3.bf16.msra.mxu0 %v5836_v54  ;;  %5354 = vmatpush3.bf16.msra.mxu1 %v5841_v2 }
 0x118   : > { %5381 = vmatprep.subr.bf16.mxu0 %v5838_v1  ;;  %5403 = vmatprep.subr.bf16.mxu1 %v6506_v13 }
 0x11b   : > { %5382 = vmatpush3.bf16.msra.mxu0 %v5838_v1 }
 0x11c   : > { %5383 = vmatprep.subr.bf16.mxu0 %v5840_v12 }
 0x11f   : > { %5384 = vmatpush3.bf16.msra.mxu0 %v5840_v12 }
 0x120   : > { %5385 = vmatprep.subr.bf16.mxu0 %v5842_v37 }
 0x123   : > { %5386 = vmatpush3.bf16.msra.mxu0 %v5842_v37 }
 0x124   : > { %5435 = vmatprep.subr.bf16.mxu0 %v6513_v25 }
 0x13c   : > { %v5069_v19 = vpop.f32.mrf.mxu0 }
 0x13d   : > { %v5101_v33 = vpop.f32.mrf.mxu1 }
 0x13e   : > { %v6486_v34 = vadd.f32 %v5101_v33, %v5069_v19  ;;  %v498_v35 = vpop.f32.mrf.mxu0 }
 0x13f   : > { %v643_v38 = vpop.f32.mrf.mxu1 }
 0x140   : > { %v6488_v39 = vadd.f32 %v643_v38, %v498_v35  ;;  %v5070_v40 = vpop.f32.mrf.mxu0 }
 0x141   : > { %v5102_v44 = vpop.f32.mrf.mxu1 }
 0x142   : > { %v6490_v46 = vadd.f32 %v5102_v44, %v5070_v40  ;;  %v6492_v47 = vpop.f32.mrf.mxu0 }
 0x143   : > { %v6494_v49 = vpop.f32.mrf.mxu1 }
 0x144   : > { %v5073_v50 = vpop.f32.mrf.mxu0 }
 0x145   : > { %v5105_v56 = vpop.f32.mrf.mxu1 }
 0x146   : > { %v6496_v57 = vadd.f32 %v5105_v56, %v5073_v50  ;;  %v514_v58 = vpop.f32.mrf.mxu0 }
 0x147   : > { %v659_v59 = vpop.f32.mrf.mxu1 }
 0x148   : > { %v6498_v60 = vadd.f32 %v659_v59, %v514_v58  ;;  %v5074_v63 = vpop.f32.mrf.mxu0 }
 0x149   : > { %v5106_v6 = vpop.f32.mrf.mxu1 }
 0x14a   : > { %v6500_v7 = vadd.f32 %v5106_v6, %v5074_v63  ;;  %v6502_v8 = vpop.f32.mrf.mxu0 }
 0x14b   : > { %v6504_v10 = vpop.f32.mrf.mxu1 }
 0x14c   : > { %v5077_v11 = vpop.f32.mrf.mxu0 }
 0x14d   : > { %v5109_v15 = vpop.f32.mrf.mxu1 }
 0x14e   : > { %v684_v18 = vadd.f32 %v5109_v15, %v5077_v11  ;;  %v530_v31 = vpop.f32.mrf.mxu0 }
 0x14f   : > { %v675_v20 = vpop.f32.mrf.mxu1 }
 0x150   : > { %v676_v28 = vadd.f32 %v675_v20, %v530_v31  ;;  %v5078_v21 = vpop.f32.mrf.mxu0 }
 0x151   : > { %v5110_v36 = vpop.f32.mrf.mxu1 }
 0x152   : > { %v687_v48 = vadd.f32 %v5110_v36, %v5078_v21  ;;  %v6509_v45 = vpop.f32.mrf.mxu0 }
 0x153   : > { %v6511_v53 = vpop.f32.mrf.mxu1 }
 0x154   : > { %v5081_v52 = vpop.f32.mrf.mxu0 }
 0x155   : > { %v5113_v26 = vpop.f32.mrf.mxu1 }
 0x156   : > { %v700_v62 = vadd.f32 %v5113_v26, %v5081_v52  ;;  %v546_v0 = vpop.f32.mrf.mxu0 }
 0x157   : > { %v691_v27 = vpop.f32.mrf.mxu1 }
 0x158   : > { %v692_v4 = vadd.f32 %v691_v27, %v546_v0  ;;  %v5082_v5 = vpop.f32.mrf.mxu0 }
 0x159   : > { %v5114_v14 = vpop.f32.mrf.mxu1 }
 0x15a   : > { %v703_v16 = vadd.f32 %v5114_v14, %v5082_v5  ;;  %v6516_v29 = vpop.f32.mrf.mxu0 }
 0x15b   : > { %v6518_v41 = vpop.f32.mrf.mxu1 }
 0x15c   : > { %v5133_v51 = vpop.f32.mrf.mxu0 }
 0x15d   : > { %v6521_v61 = vadd.f32 %v5133_v51, %v6486_v34  ;;  %v6523_v9 = vpop.f32.mrf.mxu1 }
 0x15e   : > { %v829_v19 = vpop.f32.mrf.mxu0 }
 0x15f   : > { %v6526_v32 = vadd.f32 %v829_v19, %v6488_v39  ;;  %v6528_v30 = vpop.f32.mrf.mxu1 }
 0x160   : > { %v5134_v33 = vpop.f32.mrf.mxu0 }
 0x161   : > { %v6531_v35 = vadd.f32 %v5134_v33, %v6490_v46  ;;  %v6533_v38 = vpop.f32.mrf.mxu1 }
 0x162   : > { %v6535_v40 = vpop.f32.mrf.mxu0 }
 0x163   : > { %v6537_v42 = vpop.f32.mrf.mxu1 }
 0x164   : > { %v5137_v34 = vpop.f32.mrf.mxu0 }
 0x165   : > { %v6540_v43 = vadd.f32 %v5137_v34, %v6496_v57  ;;  %v6542_v44 = vpop.f32.mrf.mxu1 }
 0x166   : > { %v845_v39 = vpop.f32.mrf.mxu0 }
 0x167   : > { %v6545_v50 = vadd.f32 %v845_v39, %v6498_v60  ;;  %v6547_v54 = vpop.f32.mrf.mxu1 }
 0x168   : > { %v5138_v46 = vpop.f32.mrf.mxu0 }
 0x169   : > { %v6550_v55 = vadd.f32 %v5138_v46, %v6500_v7  ;;  %v6552_v56 = vpop.f32.mrf.mxu1 }
 0x16a   : > { %v6554_v58 = vpop.f32.mrf.mxu0 }
 0x16b   : > { %v6556_v59 = vpop.f32.mrf.mxu1 }
 0x16c   : > { %v5141_v57 = vpop.f32.mrf.mxu0 }
 0x16d   : > { %v6558_v63 = vadd.f32 %v5141_v57, %v684_v18  ;;  %v6560_v1 = vpop.f32.mrf.mxu1 }
 0x16e   : > { %v861_v2 = vpop.f32.mrf.mxu0 }
 0x16f   : > { %v6562_v60 = vadd.f32 %v861_v2, %v676_v28  ;;  %v6564_v3 = vpop.f32.mrf.mxu1 }
 0x170   : > { %v5142_v6 = vpop.f32.mrf.mxu0 }
 0x171   : > { %v6566_v11 = vadd.f32 %v5142_v6, %v687_v48  ;;  %v6568_v7 = vpop.f32.mrf.mxu1 }
 0x172   : > { %v6570_v12 = vpop.f32.mrf.mxu0 }
 0x173   : > { %v6572_v15 = vpop.f32.mrf.mxu1 }
 0x174   : > { %v5145_v17 = vpop.f32.mrf.mxu0 }
 0x175   : > { %v6574_v31 = vadd.f32 %v5145_v17, %v700_v62  ;;  %v6576_v18 = vpop.f32.mrf.mxu1 }
 0x176   : > { %v877_v20 = vpop.f32.mrf.mxu0 }
 0x177   : > { %v6578_v21 = vadd.f32 %v877_v20, %v692_v4  ;;  %v6580_v28 = vpop.f32.mrf.mxu1 }
 0x178   : > { %v5146_v37 = vpop.f32.mrf.mxu0 }
 0x179   : > { %v6582_v36 = vadd.f32 %v5146_v37, %v703_v16  ;;  %v6584_v48 = vpop.f32.mrf.mxu1 }
 0x17a   : > { %7291 = vst [vmem:[#allocation16_spill] sm:$0xff] %v6584_v48  ;;  %v6586_v22 = vpop.f32.mrf.mxu0 }
 0x17b   : > { %7290 = vst [vmem:[#allocation15_spill] sm:$0xff] %v6582_v36  ;;  %v6588_v23 = vpop.f32.mrf.mxu1 }
 0x17c   : > { %7292 = vst [vmem:[#allocation17_spill] sm:$0xff] %v6588_v23  ;;  %v5197_v24 = vpop.f32.mrf.mxu0 }
 0x17d   : > { %v6590_v52 = vpop.f32.mrf.mxu1 }
 0x17e   : > { %v1233_v26 = vpop.f32.mrf.mxu0 }
 0x17f   : > { %v6592_v62 = vpop.f32.mrf.mxu1 }
 0x180   : > { %v5198_v0 = vpop.f32.mrf.mxu0 }
 0x181   : > { %v6594_v27 = vpop.f32.mrf.mxu1 }
 0x182   : > { %v6596_v4 = vpop.f32.mrf.mxu0 }
 0x183   : > { %v6598_v5 = vpop.f32.mrf.mxu1 }
 0x184   : > { %v6600_v14 = vpop.f32.mrf.mxu0 }
 0x185   : > { %v6602_v16 = vpop.f32.mrf.mxu1 }
 0x186   : > { %v6604_v51 = vpop.f32.mrf.mxu0 }
 0x187   : > { %v6606_v19 = vpop.f32.mrf.mxu1 }
 0x188   : > { %7293 = vst [vmem:[#allocation18_spill] sm:$0xff] %v6606_v19  ;;  %v6608_v33 = vpop.f32.mrf.mxu0 }
 0x189   : > { %v6610_v34 = vpop.f32.mrf.mxu1 }
 0x18a   : > { %7294 = vst [vmem:[#allocation19_spill] sm:$0xff] %v6610_v34  ;;  %v6612_v39 = vpop.f32.mrf.mxu0 }
 0x18b   : > { %7295 = vst [vmem:[#allocation20_spill] sm:$0xff] %v6612_v39  ;;  %v6614_v46 = vpop.f32.mrf.mxu1 }
 0x18c   : > { %7296 = vst [vmem:[#allocation21_spill] sm:$0xff] %v6614_v46  ;;  %v6616_v57 = vpop.f32.mrf.mxu0 }
 0x18d   : > { %7297 = vst [vmem:[#allocation22_spill] sm:$0xff] %v6616_v57  ;;  %v6618_v2 = vpop.f32.mrf.mxu1 }
 0x18e   : > { %7298 = vst [vmem:[#allocation23_spill] sm:$0xff] %v6618_v2  ;;  %v6620_v6 = vpop.f32.mrf.mxu0 }
 0x18f   : > { %7299 = vst [vmem:[#allocation24_spill] sm:$0xff] %v6620_v6  ;;  %v6622_v17 = vpop.f32.mrf.mxu1 }
 0x190   : > { %7300 = vst [vmem:[#allocation25_spill] sm:$0xff] %v6622_v17  ;;  %v6624_v20 = vpop.f32.mrf.mxu0 }
 0x191   : > { %7301 = vst [vmem:[#allocation26_spill] sm:$0xff] %v6624_v20  ;;  %v6626_v37 = vpop.f32.mrf.mxu1 }
 0x192   : > { %7302 = vst [vmem:[#allocation27_spill] sm:$0xff] %v6626_v37  ;;  %v6628_v25 = vpop.f32.mrf.mxu0 }
 0x193   : > { %7303 = vst [vmem:[#allocation28_spill] sm:$0xff] %v6628_v25  ;;  %v6630_v13 = vpop.f32.mrf.mxu1 }
 0x194   : > { %7304 = vst [vmem:[#allocation29_spill] sm:$0xff] %v6630_v13  ;;  %v6632_v34 = vpop.f32.mrf.mxu0 }
 0x195   : > { %7305 = vst [vmem:[#allocation30_spill] sm:$0xff] %v6632_v34  ;;  %v6634_v19 = vpop.f32.mrf.mxu1 }
 0x196   : > { %7306 = vst [vmem:[#allocation31_spill] sm:$0xff] %v6634_v19  ;;  %v6636_v46 = vpop.f32.mrf.mxu0 }
 0x197   : > { %7307 = vst [vmem:[#allocation32_spill] sm:$0xff] %v6636_v46  ;;  %v6638_v23 = vpop.f32.mrf.mxu1 }
 0x198   : > { %7308 = vst [vmem:[#allocation33_spill] sm:$0xff] %v6638_v23  ;;  %v6640_v2 = vpop.f32.mrf.mxu0 }
 0x199   : > { %7309 = vst [vmem:[#allocation34_spill] sm:$0xff] %v6640_v2  ;;  %v6642_v6 = vpop.f32.mrf.mxu1 }
 0x19a   : > { %7310 = vst [vmem:[#allocation35_spill] sm:$0xff] %v6642_v6  ;;  %v6644_v17 = vpop.f32.mrf.mxu0 }
 0x19b   : > { %7311 = vst [vmem:[#allocation36_spill] sm:$0xff] %v6644_v17  ;;  %v6646_v20 = vpop.f32.mrf.mxu1 }
 0x19c   : > { %7312 = vst [vmem:[#allocation37_spill] sm:$0xff] %v6646_v20  ;;  %v5261_v37 = vpop.f32.mrf.mxu0 }
 0x19d   : > { %v5293_v25 = vpop.f32.mrf.mxu1 }
 0x19e   : > { %v1637_v48 = vpop.f32.mrf.mxu0 }
 0x19f   : > { %v6648_v13 = vpop.f32.mrf.mxu1 }
 0x1a0   : > { %7313 = vst [vmem:[#allocation38_spill] sm:$0xff] %v6648_v13  ;;  %v5262_v34 = vpop.f32.mrf.mxu0 }
 0x1a1   : > { %v6650_v36 = vpop.f32.mrf.mxu1 }
 0x1a2   : > { %7314 = vst [vmem:[#allocation39_spill] sm:$0xff] %v6650_v36  ;;  %v6652_v19 = vpop.f32.mrf.mxu0  ;;  %v647_v36 = vadd.f32 %v6494_v49, %v6492_v47  ;;  %v1097_v47 = vadd.f32 %v6533_v38, %v6531_v35  ;;  %v695_v35 = vadd.f32 %v6518_v41, %v6516_v29  ;;  %v1100_v38 = vadd.f32 %v6542_v44, %v6540_v43 }
 0x1a3   : > { %v6656_v23 = vpop.f32.mrf.mxu1  ;;  %v1101_v29 = vadd.f32 %v6552_v56, %v6550_v55  ;;  %v1104_v43 = vadd.f32 %v6560_v1, %v6558_v63  ;;  %v1108_v56 = vadd.f32 %v6576_v18, %v6574_v31  ;;  %v7324_v31 = vld [vmem:[#allocation20_spill] sm:$0xff] }
 0x1a4   : > { %v6654_v46 = vpop.f32.mrf.mxu0  ;;  %7316 = vst [vmem:[#allocation41_spill] sm:$0xff] %v6656_v23  ;;  %v1096_v23 = vadd.f32 %v6523_v9, %v6521_v61  ;;  %v679_v61 = vadd.f32 %v6511_v53, %v6509_v45  ;;  %v1302_v44 = vadd.f32 %v6600_v14, %v1100_v38 }
 0x1a5   : > { %7315 = vst [vmem:[#allocation40_spill] sm:$0xff] %v6654_v46  ;;  %v6662_v17 = vpop.f32.mrf.mxu1  ;;  %v6676_v46 = vpop.permute.xlu0 %2177 }
 0x1a6   : > { %v6658_v2 = vpop.f32.mrf.mxu0  ;;  %7319 = vst [vmem:[#allocation44_spill] sm:$0xff] %v6662_v17  ;;  %v901_v45 = vadd.f32 %v6570_v12, %v679_v61 }
 0x1a7   : > { %7317 = vst [vmem:[#allocation42_spill] sm:$0xff] %v6658_v2  ;;  %v6668_v13 = vpop.f32.mrf.mxu1 }
 0x1a8   : > { %v6660_v6 = vpop.f32.mrf.mxu0  ;;  %7322 = vst [vmem:[#allocation47_spill] sm:$0xff] %v6668_v13  ;;  %v1103_v55 = vadd.f32 %v6572_v15, %v901_v45  ;;  %v1106_v15 = vadd.f32 %v6580_v28, %v6578_v21 }
 0x1a9   : > { %7318 = vst [vmem:[#allocation43_spill] sm:$0xff] %v6660_v6  ;;  %v1094_v6 = vadd.f32 %v6528_v30, %v6526_v32  ;;  %v6683_v17 = vpop.f32.mrf.mxu1  ;;  %v6694_v32 = vpop.permute.xlu1 %2187  ;;  %v7334_v38 = vld [vmem:[#allocation39_spill] sm:$0xff] }
 0x1aa   : > { %v6664_v20 = vpop.f32.mrf.mxu0  ;;  %v6707_v53 = vpop.permute.xlu0 %2182 }
 0x1ab   : > { %7320 = vst [vmem:[#allocation45_spill] sm:$0xff] %v6664_v20  ;;  %v893_v20 = vadd.f32 %v6535_v40, %v647_v36  ;;  %v1296_v49 = vadd.f32 %v1233_v26, %v1094_v6  ;;  %v7329_v6 = vld [vmem:[#allocation17_spill] sm:$0xff] }
 0x1ac   : > { %v6666_v57 = vpop.f32.mrf.mxu0 }
 0x1ad   : > { %7321 = vst [vmem:[#allocation46_spill] sm:$0xff] %v6666_v57  ;;  %v1298_v57 = vadd.f32 %v5197_v24, %v1096_v23  ;;  %v1095_v40 = vadd.f32 %v6537_v42, %v893_v20  ;;  %v1098_v42 = vadd.f32 %v6547_v54, %v6545_v50  ;;  %v1498_v23 = vadd.f32 %v6592_v62, %v1296_v49  ;;  %v6735_v1 = vpop.permute.xlu1 %2192  ;;  %v7331_v49 = vld [vmem:[#allocation24_spill] sm:$0xff] }
 0x1ae   : > { %v6670_v39 = vpop.f32.mrf.mxu0  ;;  %v1102_v50 = vadd.f32 %v6564_v3, %v6562_v60  ;;  %v1105_v54 = vadd.f32 %v6568_v7, %v6566_v11  ;;  %v1303_v11 = vadd.f32 %v6608_v33, %v1101_v29  ;;  %v6746_v14 = vpop.permute.xlu0 %2197  ;;  %v7326_v33 = vld [vmem:[#allocation15_spill] sm:$0xff] }
 0x1af   : > { %7323 = vst [vmem:[#allocation48_spill] sm:$0xff] %v6670_v39  ;;  %v663_v39 = vadd.f32 %v6504_v10, %v6502_v8  ;;  %v1500_v36 = vadd.f32 %v6590_v52, %v1298_v57  ;;  %v1299_v8 = vadd.f32 %v5198_v0, %v1097_v47  ;;  %v6700_v10 = vpop.f32.mrf.mxu1  ;;  %v1297_v24 = vadd.f32 %v6596_v4, %v1095_v40 }
 0x1b0   : > { %v6678_v2 = vpop.f32.mrf.mxu0  ;;  %v1700_v62 = vadd.f32 %v1637_v48, %v1498_v23  ;;  %v1300_v63 = vadd.f32 %v6604_v51, %v1098_v42  ;;  %v1304_v61 = vadd.f32 %v7331_v49, %v1102_v50  ;;  %v7335_v23 = vld [vmem:[#allocation21_spill] sm:$0xff]  ;;  %v7345_v49 = vld [vmem:[#allocation30_spill] sm:$0xff] }
 0x1b1   : > { %v897_v9 = vadd.f32 %v6554_v58, %v663_v39  ;;  %v1702_v52 = vadd.f32 %v5261_v37, %v1500_v36  ;;  %v1501_v26 = vadd.f32 %v6594_v27, %v1299_v8  ;;  %v6728_v0 = vpop.f32.mrf.mxu1  ;;  %v1499_v3 = vadd.f32 %v6598_v5, %v1297_v24  ;;  %v6751_v5 = vld [vmem:[%s7265_s4] ss:$0 sm:$0xff]  ;;  %v7328_v39 = vld [vmem:[#allocation38_spill] sm:$0xff]  ;;  %v7333_v8 = vld [vmem:[#allocation19_spill] sm:$0xff] }
 0x1b2   : > { %v6687_v13 = vpop.f32.mrf.mxu0  ;;  %v1504_v27 = vadd.f32 %v6602_v16, %v1302_v44  ;;  %v1902_v57 = vadd.f32 %v7328_v39, %v1700_v62  ;;  %v7330_v37 = vld [vmem:[#allocation18_spill] sm:$0xff]  ;;  %v6772_v62 = vpop.permute.xlu1 %2202 }
 0x1b3   : > { %v1099_v41 = vadd.f32 %v6556_v59, %v897_v9  ;;  %v905_v59 = vadd.f32 %v6586_v22, %v695_v35  ;;  %v1904_v7 = vadd.f32 %v5293_v25, %v1702_v52  ;;  %v1703_v48 = vadd.f32 %v5262_v34, %v1501_v26  ;;  %v7325_v22 = vld [vmem:[#allocation22_spill] sm:$0xff]  ;;  %v7327_v25 = vld [vmem:[#allocation16_spill] sm:$0xff]  ;;  %v6757_v28 = vpop.f32.mrf.mxu1  ;;  %v7336_v52 = vld [vmem:[#allocation23_spill] sm:$0xff] }
 0x1b4   : > { %v6696_v30 = vpop.f32.mrf.mxu0  ;;  %v1306_v4 = vadd.f32 %v7325_v22, %v1104_v43  ;;  %v1109_v34 = vadd.f32 %v7327_v25, %v7326_v33  ;;  %v1701_v21 = vadd.f32 %v6652_v19, %v1499_v3  ;;  %v1502_v47 = vadd.f32 %v7330_v37, %v1300_v63  ;;  %v7332_v9 = vld [vmem:[#allocation40_spill] sm:$0xff]  ;;  %v7338_v44 = vld [vmem:[#allocation42_spill] sm:$0xff]  ;;  %v2208_v25 = vpop.permute.xlu0 %2207  ;;  %v7344_v37 = vld [vmem:[#allocation27_spill] sm:$0xff] }
 0x1b5   : > { %v1301_v18 = vadd.f32 %v7324_v31, %v1099_v41  ;;  %v6760_v20 = vadd.f32 %v7329_v6, %v905_v59  ;;  %v1706_v40 = vadd.f32 %v7332_v9, %v1504_v27  ;;  %v1505_v35 = vadd.f32 %v7333_v8, %v1303_v11  ;;  %v7337_v41 = vld [vmem:[#allocation26_spill] sm:$0xff]  ;;  %v7339_v59 = vld [vmem:[#allocation41_spill] sm:$0xff]  ;;  %v6775_v3 = vpop.f32.mrf.mxu1 }
 0x1b6   : > { %v6709_v58 = vpop.f32.mrf.mxu0  ;;  %v1905_v45 = vadd.f32 %v7334_v38, %v1703_v48  ;;  %v1508_v29 = vadd.f32 %v7336_v52, %v1306_v4  ;;  %v1307_v43 = vadd.f32 %v7337_v41, %v1105_v54  ;;  %v1704_v26 = vadd.f32 %v7338_v44, %v1502_v47  ;;  %v7340_v27 = vld [vmem:[#allocation25_spill] sm:$0xff]  ;;  %v7342_v4 = vld [vmem:[#allocation44_spill] sm:$0xff]  ;;  %v7343_v54 = vld [vmem:[#allocation43_spill] sm:$0xff] }
 0x1b7   : > { %v1503_v24 = vadd.f32 %v7335_v23, %v1301_v18  ;;  %v1903_v63 = vadd.f32 %v7339_v59, %v1701_v21  ;;  %v1506_v31 = vadd.f32 %v7340_v27, %v1304_v61  ;;  %v7341_v18 = vld [vmem:[#allocation28_spill] sm:$0xff]  ;;  %v1707_v33 = vadd.f32 %v7343_v54, %v1505_v35  ;;  %v7347_v8 = vld [vmem:[#allocation45_spill] sm:$0xff] }
 0x1b8   : > { %v6721_v12 = vpop.f32.mrf.mxu0  ;;  %v1305_v22 = vadd.f32 %v7341_v18, %v1103_v55  ;;  %v1509_v47 = vadd.f32 %v7344_v37, %v1307_v43  ;;  %v1310_v9 = vadd.f32 %v7345_v49, %v1108_v56  ;;  %v7349_v52 = vld [vmem:[#allocation32_spill] sm:$0xff]  ;;  %v7350_v43 = vld [vmem:[#allocation46_spill] sm:$0xff] }
 0x1b9   : > { %v1705_v55 = vadd.f32 %v7347_v8, %v1503_v24  ;;  %v1308_v41 = vadd.f32 %v7349_v52, %v1106_v15  ;;  %v1909_v56 = vadd.f32 %v6683_v17, %v1707_v33  ;;  %v1710_v44 = vadd.f32 %v7350_v43, %v1508_v29  ;;  %v7353_v15 = vld [vmem:[#allocation48_spill] sm:$0xff]  ;;  %v6802_v17 = vpop.permute.xlu0 %2217  ;;  %v7358_v43 = vld [vmem:[#allocation37_spill] sm:$0xff] }
 0x1ba   : > { %v6737_v60 = vpop.f32.mrf.mxu0 }
 0x1bb   : > { %v1907_v18 = vadd.f32 %v6700_v10, %v1705_v55 }
 0x1bc   : > { %v5325_v51 = vpop.f32.mrf.mxu0 }
 0x1bd   : > { %v2106_v16 = vadd.f32 %v5325_v51, %v1904_v7  ;;  %v1908_v51 = vadd.f32 %v7342_v4, %v1706_v40  ;;  %v6788_v40 = vpop.f32.mrf.mxu1 }
 0x1be   : > { %v2041_v36 = vpop.f32.mrf.mxu0 }
 0x1bf   : > { %v2129_v42 = vadd.f32 %v6751_v5, %v2106_v16  ;;  %v2104_v19 = vadd.f32 %v2041_v36, %v1902_v57  ;;  %v7346_v36 = vld [vmem:[#allocation47_spill] sm:$0xff]  ;;  %v5305_v4 = vpop.f32.mrf.mxu1 }
 0x1c0   : > { %v5326_v50 = vpop.f32.mrf.mxu0  ;;  %v1906_v61 = vadd.f32 %v7346_v36, %v1704_v26  ;;  %v2213_v26 = vpop.permute.xlu1 %2212 }
 0x1c1   : > { %v2145_v11 = vmax.f32 %v2129_v42, 0.0  ;;  %v2127_v7 = vadd.f32 %v6751_v5, %v2104_v19  ;;  %v2107_v48 = vadd.f32 %v5326_v50, %v1905_v45  ;;  %v7348_v19 = vld [vmem:[#allocation29_spill] sm:$0xff] }
 0x1c2   : > { %v2044_v39 = vpop.f32.mrf.mxu0  ;;  %v1507_v23 = vadd.f32 %v7348_v19, %v1305_v22  ;;  %v1708_v22 = vadd.f32 %v7353_v15, %v1506_v31 }
 0x1c3   : > { %v2257_v57 = vmul.f32 %v6694_v32, %v2145_v11  ;;  %v2143_v16 = vmax.f32 %v2127_v7, 0.0  ;;  %v2130_v21 = vadd.f32 %v6751_v5, %v2107_v48  ;;  %v2105_v6 = vadd.f32 %v2044_v39, %v1903_v63  ;;  %v7351_v11 = vld [vmem:[#allocation31_spill] sm:$0xff]  ;;  %v7352_v48 = vld [vmem:[#allocation34_spill] sm:$0xff]  ;;  %v7354_v39 = vld [vmem:[#allocation33_spill] sm:$0xff] }
 0x1c4   : > { %v5329_v38 = vpop.f32.mrf.mxu0  ;;  %v1512_v7 = vadd.f32 %v7351_v11, %v1310_v9  ;;  %v1311_v27 = vadd.f32 %v7352_v48, %v1109_v34  ;;  %v1711_v34 = vadd.f32 %v6678_v2, %v1509_v47  ;;  %v1709_v8 = vadd.f32 %v6687_v13, %v1507_v23  ;;  %v6816_v55 = vpop.permute.xlu1 %2222 }
 0x1c5   : > { %2273 = vst [vmem:[#allocation2 + $0x30] sm:$0xff] %v2257_v57  ;;  %v2255_v35 = vmul.f32 %v6676_v46, %v2143_v16  ;;  %v2146_v45 = vmax.f32 %v2130_v21, 0.0  ;;  %v2128_v32 = vadd.f32 %v6751_v5, %v2105_v6  ;;  %v2110_v42 = vadd.f32 %v5329_v38, %v1908_v51  ;;  %v1887_v47 = vpop.f32.mrf.mxu1 }
 0x1c6   : > { %v2057_v24 = vpop.f32.mrf.mxu0  ;;  %v1510_v16 = vadd.f32 %v7354_v39, %v1308_v41  ;;  %v1912_v21 = vadd.f32 %v6728_v0, %v1710_v44  ;;  %v7356_v41 = vld [vmem:[#allocation13_spill] sm:$0xff] }
 0x1c7   : > { %2271 = vst [vmem:[#allocation2 + $0x20] sm:$0xff] %v2255_v35  ;;  %v2258_v50 = vmul.f32 %v6735_v1, %v2146_v45  ;;  %v2144_v59 = vmax.f32 %v2128_v32, 0.0  ;;  %v2133_v46 = vadd.f32 %v6751_v5, %v2110_v42  ;;  %v2108_v63 = vadd.f32 %v2057_v24, %v1906_v61  ;;  %v2228_v42 = vpop.permute.xlu0 %2227  ;;  %v5847_v24 = vld [vmem:[#allocation8 + $0xa8] sm:$0xff]  }
 0x1c8   : > { %v5330_v29 = vpop.f32.mrf.mxu0  ;;  %v1910_v61 = vadd.f32 %v6757_v28, %v1708_v22  ;;  %v1714_v28 = vadd.f32 %v6696_v30, %v1512_v7  ;;  %v1712_v13 = vadd.f32 %v6709_v58, %v1510_v16  ;;  %v1911_v58 = vadd.f32 %v6788_v40, %v1709_v8 }
 0x1c9   : > { %2274 = vst [vmem:[#allocation2 + $0x38] sm:$0xff] %v2258_v50  ;;  %v2256_v51 = vmul.f32 %v6707_v53, %v2144_v59  ;;  %v2149_v1 = vmax.f32 %v2133_v46, 0.0  ;;  %v2131_v54 = vadd.f32 %v6751_v5, %v2108_v63  ;;  %v2111_v33 = vadd.f32 %v5330_v29, %v1909_v56  ;;  %v7355_v53 = vld [vmem:[#allocation36_spill] sm:$0xff]  ;;  %v7357_v56 = vld [vmem:[#allocation35_spill] sm:$0xff] }
 0x1ca   : > { %v2060_v10 = vpop.f32.mrf.mxu0  ;;  %v6809_v6 = vpack.c.bf16 %v2258_v50, %v2257_v57  ;;  %v1309_v36 = vadd.f32 %v7355_v53, %v6760_v20  ;;  %v5845_v57 = vld [vmem:[#allocation8 + $0xb0] sm:$0xff]   ;;  %v1913_v20 = vadd.f32 %v6775_v3, %v1711_v34  ;;  %v1513_v3 = vadd.f32 %v7357_v56, %v1311_v27  ;;  %v5306_v50 = vpop.f32.mrf.mxu1 }
 0x1cb   : > { %2272 = vst [vmem:[#allocation2 + $0x28] sm:$0xff] %v2256_v51  ;;  %v2261_v31 = vmul.f32 %v2208_v25, %v2149_v1  ;;  %v2147_v37 = vmax.f32 %v2131_v54, 0.0  ;;  %v2134_v49 = vadd.f32 %v6751_v5, %v2111_v33  ;;  %v2109_v9 = vadd.f32 %v2060_v10, %v1907_v18  ;;  %v2233_v27 = vpop.permute.xlu1 %2232  ;;  %v2238_v39 = vpop.permute.xlu0 %2237  ;;  %v5846_v34 = vld [vmem:[#allocation8 + $0xf0] sm:$0xff]  }
 0x1cc   : > { %v5333_v0 = vpop.f32.mrf.mxu0  ;;  %v6818_v2 = vpack.c.bf16 %v2256_v51, %v2255_v35  ;;  %v1511_v30 = vadd.f32 %v7358_v43, %v1309_v36  ;;  %v1916_v11 = vadd.f32 %v5305_v4, %v1714_v28  ;;  %v1715_v7 = vadd.f32 %v6721_v12, %v1513_v3 }
 0x1cd   : > { %2277 = vst [vmem:[#allocation2 + $0x50] sm:$0xff] %v2261_v31  ;;  %v2259_v25 = vmul.f32 %v6746_v14, %v2147_v37  ;;  %v2150_v38 = vmax.f32 %v2134_v49, 0.0  ;;  %v2132_v45 = vadd.f32 %v6751_v5, %v2109_v9  ;;  %v2114_v32 = vadd.f32 %v5333_v0, %v1912_v21 }
 0x1ce   : > { %v2073_v19 = vpop.f32.mrf.mxu0  ;;  %5356 = vmatmul.mubr.bf16.vlgmr.msra.gmra.mxu1 %v6818_v2  ;;  %v1914_v48 = vadd.f32 %v1887_v47, %v1712_v13  ;;  %v2289_v54 = vld [vmem:[#allocation2 + $0x1f] sm:$0xff]  ;;  %v1713_v4 = vadd.f32 %v6737_v60, %v1511_v30  ;;  %v1917_v36 = vadd.f32 %v5306_v50, %v1715_v7  ;;  %v5853_v7 = vld [vmem:[#allocation8 + $0x90] sm:$0xff]  }
 0x1cf   : > { %2275 = vst [vmem:[#allocation2 + $0x40] sm:$0xff] %v2259_v25  ;;  %v2262_v35 = vmul.f32 %v2213_v26, %v2150_v38  ;;  %v2148_v23 = vmax.f32 %v2132_v45, 0.0  ;;  %v2137_v52 = vadd.f32 %v6751_v5, %v2114_v32  ;;  %v2112_v14 = vadd.f32 %v2073_v19, %v1910_v61  ;;  %5359 = vmatprep.mubr.bf16.mxu1 %v6809_v6  ;;  %v5849_v61 = vld [vmem:[#allocation8 + $0xa0] sm:$0xff]   ;;  %v2243_v38 = vpop.permute.xlu1 %2242  ;;  %v5848_v32 = vld [vmem:[#allocation8 + $0xe8] sm:$0xff]   ;;  %v2248_v19 = vpop.permute.xlu0 %2247 }
 0x1d0   : > { %5404 = vmatpush3.bf16.msra.mxu1 %v7356_v41  ;;  %v5334_v44 = vpop.f32.mrf.mxu0  ;;  %v2292_v33 = vld [vmem:[#allocation2 + $0x37] sm:$0xff] }
 0x1d1   : > { %5405 = vmatprep.subr.bf16.mxu1 %v5845_v57  ;;  %2278 = vst [vmem:[#allocation2 + $0x58] sm:$0xff] %v2262_v35  ;;  %v2260_v26 = vmul.f32 %v6772_v62, %v2148_v23  ;;  %v2153_v59 = vmax.f32 %v2137_v52, 0.0  ;;  %v2135_v46 = vadd.f32 %v6751_v5, %v2112_v14  ;;  %v2115_v63 = vadd.f32 %v5334_v44, %v1913_v20 }
 0x1d2   : > { %v2076_v18 = vpop.f32.mrf.mxu0  ;;  %v2290_v15 = vld [vmem:[#allocation2 + $0x27] sm:$0xff]  ;;  %v2291_v22 = vld [vmem:[#allocation2 + $0x2f] sm:$0xff]  ;;  %v6835_v40 = vpack.c.bf16 %v2262_v35, %v2261_v31  ;;  %v1890_v31 = vpop.f32.mrf.mxu1 }
 0x1d3   : > { %2276 = vst [vmem:[#allocation2 + $0x48] sm:$0xff] %v2260_v26  ;;  %v2265_v29 = vmul.f32 %v2228_v42, %v2153_v59  ;;  %v2151_v51 = vmax.f32 %v2135_v46, 0.0  ;;  %v2138_v1 = vadd.f32 %v6751_v5, %v2115_v63  ;;  %v2113_v62 = vadd.f32 %v2076_v18, %v1911_v58  ;;  %v5852_v18 = vld [vmem:[#allocation8 + $0xd8] sm:$0xff]  }
 0x1d4   : > { %5406 = vmatpush3.bf16.msra.mxu1 %v5845_v57  ;;  %v5337_v12 = vpop.f32.mrf.mxu0  ;;  %v6839_v16 = vpack.c.bf16 %v2290_v15, %v2289_v54  ;;  %v6841_v21 = vpack.c.bf16 %v2292_v33, %v2291_v22  ;;  %v6843_v10 = vpack.c.bf16 %v2260_v26, %v2259_v25  ;;  %v1915_v25 = vadd.f32 %v1890_v31, %v1713_v4  ;;  %v5851_v26 = vld [vmem:[#allocation8 + $0x98] sm:$0xff]   ;;  %v5857_v31 = vld [vmem:[#allocation8 + $0x80] sm:$0xff]  }
 0x1d5   : > { %5407 = vmatprep.subr.bf16.mxu1 %v5847_v24  ;;  %2281 = vst [vmem:[#allocation2 + $0x70] sm:$0xff] %v2265_v29  ;;  %v2263_v37 = vmul.f32 %v6802_v17, %v2151_v51  ;;  %v2154_v49 = vmax.f32 %v2138_v1, 0.0  ;;  %v2136_v9 = vadd.f32 %v6751_v5, %v2113_v62  ;;  %v2118_v53 = vadd.f32 %v5337_v12, %v1916_v11  ;;  %v7359_v17 = vld [vmem:[#allocation14_spill] sm:$0xff]  ;;  %v2253_v11 = vpop.permute.xlu1 %2252  ;;  %v2658_v4 = vld [vmem:[#allocation2 + $0x11] sm:$0xff] }
 0x1d6   : > { %5388 = vmatmul.mubr.bf16.vlgmr.msra.gmra.mxu0 %v6839_v16  ;;  %v2089_v60 = vpop.f32.mrf.mxu0  ;;  %5360 = vmatmul.mubr.bf16.gmra.mxu1 %v6843_v10  ;;  %v5855_v12 = vld [vmem:[#allocation8 + $0x88] sm:$0xff]  }
 0x1d7   : > { %2279 = vst [vmem:[#allocation2 + $0x60] sm:$0xff] %v2263_v37  ;;  %v2266_v8 = vmul.f32 %v2233_v27, %v2154_v49  ;;  %v2152_v0 = vmax.f32 %v2136_v9, 0.0  ;;  %v2141_v57 = vadd.f32 %v6751_v5, %v2118_v53  ;;  %v2116_v47 = vadd.f32 %v2089_v60, %v1914_v48  ;;  %5391 = vmatprep.mubr.bf16.mxu0 %v6841_v21  ;;  %v5856_v49 = vld [vmem:[#allocation8 + $0xc8] sm:$0xff]  }
 0x1d8   : > { %5436 = vmatpush3.bf16.msra.mxu0 %v7359_v17  ;;  %v5338_v45 = vpop.f32.mrf.mxu0  ;;  %5363 = vmatprep.mubr.bf16.mxu1 %v6835_v40  ;;  %v2296_v30 = vld [vmem:[#allocation2 + $0x57] sm:$0xff] }
 0x1d9   : > { %5437 = vmatprep.subr.bf16.mxu0 %v5846_v34  ;;  %2282 = vst [vmem:[#allocation2 + $0x78] sm:$0xff] %v2266_v8  ;;  %v2264_v20 = vmul.f32 %v6816_v55, %v2152_v0  ;;  %v2157_v28 = vmax.f32 %v2141_v57, 0.0  ;;  %v2139_v13 = vadd.f32 %v6751_v5, %v2116_v47  ;;  %v2119_v42 = vadd.f32 %v5338_v45, %v1917_v36  ;;  %v2293_v55 = vld [vmem:[#allocation2 + $0x3f] sm:$0xff]  ;;  %v2662_v17 = vld [vmem:[#allocation2 + $0x31] sm:$0xff] }
 0x1da   : > { %5408 = vmatpush3.bf16.msra.mxu1 %v5847_v24  ;;  %v2092_v35 = vpop.f32.mrf.mxu0  ;;  %v2294_v23 = vld [vmem:[#allocation2 + $0x47] sm:$0xff]  ;;  %v2295_v52 = vld [vmem:[#allocation2 + $0x4f] sm:$0xff]  ;;  %v6855_v14 = vpack.c.bf16 %v2266_v8, %v2265_v29  ;;  %v5859_v36 = vld [vmem:[#allocation8 + $0x138] sm:$0xff]  }
 0x1db   : > { %5409 = vmatprep.subr.bf16.mxu1 %v5849_v61  ;;  %2280 = vst [vmem:[#allocation2 + $0x68] sm:$0xff] %v2264_v20  ;;  %v6857_v41 = vmul.f32 %v2248_v19, %v2157_v28  ;;  %v2155_v56 = vmax.f32 %v2139_v13, 0.0  ;;  %v2142_v3 = vadd.f32 %v6751_v5, %v2119_v42  ;;  %v2117_v43 = vadd.f32 %v2092_v35, %v1915_v25  ;;  %v5850_v24 = vld [vmem:[#allocation8 + $0xe0] sm:$0xff]   ;;  %v2661_v8 = vld [vmem:[#allocation2 + $0x29] sm:$0xff]  ;;  %v5860_v45 = vld [vmem:[#allocation8 + $0x178] sm:$0xff]  }
 0x1dc   : > { %5438 = vmatpush3.bf16.msra.mxu0 %v5846_v34  ;;  %v6860_v58 = vpack.c.bf16 %v2294_v23, %v2293_v55  ;;  %v6862_v44 = vpack.c.bf16 %v2296_v30, %v2295_v52  ;;  %v6864_v50 = vpack.c.bf16 %v2264_v20, %v2263_v37  ;;  %v2659_v34 = vld [vmem:[#allocation2 + $0x19] sm:$0xff]  ;;  %v5861_v25 = vld [vmem:[#allocation8 + $0x130] sm:$0xff]   ;;  %v2664_v20 = vld [vmem:[#allocation2 + $0x41] sm:$0xff] }
 0x1dd   : > { %5439 = vmatprep.subr.bf16.mxu0 %v5848_v32  ;;  %2285 = vst [vmem:[#allocation2 + $0x90] sm:$0xff] %v6857_v41  ;;  %v2267_v59 = vmul.f32 %v2238_v39, %v2155_v56  ;;  %v2158_v46 = vmax.f32 %v2142_v3, 0.0  ;;  %v2140_v63 = vadd.f32 %v6751_v5, %v2117_v43  ;;  %v5854_v39 = vld [vmem:[#allocation8 + $0xd0] sm:$0xff]   ;;  %v2674_v37 = vpack.c.bf16 %v2659_v34, %v2658_v4  ;;  %v5858_v0 = vld [vmem:[#allocation8 + $0xc0] sm:$0xff]   ;;  %v5864_v52 = vld [vmem:[#allocation8 + $0x168] sm:$0xff]  }
 0x1de   : > { %5410 = vmatpush3.bf16.msra.mxu1 %v5849_v61  ;;  %5392 = vmatmul.mubr.bf16.gmra.mxu0 %v6860_v58  ;;  %v2297_v15 = vld [vmem:[#allocation2 + $0x5f] sm:$0xff]  ;;  %v2665_v28 = vld [vmem:[#allocation2 + $0x49] sm:$0xff]  ;;  %v2666_v19 = vld [vmem:[#allocation2 + $0x51] sm:$0xff] }
 0x1df   : > { %5364 = vmatmul.mubr.bf16.gmra.mxu1 %v6864_v50  ;;  %2283 = vst [vmem:[#allocation2 + $0x80] sm:$0xff] %v2267_v59  ;;  %v6870_v48 = vmul.f32 %v2253_v11, %v2158_v46  ;;  %v2156_v27 = vmax.f32 %v2140_v63, 0.0  ;;  %5395 = vmatprep.mubr.bf16.mxu0 %v6862_v44  ;;  %v2660_v61 = vld [vmem:[#allocation2 + $0x21] sm:$0xff]  ;;  %v2663_v57 = vld [vmem:[#allocation2 + $0x39] sm:$0xff]  ;;  %v5862_v13 = vld [vmem:[#allocation8 + $0x170] sm:$0xff]  }
 0x1e0   : > { %5440 = vmatpush3.bf16.msra.mxu0 %v5848_v32  ;;  %5411 = vmatprep.subr.bf16.mxu1 %v5851_v26  ;;  %v2300_v1 = vld [vmem:[#allocation2 + $0x77] sm:$0xff]  ;;  %v6889_v47 = vpack.c.bf16 %v2661_v8, %v2660_v61  ;;  %v5863_v32 = vld [vmem:[#allocation8 + $0x128] sm:$0xff]   ;;  %v5865_v35 = vld [vmem:[#allocation8 + $0x120] sm:$0xff]  }
 0x1e1   : > { %5441 = vmatprep.subr.bf16.mxu0 %v5850_v24  ;;  %2286 = vst [vmem:[#allocation2 + $0x98] sm:$0xff] %v6870_v48  ;;  %v2268_v5 = vmul.f32 %v2243_v38, %v2156_v27  ;;  %5367 = vmatprep.mubr.bf16.mxu1 %v6855_v14  ;;  %v3085_v22 = vpack.c.bf16 %v6870_v48, %v6857_v41  ;;  %v2667_v42 = vld [vmem:[#allocation2 + $0x59] sm:$0xff]  ;;  %v5871_v11 = vld [vmem:[#allocation8 + $0x108] sm:$0xff]   ;;  %v5877_v34 = vld [vmem:[#allocation8 + $0x1b0] sm:$0xff]  }
 0x1e2   : > { %5412 = vmatpush3.bf16.msra.mxu1 %v5851_v26  ;;  %v2298_v29 = vld [vmem:[#allocation2 + $0x67] sm:$0xff]  ;;  %v2299_v51 = vld [vmem:[#allocation2 + $0x6f] sm:$0xff]  ;;  %v6892_v38 = vpack.c.bf16 %v2663_v57, %v2662_v17  ;;  %v6900_v23 = vpack.c.bf16 %v2667_v42, %v2666_v19  ;;  %v5867_v56 = vld [vmem:[#allocation8 + $0x118] sm:$0xff]  }
 0x1e3   : > { %5413 = vmatprep.subr.bf16.mxu1 %v5853_v7  ;;  %2284 = vst [vmem:[#allocation2 + $0x88] sm:$0xff] %v2268_v5  ;;  %v6877_v62 = vpack.c.bf16 %v2298_v29, %v2297_v15  ;;  %v6879_v54 = vpack.c.bf16 %v2300_v1, %v2299_v51  ;;  %v6881_v33 = vpack.c.bf16 %v2268_v5, %v2267_v59  ;;  %v2668_v3 = vld [vmem:[#allocation2 + $0x61] sm:$0xff]  ;;  %v2669_v43 = vld [vmem:[#allocation2 + $0x69] sm:$0xff]  ;;  %v2670_v26 = vld [vmem:[#allocation2 + $0x71] sm:$0xff] }
 0x1e4   : > { %5442 = vmatpush3.bf16.msra.mxu0 %v5850_v24  ;;  %v5866_v55 = vld [vmem:[#allocation8 + $0x160] sm:$0xff]   ;;  %v6905_v24 = vpack.c.bf16 %v2669_v43, %v2668_v3  ;;  %v5869_v59 = vld [vmem:[#allocation8 + $0x110] sm:$0xff]   ;;  %v5868_v63 = vld [vmem:[#allocation8 + $0x158] sm:$0xff]  }
 0x1e5   : > { %5443 = vmatprep.subr.bf16.mxu0 %v5852_v18  ;;  %v5873_v15 = vld [vmem:[#allocation8 + $0x100] sm:$0xff]   ;;  %v5872_v29 = vld [vmem:[#allocation8 + $0x148] sm:$0xff]   ;;  %v5875_v1 = vld [vmem:[#allocation8 + $0x1b8] sm:$0xff]  }
 0x1e6   : > { %5414 = vmatpush3.bf16.msra.mxu1 %v5853_v7  ;;  %5396 = vmatmul.mubr.bf16.gmra.mxu0 %v6877_v62  ;;  %v2301_v9 = vld [vmem:[#allocation2 + $0x7f] sm:$0xff]  ;;  %v5893_v41 = vld [vmem:[#allocation8 + $0x230] sm:$0xff]  }
 0x1e7   : > { %5368 = vmatmul.mubr.bf16.gmra.mxu1 %v6881_v33  ;;  %5399 = vmatprep.mubr.bf16.mxu0 %v6879_v54  ;;  %v2671_v30 = vld [vmem:[#allocation2 + $0x79] sm:$0xff]  ;;  %v3672_v19 = vld [vmem:[#allocation2 + $0x50] sm:$0xff] }
 0x1e8   : > { %5444 = vmatpush3.bf16.msra.mxu0 %v5852_v18  ;;  %5415 = vmatprep.subr.bf16.mxu1 %v5855_v12  ;;  %v6908_v46 = vpack.c.bf16 %v2671_v30, %v2670_v26  ;;  %v5870_v18 = vld [vmem:[#allocation8 + $0x150] sm:$0xff]   ;;  %v5889_v61 = vld [vmem:[#allocation8 + $0x180] sm:$0xff]   ;;  %v3669_v57 = vld [vmem:[#allocation2 + $0x38] sm:$0xff] }
 0x1e9   : > { %5445 = vmatprep.subr.bf16.mxu0 %v5854_v39  ;;  %5419 = vmatprep.mubr.bf16.mxu1 %v2674_v37  ;;  %v2875_v4 = vld [vmem:[#allocation2 + $0x97] sm:$0xff] }
 0x1ea   : > { %5416 = vmatpush3.bf16.msra.mxu1 %v5855_v12  ;;  %v2302_v53 = vld [vmem:[#allocation2 + $0x87] sm:$0xff]  ;;  %v2874_v51 = vld [vmem:[#allocation2 + $0x8f] sm:$0xff]  ;;  %v3677_v3 = vld [vmem:[#allocation2 + $0x78] sm:$0xff] }
 0x1eb   : > { %5417 = vmatprep.subr.bf16.mxu1 %v5857_v31  ;;  %v6886_v60 = vpack.c.bf16 %v2302_v53, %v2301_v9  ;;  %v2672_v7 = vld [vmem:[#allocation2 + $0x81] sm:$0xff]  ;;  %v2673_v27 = vld [vmem:[#allocation2 + $0x89] sm:$0xff]  ;;  %v3278_v8 = vld [vmem:[#allocation2 + $0x91] sm:$0xff] }
 0x1ec   : > { %5446 = vmatpush3.bf16.msra.mxu0 %v5854_v39  ;;  %v6913_v5 = vpack.c.bf16 %v2673_v27, %v2672_v7  ;;  %v6918_v39 = vpack.c.bf16 %v2875_v4, %v2874_v51  ;;  %v5874_v12 = vld [vmem:[#allocation8 + $0x140] sm:$0xff]   ;;  %v5878_v37 = vld [vmem:[#allocation8 + $0x1f0] sm:$0xff]   ;;  %v5899_v43 = vld [vmem:[#allocation8 + $0x218] sm:$0xff]  }
 0x1ed   : > { %5447 = vmatprep.subr.bf16.mxu0 %v5856_v49  ;;  %v5882_v9 = vld [vmem:[#allocation8 + $0x1e0] sm:$0xff]   ;;  %v5885_v53 = vld [vmem:[#allocation8 + $0x190] sm:$0xff]   ;;  %v5903_v7 = vld [vmem:[#allocation8 + $0x208] sm:$0xff]  }
 0x1ee   : > { %5418 = vmatpush3.bf16.msra.mxu1 %v5857_v31  ;;  %5400 = vmatmul.mubr.bf16.gmra.mxu0 %v6886_v60  ;;  %v5879_v31 = vld [vmem:[#allocation8 + $0x1a8] sm:$0xff]   ;;  %v3676_v26 = vld [vmem:[#allocation2 + $0x70] sm:$0xff]  ;;  %v3480_v27 = vld [vmem:[#allocation2 + $0x9f] sm:$0xff] }
 0x1ef   : > { %5467 = vmatprep.subr.bf16.mxu1 %v5859_v36  ;;  %5451 = vmatprep.mubr.bf16.mxu0 %v6839_v16  ;;  %v6897_v16 = vpack.c.bf16 %v2665_v28, %v2664_v20  ;;  %v3673_v20 = vld [vmem:[#allocation2 + $0x58] sm:$0xff]  ;;  %v5895_v28 = vld [vmem:[#allocation8 + $0x228] sm:$0xff]   ;;  %v5905_v51 = vld [vmem:[#allocation8 + $0x200] sm:$0xff]  }
 0x1f0   : > { %5448 = vmatpush3.bf16.msra.mxu0 %v5856_v49  ;;  %v5881_v49 = vld [vmem:[#allocation8 + $0x1a0] sm:$0xff]  }
 0x1f1   : > { %5449 = vmatprep.subr.bf16.mxu0 %v5858_v0  ;;  %5420 = vmatmul.mubr.bf16.vlgmr.msra.gmra.mxu1 %v6889_v47  ;;  %v4072_v4 = vld [vmem:[%s6242_s13 + $0x1e0] sm:$0xff] }
 0x1f2   : > { %5423 = vmatprep.mubr.bf16.mxu1 %v6892_v38  ;;  %5468 = vmatpush3.bf16.msra.mxu1 %v5859_v36  ;;  %v5886_v36 = vld [vmem:[#allocation8 + $0x1d0] sm:$0xff]  }
 0x1f3   : > { %5469 = vmatprep.subr.bf16.mxu1 %v5861_v25 }
 0x1f4   : > { %5450 = vmatpush3.bf16.msra.mxu0 %v5858_v0  ;;  %v3279_v0 = vld [vmem:[#allocation2 + $0x99] sm:$0xff] }
 0x1f5   : > { %5499 = vmatprep.subr.bf16.mxu0 %v5860_v45  ;;  %v6938_v17 = vpack.c.bf16 %v3279_v0, %v3278_v8 }
 0x1f6   : > { %5470 = vmatpush3.bf16.msra.mxu1 %v5861_v25  ;;  %v3668_v25 = vld [vmem:[#allocation2 + $0x30] sm:$0xff] }
 0x1f7   : > { %5452 = vmatmul.mubr.bf16.vlgmr.msra.gmra.mxu0 %v6841_v21  ;;  %5471 = vmatprep.subr.bf16.mxu1 %v5863_v32 }
 0x1f8   : > { %5455 = vmatprep.mubr.bf16.mxu0 %v6860_v58  ;;  %5500 = vmatpush3.bf16.msra.mxu0 %v5860_v45  ;;  %v5890_v45 = vld [vmem:[#allocation8 + $0x1c0] sm:$0xff]  }
 0x1f9   : > { %5501 = vmatprep.subr.bf16.mxu0 %v5862_v13  ;;  %5424 = vmatmul.mubr.bf16.gmra.mxu1 %v6897_v16 }
 0x1fa   : > { %5427 = vmatprep.mubr.bf16.mxu1 %v6900_v23  ;;  %5472 = vmatpush3.bf16.msra.mxu1 %v5863_v32  ;;  %v3684_v32 = vpack.c.bf16 %v3669_v57, %v3668_v25  ;;  %v4086_v57 = vld [vmem:[%s6242_s13 + $0x250] sm:$0xff] }
 0x1fb   : > { %5473 = vmatprep.subr.bf16.mxu1 %v5865_v35 }
 0x1fc   : > { %5502 = vmatpush3.bf16.msra.mxu0 %v5862_v13  ;;  %v3670_v13 = vld [vmem:[#allocation2 + $0x40] sm:$0xff] }
 0x1fd   : > { %5503 = vmatprep.subr.bf16.mxu0 %v5864_v52 }
 0x1fe   : > { %5474 = vmatpush3.bf16.msra.mxu1 %v5865_v35  ;;  %v3686_v35 = vpack.c.bf16 %v3673_v20, %v3672_v19 }
 0x1ff   : > { %5456 = vmatmul.mubr.bf16.gmra.mxu0 %v6862_v44  ;;  %5475 = vmatprep.subr.bf16.mxu1 %v5867_v56 }
 0x200   : > { %5459 = vmatprep.mubr.bf16.mxu0 %v6877_v62  ;;  %5504 = vmatpush3.bf16.msra.mxu0 %v5864_v52  ;;  %v6960_v52 = vld [vmem:[%s7264_s3 + $0x28] sm:$0xff]  }
 0x201   : > { %5505 = vmatprep.subr.bf16.mxu0 %v5866_v55  ;;  %5428 = vmatmul.mubr.bf16.gmra.mxu1 %v6905_v24 }
 0x202   : > { %5431 = vmatprep.mubr.bf16.mxu1 %v6908_v46  ;;  %5476 = vmatpush3.bf16.msra.mxu1 %v5867_v56  ;;  %v3675_v56 = vld [vmem:[#allocation2 + $0x68] sm:$0xff] }
 0x203   : > { %5477 = vmatprep.subr.bf16.mxu1 %v5869_v59 }
 0x204   : > { %5506 = vmatpush3.bf16.msra.mxu0 %v5866_v55  ;;  %v3674_v55 = vld [vmem:[#allocation2 + $0x60] sm:$0xff] }
 0x205   : > { %5507 = vmatprep.subr.bf16.mxu0 %v5868_v63  ;;  %v3687_v30 = vpack.c.bf16 %v3675_v56, %v3674_v55 }
 0x206   : > { %5478 = vmatpush3.bf16.msra.mxu1 %v5869_v59  ;;  %v3688_v59 = vpack.c.bf16 %v3677_v3, %v3676_v26 }
 0x207   : > { %5460 = vmatmul.mubr.bf16.gmra.mxu0 %v6879_v54  ;;  %5479 = vmatprep.subr.bf16.mxu1 %v5871_v11 }
 0x208   : > { %5463 = vmatprep.mubr.bf16.mxu0 %v6886_v60  ;;  %5508 = vmatpush3.bf16.msra.mxu0 %v5868_v63  ;;  %v6976_v63 = vld [vmem:[%s7264_s3 + $0x18] sm:$0xff]  }
 0x209   : > { %5509 = vmatprep.subr.bf16.mxu0 %v5870_v18  ;;  %5432 = vmatmul.mubr.bf16.gmra.mxu1 %v6913_v5 }
 0x20a   : > { %5480 = vmatpush3.bf16.msra.mxu1 %v5871_v11  ;;  %5483 = vmatprep.mubr.bf16.mxu1 %v6818_v2  ;;  %v5876_v2 = vld [vmem:[#allocation8 + $0x1f8] sm:$0xff]   ;;  %v3680_v11 = vld [vmem:[#allocation2 + $0x90] sm:$0xff] }
 0x20b   : > { %5481 = vmatprep.subr.bf16.mxu1 %v5873_v15 }
 0x20c   : > { %5510 = vmatpush3.bf16.msra.mxu0 %v5870_v18  ;;  %v3481_v18 = vld [vmem:[#allocation2 + $0xa7] sm:$0xff] }
 0x20d   : > { %5511 = vmatprep.subr.bf16.mxu0 %v5872_v29 }
 0x20e   : > { %5482 = vmatpush3.bf16.msra.mxu1 %v5873_v15  ;;  %v3690_v15 = vpack.c.bf16 %v6870_v48, %v3680_v11  ;;  %v5907_v48 = vld [vmem:[#allocation2] sm:$0xff] }
 0x20f   : > { %5464 = vmatmul.mubr.bf16.gmra.mxu0 %v6918_v39  ;;  %5531 = vmatprep.subr.bf16.mxu1 %v5875_v1 }
 0x210   : > { %5512 = vmatpush3.bf16.msra.mxu0 %v5872_v29  ;;  %5515 = vmatprep.mubr.bf16.mxu0 %v6889_v47  ;;  %v5891_v47 = vld [vmem:[#allocation8 + $0x238] sm:$0xff]   ;;  %v3489_v29 = vpack.c.bf16 %v3481_v18, %v3480_v27 }
 0x211   : > { %5513 = vmatprep.subr.bf16.mxu0 %v5874_v12  ;;  %5484 = vmatmul.mubr.bf16.vlgmr.msra.gmra.mxu1 %v6809_v6  ;;  %v5880_v6 = vld [vmem:[#allocation8 + $0x1e8] sm:$0xff]  }
 0x212   : > { %5487 = vmatprep.mubr.bf16.mxu1 %v6843_v10  ;;  %5532 = vmatpush3.bf16.msra.mxu1 %v5875_v1  ;;  %v5883_v10 = vld [vmem:[#allocation8 + $0x198] sm:$0xff]   ;;  %v5904_v1 = vld [vmem:[%s7264_s3 + $0x8] sm:$0xff]  }
 0x213   : > { %5533 = vmatprep.subr.bf16.mxu1 %v5877_v34 }
 0x214   : > { %5514 = vmatpush3.bf16.msra.mxu0 %v5874_v12 }
 0x215   : > { %5563 = vmatprep.subr.bf16.mxu0 %v5876_v2 }
 0x216   : > { %5534 = vmatpush3.bf16.msra.mxu1 %v5877_v34  ;;  %v5906_v34 = vld [vmem:[%s7264_s3] sm:$0xff]  }
 0x217   : > { %5516 = vmatmul.mubr.bf16.vlgmr.msra.gmra.mxu0 %v6892_v38  ;;  %5535 = vmatprep.subr.bf16.mxu1 %v5879_v31 }
 0x218   : > { %5519 = vmatprep.mubr.bf16.mxu0 %v6897_v16  ;;  %5564 = vmatpush3.bf16.msra.mxu0 %v5876_v2  ;;  %v4075_v2 = vld [vmem:[%s6242_s13 + $0x1f8] sm:$0xff] }
 0x219   : > { %5565 = vmatprep.subr.bf16.mxu0 %v5878_v37  ;;  %5488 = vmatmul.mubr.bf16.gmra.mxu1 %v6835_v40  ;;  %v5884_v40 = vld [vmem:[#allocation8 + $0x1d8] sm:$0xff]  }
 0x21a   : > { %5491 = vmatprep.mubr.bf16.mxu1 %v6864_v50  ;;  %5536 = vmatpush3.bf16.msra.mxu1 %v5879_v31  ;;  %v5887_v50 = vld [vmem:[#allocation8 + $0x188] sm:$0xff]   ;;  %v4076_v31 = vld [vmem:[%s6242_s13 + $0x200] sm:$0xff] }
 0x21b   : > { %5537 = vmatprep.subr.bf16.mxu1 %v5881_v49 }
 0x21c   : > { %5566 = vmatpush3.bf16.msra.mxu0 %v5878_v37  ;;  %v4077_v37 = vld [vmem:[%s6242_s13 + $0x208] sm:$0xff] }
 0x21d   : > { %5567 = vmatprep.subr.bf16.mxu0 %v5880_v6 }
 0x21e   : > { %5538 = vmatpush3.bf16.msra.mxu1 %v5881_v49 }
 0x21f   : > { %5520 = vmatmul.mubr.bf16.gmra.mxu0 %v6900_v23  ;;  %5539 = vmatprep.subr.bf16.mxu1 %v5883_v10 }
 0x220   : > { %5523 = vmatprep.mubr.bf16.mxu0 %v6905_v24  ;;  %5568 = vmatpush3.bf16.msra.mxu0 %v5880_v6  ;;  %v4090_v6 = vpack.c.bf16 %v4077_v37, %v4076_v31 }
 0x221   : > { %5569 = vmatprep.subr.bf16.mxu0 %v5882_v9  ;;  %5492 = vmatmul.mubr.bf16.gmra.mxu1 %v6855_v14  ;;  %v5888_v14 = vld [vmem:[#allocation8 + $0x1c8] sm:$0xff]  }
 0x222   : > { %5495 = vmatprep.mubr.bf16.mxu1 %v6881_v33  ;;  %5540 = vmatpush3.bf16.msra.mxu1 %v5883_v10  ;;  %v4078_v10 = vld [vmem:[%s6242_s13 + $0x210] sm:$0xff] }
 0x223   : > { %5541 = vmatprep.subr.bf16.mxu1 %v5885_v53 }
 0x224   : > { %5570 = vmatpush3.bf16.msra.mxu0 %v5882_v9  ;;  %v4080_v9 = vld [vmem:[%s6242_s13 + $0x220] sm:$0xff] }
 0x225   : > { %5571 = vmatprep.subr.bf16.mxu0 %v5884_v40 }
 0x226   : > { %5542 = vmatpush3.bf16.msra.mxu1 %v5885_v53  ;;  %v4081_v53 = vld [vmem:[%s6242_s13 + $0x228] sm:$0xff] }
 0x227   : > { %5524 = vmatmul.mubr.bf16.gmra.mxu0 %v6908_v46  ;;  %5543 = vmatprep.subr.bf16.mxu1 %v5887_v50 }
 0x228   : > { %5527 = vmatprep.mubr.bf16.mxu0 %v6913_v5  ;;  %5572 = vmatpush3.bf16.msra.mxu0 %v5884_v40 }
 0x229   : > { %5573 = vmatprep.subr.bf16.mxu0 %v5886_v36  ;;  %5496 = vmatmul.mubr.bf16.gmra.mxu1 %v3085_v22  ;;  %v3671_v22 = vld [vmem:[#allocation2 + $0x48] sm:$0xff] }
 0x22a   : > { %5544 = vmatpush3.bf16.msra.mxu1 %v5887_v50  ;;  %5547 = vmatprep.mubr.bf16.mxu1 %v6841_v21  ;;  %v6945_v21 = vld [vmem:[%s7264_s3 + $0x38] sm:$0xff]   ;;  %v3685_v42 = vpack.c.bf16 %v3671_v22, %v3670_v13  ;;  %v4092_v50 = vpack.c.bf16 %v4081_v53, %v4080_v9 }
 0x22b   : > { %5545 = vmatprep.subr.bf16.mxu1 %v5889_v61 }
 0x22c   : > { %5574 = vmatpush3.bf16.msra.mxu0 %v5886_v36  ;;  %v4083_v36 = vld [vmem:[%s6242_s13 + $0x238] sm:$0xff] }
 0x22d   : > { %5575 = vmatprep.subr.bf16.mxu0 %v5888_v14 }
 0x22e   : > { %5546 = vmatpush3.bf16.msra.mxu1 %v5889_v61  ;;  %v4084_v61 = vld [vmem:[%s6242_s13 + $0x240] sm:$0xff] }
 0x22f   : > { %5528 = vmatmul.mubr.bf16.gmra.mxu0 %v6938_v17  ;;  %5595 = vmatprep.subr.bf16.mxu1 %v5891_v47 }
 0x230   : > { %5576 = vmatpush3.bf16.msra.mxu0 %v5888_v14  ;;  %5579 = vmatprep.mubr.bf16.mxu0 %v3684_v32  ;;  %v4085_v14 = vld [vmem:[%s6242_s13 + $0x248] sm:$0xff] }
 0x231   : > { %5577 = vmatprep.subr.bf16.mxu0 %v5890_v45  ;;  %5548 = vmatmul.mubr.bf16.vlgmr.msra.gmra.mxu1 %v6860_v58  ;;  %v6952_v58 = vld [vmem:[%s7264_s3 + $0x30] sm:$0xff]   ;;  %v4094_v0 = vpack.c.bf16 %v4085_v14, %v4084_v61 }
 0x232   : > { %5551 = vmatprep.mubr.bf16.mxu1 %v6862_v44  ;;  %5596 = vmatpush3.bf16.msra.mxu1 %v5891_v47  ;;  %v5897_v44 = vld [vmem:[#allocation8 + $0x220] sm:$0xff]   ;;  %v4087_v47 = vld [vmem:[%s6242_s13 + $0x258] sm:$0xff] }
 0x233   : > { %5597 = vmatprep.subr.bf16.mxu1 %v5893_v41 }
 0x234   : > { %5578 = vmatpush3.bf16.msra.mxu0 %v5890_v45 }
 0x235   : > { %5627 = vmatprep.subr.bf16.mxu0 %v6945_v21 }
 0x236   : > { %5598 = vmatpush3.bf16.msra.mxu1 %v5893_v41 }
 0x237   : > { %5580 = vmatmul.mubr.bf16.vlgmr.msra.gmra.mxu0 %v3685_v42  ;;  %5599 = vmatprep.subr.bf16.mxu1 %v5895_v28 }
 0x238   : > { %5583 = vmatprep.mubr.bf16.mxu0 %v3686_v35  ;;  %5628 = vmatpush3.bf16.msra.mxu0 %v6945_v21 }
 0x239   : > { %5629 = vmatprep.subr.bf16.mxu0 %v6952_v58  ;;  %5552 = vmatmul.mubr.bf16.gmra.mxu1 %v6877_v62  ;;  %v6968_v62 = vld [vmem:[%s7264_s3 + $0x20] sm:$0xff]  }
 0x23a   : > { %5555 = vmatprep.mubr.bf16.mxu1 %v6879_v54  ;;  %5600 = vmatpush3.bf16.msra.mxu1 %v5895_v28  ;;  %v5901_v54 = vld [vmem:[#allocation8 + $0x210] sm:$0xff]  }
 0x23b   : > { %5601 = vmatprep.subr.bf16.mxu1 %v5897_v44 }
 0x23c   : > { %5630 = vmatpush3.bf16.msra.mxu0 %v6952_v58 }
 0x23d   : > { %5631 = vmatprep.subr.bf16.mxu0 %v6960_v52 }
 0x23e   : > { %5602 = vmatpush3.bf16.msra.mxu1 %v5897_v44 }
 0x23f   : > { %5584 = vmatmul.mubr.bf16.gmra.mxu0 %v3687_v30  ;;  %5603 = vmatprep.subr.bf16.mxu1 %v5899_v43 }
 0x240   : > { %5587 = vmatprep.mubr.bf16.mxu0 %v3688_v59  ;;  %5632 = vmatpush3.bf16.msra.mxu0 %v6960_v52 }
 0x241   : > { %5633 = vmatprep.subr.bf16.mxu0 %v6968_v62  ;;  %5556 = vmatmul.mubr.bf16.gmra.mxu1 %v6886_v60  ;;  %v6984_v60 = vld [vmem:[%s7264_s3 + $0x10] sm:$0xff]  }
 0x242   : > { %5559 = vmatprep.mubr.bf16.mxu1 %v6918_v39  ;;  %5604 = vmatpush3.bf16.msra.mxu1 %v5899_v43  ;;  %v4073_v39 = vld [vmem:[%s6242_s13 + $0x1e8] sm:$0xff] }
 0x243   : > { %5605 = vmatprep.subr.bf16.mxu1 %v5901_v54  ;;  %v4088_v12 = vpack.c.bf16 %v4073_v39, %v4072_v4 }
 0x244   : > { %5634 = vmatpush3.bf16.msra.mxu0 %v6968_v62 }
 0x245   : > { %5635 = vmatprep.subr.bf16.mxu0 %v6976_v63 }
 0x246   : > { %5606 = vmatpush3.bf16.msra.mxu1 %v5901_v54 }
 0x247   : > { %5588 = vmatmul.mubr.bf16.gmra.mxu0 %v6881_v33  ;;  %5607 = vmatprep.subr.bf16.mxu1 %v5903_v7  ;;  %v3691_v33 = vpack.c.bf16 %v5907_v48, %v5907_v48 }
 0x248   : > { %5591 = vmatprep.mubr.bf16.mxu0 %v3690_v15  ;;  %5636 = vmatpush3.bf16.msra.mxu0 %v6976_v63 }
 0x249   : > { %5637 = vmatprep.subr.bf16.mxu0 %v6984_v60  ;;  %5560 = vmatmul.mubr.bf16.gmra.mxu1 %v3489_v29 }
 0x24a   : > { %5608 = vmatpush3.bf16.msra.mxu1 %v5903_v7  ;;  %5611 = vmatprep.mubr.bf16.mxu1 %v6892_v38  ;;  %v4074_v38 = vld [vmem:[%s6242_s13 + $0x1f0] sm:$0xff] }
 0x24b   : > { %5609 = vmatprep.subr.bf16.mxu1 %v5905_v51  ;;  %v4089_v49 = vpack.c.bf16 %v4075_v2, %v4074_v38 }
 0x24c   : > { %5638 = vmatpush3.bf16.msra.mxu0 %v6984_v60 }
 0x24d   : > { %5639 = vmatprep.subr.bf16.mxu0 %v5904_v1 }
 0x24e   : > { %5610 = vmatpush3.bf16.msra.mxu1 %v5905_v51 }
 0x24f   : > { %5592 = vmatmul.mubr.bf16.gmra.mxu0 %v3691_v33  ;;  %5659 = vmatprep.subr.bf16.mxu1 %v6945_v21 }
 0x250   : > { %5640 = vmatpush3.bf16.msra.mxu0 %v5904_v1  ;;  %5643 = vmatprep.mubr.bf16.mxu0 %v4088_v12 }
 0x251   : > { %5641 = vmatprep.subr.bf16.mxu0 %v5906_v34  ;;  %5612 = vmatmul.mubr.bf16.vlgmr.msra.gmra.mxu1 %v6897_v16  ;;  %v4079_v16 = vld [vmem:[%s6242_s13 + $0x218] sm:$0xff] }
 0x252   : > { %5615 = vmatprep.mubr.bf16.mxu1 %v6900_v23  ;;  %5667 = vmatpush3.bf16.msra.mxu1 %v6945_v21  ;;  %v4091_v23 = vpack.c.bf16 %v4079_v16, %v4078_v10 }
 0x253   : > { %5660 = vmatprep.subr.bf16.mxu1 %v6952_v58 }
 0x254   : > { %5642 = vmatpush3.bf16.msra.mxu0 %v5906_v34 }
 0x256   : > { %5668 = vmatpush3.bf16.msra.mxu1 %v6952_v58 }
 0x257   : > { %5644 = vmatmul.mubr.bf16.vlgmr.msra.gmra.mxu0 %v4089_v49  ;;  %5661 = vmatprep.subr.bf16.mxu1 %v6960_v52 }
 0x258   : > { %5647 = vmatprep.mubr.bf16.mxu0 %v4090_v6 }
 0x259   : > { %5616 = vmatmul.mubr.bf16.gmra.mxu1 %v6905_v24  ;;  %v3884_v24 = vld [vmem:[#allocation2 + $0xa1] sm:$0xff] }
 0x25a   : > { %5619 = vmatprep.mubr.bf16.mxu1 %v6908_v46  ;;  %5669 = vmatpush3.bf16.msra.mxu1 %v6960_v52  ;;  %v3885_v46 = vld [vmem:[#allocation2 + $0xa9] sm:$0xff] }
 0x25b   : > { %5662 = vmatprep.subr.bf16.mxu1 %v6968_v62  ;;  %v3893_v40 = vpack.c.bf16 %v3885_v46, %v3884_v24 }
 0x25e   : > { %5670 = vmatpush3.bf16.msra.mxu1 %v6968_v62 }
 0x25f   : > { %5648 = vmatmul.mubr.bf16.gmra.mxu0 %v4091_v23  ;;  %5663 = vmatprep.subr.bf16.mxu1 %v6976_v63 }
 0x261   : > { %5620 = vmatmul.mubr.bf16.gmra.mxu1 %v6913_v5  ;;  %v4082_v5 = vld [vmem:[%s6242_s13 + $0x230] sm:$0xff] }
 0x262   : > { %5623 = vmatprep.mubr.bf16.mxu1 %v6938_v17  ;;  %5671 = vmatpush3.bf16.msra.mxu1 %v6976_v63  ;;  %v4093_v8 = vpack.c.bf16 %v4083_v36, %v4082_v5  ;;  %v4095_v17 = vpack.c.bf16 %v4087_v47, %v4086_v57 }
 0x263   : > { %5664 = vmatprep.subr.bf16.mxu1 %v6984_v60 }
 0x266   : > { %5672 = vmatpush3.bf16.msra.mxu1 %v6984_v60 }
 0x267   : > { %5665 = vmatprep.subr.bf16.mxu1 %v5904_v1 }
 0x269   : > { %5624 = vmatmul.mubr.bf16.gmra.mxu1 %v3893_v40 }
 0x26a   : > { %5673 = vmatpush3.bf16.msra.mxu1 %v5904_v1  ;;  %5651 = vmatprep.mubr.bf16.mxu1 %v4092_v50 }
 0x26b   : > { %5666 = vmatprep.subr.bf16.mxu1 %v5906_v34 }
 0x26e   : > { %5674 = vmatpush3.bf16.msra.mxu1 %v5906_v34 }
 0x271   : > { %5652 = vmatmul.mubr.bf16.vlgmr.msra.gmra.mxu1 %v4093_v8 }
 0x272   : > { %5655 = vmatprep.mubr.bf16.mxu1 %v4094_v0 }
 0x279   : > { %5656 = vmatmul.mubr.bf16.gmra.mxu1 %v4095_v17 }
 0x28e   : > { %v5357_v25 = vpop.f32.mrf.mxu1 }
 0x290   : > { %v2450_v45 = vpop.f32.mrf.mxu1 }
 0x292   : > { %v5358_v32 = vpop.f32.mrf.mxu1 }
 0x294   : > { %v2453_v41 = vpop.f32.mrf.mxu1 }
 0x296   : > { %v5389_v21 = vpop.f32.mrf.mxu0  ;;  %v5361_v22 = vpop.f32.mrf.mxu1 }
 0x297   : > { %v2604_v20 = vadd.f32 %v5389_v21, %v5357_v25 }
 0x298   : > { %v2595_v28 = vpop.f32.mrf.mxu0  ;;  %v2466_v13 = vpop.f32.mrf.mxu1 }
 0x299   : > { %v2596_v42 = vadd.f32 %v2595_v28, %v2450_v45 }
 0x29a   : > { %v5390_v19 = vpop.f32.mrf.mxu0  ;;  %v5362_v58 = vpop.f32.mrf.mxu1 }
 0x29b   : > { %v2607_v35 = vadd.f32 %v5390_v19, %v5358_v32 }
 0x29c   : > { %v2598_v44 = vpop.f32.mrf.mxu0  ;;  %v2469_v52 = vpop.f32.mrf.mxu1 }
 0x29d   : > { %v2599_v56 = vadd.f32 %v2598_v44, %v2453_v41 }
 0x29e   : > { %v5393_v3 = vpop.f32.mrf.mxu0 }
 0x29f   : > { %v5365_v43 = vpop.f32.mrf.mxu1  ;;  %v2620_v55 = vadd.f32 %v5393_v3, %v5361_v22 }
 0x2a0   : > { %v2611_v30 = vpop.f32.mrf.mxu0 }
 0x2a1   : > { %v2482_v26 = vpop.f32.mrf.mxu1  ;;  %v2612_v62 = vadd.f32 %v2611_v30, %v2466_v13 }
 0x2a2   : > { %v5394_v59 = vpop.f32.mrf.mxu0 }
 0x2a3   : > { %v5366_v54 = vpop.f32.mrf.mxu1  ;;  %v2623_v63 = vadd.f32 %v5394_v59, %v5362_v58 }
 0x2a4   : > { %v2614_v11 = vpop.f32.mrf.mxu0 }
 0x2a5   : > { %v2485_v7 = vpop.f32.mrf.mxu1  ;;  %v2615_v27 = vadd.f32 %v2614_v11, %v2469_v52 }
 0x2a6   : > { %v5397_v18 = vpop.f32.mrf.mxu0 }
 0x2a7   : > { %v5369_v60 = vpop.f32.mrf.mxu1  ;;  %v2636_v15 = vadd.f32 %v5397_v18, %v5365_v43 }
 0x2a8   : > { %v2627_v29 = vpop.f32.mrf.mxu0 }
 0x2a9   : > { %v2498_v51 = vpop.f32.mrf.mxu1  ;;  %v2628_v1 = vadd.f32 %v2627_v29, %v2482_v26 }
 0x2aa   : > { %v5398_v4 = vpop.f32.mrf.mxu0 }
 0x2ab   : > { %v5370_v39 = vpop.f32.mrf.mxu1  ;;  %v2639_v48 = vadd.f32 %v5398_v4, %v5366_v54 }
 0x2ac   : > { %v2630_v33 = vpop.f32.mrf.mxu0 }
 0x2ad   : > { %v2501_v12 = vpop.f32.mrf.mxu1  ;;  %v2631_v34 = vadd.f32 %v2630_v33, %v2485_v7 }
 0x2ae   : > { %v5401_v38 = vpop.f32.mrf.mxu0 }
 0x2af   : > { %v2652_v2 = vadd.f32 %v5401_v38, %v5369_v60 }
 0x2b0   : > { %v2643_v31 = vpop.f32.mrf.mxu0 }
 0x2b1   : > { %v5421_v37 = vpop.f32.mrf.mxu1  ;;  %v2644_v49 = vadd.f32 %v2643_v31, %v2498_v51 }
 0x2b2   : > { %v2846_v6 = vadd.f32 %v5421_v37, %v2604_v20  ;;  %v5402_v10 = vpop.f32.mrf.mxu0 }
 0x2b3   : > { %v2781_v16 = vpop.f32.mrf.mxu1  ;;  %v2655_v23 = vadd.f32 %v5402_v10, %v5370_v39 }
 0x2b4   : > { %v2844_v24 = vadd.f32 %v2781_v16, %v2596_v42  ;;  %v2646_v46 = vpop.f32.mrf.mxu0 }
 0x2b5   : > { %v5422_v9 = vpop.f32.mrf.mxu1  ;;  %v2647_v53 = vadd.f32 %v2646_v46, %v2501_v12 }
 0x2b6   : > { %v2847_v40 = vadd.f32 %v5422_v9, %v2607_v35 }
 0x2b7   : > { %v5453_v50 = vpop.f32.mrf.mxu0  ;;  %v2784_v5 = vpop.f32.mrf.mxu1 }
 0x2b8   : > { %v3048_v36 = vadd.f32 %v5453_v50, %v2846_v6  ;;  %v2845_v61 = vadd.f32 %v2784_v5, %v2599_v56 }
 0x2b9   : > { %v2983_v14 = vpop.f32.mrf.mxu0  ;;  %v5425_v8 = vpop.f32.mrf.mxu1 }
 0x2ba   : > { %v3046_v0 = vadd.f32 %v2983_v14, %v2844_v24  ;;  %v2850_v57 = vadd.f32 %v5425_v8, %v2620_v55 }
 0x2bb   : > { %v5454_v47 = vpop.f32.mrf.mxu0  ;;  %v2797_v17 = vpop.f32.mrf.mxu1 }
 0x2bc   : > { %v7032_v25 = vadd.f32 %v5454_v47, %v2847_v40  ;;  %v2848_v45 = vadd.f32 %v2797_v17, %v2612_v62 }
 0x2bd   : > { %v2986_v32 = vpop.f32.mrf.mxu0  ;;  %v5426_v41 = vpop.f32.mrf.mxu1 }
 0x2be   : > { %v7034_v21 = vadd.f32 %v2986_v32, %v2845_v61  ;;  %v2851_v22 = vadd.f32 %v5426_v41, %v2623_v63 }
 0x2bf   : > { %v5457_v20 = vpop.f32.mrf.mxu0  ;;  %v2800_v28 = vpop.f32.mrf.mxu1 }
 0x2c0   : > { %v3052_v13 = vadd.f32 %v5457_v20, %v2850_v57  ;;  %v2849_v42 = vadd.f32 %v2800_v28, %v2615_v27 }
 0x2c1   : > { %v2999_v19 = vpop.f32.mrf.mxu0  ;;  %v5429_v58 = vpop.f32.mrf.mxu1 }
 0x2c2   : > { %v3050_v35 = vadd.f32 %v2999_v19, %v2848_v45  ;;  %v2854_v44 = vadd.f32 %v5429_v58, %v2636_v15 }
 0x2c3   : > { %v5458_v52 = vpop.f32.mrf.mxu0  ;;  %v2813_v56 = vpop.f32.mrf.mxu1 }
 0x2c4   : > { %v7036_v3 = vadd.f32 %v5458_v52, %v2851_v22  ;;  %v2852_v43 = vadd.f32 %v2813_v56, %v2628_v1 }
 0x2c5   : > { %v3002_v55 = vpop.f32.mrf.mxu0  ;;  %v5430_v30 = vpop.f32.mrf.mxu1 }
 0x2c6   : > { %v7038_v26 = vadd.f32 %v3002_v55, %v2849_v42  ;;  %v2855_v62 = vadd.f32 %v5430_v30, %v2639_v48 }
 0x2c7   : > { %v5461_v59 = vpop.f32.mrf.mxu0  ;;  %v2816_v54 = vpop.f32.mrf.mxu1 }
 0x2c8   : > { %v3056_v63 = vadd.f32 %v5461_v59, %v2854_v44  ;;  %v2853_v11 = vadd.f32 %v2816_v54, %v2631_v34 }
 0x2c9   : > { %v3015_v7 = vpop.f32.mrf.mxu0  ;;  %v5433_v27 = vpop.f32.mrf.mxu1 }
 0x2ca   : > { %v3054_v18 = vadd.f32 %v3015_v7, %v2852_v43  ;;  %v2858_v60 = vadd.f32 %v5433_v27, %v2652_v2 }
 0x2cb   : > { %v5462_v29 = vpop.f32.mrf.mxu0  ;;  %v2829_v15 = vpop.f32.mrf.mxu1 }
 0x2cc   : > { %v3057_v51 = vadd.f32 %v5462_v29, %v2855_v62  ;;  %v2856_v4 = vadd.f32 %v2829_v15, %v2644_v49 }
 0x2cd   : > { %v3018_v39 = vpop.f32.mrf.mxu0  ;;  %v5434_v33 = vpop.f32.mrf.mxu1 }
 0x2ce   : > { %v3055_v1 = vadd.f32 %v3018_v39, %v2853_v11  ;;  %v2859_v12 = vadd.f32 %v5434_v33, %v2655_v23 }
 0x2cf   : > { %v5465_v38 = vpop.f32.mrf.mxu0  ;;  %v2832_v31 = vpop.f32.mrf.mxu1 }
 0x2d0   : > { %v3060_v37 = vadd.f32 %v5465_v38, %v2858_v60  ;;  %v2857_v48 = vadd.f32 %v2832_v31, %v2647_v53 }
 0x2d1   : > { %v3031_v6 = vpop.f32.mrf.mxu0  ;;  %v5485_v10 = vpop.f32.mrf.mxu1 }
 0x2d2   : > { %v3058_v16 = vadd.f32 %v3031_v6, %v2856_v4  ;;  %v7040_v34 = vadd.f32 %v5485_v10, %v3048_v36 }
 0x2d3   : > { %v5466_v24 = vpop.f32.mrf.mxu0  ;;  %v3185_v46 = vpop.f32.mrf.mxu1 }
 0x2d4   : > { %v3061_v2 = vadd.f32 %v5466_v24, %v2859_v12  ;;  %v7042_v9 = vadd.f32 %v3185_v46, %v3046_v0 }
 0x2d5   : > { %v3034_v40 = vpop.f32.mrf.mxu0  ;;  %v7044_v49 = vpop.f32.mrf.mxu1 }
 0x2d6   : > { %v3059_v50 = vadd.f32 %v3034_v40, %v2857_v48 }
 0x2d7   : > { %v7046_v5 = vpop.f32.mrf.mxu0  ;;  %v7048_v23 = vpop.f32.mrf.mxu1 }
 0x2d9   : > { %v7050_v61 = vpop.f32.mrf.mxu0  ;;  %v5489_v53 = vpop.f32.mrf.mxu1 }
 0x2da   : > { %v7052_v14 = vadd.f32 %v5489_v53, %v3052_v13 }
 0x2db   : > { %v7054_v36 = vpop.f32.mrf.mxu0  ;;  %v3201_v8 = vpop.f32.mrf.mxu1 }
 0x2dc   : > { %v7056_v57 = vadd.f32 %v3201_v8, %v3050_v35 }
 0x2dd   : > { %v7058_v0 = vpop.f32.mrf.mxu0  ;;  %v7060_v47 = vpop.f32.mrf.mxu1 }
 0x2df   : > { %v7062_v17 = vpop.f32.mrf.mxu0  ;;  %v7064_v45 = vpop.f32.mrf.mxu1 }
 0x2e1   : > { %v7066_v32 = vpop.f32.mrf.mxu0  ;;  %v5493_v41 = vpop.f32.mrf.mxu1 }
 0x2e2   : > { %v3258_v22 = vadd.f32 %v5493_v41, %v3056_v63 }
 0x2e3   : > { %v7068_v20 = vpop.f32.mrf.mxu0  ;;  %v3217_v28 = vpop.f32.mrf.mxu1 }
 0x2e4   : > { %v3256_v13 = vadd.f32 %v3217_v28, %v3054_v18 }
 0x2e5   : > { %v7070_v42 = vpop.f32.mrf.mxu0  ;;  %v5494_v19 = vpop.f32.mrf.mxu1 }
 0x2e6   : > { %v3259_v58 = vadd.f32 %v5494_v19, %v3057_v51 }
 0x2e7   : > { %v5525_v35 = vpop.f32.mrf.mxu0  ;;  %v3220_v44 = vpop.f32.mrf.mxu1 }
 0x2e8   : > { %v7072_v52 = vadd.f32 %v5525_v35, %v3258_v22  ;;  %v3257_v56 = vadd.f32 %v3220_v44, %v3055_v1 }
 0x2e9   : > { %v3419_v43 = vpop.f32.mrf.mxu0  ;;  %v5497_v55 = vpop.f32.mrf.mxu1 }
 0x2ea   : > { %v7074_v30 = vadd.f32 %v3419_v43, %v3256_v13  ;;  %v3262_v62 = vadd.f32 %v5497_v55, %v3060_v37 }
 0x2eb   : > { %v5526_v59 = vpop.f32.mrf.mxu0  ;;  %v3233_v54 = vpop.f32.mrf.mxu1 }
 0x2ec   : > { %v7076_v63 = vadd.f32 %v5526_v59, %v3259_v58  ;;  %v3260_v11 = vadd.f32 %v3233_v54, %v3058_v16 }
 0x2ed   : > { %v3422_v7 = vpop.f32.mrf.mxu0  ;;  %v5498_v27 = vpop.f32.mrf.mxu1 }
 0x2ee   : > { %v7078_v18 = vadd.f32 %v3422_v7, %v3257_v56  ;;  %v3263_v60 = vadd.f32 %v5498_v27, %v3061_v2 }
 0x2ef   : > { %v5529_v29 = vpop.f32.mrf.mxu0  ;;  %v3236_v15 = vpop.f32.mrf.mxu1 }
 0x2f0   : > { %v7080_v51 = vadd.f32 %v5529_v29, %v3262_v62  ;;  %v3261_v4 = vadd.f32 %v3236_v15, %v3059_v50 }
 0x2f1   : > { %v3435_v39 = vpop.f32.mrf.mxu0  ;;  %v5549_v33 = vpop.f32.mrf.mxu1 }
 0x2f2   : > { %v7082_v1 = vadd.f32 %v3435_v39, %v3260_v11  ;;  %v3251_v39 = vadd.f32 %v7044_v49, %v7032_v25  ;;  %v3456_v25 = vadd.f32 %v7062_v17, %v7052_v14 }
 0x2f3   : > { %v5530_v12 = vpop.f32.mrf.mxu0  ;;  %v3589_v38 = vpop.f32.mrf.mxu1 }
 0x2f4   : > { %v7084_v31 = vadd.f32 %v5530_v12, %v3263_v60  ;;  %v3452_v60 = vadd.f32 %v7046_v5, %v7040_v34 }
 0x2f5   : > { %v3438_v37 = vpop.f32.mrf.mxu0  ;;  %v5550_v48 = vpop.f32.mrf.mxu1 }
 0x2f6   : > { %7360 = vst [vmem:[#allocation20_spill] sm:$0xff] %v7084_v31  ;;  %v7086_v6 = vadd.f32 %v3438_v37, %v3261_v4  ;;  %v3450_v4 = vadd.f32 %v7050_v61, %v7042_v9  ;;  %v3654_v12 = vadd.f32 %v5549_v33, %v3452_v60 }
 0x2f7   : > { %v5581_v10 = vpop.f32.mrf.mxu0  ;;  %v3592_v16 = vpop.f32.mrf.mxu1 }
 0x2f8   : > { %7361 = vst [vmem:[#allocation22_spill] sm:$0xff] %v7086_v6  ;;  %v3856_v31 = vadd.f32 %v5581_v10, %v3654_v12  ;;  %v3652_v34 = vadd.f32 %v3589_v38, %v3450_v4 }
 0x2f9   : > { %v3791_v24 = vpop.f32.mrf.mxu0  ;;  %v5553_v46 = vpop.f32.mrf.mxu1 }
 0x2fa   : > { %v3854_v9 = vadd.f32 %v3791_v24, %v3652_v34  ;;  %v3658_v17 = vadd.f32 %v5553_v46, %v3456_v25 }
 0x2fb   : > { %v5582_v2 = vpop.f32.mrf.mxu0  ;;  %v3605_v40 = vpop.f32.mrf.mxu1 }
 0x2fd   : > { %v3794_v53 = vpop.f32.mrf.mxu0  ;;  %v7088_v50 = vpop.f32.mrf.mxu1 }
 0x2ff   : > { %v5585_v8 = vpop.f32.mrf.mxu0  ;;  %v7090_v41 = vpop.f32.mrf.mxu1 }
 0x301   : > { %v7092_v22 = vpop.f32.mrf.mxu0  ;;  %v7094_v28 = vpop.f32.mrf.mxu1 }
 0x303   : > { %v7096_v13 = vpop.f32.mrf.mxu0  ;;  %v7098_v19 = vpop.f32.mrf.mxu1 }
 0x305   : > { %v7100_v58 = vpop.f32.mrf.mxu0  ;;  %v7102_v35 = vpop.f32.mrf.mxu1 }
 0x307   : > { %v7104_v44 = vpop.f32.mrf.mxu0  ;;  %v7106_v56 = vpop.f32.mrf.mxu1 }
 0x309   : > { %v7108_v43 = vpop.f32.mrf.mxu0  ;;  %v7110_v55 = vpop.f32.mrf.mxu1 }
 0x30b   : > { %v7112_v62 = vpop.f32.mrf.mxu0  ;;  %v7114_v59 = vpop.f32.mrf.mxu1 }
 0x30c   : > { %7362 = vst [vmem:[#allocation15_spill] sm:$0xff] %v7114_v59 }
 0x30d   : > { %v7116_v54 = vpop.f32.mrf.mxu0  ;;  %v7118_v11 = vpop.f32.mrf.mxu1 }
 0x30e   : > { %7363 = vst [vmem:[#allocation16_spill] sm:$0xff] %v7118_v11  ;;  %v3453_v11 = vadd.f32 %v7054_v36, %v3251_v39 }
 0x30f   : > { %v7120_v7 = vpop.f32.mrf.mxu0  ;;  %v7122_v27 = vpop.f32.mrf.mxu1 }
 0x310   : > { %7364 = vst [vmem:[#allocation38_spill] sm:$0xff] %v7120_v7  ;;  %7365 = vst [vmem:[#allocation17_spill] sm:$0xff] %v7122_v27  ;;  %v3249_v27 = vadd.f32 %v7048_v23, %v7034_v21  ;;  %v3655_v61 = vadd.f32 %v5550_v48, %v3453_v11  ;;  %v7145_v21 = vld [vmem:[%s7266_s5] ss:$0 sm:$0xff]  ;;  %v3454_v23 = vadd.f32 %v7066_v32, %v7056_v57 }
 0x311   : > { %v7126_v29 = vpop.f32.mrf.mxu0  ;;  %v5613_v15 = vpop.f32.mrf.mxu1  ;;  %v3860_v57 = vadd.f32 %v5585_v8, %v3658_v17 }
 0x312   : > { %7366 = vst [vmem:[#allocation18_spill] sm:$0xff] %v7126_v29  ;;  %v3451_v7 = vadd.f32 %v7058_v0, %v3249_v27  ;;  %v4058_v59 = vadd.f32 %v5613_v15, %v3856_v31  ;;  %v3857_v60 = vadd.f32 %v5582_v2, %v3655_v61  ;;  %v3255_v0 = vadd.f32 %v7060_v47, %v7036_v3 }
 0x313   : > { %v7132_v37 = vpop.f32.mrf.mxu0  ;;  %v3993_v6 = vpop.f32.mrf.mxu1  ;;  %v3656_v32 = vadd.f32 %v3605_v40, %v3454_v23 }
 0x314   : > { %7367 = vst [vmem:[#allocation24_spill] sm:$0xff] %v7132_v37  ;;  %v3653_v36 = vadd.f32 %v3592_v16, %v3451_v7  ;;  %v4056_v39 = vadd.f32 %v3993_v6, %v3854_v9  ;;  %v3457_v6 = vadd.f32 %v7068_v20, %v3255_v0  ;;  %v3253_v16 = vadd.f32 %v7064_v45, %v7038_v26 }
 0x315   : > { %v7137_v5 = vpop.f32.mrf.mxu0  ;;  %v5614_v29 = vpop.f32.mrf.mxu1  ;;  %v3858_v20 = vadd.f32 %v7092_v22, %v3656_v32 }
 0x316   : > { %v3855_v14 = vadd.f32 %v3794_v53, %v3653_v36  ;;  %v4059_v48 = vadd.f32 %v5614_v29, %v3857_v60  ;;  %v3455_v47 = vadd.f32 %v7070_v42, %v3253_v16  ;;  %v3659_v46 = vadd.f32 %v7088_v50, %v3457_v6 }
 0x317   : > { %v5645_v49 = vpop.f32.mrf.mxu0  ;;  %v3996_v33 = vpop.f32.mrf.mxu1 }
 0x318   : > { %v4259_v37 = vadd.f32 %v5645_v49, %v4058_v59  ;;  %v4057_v11 = vadd.f32 %v3996_v33, %v3855_v14  ;;  %v3861_v8 = vadd.f32 %v7096_v13, %v3659_v46  ;;  %v3657_v40 = vadd.f32 %v7090_v41, %v3455_v47 }
 0x319   : > { %v4194_v38 = vpop.f32.mrf.mxu0  ;;  %v5617_v31 = vpop.f32.mrf.mxu1 }
 0x31a   : > { %v4257_v10 = vadd.f32 %v4194_v38, %v4056_v39  ;;  %v4282_v24 = vadd.f32 %v7145_v21, %v4259_v37  ;;  %v4062_v45 = vadd.f32 %v5617_v31, %v3860_v57  ;;  %v3859_v9 = vadd.f32 %v7100_v58, %v3657_v40 }
 0x31b   : > { %v5646_v2 = vpop.f32.mrf.mxu0  ;;  %v4009_v59 = vpop.f32.mrf.mxu1 }
 0x31c   : > { %v4260_v3 = vadd.f32 %v5646_v2, %v4059_v48  ;;  %v4280_v53 = vadd.f32 %v7145_v21, %v4257_v10  ;;  %v4298_v15 = vmax.f32 %v4282_v24, 0.0  ;;  %v4060_v37 = vadd.f32 %v4009_v59, %v3858_v20 }
 0x31d   : > { %v4197_v7 = vpop.f32.mrf.mxu0  ;;  %v5618_v27 = vpop.f32.mrf.mxu1 }
 0x31e   : > { %v4283_v26 = vadd.f32 %v7145_v21, %v4260_v3  ;;  %v4258_v29 = vadd.f32 %v4197_v7, %v4057_v11  ;;  %v4296_v22 = vmax.f32 %v4280_v53, 0.0  ;;  %v4063_v60 = vadd.f32 %v5618_v27, %v3861_v8 }
 0x31f   : > { %v5649_v4 = vpop.f32.mrf.mxu0  ;;  %v4012_v42 = vpop.f32.mrf.mxu1  ;;  %v3662_v3 = vadd.f32 %v7094_v28, %v7072_v52  ;;  %v3660_v7 = vadd.f32 %v7098_v19, %v7074_v30  ;;  %v3661_v52 = vadd.f32 %v7106_v56, %v7078_v18  ;;  %v3666_v30 = vadd.f32 %v7110_v55, %v7080_v51  ;;  %v7370_v56 = vld [vmem:[#allocation20_spill] sm:$0xff] }
 0x320   : > { %v4299_v12 = vmax.f32 %v4283_v26, 0.0  ;;  %v4281_v50 = vadd.f32 %v7145_v21, %v4258_v29  ;;  %v4263_v34 = vadd.f32 %v5649_v4, %v4062_v45  ;;  %v4061_v0 = vadd.f32 %v4012_v42, %v3859_v9  ;;  %v7368_v4 = vld [vmem:[#allocation15_spill] sm:$0xff]  ;;  %v7369_v42 = vld [vmem:[#allocation38_spill] sm:$0xff] }
 0x321   : > { %v4210_v61 = vpop.f32.mrf.mxu0  ;;  %v5621_v25 = vpop.f32.mrf.mxu1  ;;  %v3864_v53 = vadd.f32 %v7104_v44, %v3662_v3  ;;  %v3862_v20 = vadd.f32 %v7108_v43, %v3660_v7  ;;  %v3663_v26 = vadd.f32 %v7102_v35, %v7076_v63  ;;  %v3664_v63 = vadd.f32 %v7368_v4, %v7082_v1  ;;  %v7372_v9 = vld [vmem:[#allocation18_spill] sm:$0xff] }
 0x322   : > { %v4708_v49 = vpack.c.bf16 %v4299_v12, %v4298_v15  ;;  %v4297_v33 = vmax.f32 %v4281_v50, 0.0  ;;  %v4261_v36 = vadd.f32 %v4210_v61, %v4060_v37  ;;  %v4286_v23 = vadd.f32 %v7145_v21, %v4263_v34  ;;  %v7371_v37 = vld [vmem:[#allocation16_spill] sm:$0xff]  ;;  %v7373_v1 = vld [vmem:[#allocation22_spill] sm:$0xff] }
 0x323   : > { %v5650_v13 = vpop.f32.mrf.mxu0  ;;  %v4025_v39 = vpop.f32.mrf.mxu1  ;;  %v4066_v45 = vadd.f32 %v5621_v25, %v3864_v53  ;;  %v3865_v8 = vadd.f32 %v7112_v62, %v3663_v26  ;;  %v3863_v15 = vadd.f32 %v7116_v54, %v3661_v52  ;;  %v3868_v12 = vadd.f32 %v7369_v42, %v3666_v30 }
 0x324   : > { %4740 = vst [vmem:[%s7165_s30 + $0x8] sm:$0xff] %v4708_v49   ;;  %v4703_v41 = vpack.c.bf16 %v4297_v33, %v4296_v22  ;;  %v4264_v38 = vadd.f32 %v5650_v13, %v4063_v60  ;;  %v4284_v14 = vadd.f32 %v7145_v21, %v4261_v36  ;;  %v4302_v6 = vmax.f32 %v4286_v23, 0.0  ;;  %v7374_v49 = vld [vmem:[#allocation17_spill] sm:$0xff]  ;;  %v7375_v60 = vld [vmem:[#allocation24_spill] sm:$0xff] }
 0x325   : > { %v4213_v58 = vpop.f32.mrf.mxu0  ;;  %v5622_v31 = vpop.f32.mrf.mxu1  ;;  %v4064_v28 = vadd.f32 %v4025_v39, %v3862_v20  ;;  %v3667_v34 = vadd.f32 %v7371_v37, %v7370_v56  ;;  %v3866_v54 = vadd.f32 %v7372_v9, %v3664_v63  ;;  %v3665_v33 = vadd.f32 %v7374_v49, %v7373_v1 }
 0x326   : > { %4704 = vst [vmem:[%s7165_s30] sm:$0xff] %v4703_v41   ;;  %v4287_v17 = vadd.f32 %v7145_v21, %v4264_v38  ;;  %v4262_v48 = vadd.f32 %v4213_v58, %v4061_v0  ;;  %v4300_v59 = vmax.f32 %v4284_v14, 0.0  ;;  %v4067_v19 = vadd.f32 %v5622_v31, %v3865_v8 }
 0x327   : > { %v4028_v10 = vpop.f32.mrf.mxu1  ;;  %v3869_v36 = vadd.f32 %v7375_v60, %v3667_v34  ;;  %v3867_v58 = vadd.f32 %v7137_v5, %v3665_v33 }
 0x328   : > { %v4303_v16 = vmax.f32 %v4287_v17, 0.0  ;;  %v4285_v24 = vadd.f32 %v7145_v21, %v4262_v48  ;;  %v4065_v62 = vadd.f32 %v4028_v10, %v3863_v15 }
 0x329   : > { %v5625_v2 = vpop.f32.mrf.mxu1 }
 0x32a   : > { %v4718_v57 = vpack.c.bf16 %v4303_v16, %v4302_v6  ;;  %v4301_v32 = vmax.f32 %v4285_v24, 0.0  ;;  %v4070_v61 = vadd.f32 %v5625_v2, %v3868_v12 }
 0x32b   : > { %v4041_v11 = vpop.f32.mrf.mxu1 }
 0x32c   : > { %4742 = vst [vmem:[%s7165_s30 + $0x18] sm:$0xff] %v4718_v57   ;;  %v4713_v47 = vpack.c.bf16 %v4301_v32, %v4300_v59  ;;  %v4068_v13 = vadd.f32 %v4041_v11, %v3866_v54 }
 0x32d   : > { %v5626_v46 = vpop.f32.mrf.mxu1 }
 0x32e   : > { %4741 = vst [vmem:[%s7165_s30 + $0x10] sm:$0xff] %v4713_v47   ;;  %v4071_v31 = vadd.f32 %v5626_v46, %v3869_v36 }
 0x32f   : > { %v4044_v27 = vpop.f32.mrf.mxu1 }
 0x330   : > { %v4069_v24 = vadd.f32 %v4044_v27, %v3867_v58 }
 0x331   : > { %v5653_v29 = vpop.f32.mrf.mxu1 }
 0x332   : > { %v4267_v40 = vadd.f32 %v5653_v29, %v4066_v45 }
 0x333   : > { %v4226_v44 = vpop.f32.mrf.mxu1 }
 0x334   : > { %v4265_v43 = vadd.f32 %v4226_v44, %v4064_v28  ;;  %v4290_v50 = vadd.f32 %v7145_v21, %v4267_v40 }
 0x335   : > { %v5654_v35 = vpop.f32.mrf.mxu1 }
 0x336   : > { %v4268_v18 = vadd.f32 %v5654_v35, %v4067_v19  ;;  %v4288_v51 = vadd.f32 %v7145_v21, %v4265_v43  ;;  %v4306_v41 = vmax.f32 %v4290_v50, 0.0 }
 0x337   : > { %v4229_v22 = vpop.f32.mrf.mxu1 }
 0x338   : > { %v4291_v55 = vadd.f32 %v7145_v21, %v4268_v18  ;;  %v4266_v25 = vadd.f32 %v4229_v22, %v4065_v62  ;;  %v4304_v17 = vmax.f32 %v4288_v51, 0.0 }
 0x339   : > { %v5657_v39 = vpop.f32.mrf.mxu1 }
 0x33a   : > { %v4307_v23 = vmax.f32 %v4291_v55, 0.0  ;;  %v4289_v0 = vadd.f32 %v7145_v21, %v4266_v25  ;;  %v4271_v38 = vadd.f32 %v5657_v39, %v4070_v61 }
 0x33b   : > { %v4242_v14 = vpop.f32.mrf.mxu1 }
 0x33c   : > { %v4728_v48 = vpack.c.bf16 %v4307_v23, %v4306_v41  ;;  %v4305_v10 = vmax.f32 %v4289_v0, 0.0  ;;  %v4269_v6 = vadd.f32 %v4242_v14, %v4068_v13  ;;  %v4294_v59 = vadd.f32 %v7145_v21, %v4271_v38 }
 0x33d   : > { %v5658_v16 = vpop.f32.mrf.mxu1 }
 0x33e   : > { %4744 = vst [vmem:[%s7165_s30 + $0x28] sm:$0xff] %v4728_v48   ;;  %v4723_v2 = vpack.c.bf16 %v4305_v10, %v4304_v17  ;;  %v4272_v57 = vadd.f32 %v5658_v16, %v4071_v31  ;;  %v4292_v5 = vadd.f32 %v7145_v21, %v4269_v6  ;;  %v4310_v47 = vmax.f32 %v4294_v59, 0.0 }
 0x33f   : > { %v4245_v32 = vpop.f32.mrf.mxu1 }
 0x340   : > { %4743 = vst [vmem:[%s7165_s30 + $0x20] sm:$0xff] %v4723_v2   ;;  %v4295_v11 = vadd.f32 %v7145_v21, %v4272_v57  ;;  %v4270_v3 = vadd.f32 %v4245_v32, %v4069_v24  ;;  %v4308_v7 = vmax.f32 %v4292_v5, 0.0 }
 0x342   : > { %v4311_v46 = vmax.f32 %v4295_v11, 0.0  ;;  %v4293_v53 = vadd.f32 %v7145_v21, %v4270_v3 }
 0x344   : > { %v4738_v27 = vpack.c.bf16 %v4311_v46, %v4310_v47  ;;  %v4309_v20 = vmax.f32 %v4293_v53, 0.0 }
 0x346   : > { %4746 = vst [vmem:[%s7165_s30 + $0x38] sm:$0xff] %v4738_v27   ;;  %v4733_v26 = vpack.c.bf16 %v4309_v20, %v4308_v7 }
 0x348   : > { %4745 = vst [vmem:[%s7165_s30 + $0x30] sm:$0xff] %v4733_v26  }
 0x349   : > { %6001 = shalt.err (!%p5998_p9)
}
 0x34a   : > { %s6002_s29 = scalar_lea.hbm %s7214_s22, 1024  ;;  %s6006_s18 = scalar_lea.hbm %s7268_s7, 2048 }
 0x34b   : > { %p6003_p13 = scmp.ne.s32.totalorder %s7214_s22, %s6002_s29  ;;  %p6007_p4 = scmp.lt.s32.totalorder %s7214_s22, %s7268_s7 }
 0x34c   : > { %p6008_p8 = scmp.lt.s32.totalorder %s6006_s18, %s6002_s29 }
 0x34d   : > { %p6004_p5 = pnand %p6003_p13, %p7376_p10 }
 0x34e   : > { %p6009_p3 = por %p6008_p8, %p6007_p4 }
 0x34f   : > { %p6005_p0 = pneg %p6004_p5 }
 0x351   : > { %p6010_p11 = pnand %p6009_p3, %p6005_p0 }
 0x353   : > { %6013 = shalt.err (!%p6010_p11)
}
 0x354   : > { %s6069_s19 = smov 64   ;;  %s6070_s21 = smov 4  }
 0x355   : > { %5688 = dma.vmem_to_hbm [thread:$0]  (%p7376_p10), %s7216_s16, 1024, %s7214_s22, %s4393_s15, %s6069_s19, %s6069_s19, %s6070_s21  }
 0x356 PF: > { %s4421_s20 = sand.u32 1, %s6044_s24   ;;  %p7377_p1 = scmp.ne.s32.totalorder %s7277_s8, 0 }
 0x357   : > { %p7378_p2 = scmp.ge.s32.totalorder %s6056_s27, 2  ;;  %s4422_s28 = scalar_lea.sflag [#allocation5], %s4421_s20 }
 0x359   : > { %p5702_p6 = pnand %p7378_p2, %p7377_p1 }
 0x35b   : > { %p5703_p12 = pneg %p5702_p6 }
 0x35d   : > { %6039 = dma.done.wait (%p5703_p12), %s4422_s28, 1024  }
 0x35e   : > { %6041 = vsyncadd (%p5703_p12), %s4422_s28, 4294966272  ;;  %p21_p7 = scmp.ge.s32.totalorder %s6183_s23, 4   ;;  %s7379_s24 = smov %s6048_s25 }
 0x35f   : > { %s7380_s25 = smov %s6052_s26  ;;  %s7381_s26 = smov %s6199_s12 }
 0x360   : > { %s7382_s27 = smov %s6183_s23  ;;  %23 = sbr.rel (!%p21_p7) target bundleno = 8 (0x8), region = 117 }
 0x365   :  { %4427 = vsyncpa [#allocation4], 1 }
 0x366   :  { %4429 = vsyncpa [#allocation4 + $0x1], 1 }
 0x367   :  { %4430 = vsyncpa [#allocation7], 1 }
 0x368   :  { %4431 = vsyncpa [#allocation5], 1 }
 0x369   :  { %4433 = vsyncpa [#allocation5 + $0x1], 1 }

</bundles_post_ra>
